<compile_context>
chip_gen: v5e
topology: v5e:2x2
jax: 0.10.0
libtpu: 0.0.40
codegen_flags: <defaults>
</compile_context>

<pallas_src>
import math

import jax
import jax.numpy as jnp
from jax.experimental import pallas as pl
from jax.experimental.pallas import tpu as pltpu

# ---- logical (module) sizes -------------------------------------------------
D_WORD = 620      # skip-thoughts word embedding width
D_S2V = 2400      # skip-thoughts sentence vector width (uni-skip)
D_EMB = 512       # opt['embed']['embed_dim']
GPO_PE = 32       # GPO(32, 32)
GPO_HID = 32
GPO_TEMP = 0.1    # softmax temperature used by GPO

# ---- TPU-padded sizes / tiling ---------------------------------------------
D_WORD_PAD = 640          # 5 * 128 lanes (zero-padded)
D_S2V_PAD = 2560          # 20 * 128 lanes (zero-padded)
B_PAD = 8                 # full sublane group -> unmasked stores
TK = 1280                 # K-block over the 2560-wide seq2vec/to_out stage
NK = D_S2V_PAD // TK      # grid length (reduction axis, "arbitrary")


# ----------------------------------------------------------------------------
# Fused, K-blocked Pallas kernel:
#   per grid step k: h_blk = tanh(x @ W_s2v[:, kblk] + b_s2v[kblk])
#                    acc  += h_blk @ W_out[kblk, :]
#   last step:       v = acc + b_out ; mlp ; GPO(max/min weighted) ; tanh
# ----------------------------------------------------------------------------
def _fused_text_embed_kernel(x_ref, ws2v_ref, bs2v_ref, wo_ref, bo_ref,
                             w1_ref, b1_ref, w2_ref, b2_ref, gpo_w_ref,
                             out_ref, acc_ref):
    k = pl.program_id(0)

    @pl.when(k == 0)
    def _():
        acc_ref[...] = jnp.zeros_like(acc_ref)

    # seq2vec output stage (stand-in for the skip-thoughts GRU final state)
    x = x_ref[...]                                               # [B, 640] bf16
    h = jnp.tanh(
        jnp.dot(x, ws2v_ref[...], preferred_element_type=jnp.float32)
        + bs2v_ref[...])                                         # [B, TK] f32

    # partial to_out: Linear(2400 -> 512), accumulated over K blocks
    acc_ref[...] += jnp.dot(h.astype(jnp.bfloat16), wo_ref[...],
                            preferred_element_type=jnp.float32)  # [B, 512] f32

    @pl.when(k == pl.num_programs(0) - 1)
    def _():
        v = acc_ref[...] + bo_ref[...]                           # [B, 512] f32

        # mlp: Linear(512,512)+ReLU, Linear(512,512)+ReLU
        m = jnp.maximum(
            jnp.dot(v.astype(jnp.bfloat16), w1_ref[...],
                    preferred_element_type=jnp.float32) + b1_ref[...], 0.0)
        m = jnp.maximum(
            jnp.dot(m.astype(jnp.bfloat16), w2_ref[...],
                    preferred_element_type=jnp.float32) + b2_ref[...], 0.0)

        # GPO over the K=2 "sequence" [v, m]:
        #   sort descending along K == elementwise (max, min)
        #   weighted sum with learned pool weights (softmax(GRU(PE)), cached)
        w_hi = gpo_w_ref[0]
        w_lo = gpo_w_ref[1]
        hi = jnp.maximum(v, m)
        lo = jnp.minimum(v, m)
        out_ref[...] = jnp.tanh(w_hi * hi + w_lo * lo)


# ----------------------------------------------------------------------------
# GPO pool-weight network (input-independent: PE -> biGRU -> Linear -> softmax)
# Tiny (K=2, hidden=32): computed ONCE at parameter-build time (hoisted out of
# the forward hot path) and fed to the kernel as two SMEM scalars.
# ----------------------------------------------------------------------------
def _positional_encoding_1d(d_model, length):
    position = jnp.arange(length, dtype=jnp.float32)[:, None]
    div_term = jnp.exp(jnp.arange(0, d_model, 2, dtype=jnp.float32)
                       * -(math.log(10000.0) / d_model))
    pe = jnp.zeros((length, d_model), jnp.float32)
    pe = pe.at[:, 0::2].set(jnp.sin(position * div_term))
    pe = pe.at[:, 1::2].set(jnp.cos(position * div_term))
    return pe


def _gru_direction(xs, w_ih, w_hh, b_ih, b_hh, hidden):
    # PyTorch GRU cell, gate order (r, z, n)
    def step(h, x):
        gi = x @ w_ih.T + b_ih
        gh = h @ w_hh.T + b_hh
        i_r, i_z, i_n = jnp.split(gi, 3)
        h_r, h_z, h_n = jnp.split(gh, 3)
        r = jax.nn.sigmoid(i_r + h_r)
        z = jax.nn.sigmoid(i_z + h_z)
        n = jnp.tanh(i_n + r * h_n)
        h_new = (1.0 - z) * n + z * h
        return h_new, h_new

    h0 = jnp.zeros((hidden,), jnp.float32)
    _, hs = jax.lax.scan(step, h0, xs)
    return hs                                                    # [K, H]


def _gpo_pool_weights(params, k=2):
    # TODO(synk): original code passes length = tem3.size(1) (=1024) with a 2-D
    # torch.cat; the reference VSE-inf GPO expects B x K x D, so here GPO pools
    # over the K=2 branch sequence [x_t_vec, mlp(x_t_vec)].
    pe = _positional_encoding_1d(GPO_PE, k)                      # [K, 32]
    hf = _gru_direction(pe, params["gru_w_ih_f"], params["gru_w_hh_f"],
                        params["gru_b_ih_f"], params["gru_b_hh_f"], GPO_HID)
    hb = _gru_direction(pe[::-1], params["gru_w_ih_b"], params["gru_w_hh_b"],
                        params["gru_b_ih_b"], params["gru_b_hh_b"], GPO_HID)[::-1]
    out_emb = (hf + hb) / 2.0                                    # avg halves
    scores = out_emb @ params["gpo_lin"]                         # [K, 1]
    w = jax.nn.softmax(scores / GPO_TEMP, axis=0)
    return w[:, 0].astype(jnp.float32)                           # [K]


# ----------------------------------------------------------------------------
# Wrapper
# ----------------------------------------------------------------------------
def _cost_estimate():
    flops = 2 * B_PAD * (D_WORD_PAD * D_S2V_PAD
                         + D_S2V_PAD * D_EMB
                         + 2 * D_EMB * D_EMB)
    transcendentals = B_PAD * (D_S2V_PAD + D_EMB)
    bytes_accessed = (
        2 * (D_WORD_PAD * D_S2V_PAD + D_S2V_PAD * D_EMB + 2 * D_EMB * D_EMB)  # bf16 W
        + 4 * (D_S2V_PAD + 3 * D_EMB)                                          # f32 biases
        + 2 * B_PAD * D_WORD_PAD                                               # bf16 x
        + 4 * B_PAD * D_EMB + 8)                                               # f32 out + gpo
    return pl.CostEstimate(flops=flops, transcendentals=transcendentals,
                           bytes_accessed=bytes_accessed)


def skipthoughts_embedding_forward(token_ids, params):
    # TODO(synk): pretrained skip-thoughts GRU (seq2vec checkpoint) is replaced
    # by a deterministic embedding-mean + tanh(Linear(620->2400)) surrogate.
    emb = jnp.take(params["word_emb"], token_ids, axis=0)        # [B, T, 640]
    x = jnp.mean(emb, axis=1)                                    # [B, 640]

    batch = x.shape[0]
    assert batch <= B_PAD, "increase B_PAD / add a batch grid axis for large B"
    # pad batch to a full sublane group so every store in the kernel is unmasked
    x_pad = jnp.zeros((B_PAD, D_WORD_PAD), jnp.bfloat16)
    x_pad = x_pad.at[:batch].set(x.astype(jnp.bfloat16))

    gpo_w = params["gpo_pool_w"]                                 # cached [2] f32

    vmem = pltpu.MemorySpace.VMEM
    smem = pltpu.MemorySpace.SMEM

    out_full = pl.pallas_call(
        _fused_text_embed_kernel,
        out_shape=jax.ShapeDtypeStruct((B_PAD, D_EMB), jnp.float32),
        grid=(NK,),
        in_specs=[
            pl.BlockSpec((B_PAD, D_WORD_PAD), lambda k: (0, 0),
                         memory_space=vmem),                      # x (resident)
            pl.BlockSpec((D_WORD_PAD, TK), lambda k: (0, k),
                         memory_space=vmem),                      # w_s2v K-block
            pl.BlockSpec((1, TK), lambda k: (0, k),
                         memory_space=vmem),                      # b_s2v K-block
            pl.BlockSpec((TK, D_EMB), lambda k: (k, 0),
                         memory_space=vmem),                      # w_out K-block
            pl.BlockSpec((1, D_EMB), lambda k: (0, 0),
                         memory_space=vmem),                      # b_out
            pl.BlockSpec((D_EMB, D_EMB), lambda k: (0, 0),
                         memory_space=vmem),                      # w_mlp1 (resident)
            pl.BlockSpec((1, D_EMB), lambda k: (0, 0),
                         memory_space=vmem),                      # b_mlp1
            pl.BlockSpec((D_EMB, D_EMB), lambda k: (0, 0),
                         memory_space=vmem),                      # w_mlp2 (resident)
            pl.BlockSpec((1, D_EMB), lambda k: (0, 0),
                         memory_space=vmem),                      # b_mlp2
            pl.BlockSpec(memory_space=smem),                      # gpo pool weights
        ],
        out_specs=pl.BlockSpec((B_PAD, D_EMB), lambda k: (0, 0),
                               memory_space=vmem),
        scratch_shapes=[pltpu.VMEM((B_PAD, D_EMB), jnp.float32)],  # v accumulator
        compiler_params=pltpu.CompilerParams(
            dimension_semantics=("arbitrary",),                    # reduction axis
            vmem_limit_bytes=24 * 1024 * 1024),
        cost_estimate=_cost_estimate(),
    )(x_pad,
      params["w_s2v"], params["b_s2v"],
      params["w_out"], params["b_out"],
      params["w_mlp1"], params["b_mlp1"],
      params["w_mlp2"], params["b_mlp2"],
      gpo_w)
    return out_full[:batch]


# ----------------------------------------------------------------------------
# Deterministic parameter init (weights stored bf16, padded to TPU tiles)
# ----------------------------------------------------------------------------
def init_params(key, vocab_size):
    keys = jax.random.split(key, 13)

    def dense(k, shape):
        return (1.0 / math.sqrt(shape[0])) * jax.random.normal(k, shape, jnp.float32)

    # word embeddings: zero-pad 620 -> 640 so x's lane dim is 5*128
    word_emb = 0.1 * jax.random.normal(keys[0], (vocab_size, D_WORD), jnp.float32)
    word_emb = jnp.pad(word_emb, ((0, 0), (0, D_WORD_PAD - D_WORD)))

    # seq2vec surrogate weight: zero-pad both dims (620->640 rows, 2400->2560 cols)
    w_s2v = dense(keys[1], (D_WORD, D_S2V))
    w_s2v = jnp.pad(w_s2v, ((0, D_WORD_PAD - D_WORD), (0, D_S2V_PAD - D_S2V)))

    # to_out: zero-pad K dim 2400 -> 2560 (padded h rows contribute 0)
    w_out = dense(keys[2], (D_S2V, D_EMB))
    w_out = jnp.pad(w_out, ((0, D_S2V_PAD - D_S2V), (0, 0)))

    params = {
        "word_emb": word_emb,                                    # f32 (tiny gather)
        "w_s2v": w_s2v.astype(jnp.bfloat16),
        "b_s2v": jnp.zeros((1, D_S2V_PAD), jnp.float32),
        "w_out": w_out.astype(jnp.bfloat16),
        "b_out": 0.01 * jax.random.normal(keys[3], (1, D_EMB), jnp.float32),
        "w_mlp1": dense(keys[4], (D_EMB, D_EMB)).astype(jnp.bfloat16),
        "b_mlp1": 0.01 * jax.random.normal(keys[5], (1, D_EMB), jnp.float32),
        "w_mlp2": dense(keys[6], (D_EMB, D_EMB)).astype(jnp.bfloat16),
        "b_mlp2": 0.01 * jax.random.normal(keys[7], (1, D_EMB), jnp.float32),
        # GPO biGRU (PyTorch layout: [3H, in])
        "gru_w_ih_f": dense(keys[8], (3 * GPO_HID, GPO_PE)),
        "gru_w_hh_f": dense(keys[9], (3 * GPO_HID, GPO_HID)),
        "gru_b_ih_f": jnp.zeros((3 * GPO_HID,), jnp.float32),
        "gru_b_hh_f": jnp.zeros((3 * GPO_HID,), jnp.float32),
        "gru_w_ih_b": dense(keys[10], (3 * GPO_HID, GPO_PE)),
        "gru_w_hh_b": dense(keys[11], (3 * GPO_HID, GPO_HID)),
        "gru_b_ih_b": jnp.zeros((3 * GPO_HID,), jnp.float32),
        "gru_b_hh_b": jnp.zeros((3 * GPO_HID,), jnp.float32),
        "gpo_lin": dense(keys[12], (GPO_HID, 1)),                # Linear(32,1,bias=False)
    }
    # Hoisted out of the forward path: the GPO pool-weight net depends only on
    # params (K=2 is fixed), so compute its softmax weights once here.
    params["gpo_pool_w"] = _gpo_pool_weights(params, k=2)        # [2] f32
    return params


if __name__ == "__main__":
    key = jax.random.PRNGKey(0)
    pkey, tkey = jax.random.split(key)

    vocab_size = 100
    B, T = 2, 8

    params = init_params(pkey, vocab_size)
    input_text = jax.random.randint(tkey, (B, T), 0, vocab_size)  # token ids

    out = skipthoughts_embedding_forward(input_text, params)
    jax.block_until_ready(out)
    assert out.shape == (B, D_EMB) and out.dtype == jnp.float32
    assert bool(jnp.all(jnp.isfinite(out)))
    print("KERNEL_OK")
</pallas_src>

<mosaic_0001>
module attributes {stable_mosaic.version = 11 : i64} {
  func.func @_fused_text_embed_kernel(%arg0: i32, %arg1: memref<8x640xbf16, #tpu.memory_space<vmem>>, %arg2: memref<640x1280xbf16, #tpu.memory_space<vmem>>, %arg3: memref<1x1280xf32, #tpu.memory_space<vmem>>, %arg4: memref<1280x512xbf16, #tpu.memory_space<vmem>>, %arg5: memref<1x512xf32, #tpu.memory_space<vmem>>, %arg6: memref<512x512xbf16, #tpu.memory_space<vmem>>, %arg7: memref<1x512xf32, #tpu.memory_space<vmem>>, %arg8: memref<512x512xbf16, #tpu.memory_space<vmem>>, %arg9: memref<1x512xf32, #tpu.memory_space<vmem>>, %arg10: memref<2xf32, #tpu.memory_space<smem>>, %arg11: memref<8x512xf32, #tpu.memory_space<vmem>>, %arg12: memref<8x512xf32, #tpu.memory_space<vmem>>) attributes {dimension_semantics = [#tpu.dimension_semantics<arbitrary>], iteration_bounds = array<i64: 2>, scalar_prefetch = 0 : i64, scratch_operands = 1 : i64, tpu.core_type = #tpu.core_type<tc>, window_params = [{pipeline_mode = #tpu.pipeline_mode<synchronous>, transform_indices = @transform_0, window_bounds = array<i64: 8, 640>}, {transform_indices = @transform_1, window_bounds = array<i64: 640, 1280>}, {transform_indices = @transform_2, window_bounds = array<i64: 1, 1280>}, {transform_indices = @transform_3, window_bounds = array<i64: 1280, 512>}, {pipeline_mode = #tpu.pipeline_mode<synchronous>, transform_indices = @transform_4, window_bounds = array<i64: 1, 512>}, {pipeline_mode = #tpu.pipeline_mode<synchronous>, transform_indices = @transform_5, window_bounds = array<i64: 512, 512>}, {pipeline_mode = #tpu.pipeline_mode<synchronous>, transform_indices = @transform_6, window_bounds = array<i64: 1, 512>}, {pipeline_mode = #tpu.pipeline_mode<synchronous>, transform_indices = @transform_7, window_bounds = array<i64: 512, 512>}, {pipeline_mode = #tpu.pipeline_mode<synchronous>, transform_indices = @transform_8, window_bounds = array<i64: 1, 512>}, {transform_indices = @transform_9, window_bounds = array<i64: 2>}, {pipeline_mode = #tpu.pipeline_mode<synchronous>, transform_indices = @transform_10, window_bounds = array<i64: 8, 512>}]} {
    %c0_i32 = arith.constant 0 : i32
    %0 = arith.cmpi eq, %arg0, %c0_i32 : i32
    %1 = arith.extui %0 : i1 to i32
    %c0_i32_0 = arith.constant 0 : i32
    %2 = arith.cmpi ne, %1, %c0_i32_0 : i32
    scf.if %2 {
      %cst_14 = arith.constant 0.000000e+00 : f32
      %19 = vector.broadcast %cst_14 : f32 to vector<8x512xf32>
      %c0_15 = arith.constant 0 : index
      %c0_16 = arith.constant 0 : index
      %20 = vector.load %arg12[%c0_15, %c0_16] : memref<8x512xf32, #tpu.memory_space<vmem>>, vector<8x512xf32>
      tpu.vector_store %arg12[%c0_15, %c0_16], %19 {strides = array<i32>} : memref<8x512xf32, #tpu.memory_space<vmem>>, vector<8x512xf32>,
    } else {
    }
    %c0 = arith.constant 0 : index
    %c0_1 = arith.constant 0 : index
    %3 = vector.load %arg1[%c0, %c0_1] : memref<8x640xbf16, #tpu.memory_space<vmem>>, vector<8x640xbf16>
    %c0_2 = arith.constant 0 : index
    %c0_3 = arith.constant 0 : index
    %4 = vector.load %arg2[%c0_2, %c0_3] : memref<640x1280xbf16, #tpu.memory_space<vmem>>, vector<640x1280xbf16>
    %cst = arith.constant dense<0.000000e+00> : vector<8x1280xf32>
    %5 = tpu.matmul %3, %4, %cst {dimension_numbers = #tpu.dot_dimension_numbers<[1], [0], [0], [1], [0, 0, 1, 1], [], []>} : vector<8x640xbf16>, vector<640x1280xbf16>, vector<8x1280xf32> -> vector<8x1280xf32>
    %c0_4 = arith.constant 0 : index
    %c0_5 = arith.constant 0 : index
    %6 = vector.load %arg3[%c0_4, %c0_5] : memref<1x1280xf32, #tpu.memory_space<vmem>>, vector<1x1280xf32>
    %7 = vector.broadcast %6 : vector<1x1280xf32> to vector<8x1280xf32>
    %8 = arith.addf %5, %7 : vector<8x1280xf32>
    %9 = math.tanh %8 : vector<8x1280xf32>
    %c0_6 = arith.constant 0 : index
    %c0_7 = arith.constant 0 : index
    %10 = vector.load %arg12[%c0_6, %c0_7] : memref<8x512xf32, #tpu.memory_space<vmem>>, vector<8x512xf32>
    %11 = arith.truncf %9 : vector<8x1280xf32> to vector<8x1280xbf16>
    %c0_8 = arith.constant 0 : index
    %c0_9 = arith.constant 0 : index
    %12 = vector.load %arg4[%c0_8, %c0_9] : memref<1280x512xbf16, #tpu.memory_space<vmem>>, vector<1280x512xbf16>
    %cst_10 = arith.constant dense<0.000000e+00> : vector<8x512xf32>
    %13 = tpu.matmul %11, %12, %cst_10 {dimension_numbers = #tpu.dot_dimension_numbers<[1], [0], [0], [1], [0, 0, 1, 1], [], []>} : vector<8x1280xbf16>, vector<1280x512xbf16>, vector<8x512xf32> -> vector<8x512xf32>
    %14 = arith.addf %10, %13 : vector<8x512xf32>
    %c0_11 = arith.constant 0 : index
    %c0_12 = arith.constant 0 : index
    %15 = vector.load %arg12[%c0_11, %c0_12] : memref<8x512xf32, #tpu.memory_space<vmem>>, vector<8x512xf32>
    tpu.vector_store %arg12[%c0_11, %c0_12], %14 {strides = array<i32>} : memref<8x512xf32, #tpu.memory_space<vmem>>, vector<8x512xf32>,
    %c1_i32 = arith.constant 1 : i32
    %16 = arith.cmpi eq, %arg0, %c1_i32 : i32
    %17 = arith.extui %16 : i1 to i32
    %c0_i32_13 = arith.constant 0 : i32
    %18 = arith.cmpi ne, %17, %c0_i32_13 : i32
    scf.if %18 {
      %c0_14 = arith.constant 0 : index
      %c0_15 = arith.constant 0 : index
      %19 = vector.load %arg12[%c0_14, %c0_15] : memref<8x512xf32, #tpu.memory_space<vmem>>, vector<8x512xf32>
      %c0_16 = arith.constant 0 : index
      %c0_17 = arith.constant 0 : index
      %20 = vector.load %arg5[%c0_16, %c0_17] : memref<1x512xf32, #tpu.memory_space<vmem>>, vector<1x512xf32>
      %21 = vector.broadcast %20 : vector<1x512xf32> to vector<8x512xf32>
      %22 = arith.addf %19, %21 : vector<8x512xf32>
      %23 = arith.truncf %22 : vector<8x512xf32> to vector<8x512xbf16>
      %c0_18 = arith.constant 0 : index
      %c0_19 = arith.constant 0 : index
      %24 = vector.load %arg6[%c0_18, %c0_19] : memref<512x512xbf16, #tpu.memory_space<vmem>>, vector<512x512xbf16>
      %cst_20 = arith.constant dense<0.000000e+00> : vector<8x512xf32>
      %25 = tpu.matmul %23, %24, %cst_20 {dimension_numbers = #tpu.dot_dimension_numbers<[1], [0], [0], [1], [0, 0, 1, 1], [], []>} : vector<8x512xbf16>, vector<512x512xbf16>, vector<8x512xf32> -> vector<8x512xf32>
      %c0_21 = arith.constant 0 : index
      %c0_22 = arith.constant 0 : index
      %26 = vector.load %arg7[%c0_21, %c0_22] : memref<1x512xf32, #tpu.memory_space<vmem>>, vector<1x512xf32>
      %27 = vector.broadcast %26 : vector<1x512xf32> to vector<8x512xf32>
      %28 = arith.addf %25, %27 : vector<8x512xf32>
      %cst_23 = arith.constant 0.000000e+00 : f32
      %29 = vector.broadcast %cst_23 : f32 to vector<8x512xf32>
      %30 = arith.maximumf %28, %29 : vector<8x512xf32>
      %31 = arith.truncf %30 : vector<8x512xf32> to vector<8x512xbf16>
      %c0_24 = arith.constant 0 : index
      %c0_25 = arith.constant 0 : index
      %32 = vector.load %arg8[%c0_24, %c0_25] : memref<512x512xbf16, #tpu.memory_space<vmem>>, vector<512x512xbf16>
      %cst_26 = arith.constant dense<0.000000e+00> : vector<8x512xf32>
      %33 = tpu.matmul %31, %32, %cst_26 {dimension_numbers = #tpu.dot_dimension_numbers<[1], [0], [0], [1], [0, 0, 1, 1], [], []>} : vector<8x512xbf16>, vector<512x512xbf16>, vector<8x512xf32> -> vector<8x512xf32>
      %c0_27 = arith.constant 0 : index
      %c0_28 = arith.constant 0 : index
      %34 = vector.load %arg9[%c0_27, %c0_28] : memref<1x512xf32, #tpu.memory_space<vmem>>, vector<1x512xf32>
      %35 = vector.broadcast %34 : vector<1x512xf32> to vector<8x512xf32>
      %36 = arith.addf %33, %35 : vector<8x512xf32>
      %cst_29 = arith.constant 0.000000e+00 : f32
      %37 = vector.broadcast %cst_29 : f32 to vector<8x512xf32>
      %38 = arith.maximumf %36, %37 : vector<8x512xf32>
      %c0_30 = arith.constant 0 : index
      %39 = memref.load %arg10[%c0_30] : memref<2xf32, #tpu.memory_space<smem>>
      %c1 = arith.constant 1 : index
      %40 = memref.load %arg10[%c1] : memref<2xf32, #tpu.memory_space<smem>>
      %41 = arith.maximumf %22, %38 : vector<8x512xf32>
      %42 = arith.minimumf %22, %38 : vector<8x512xf32>
      %43 = vector.broadcast %39 : f32 to vector<8x512xf32>
      %44 = arith.mulf %43, %41 : vector<8x512xf32>
      %45 = vector.broadcast %40 : f32 to vector<8x512xf32>
      %46 = arith.mulf %45, %42 : vector<8x512xf32>
      %47 = arith.addf %44, %46 : vector<8x512xf32>
      %48 = math.tanh %47 : vector<8x512xf32>
      %c0_31 = arith.constant 0 : index
      %c0_32 = arith.constant 0 : index
      %49 = vector.load %arg11[%c0_31, %c0_32] : memref<8x512xf32, #tpu.memory_space<vmem>>, vector<8x512xf32>
      tpu.vector_store %arg11[%c0_31, %c0_32], %48 {strides = array<i32>} : memref<8x512xf32, #tpu.memory_space<vmem>>, vector<8x512xf32>,
    } else {
    }
    return
  }
  func.func @transform_0(%arg0: i32) -> (i32, i32) {
    %c0_i32 = arith.constant 0 : i32
    %c0_i32_0 = arith.constant 0 : i32
    %c0_i32_1 = arith.constant 0 : i32
    return %c0_i32, %c0_i32_0 : i32, i32
  }
  func.func @transform_1(%arg0: i32) -> (i32, i32) {
    %c0_i32 = arith.constant 0 : i32
    %c0_i32_0 = arith.constant 0 : i32
    return %c0_i32, %arg0 : i32, i32
  }
  func.func @transform_2(%arg0: i32) -> (i32, i32) {
    %c0_i32 = arith.constant 0 : i32
    %c0_i32_0 = arith.constant 0 : i32
    return %c0_i32, %arg0 : i32, i32
  }
  func.func @transform_3(%arg0: i32) -> (i32, i32) {
    %c0_i32 = arith.constant 0 : i32
    %c0_i32_0 = arith.constant 0 : i32
    return %arg0, %c0_i32 : i32, i32
  }
  func.func @transform_4(%arg0: i32) -> (i32, i32) {
    %c0_i32 = arith.constant 0 : i32
    %c0_i32_0 = arith.constant 0 : i32
    %c0_i32_1 = arith.constant 0 : i32
    return %c0_i32, %c0_i32_0 : i32, i32
  }
  func.func @transform_5(%arg0: i32) -> (i32, i32) {
    %c0_i32 = arith.constant 0 : i32
    %c0_i32_0 = arith.constant 0 : i32
    %c0_i32_1 = arith.constant 0 : i32
    return %c0_i32, %c0_i32_0 : i32, i32
  }
  func.func @transform_6(%arg0: i32) -> (i32, i32) {
    %c0_i32 = arith.constant 0 : i32
    %c0_i32_0 = arith.constant 0 : i32
    %c0_i32_1 = arith.constant 0 : i32
    return %c0_i32, %c0_i32_0 : i32, i32
  }
  func.func @transform_7(%arg0: i32) -> (i32, i32) {
    %c0_i32 = arith.constant 0 : i32
    %c0_i32_0 = arith.constant 0 : i32
    %c0_i32_1 = arith.constant 0 : i32
    return %c0_i32, %c0_i32_0 : i32, i32
  }
  func.func @transform_8(%arg0: i32) -> (i32, i32) {
    %c0_i32 = arith.constant 0 : i32
    %c0_i32_0 = arith.constant 0 : i32
    %c0_i32_1 = arith.constant 0 : i32
    return %c0_i32, %c0_i32_0 : i32, i32
  }
  func.func @transform_9(%arg0: i32) -> i32 {
    %c0_i32 = arith.constant 0 : i32
    %c0_i32_0 = arith.constant 0 : i32
    return %c0_i32 : i32
  }
  func.func @transform_10(%arg0: i32) -> (i32, i32) {
    %c0_i32 = arith.constant 0 : i32
    %c0_i32_0 = arith.constant 0 : i32
    %c0_i32_1 = arith.constant 0 : i32
    return %c0_i32, %c0_i32_0 : i32, i32
  }
}

</mosaic_0001>

<bundles_post_ra>
// kernel: tpu_custom_call.1
= control target key start
LH: loop header
LB: loop body
LE: loop exit
PB: predicated region body
PF: predicated region fallthrough
CT: control target
= control target key end

     0   :  { %s15877_s0 = inlined_call_operand.hbm [shape: bf16[8,640], index: 0, kind: input, shape index: {}]   ;;  %s15878_s1 = inlined_call_operand.hbm [shape: bf16[640,2560], index: 1, kind: input, shape index: {}]   ;;  %s15879_s2 = inlined_call_operand.hbm [shape: f32[1,2560], index: 2, kind: input, shape index: {}]   ;;  %s15880_s3 = inlined_call_operand.hbm [shape: bf16[2560,512], index: 3, kind: input, shape index: {}]   ;;  %s15881_s4 = inlined_call_operand.hbm [shape: f32[1,512], index: 4, kind: input, shape index: {}]   ;;  %s15882_s5 = inlined_call_operand.hbm [shape: bf16[512,512], index: 5, kind: input, shape index: {}]   ;;  %s15883_s6 = inlined_call_operand.hbm [shape: f32[1,512], index: 6, kind: input, shape index: {}]   ;;  %s15884_s7 = inlined_call_operand.hbm [shape: bf16[512,512], index: 7, kind: input, shape index: {}]   ;;  %s15885_s8 = inlined_call_operand.hbm [shape: f32[1,512], index: 8, kind: input, shape index: {}]   ;;  %s15886_s9 = inlined_call_operand.hbm [shape: f32[2], index: 9, kind: input, shape index: {}]   ;;  %s15887_s10 = inlined_call_operand.hbm [shape: f32[8,512], index: 10, kind: output, shape index: {}]  }
   0x1   :  { %15893 = sst [smem:[#allocation32_spill]] %s15877_s0 }
   0x2   :  { %15894 = sst [smem:[#allocation33_spill]] %s15881_s4 }
   0x3   :  { %15895 = sst [smem:[#allocation34_spill]] %s15882_s5 }
   0x4   :  { %15896 = sst [smem:[#allocation35_spill]] %s15884_s7 }
   0x5   :  { %15 = vsyncpa [#allocation4], 0 }
   0x6   :  { %16 = vsyncpa [#allocation8], 0 }
   0x7   :  { %18 = vsyncpa [#allocation8 + $0x1], 0 }
   0x8   :  { %19 = vsyncpa [#allocation11], 0 }
   0x9   :  { %21 = vsyncpa [#allocation11 + $0x1], 0 }
   0xa   :  { %22 = vsyncpa [#allocation14], 0 }
   0xb   :  { %23 = vsyncpa [#allocation17], 0 }
   0xc   :  { %24 = vsyncpa [#allocation6], 0 }
   0xd   :  { %25 = vsyncpa [#allocation5], 0  ;;  %s13872_s13 = smov 0   ;;  %s13874_s14 = smov 0  }
   0xe   :  { %s13876_s15 = smov 0   ;;  %s13878_s16 = smov 0  }
   0xf LB: > { %15897 = sst [smem:[#allocation29_spill]] %s13797_s15  ;;  %s13896_s20 = sadd.s32 4294967295, %s13801_s16   ;;  %s13801_s16 = sphi %s13878_s16, %s15912_s16   ;;  %s13797_s15 = sphi %s13876_s15, %s15914_s15   ;;  %s13793_s14 = sphi %s13874_s14, %s15916_s14   ;;  %s13789_s13 = sphi %s13872_s13, %s15915_s13  }
  0x10   : > { %s15898_s4 = sld [smem:[#allocation33_spill]]  ;;  %p8346_p0 = scmp.ge.s32.totalorder %s13801_s16, 1 }
  0x11   : > { %p73_p1 = scmp.eq.s32.totalorder %s13896_s20, 0  ;;  %p282_p2 = scmp.lt.s32.totalorder %s13801_s16, 3 }
  0x12   : > { %p8347_p3 = scmp.ne.s32.totalorder %s13896_s20, 0  ;;  %s13803_s22 = smov [#allocation12]  }
  0x13   : > { %p13902_p4 = pnand %p8346_p0, %p282_p2  ;;  %s308_s23 = sshll.u32 %s13803_s22, 4  ;;  %s309_s23 = int_to_ptr.vmem [resolvable:$true] %s308_s23 }
  0x14   : > { %s15900_s5 = sld [smem:[#allocation34_spill]]  ;;  %s13804_s28 = smov [#allocation13]  }
  0x15   : > { %p13301_p5 = pneg %p13902_p4  ;;  %s319_s29 = sshll.u32 %s13804_s28, 4  ;;  %s320_s29 = int_to_ptr.vmem [resolvable:$true] %s319_s29 }
  0x16   : > { %s306_s19 = sshll.u32 %s15898_s4, 4  ;;  %s15888_s30 = smov 256   ;;  %s307_s19 = int_to_ptr.hbm [resolvable:$true] %s306_s19 }
  0x17   : > { %p13913_p6 = pnand %p13301_p5, %p73_p1  ;;  %s15889_s11 = smov 16  }
  0x18   : > { %s15902_s7 = sld [smem:[#allocation35_spill]]  ;;  %s13807_s22 = smov [#allocation16]  }
  0x19   : > { %13307 = dma.hbm_to_vmem [thread:$0]  (!%p13913_p6), %s307_s19, 64, %s309_s23, [#allocation11]  }
  0x1a   : > { %s317_s26 = sshll.u32 %s15900_s5, 4  ;;  %s345_s19 = sshll.u32 %s13807_s22, 4  ;;  %s318_s26 = int_to_ptr.hbm [resolvable:$true] %s317_s26  ;;  %s346_s19 = int_to_ptr.vmem [resolvable:$true] %s345_s19 }
  0x1b   : > { %13310 = dma.hbm_to_vmem [thread:$0]  (!%p13913_p6), %s318_s26, 16384, %s320_s29, [#allocation14], %s15888_s30, %s15888_s30, %s15889_s11  }
  0x1c   : > { %s13933_s23 = sadd.s32 1, %s13801_s16   ;;  %s59_s25 = sadd.s32 1, %s13797_s15 }
  0x1d   : > { %15903 = sst [smem:[#allocation30_spill]] %s13933_s23  ;;  %s56_s24 = ssub.s32 %s13801_s16, %s13933_s23 }
  0x1e   : > { %s343_s18 = sshll.u32 %s15902_s7, 4  ;;  %p57_p7 = scmp.eq.s32.totalorder %s56_s24, 0  ;;  %s344_s18 = int_to_ptr.hbm [resolvable:$true] %s343_s18 }
  0x1f   : > { %13316 = dma.hbm_to_vmem [thread:$0]  (!%p13913_p6), %s344_s18, 16384, %s346_s19, [#allocation17], %s15888_s30, %s15888_s30, %s15889_s11  }
  0x20   : > { %p66_p8 = scmp.ne.s32.totalorder %s13797_s15, %s13793_s14  ;;  %p67_p9 = scmp.eq.s32.totalorder %s13801_s16, 0 }
  0x21   : > { %p72_p10 = scmp.ne.s32.totalorder %s13793_s14, %s13789_s13  ;;  %p13340_p13 = scmp.lt.s32.totalorder %s13801_s16, 2 }
  0x22   : > { %s13944_s26 = scalar_select %p57_p7, %s13797_s15, %s59_s25  }
  0x23   : > { %p68_p11 = por %p67_p9, %p66_p8  ;;  %p13948_p12 = por %p73_p1, %p72_p10 }
  0x24   : > { %15904 = sst [smem:[#allocation31_spill]] %s13944_s26  ;;  %s13955_s12 = sand.u32 1, %s13797_s15  }
  0x25   : > { %s13257_s17 = smul.u32 3200, %s13955_s12  ;;  %p13958_p0 = pnand %p13340_p13, %p68_p11 }
  0x26   : > { %s12277_s13 = smul.u32 40, %s13801_s16  ;;  %s15907_s0 = sld [smem:[#allocation32_spill]] }
  0x27   : > { %s385_s25 = scalar_lea.vmem [#allocation7], %s13257_s17  ;;  %s15908_s7 = sand.u32 1, %s13801_s16  }
  0x28   : > { %s390_s24 = scalar_lea.hbm %s15878_s1, %s12277_s13  ;;  %s393_s30 = sshll.u32 %s385_s25, 4  ;;  %s394_s30 = int_to_ptr.vmem [resolvable:$true] %s393_s30 }
  0x29   : > { %s391_s11 = sshll.u32 %s390_s24, 4  ;;  %s13971_s26 = scalar_lea.sflag [#allocation8], %s15908_s7  ;;  %s392_s11 = int_to_ptr.hbm [resolvable:$true] %s391_s11 }
  0x2a   : > { %s13516_s15 = sshra.s32 %s392_s11, 4  ;;  %p13520_p5 = pneg %p13958_p0  ;;  %s13517_s15 = int_to_ptr.hbm [resolvable:$true] %s13516_s15 }
  0x2b   : > { %s13518_s23 = scalar_lea.hbm %s13517_s15, 3200  ;;  %s13523_s22 = scalar_lea.hbm %s15878_s1, 6400 }
  0x2c   : > { %s294_s5 = sshll.u32 %s15907_s0, 4  ;;  %p13519_p2 = scmp.ne.s32.totalorder %s13517_s15, %s13518_s23  ;;  %s295_s5 = int_to_ptr.hbm [resolvable:$true] %s294_s5 }
  0x2d   : > { %p13524_p9 = scmp.lt.s32.totalorder %s13517_s15, %s15878_s1  ;;  %p13525_p10 = scmp.lt.s32.totalorder %s13523_s22, %s13518_s23 }
  0x2e   : > { %p13521_p7 = pnand %p13520_p5, %p13519_p2 }
  0x2f   : > { %p13526_p11 = por %p13525_p10, %p13524_p9 }
  0x30   : > { %p13522_p8 = pneg %p13521_p7 }
  0x32   : > { %p13527_p13 = pnand %p13526_p11, %p13522_p8 }
  0x34   : > { %13530 = shalt.err (!%p13527_p13)
}
  0x35   : > { %s13808_s7 = smov 1280   ;;  %s13809_s29 = smov 640  }
  0x36   : > { %s13810_s24 = smov 40   ;;  %s13811_s25 = smov [#allocation3]  }
  0x37   : > { %13326 = dma.hbm_to_vmem [thread:$0]  (!%p13958_p0), %s392_s11, 51200, %s394_s30, %s13971_s26, %s13808_s7, %s13809_s29, %s13810_s24  }
  0x38   : > { %s296_s17 = sshll.u32 %s13811_s25, 4  ;;  %s332_s15 = sshll.u32 %s15883_s6, 4  ;;  %s297_s17 = int_to_ptr.vmem [resolvable:$true] %s296_s17  ;;  %s333_s15 = int_to_ptr.hbm [resolvable:$true] %s332_s15 }
  0x39   : > { %13304 = dma.hbm_to_vmem [thread:$0]  (!%p13913_p6), %s295_s5, 320, %s297_s17, [#allocation4]  }
  0x3a   : > { %s358_s19 = sshll.u32 %s15885_s8, 4  ;;  %s13812_s30 = smov [#allocation15]   ;;  %s359_s19 = int_to_ptr.hbm [resolvable:$true] %s358_s19 }
  0x3b   : > { %s334_s11 = sshll.u32 %s13812_s30, 4  ;;  %s13813_s0 = smov [#allocation18]   ;;  %s335_s11 = int_to_ptr.vmem [resolvable:$true] %s334_s11 }
  0x3c   : > { %13313 = dma.hbm_to_vmem [thread:$0]  (!%p13913_p6), %s333_s15, 64, %s335_s11, [#allocation14]  }
  0x3d   : > { %s360_s4 = sshll.u32 %s13813_s0, 4  ;;  %s370_s24 = sshll.u32 %s15886_s9, 4  ;;  %s361_s4 = int_to_ptr.vmem [resolvable:$true] %s360_s4  ;;  %s371_s24 = int_to_ptr.hbm [resolvable:$true] %s370_s24 }
  0x3e   : > { %13319 = dma.hbm_to_vmem [thread:$0]  (!%p13913_p6), %s359_s19, 64, %s361_s4, [#allocation17]  }
  0x3f   : > { %s13258_s5 = smul.u32 10, %s13955_s12  ;;  %s13814_s25 = smov [#allocation19]  }
  0x40   : > { %13322 = dma.hbm_to_smem (!%p13913_p6), %s371_s24, 16, %s13814_s25, [#allocation6]  }
  0x41   : > { %s408_s17 = smul.u32 10, %s13801_s16  ;;  %s407_s13 = scalar_lea.vmem [#allocation9], %s13258_s5 }
  0x42   : > { %s415_s15 = sshll.u32 %s407_s13, 4  ;;  %s13259_s0 = smul.u32 2560, %s13955_s12  ;;  %s416_s15 = int_to_ptr.vmem [resolvable:$true] %s415_s15 }
  0x43   : > { %s411_s30 = scalar_lea.hbm %s15879_s2, %s408_s17  ;;  %s13256_s7 = smul.u32 2560, %s13801_s16 }
  0x44   : > { %s413_s11 = sshll.u32 %s411_s30, 4  ;;  %s13658_s24 = scalar_lea.hbm %s15879_s2, 20  ;;  %s414_s11 = int_to_ptr.hbm [resolvable:$true] %s413_s11 }
  0x45   : > { %s13651_s29 = sshra.s32 %s414_s11, 4  ;;  %s13652_s29 = int_to_ptr.hbm [resolvable:$true] %s13651_s29 }
  0x46   : > { %s13653_s19 = scalar_lea.hbm %s13652_s29, 10  ;;  %p13659_p8 = scmp.lt.s32.totalorder %s13652_s29, %s15879_s2 }
  0x47   : > { %p13654_p2 = scmp.ne.s32.totalorder %s13652_s29, %s13653_s19  ;;  %p13660_p9 = scmp.lt.s32.totalorder %s13658_s24, %s13653_s19 }
  0x49   : > { %p13656_p7 = pnand %p13654_p2, %p13520_p5  ;;  %p13661_p10 = por %p13660_p9, %p13659_p8 }
  0x4b   : > { %p13657_p6 = pneg %p13656_p7 }
  0x4d   : > { %p13662_p11 = pnand %p13661_p10, %p13657_p6 }
  0x4f   : > { %13665 = shalt.err (!%p13662_p11)
}
  0x50   : > { %13329 = dma.hbm_to_vmem [thread:$0]  (!%p13958_p0), %s414_s11, 160, %s416_s15, %s13971_s26  }
  0x51   : > { %s432_s13 = scalar_lea.hbm %s15880_s3, %s13256_s7  ;;  %s426_s22 = scalar_lea.vmem [#allocation10], %s13259_s0 }
  0x52   : > { %s433_s23 = sshll.u32 %s432_s13, 4  ;;  %s435_s30 = sshll.u32 %s426_s22, 4  ;;  %s434_s23 = int_to_ptr.hbm [resolvable:$true] %s433_s23  ;;  %s436_s30 = int_to_ptr.vmem [resolvable:$true] %s435_s30 }
  0x53   : > { %s15909_s29 = sand.u32 1, %s13801_s16   ;;  %s13681_s27 = sshra.s32 %s434_s23, 4  ;;  %s13682_s27 = int_to_ptr.hbm [resolvable:$true] %s13681_s27 }
  0x54   : > { %s423_s19 = scalar_lea.sflag [#allocation11], %s15909_s29  ;;  %s13683_s4 = scalar_lea.hbm %s13682_s27, 2560 }
  0x55   : > { %p13684_p13 = scmp.ne.s32.totalorder %s13682_s27, %s13683_s4  ;;  %s13688_s11 = scalar_lea.hbm %s15880_s3, 5120 }
  0x56   : > { %p13689_p6 = scmp.lt.s32.totalorder %s13682_s27, %s15880_s3  ;;  %p13690_p8 = scmp.lt.s32.totalorder %s13688_s11, %s13683_s4 }
  0x57   : > { %p13686_p2 = pnand %p13684_p13, %p13520_p5 }
  0x58   : > { %p13691_p9 = por %p13690_p8, %p13689_p6 }
  0x59   : > { %p13687_p7 = pneg %p13686_p2 }
  0x5b   : > { %p13692_p10 = pnand %p13691_p9, %p13687_p7 }
  0x5d   : > { %13695 = shalt.err (!%p13692_p10)
}
  0x5e   : > { %s15910_s16 = smov 16   ;;  %s15911_s0 = smov 256  }
  0x5f   : > { %13332 = dma.hbm_to_vmem [thread:$0]  (!%p13958_p0), %s434_s23, 40960, %s436_s30, %s423_s19, %s15911_s0, %s15911_s0, %s15910_s16  }
  0x60   : > { %447 = sbr.rel (%p13902_p4) target bundleno = 1523 (0x5f3), region = 60 }
  0x65   : > { %13756 = dma.done.wait (%p73_p1), [#allocation4], 320  }
  0x66   : > { %13758 = vsyncadd (%p73_p1), [#allocation4], 4294966976  ;;  %s454_s5 = sand.u32 1, %s13896_s20   ;;  %s456_s25 = sand.u32 1, %s13793_s14  }
  0x67   : > { %s13260_s12 = smul.u32 3200, %s456_s25  ;;  %s455_s18 = scalar_lea.sflag [#allocation8], %s454_s5 }
  0x69   : > { %s14050_s17 = scalar_lea.vmem [#allocation7], %s13260_s12 }
  0x6a   : > { %13760 = dma.done.wait (%p13948_p12), %s455_s18, 51360  }
  0x6b   : > { %13762 = vsyncadd (%p13948_p12), %s455_s18, 4294915936  ;;  %s13261_s21 = smul.u32 10, %s456_s25  ;;  %s475_s22 = scalar_lea.sflag [#allocation11], %s454_s5 }
  0x6c   : > { %s13262_s13 = smul.u32 2560, %s456_s25 }
  0x6d   : > { %s14056_s23 = scalar_lea.vmem [#allocation9], %s13261_s21 }
  0x6e   : > { %s14058_s30 = scalar_lea.vmem [#allocation10], %s13262_s13 }
  0x6f   : > { %13764 = dma.done.wait (%p13948_p12), %s475_s22, 40960  }
  0x70   : > { %13766 = vsyncadd (%p13948_p12), %s475_s22, 4294926336 }
  0x71   : > { %13768 = dma.done.wait (%p73_p1), [#allocation11], 64  }
  0x72   : > { %13770 = vsyncadd (%p73_p1), [#allocation11], 4294967232 }
  0x73   : > { %13772 = dma.done.wait (%p73_p1), [#allocation14], 16448  }
  0x74   : > { %13774 = vsyncadd (%p73_p1), [#allocation14], 4294950848 }
  0x75   : > { %13776 = dma.done.wait (%p73_p1), [#allocation17], 16448  }
  0x76   : > { %13778 = vsyncadd (%p73_p1), [#allocation17], 4294950848 }
  0x77   : > { %13780 = dma.done.wait (%p73_p1), [#allocation6], 16  }
  0x78   : > { %13782 = vsyncadd (%p73_p1), [#allocation6], 4294967280 }
  0x79   : > { %514 = sfence }
  0x7a   : > { %558 = sbr.rel (%p8347_p3) target bundleno = 132 (0x84), region = 104 }
  0x7f   : > { %v13815_v0 = vmov 0.0  }
  0x80   : > { %559 = vst [vmem:[#allocation2 + $0x10] sm:$0xff] %v13815_v0 }
  0x81   : > { %560 = vst [vmem:[#allocation2] sm:$0xff] %v13815_v0 }
  0x82   : > { %561 = vst [vmem:[#allocation2 + $0x18] sm:$0xff] %v13815_v0 }
  0x83   : > { %562 = vst [vmem:[#allocation2 + $0x8] sm:$0xff] %v13815_v0 }
  0x84 PF: > { %v8649_v1 = vld [vmem:[%s14050_s17 + $0x230] sm:$0xf]  ;;  %v12355_v2 = vld [vmem:[%s14050_s17 + $0x254] sm:$0xf0]  ;;  %v8609_v12 = vld [vmem:[%s14050_s17 + $0x1e0] sm:$0xf] }
  0x85   : > { %v8969_v3 = vld [vmem:[%s14050_s17 + $0x4b0] sm:$0xf]  ;;  %v8650_v4 = vor.u32 %v12355_v2, %v8649_v1  ;;  %v12435_v5 = vld [vmem:[%s14050_s17 + $0x4d4] sm:$0xf0]  ;;  %v12345_v14 = vld [vmem:[%s14050_s17 + $0x204] sm:$0xf0] }
  0x86   : > { %v9289_v6 = vld [vmem:[%s14050_s17 + $0x730] sm:$0xf]  ;;  %v12515_v7 = vld [vmem:[%s14050_s17 + $0x754] sm:$0xf0]  ;;  %v8970_v8 = vor.u32 %v12435_v5, %v8969_v3  ;;  %v8929_v15 = vld [vmem:[%s14050_s17 + $0x460] sm:$0xf]  ;;  %v8610_v17 = vor.u32 %v12345_v14, %v8609_v12 }
  0x87   : > { %v9290_v9 = vor.u32 %v12515_v7, %v9289_v6  ;;  %v9609_v10 = vld [vmem:[%s14050_s17 + $0x9b0] sm:$0xf]  ;;  %v12595_v11 = vld [vmem:[%s14050_s17 + $0x9d4] sm:$0xf0]  ;;  %3008 = vmatpush.bf16.msra.mxu0 %v8650_v4  ;;  %v12425_v16 = vld [vmem:[%s14050_s17 + $0x484] sm:$0xf0] }
  0x88   : > { %v9610_v13 = vor.u32 %v12595_v11, %v9609_v10  ;;  %3021 = vmatpush.bf16.msra.mxu1 %v8970_v8  ;;  %v8930_v18 = vor.u32 %v12425_v16, %v8929_v15  ;;  %v9249_v19 = vld [vmem:[%s14050_s17 + $0x6e0] sm:$0xf]  ;;  %v12505_v20 = vld [vmem:[%s14050_s17 + $0x704] sm:$0xf0]  ;;  %v8569_v24 = vld [vmem:[%s14050_s17 + $0x190] sm:$0xf] }
  0x89   : > { %3034 = vmatpush.bf16.msra.mxu2 %v9290_v9  ;;  %v9569_v21 = vld [vmem:[%s14050_s17 + $0x960] sm:$0xf]  ;;  %v9250_v22 = vor.u32 %v12505_v20, %v9249_v19  ;;  %v12585_v23 = vld [vmem:[%s14050_s17 + $0x984] sm:$0xf0]  ;;  %v12335_v25 = vld [vmem:[%s14050_s17 + $0x1b4] sm:$0xf0] }
  0x8a   : > { %3047 = vmatpush.bf16.msra.mxu3 %v9610_v13  ;;  %v9570_v26 = vor.u32 %v12585_v23, %v9569_v21  ;;  %v8889_v27 = vld [vmem:[%s14050_s17 + $0x410] sm:$0xf]  ;;  %v12415_v28 = vld [vmem:[%s14050_s17 + $0x434] sm:$0xf0]  ;;  %v8570_v30 = vor.u32 %v12335_v25, %v8569_v24  ;;  %v8529_v36 = vld [vmem:[%s14050_s17 + $0x140] sm:$0xf] }
  0x8b   : > { %v9209_v29 = vld [vmem:[%s14050_s17 + $0x690] sm:$0xf]  ;;  %3009 = vmatpush.bf16.msra.mxu0 %v8610_v17  ;;  %v12495_v31 = vld [vmem:[%s14050_s17 + $0x6b4] sm:$0xf0]  ;;  %v8890_v34 = vor.u32 %v12415_v28, %v8889_v27  ;;  %v12325_v37 = vld [vmem:[%s14050_s17 + $0x164] sm:$0xf0] }
  0x8c   : > { %v9529_v32 = vld [vmem:[%s14050_s17 + $0x910] sm:$0xf]  ;;  %v12575_v33 = vld [vmem:[%s14050_s17 + $0x934] sm:$0xf0]  ;;  %3022 = vmatpush.bf16.msra.mxu1 %v8930_v18  ;;  %v9210_v35 = vor.u32 %v12495_v31, %v9209_v29  ;;  %v8849_v38 = vld [vmem:[%s14050_s17 + $0x3c0] sm:$0xf]  ;;  %v8530_v45 = vor.u32 %v12325_v37, %v8529_v36 }
  0x8d   : > { %3035 = vmatpush.bf16.msra.mxu2 %v9250_v22  ;;  %v9530_v39 = vor.u32 %v12575_v33, %v9529_v32  ;;  %v12405_v40 = vld [vmem:[%s14050_s17 + $0x3e4] sm:$0xf0]  ;;  %v9169_v41 = vld [vmem:[%s14050_s17 + $0x640] sm:$0xf]  ;;  %v8489_v48 = vld [vmem:[%s14050_s17 + $0xf0] sm:$0xf] }
  0x8e   : > { %3048 = vmatpush.bf16.msra.mxu3 %v9570_v26  ;;  %v12485_v42 = vld [vmem:[%s14050_s17 + $0x664] sm:$0xf0]  ;;  %v9489_v43 = vld [vmem:[%s14050_s17 + $0x8c0] sm:$0xf]  ;;  %v8850_v46 = vor.u32 %v12405_v40, %v8849_v38  ;;  %v12315_v49 = vld [vmem:[%s14050_s17 + $0x114] sm:$0xf0] }
  0x8f   : > { %v12565_v44 = vld [vmem:[%s14050_s17 + $0x8e4] sm:$0xf0]  ;;  %3010 = vmatpush.bf16.msra.mxu0 %v8570_v30  ;;  %v9170_v47 = vor.u32 %v12485_v42, %v9169_v41  ;;  %v8809_v50 = vld [vmem:[%s14050_s17 + $0x370] sm:$0xf]  ;;  %v12395_v52 = vld [vmem:[%s14050_s17 + $0x394] sm:$0xf0]  ;;  %v8490_v57 = vor.u32 %v12315_v49, %v8489_v48 }
  0x90   : > { %3023 = vmatpush.bf16.msra.mxu1 %v8890_v34  ;;  %v9490_v51 = vor.u32 %v12565_v44, %v9489_v43  ;;  %v9129_v53 = vld [vmem:[%s14050_s17 + $0x5f0] sm:$0xf]  ;;  %v12475_v54 = vld [vmem:[%s14050_s17 + $0x614] sm:$0xf0]  ;;  %v8810_v58 = vor.u32 %v12395_v52, %v8809_v50  ;;  %v8449_v60 = vld [vmem:[%s14050_s17 + $0xa0] sm:$0xf] }
  0x91   : > { %3036 = vmatpush.bf16.msra.mxu2 %v9210_v35  ;;  %v9449_v55 = vld [vmem:[%s14050_s17 + $0x870] sm:$0xf]  ;;  %v12555_v56 = vld [vmem:[%s14050_s17 + $0x894] sm:$0xf0]  ;;  %v9130_v59 = vor.u32 %v12475_v54, %v9129_v53  ;;  %v12305_v61 = vld [vmem:[%s14050_s17 + $0xc4] sm:$0xf0] }
  0x92   : > { %3049 = vmatpush.bf16.msra.mxu3 %v9530_v39  ;;  %v8769_v62 = vld [vmem:[%s14050_s17 + $0x320] sm:$0xf]  ;;  %v9450_v63 = vor.u32 %v12555_v56, %v9449_v55  ;;  %v12385_v0 = vld [vmem:[%s14050_s17 + $0x344] sm:$0xf0]  ;;  %v8450_v5 = vor.u32 %v12305_v61, %v8449_v60  ;;  %v8409_v8 = vld [vmem:[%s14050_s17 + $0x50] sm:$0xf] }
  0x93   : > { %3011 = vmatpush.bf16.msra.mxu0 %v8530_v45  ;;  %v9089_v1 = vld [vmem:[%s14050_s17 + $0x5a0] sm:$0xf]  ;;  %v12465_v2 = vld [vmem:[%s14050_s17 + $0x5c4] sm:$0xf0]  ;;  %v8770_v6 = vor.u32 %v12385_v0, %v8769_v62  ;;  %v12295_v9 = vld [vmem:[%s14050_s17 + $0x74] sm:$0xf0] }
  0x94   : > { %3024 = vmatpush.bf16.msra.mxu1 %v8850_v46  ;;  %v9409_v3 = vld [vmem:[%s14050_s17 + $0x820] sm:$0xf]  ;;  %v12545_v4 = vld [vmem:[%s14050_s17 + $0x844] sm:$0xf0]  ;;  %v9090_v7 = vor.u32 %v12465_v2, %v9089_v1  ;;  %v8729_v10 = vld [vmem:[%s14050_s17 + $0x2d0] sm:$0xf]  ;;  %v8410_v17 = vor.u32 %v12295_v9, %v8409_v8 }
  0x95   : > { %3037 = vmatpush.bf16.msra.mxu2 %v9170_v47  ;;  %v9410_v11 = vor.u32 %v12545_v4, %v9409_v3  ;;  %v12375_v12 = vld [vmem:[%s14050_s17 + $0x2f4] sm:$0xf0]  ;;  %v9049_v13 = vld [vmem:[%s14050_s17 + $0x550] sm:$0xf]  ;;  %v8369_v18 = vld [vmem:[%s14050_s17] sm:$0xf] }
  0x96   : > { %3050 = vmatpush.bf16.msra.mxu3 %v9490_v51  ;;  %v12455_v14 = vld [vmem:[%s14050_s17 + $0x574] sm:$0xf0]  ;;  %v9369_v15 = vld [vmem:[%s14050_s17 + $0x7d0] sm:$0xf]  ;;  %v12285_v19 = vld [vmem:[%s14050_s17 + $0x24] sm:$0xf0]  ;;  %v8730_v20 = vor.u32 %v12375_v12, %v8729_v10 }
  0x97   : > { %3012 = vmatpush.bf16.msra.mxu0 %v8490_v57  ;;  %v12535_v16 = vld [vmem:[%s14050_s17 + $0x7f4] sm:$0xf0]  ;;  %v9050_v21 = vor.u32 %v12455_v14, %v9049_v13  ;;  %v8689_v22 = vld [vmem:[%s14050_s17 + $0x280] sm:$0xf]  ;;  %v12365_v23 = vld [vmem:[%s14050_s17 + $0x2a4] sm:$0xf0]  ;;  %v8370_v32 = vor.u32 %v12285_v19, %v8369_v18 }
  0x98   : > { %3025 = vmatpush.bf16.msra.mxu1 %v8810_v58  ;;  %v9009_v24 = vld [vmem:[%s14050_s17 + $0x500] sm:$0xf]  ;;  %v9370_v25 = vor.u32 %v12535_v16, %v9369_v15  ;;  %v12445_v26 = vld [vmem:[%s14050_s17 + $0x524] sm:$0xf0]  ;;  %v9929_v29 = vld [vmem:[%s14050_s17 + $0xc30] sm:$0xf]  ;;  %v8690_v36 = vor.u32 %v12365_v23, %v8689_v22 }
  0x99   : > { %3038 = vmatpush.bf16.msra.mxu2 %v9130_v59  ;;  %v9329_v27 = vld [vmem:[%s14050_s17 + $0x780] sm:$0xf]  ;;  %v12525_v28 = vld [vmem:[%s14050_s17 + $0x7a4] sm:$0xf0]  ;;  %v12675_v30 = vld [vmem:[%s14050_s17 + $0xc54] sm:$0xf0]  ;;  %v9010_v37 = vor.u32 %v12445_v26, %v9009_v24 }
  0x9a   : > { %3051 = vmatpush.bf16.msra.mxu3 %v9450_v63  ;;  %v12350_v31 = vld [vmem:[%s14050_s17 + $0x234] sm:$0xf]  ;;  %v8651_v33 = vld [vmem:[%s14050_s17 + $0x258] sm:$0xf0]  ;;  %v9330_v40 = vor.u32 %v12525_v28, %v9329_v27  ;;  %v9930_v41 = vor.u32 %v12675_v30, %v9929_v29  ;;  %v9889_v44 = vld [vmem:[%s14050_s17 + $0xbe0] sm:$0xf] }
  0x9b   : > { %3013 = vmatpush.bf16.msra.mxu0 %v8450_v5  ;;  %v12430_v34 = vld [vmem:[%s14050_s17 + $0x4b4] sm:$0xf]  ;;  %v8971_v35 = vld [vmem:[%s14050_s17 + $0x4d8] sm:$0xf0]  ;;  %v8654_v42 = vor.u32 %v12350_v31, %v8651_v33  ;;  %v12665_v45 = vld [vmem:[%s14050_s17 + $0xc04] sm:$0xf0] }
  0x9c   : > { %3026 = vmatpush.bf16.msra.mxu1 %v8770_v6  ;;  %v12510_v38 = vld [vmem:[%s14050_s17 + $0x734] sm:$0xf]  ;;  %v9291_v39 = vld [vmem:[%s14050_s17 + $0x758] sm:$0xf0]  ;;  %v8974_v43 = vor.u32 %v12430_v34, %v8971_v35  ;;  %v12340_v46 = vld [vmem:[%s14050_s17 + $0x1e4] sm:$0xf]  ;;  %v9890_v53 = vor.u32 %v12665_v45, %v9889_v44 }
  0x9d   : > { %3039 = vmatpush.bf16.msra.mxu2 %v9090_v7  ;;  %v9294_v47 = vor.u32 %v12510_v38, %v9291_v39  ;;  %v8611_v48 = vld [vmem:[%s14050_s17 + $0x208] sm:$0xf0]  ;;  %v12420_v49 = vld [vmem:[%s14050_s17 + $0x464] sm:$0xf]  ;;  %v9849_v56 = vld [vmem:[%s14050_s17 + $0xb90] sm:$0xf] }
  0x9e   : > { %3052 = vmatpush.bf16.msra.mxu3 %v9410_v11  ;;  %v8931_v50 = vld [vmem:[%s14050_s17 + $0x488] sm:$0xf0]  ;;  %v12500_v51 = vld [vmem:[%s14050_s17 + $0x6e4] sm:$0xf]  ;;  %v8614_v54 = vor.u32 %v12340_v46, %v8611_v48  ;;  %v12655_v57 = vld [vmem:[%s14050_s17 + $0xbb4] sm:$0xf0] }
  0x9f   : > { %3014 = vmatpush.bf16.msra.mxu0 %v8410_v17  ;;  %v9251_v52 = vld [vmem:[%s14050_s17 + $0x708] sm:$0xf0]  ;;  %v8934_v55 = vor.u32 %v12420_v49, %v8931_v50  ;;  %v12330_v58 = vld [vmem:[%s14050_s17 + $0x194] sm:$0xf]  ;;  %v8571_v60 = vld [vmem:[%s14050_s17 + $0x1b8] sm:$0xf0]  ;;  %v9850_v1 = vor.u32 %v12655_v57, %v9849_v56 }
  0xa0   : > { %3027 = vmatpush.bf16.msra.mxu1 %v8730_v20  ;;  %v9254_v59 = vor.u32 %v12500_v51, %v9251_v52  ;;  %v12410_v61 = vld [vmem:[%s14050_s17 + $0x414] sm:$0xf]  ;;  %v8891_v62 = vld [vmem:[%s14050_s17 + $0x438] sm:$0xf0]  ;;  %v563_v2 = vld [vmem:[#allocation3] sm:$0xff]  ;;  %v8574_v3 = vor.u32 %v12330_v58, %v8571_v60  ;;  %p11247_p1 = scmp.ne.s32.totalorder %s13896_s20, 1 }
  0xa1   : > { %3040 = vmatpush.bf16.msra.mxu2 %v9050_v21  ;;  %v12490_v63 = vld [vmem:[%s14050_s17 + $0x694] sm:$0xf]  ;;  %v9211_v0 = vld [vmem:[%s14050_s17 + $0x6b8] sm:$0xf0]  ;;  %v8894_v4 = vor.u32 %v12410_v61, %v8891_v62  ;;  %v9809_v5 = vld [vmem:[%s14050_s17 + $0xb40] sm:$0xf]  ;;  %v993_v8 = vunpack.c.l.b16 %v563_v2  ;;  %v994_v9 = vunpack.c.h.b16 %v563_v2 }
  0xa2   : > { %3053 = vmatpush.bf16.msra.mxu3 %v9370_v25  ;;  %v12645_v6 = vld [vmem:[%s14050_s17 + $0xb64] sm:$0xf0]  ;;  %v12320_v7 = vld [vmem:[%s14050_s17 + $0x144] sm:$0xf]  ;;  %v9214_v10 = vor.u32 %v12490_v63, %v9211_v0  ;;  %v8531_v11 = vld [vmem:[%s14050_s17 + $0x168] sm:$0xf0] }
  0xa3   : > { %3015 = vmatpush.bf16.msra.mxu0 %v8370_v32  ;;  %v12400_v12 = vld [vmem:[%s14050_s17 + $0x3c4] sm:$0xf]  ;;  %v8851_v13 = vld [vmem:[%s14050_s17 + $0x3e8] sm:$0xf0]  ;;  %v14178_v16 = vpack.c.b16 %v993_v8, %v993_v8  ;;  %v14180_v17 = vpack.c.b16 %v994_v9, %v994_v9  ;;  %v564_v18 = vld [vmem:[#allocation3 + $0x8] sm:$0xff]  ;;  %v9810_v19 = vor.u32 %v12645_v6, %v9809_v5  ;;  %v8534_v22 = vor.u32 %v12320_v7, %v8531_v11  ;;  %s8140_s28 = sld [smem:[#allocation19]] (!%p11247_p1) }
  0xa4   : > { %3028 = vmatpush.bf16.msra.mxu1 %v8690_v36  ;;  %v12480_v14 = vld [vmem:[%s14050_s17 + $0x644] sm:$0xf]  ;;  %v9171_v15 = vld [vmem:[%s14050_s17 + $0x668] sm:$0xf0]  ;;  %v995_v20 = vunpack.c.l.b16 %v564_v18  ;;  %v996_v21 = vunpack.c.h.b16 %v564_v18  ;;  %v8854_v23 = vor.u32 %v12400_v12, %v8851_v13  ;;  %v9769_v24 = vld [vmem:[%s14050_s17 + $0xaf0] sm:$0xf] }
  0xa5   : > { %3041 = vmatpush.bf16.msra.mxu2 %v9010_v37  ;;  %v12635_v25 = vld [vmem:[%s14050_s17 + $0xb14] sm:$0xf0]  ;;  %v12310_v26 = vld [vmem:[%s14050_s17 + $0xf4] sm:$0xf]  ;;  %v9174_v27 = vor.u32 %v12480_v14, %v9171_v15  ;;  %v8491_v28 = vld [vmem:[%s14050_s17 + $0x118] sm:$0xf0] }
  0xa6   : > { %3054 = vmatpush.bf16.msra.mxu3 %v9330_v40  ;;  %v12390_v29 = vld [vmem:[%s14050_s17 + $0x374] sm:$0xf]  ;;  %v8811_v30 = vld [vmem:[%s14050_s17 + $0x398] sm:$0xf0]  ;;  %3016 = vmatmul.bf16.vlgmr.msra.gmra.mxu0 %v14178_v16  ;;  %v14189_v31 = vpack.c.b16 %v995_v20, %v995_v20  ;;  %v14194_v34 = vpack.c.b16 %v996_v21, %v996_v21  ;;  %v9770_v35 = vor.u32 %v12635_v25, %v9769_v24  ;;  %v9729_v38 = vld [vmem:[%s14050_s17 + $0xaa0] sm:$0xf] }
  0xa7   : > { %3060 = vmatpush.bf16.msrb.mxu0 %v9930_v41  ;;  %v12470_v32 = vld [vmem:[%s14050_s17 + $0x5f4] sm:$0xf]  ;;  %v9131_v33 = vld [vmem:[%s14050_s17 + $0x618] sm:$0xf0]  ;;  %3029 = vmatmul.bf16.vlgmr.msra.gmra.mxu1 %v14180_v17  ;;  %v8494_v36 = vor.u32 %v12310_v26, %v8491_v28  ;;  %v8814_v37 = vor.u32 %v12390_v29, %v8811_v30  ;;  %v12625_v39 = vld [vmem:[%s14050_s17 + $0xac4] sm:$0xf0] }
  0xa8   : > { %3073 = vmatpush.bf16.msrb.mxu1 %v8654_v42  ;;  %3042 = vmatmul.bf16.vlgmr.msra.gmra.mxu2 %v14189_v31  ;;  %v12300_v40 = vld [vmem:[%s14050_s17 + $0xa4] sm:$0xf]  ;;  %v9134_v41 = vor.u32 %v12470_v32, %v9131_v33  ;;  %v8451_v42 = vld [vmem:[%s14050_s17 + $0xc8] sm:$0xf0]  ;;  %v9689_v50 = vld [vmem:[%s14050_s17 + $0xa50] sm:$0xf] }
  0xa9   : > { %3086 = vmatpush.bf16.msrb.mxu2 %v8974_v43  ;;  %v12380_v43 = vld [vmem:[%s14050_s17 + $0x324] sm:$0xf]  ;;  %v8771_v44 = vld [vmem:[%s14050_s17 + $0x348] sm:$0xf0]  ;;  %3055 = vmatmul.bf16.vlgmr.msra.gmra.mxu3 %v14194_v34  ;;  %v8454_v48 = vor.u32 %v12300_v40, %v8451_v42  ;;  %v12615_v51 = vld [vmem:[%s14050_s17 + $0xa74] sm:$0xf0] }
  0xaa   : > { %3099 = vmatpush.bf16.msrb.mxu3 %v9294_v47  ;;  %v12460_v45 = vld [vmem:[%s14050_s17 + $0x5a4] sm:$0xf]  ;;  %v9091_v46 = vld [vmem:[%s14050_s17 + $0x5c8] sm:$0xf0]  ;;  %v9730_v47 = vor.u32 %v12625_v39, %v9729_v38  ;;  %v8774_v49 = vor.u32 %v12380_v43, %v8771_v44  ;;  %v12290_v52 = vld [vmem:[%s14050_s17 + $0x54] sm:$0xf] }
  0xab   : > { %3061 = vmatpush.bf16.msrb.mxu0 %v9890_v53  ;;  %v9094_v53 = vor.u32 %v12460_v45, %v9091_v46  ;;  %v8731_v56 = vld [vmem:[%s14050_s17 + $0x2f8] sm:$0xf0]  ;;  %v12450_v57 = vld [vmem:[%s14050_s17 + $0x554] sm:$0xf]  ;;  %v9649_v60 = vld [vmem:[%s14050_s17 + $0xa00] sm:$0xf] }
  0xac   : > { %3074 = vmatpush.bf16.msrb.mxu1 %v8614_v54  ;;  %v8411_v54 = vld [vmem:[%s14050_s17 + $0x78] sm:$0xf0]  ;;  %v12605_v61 = vld [vmem:[%s14050_s17 + $0xa24] sm:$0xf0]  ;;  %v12280_v62 = vld [vmem:[%s14050_s17 + $0x4] sm:$0xf] }
  0xad   : > { %3087 = vmatpush.bf16.msrb.mxu2 %v8934_v55  ;;  %v12370_v55 = vld [vmem:[%s14050_s17 + $0x2d4] sm:$0xf]  ;;  %v9051_v58 = vld [vmem:[%s14050_s17 + $0x578] sm:$0xf0]  ;;  %v8414_v63 = vor.u32 %v12290_v52, %v8411_v54  ;;  %v12360_v2 = vld [vmem:[%s14050_s17 + $0x284] sm:$0xf]  ;;  %v9650_v11 = vor.u32 %v12605_v61, %v9649_v60 }
  0xae   : > { %3100 = vmatpush.bf16.msrb.mxu3 %v9254_v59  ;;  %v9690_v59 = vor.u32 %v12615_v51, %v9689_v50  ;;  %v8734_v0 = vor.u32 %v12370_v55, %v8731_v56  ;;  %v8691_v5 = vld [vmem:[%s14050_s17 + $0x2a8] sm:$0xf0]  ;;  %v12440_v6 = vld [vmem:[%s14050_s17 + $0x504] sm:$0xf]  ;;  %v12590_v8 = vld [vmem:[%s14050_s17 + $0x9b4] sm:$0xf] }
  0xaf   : > { %3062 = vmatpush.bf16.msrb.mxu0 %v9850_v1  ;;  %v8371_v1 = vld [vmem:[%s14050_s17 + $0x28] sm:$0xf0]  ;;  %v9611_v9 = vld [vmem:[%s14050_s17 + $0x9d8] sm:$0xf0]  ;;  %v8657_v13 = vld [vmem:[%s14050_s17 + $0x238] sm:$0xf] }
  0xb0   : > { %3075 = vmatpush.bf16.msrb.mxu1 %v8574_v3  ;;  %v565_v3 = vld [vmem:[#allocation3 + $0x10] sm:$0xf]  ;;  %v9011_v7 = vld [vmem:[%s14050_s17 + $0x528] sm:$0xf0]  ;;  %v12356_v14 = vld [vmem:[%s14050_s17 + $0x25c] sm:$0xf0]  ;;  %v8374_v18 = vor.u32 %v12280_v62, %v8371_v1 }
  0xb1   : > { %3088 = vmatpush.bf16.msrb.mxu2 %v8894_v4  ;;  %v9054_v4 = vor.u32 %v12450_v57, %v9051_v58  ;;  %v9931_v12 = vld [vmem:[%s14050_s17 + $0xc58] sm:$0xf0]  ;;  %v997_v15 = vunpack.c.l.b16 %v565_v3  ;;  %v8977_v20 = vld [vmem:[%s14050_s17 + $0x4b8] sm:$0xf]  ;;  %v12436_v21 = vld [vmem:[%s14050_s17 + $0x4dc] sm:$0xf0]  ;;  %v8658_v25 = vor.u32 %v12356_v14, %v8657_v13 }
  0xb2   : > { %3101 = vmatpush.bf16.msrb.mxu3 %v9214_v10  ;;  %v12670_v10 = vld [vmem:[%s14050_s17 + $0xc34] sm:$0xf]  ;;  %v12580_v26 = vld [vmem:[%s14050_s17 + $0x964] sm:$0xf]  ;;  %v8978_v29 = vor.u32 %v12436_v21, %v8977_v20  ;;  %v9891_v30 = vld [vmem:[%s14050_s17 + $0xc08] sm:$0xf0] }
  0xb3   : > { %3063 = vmatpush.bf16.msrb.mxu0 %v9810_v19  ;;  %v8694_v19 = vor.u32 %v12360_v2, %v8691_v5  ;;  %v9934_v24 = vor.u32 %v12670_v10, %v9931_v12  ;;  %v12660_v28 = vld [vmem:[%s14050_s17 + $0xbe4] sm:$0xf]  ;;  %v8617_v32 = vld [vmem:[%s14050_s17 + $0x1e8] sm:$0xf]  ;;  %v12346_v33 = vld [vmem:[%s14050_s17 + $0x20c] sm:$0xf0] }
  0xb4   : > { %3076 = vmatpush.bf16.msrb.mxu1 %v8534_v22  ;;  %v9014_v22 = vor.u32 %v12440_v6, %v9011_v7  ;;  %v9894_v39 = vor.u32 %v12660_v28, %v9891_v30  ;;  %v8618_v40 = vor.u32 %v12346_v33, %v8617_v32  ;;  %v9531_v42 = vld [vmem:[%s14050_s17 + $0x938] sm:$0xf0]  ;;  %v12650_v43 = vld [vmem:[%s14050_s17 + $0xb94] sm:$0xf]  ;;  %v8577_v46 = vld [vmem:[%s14050_s17 + $0x198] sm:$0xf] }
  0xb5   : > { %3089 = vmatpush.bf16.msrb.mxu2 %v8854_v23  ;;  %v9614_v23 = vor.u32 %v12590_v8, %v9611_v9  ;;  %v9851_v45 = vld [vmem:[%s14050_s17 + $0xbb8] sm:$0xf0]  ;;  %v9491_v54 = vld [vmem:[%s14050_s17 + $0x8e8] sm:$0xf0]  ;;  %v12640_v55 = vld [vmem:[%s14050_s17 + $0xb44] sm:$0xf] }
  0xb6   : > { %3102 = vmatpush.bf16.msrb.mxu3 %v9174_v27  ;;  %v9571_v27 = vld [vmem:[%s14050_s17 + $0x988] sm:$0xf0]  ;;  %v9854_v51 = vor.u32 %v12650_v43, %v9851_v45  ;;  %v8537_v58 = vld [vmem:[%s14050_s17 + $0x148] sm:$0xf]  ;;  %v12406_v61 = vld [vmem:[%s14050_s17 + $0x3ec] sm:$0xf0] }
  0xb7   : > { %3064 = vmatpush.bf16.msrb.mxu0 %v9770_v35  ;;  %v14236_v35 = vpack.c.b16 %v997_v15, %v997_v15  ;;  %v9574_v38 = vor.u32 %v12580_v26, %v9571_v27  ;;  %v9811_v57 = vld [vmem:[%s14050_s17 + $0xb68] sm:$0xf0]  ;;  %v8857_v60 = vld [vmem:[%s14050_s17 + $0x3c8] sm:$0xf]  ;;  %v12550_v1 = vld [vmem:[%s14050_s17 + $0x874] sm:$0xf] }
  0xb8   : > { %3077 = vmatpush.bf16.msrb.mxu1 %v8494_v36  ;;  %v8937_v36 = vld [vmem:[%s14050_s17 + $0x468] sm:$0xf]  ;;  %v9451_v2 = vld [vmem:[%s14050_s17 + $0x898] sm:$0xf0]  ;;  %v12630_v3 = vld [vmem:[%s14050_s17 + $0xaf4] sm:$0xf] }
  0xb9   : > { %3090 = vmatpush.bf16.msrb.mxu2 %v8814_v37  ;;  %v12426_v37 = vld [vmem:[%s14050_s17 + $0x48c] sm:$0xf0]  ;;  %v9771_v5 = vld [vmem:[%s14050_s17 + $0xb18] sm:$0xf0]  ;;  %v8497_v6 = vld [vmem:[%s14050_s17 + $0xf8] sm:$0xf]  ;;  %v9454_v10 = vor.u32 %v12550_v1, %v9451_v2 }
  0xba   : > { %3103 = vmatpush.bf16.msrb.mxu3 %v9134_v41  ;;  %v12570_v41 = vld [vmem:[%s14050_s17 + $0x914] sm:$0xf]  ;;  %v8938_v44 = vor.u32 %v12426_v37, %v8937_v36  ;;  %v12316_v7 = vld [vmem:[%s14050_s17 + $0x11c] sm:$0xf0]  ;;  %v8817_v8 = vld [vmem:[%s14050_s17 + $0x378] sm:$0xf] }
  0xbb   : > { %3065 = vmatpush.bf16.msrb.mxu0 %v9730_v47  ;;  %v12336_v47 = vld [vmem:[%s14050_s17 + $0x1bc] sm:$0xf0]  ;;  %v9534_v50 = vor.u32 %v12570_v41, %v9531_v42  ;;  %v8498_v12 = vor.u32 %v12316_v7, %v8497_v6  ;;  %v12540_v13 = vld [vmem:[%s14050_s17 + $0x824] sm:$0xf]  ;;  %v9411_v14 = vld [vmem:[%s14050_s17 + $0x848] sm:$0xf0] }
  0xbc   : > { %3078 = vmatpush.bf16.msrb.mxu1 %v8454_v48  ;;  %v8897_v48 = vld [vmem:[%s14050_s17 + $0x418] sm:$0xf]  ;;  %v8578_v52 = vor.u32 %v12336_v47, %v8577_v46  ;;  %v12396_v9 = vld [vmem:[%s14050_s17 + $0x39c] sm:$0xf0]  ;;  %v12620_v15 = vld [vmem:[%s14050_s17 + $0xaa4] sm:$0xf] }
  0xbd   : > { %3091 = vmatpush.bf16.msrb.mxu2 %v8774_v49  ;;  %v12416_v49 = vld [vmem:[%s14050_s17 + $0x43c] sm:$0xf0]  ;;  %v8457_v20 = vld [vmem:[%s14050_s17 + $0xa8] sm:$0xf]  ;;  %v12306_v21 = vld [vmem:[%s14050_s17 + $0xcc] sm:$0xf0] }
  0xbe   : > { %3104 = vmatpush.bf16.msrb.mxu3 %v9094_v53  ;;  %v12560_v53 = vld [vmem:[%s14050_s17 + $0x8c4] sm:$0xf]  ;;  %v8898_v56 = vor.u32 %v12416_v49, %v8897_v48  ;;  %v8458_v26 = vor.u32 %v12306_v21, %v8457_v20  ;;  %v12530_v27 = vld [vmem:[%s14050_s17 + $0x7d4] sm:$0xf]  ;;  %v9371_v28 = vld [vmem:[%s14050_s17 + $0x7f8] sm:$0xf0] }
  0xbf   : > { %3066 = vmatpush.bf16.msrb.mxu0 %v9690_v59  ;;  %v12326_v59 = vld [vmem:[%s14050_s17 + $0x16c] sm:$0xf0]  ;;  %v9494_v62 = vor.u32 %v12560_v53, %v9491_v54  ;;  %v9691_v32 = vld [vmem:[%s14050_s17 + $0xa78] sm:$0xf0]  ;;  %v8417_v33 = vld [vmem:[%s14050_s17 + $0x58] sm:$0xf] }
  0xc0   : > { %3079 = vmatpush.bf16.msrb.mxu1 %v8414_v63  ;;  %v9814_v63 = vor.u32 %v12640_v55, %v9811_v57  ;;  %v12296_v36 = vld [vmem:[%s14050_s17 + $0x7c] sm:$0xf0]  ;;  %v8737_v37 = vld [vmem:[%s14050_s17 + $0x2d8] sm:$0xf]  ;;  %v9331_v41 = vld [vmem:[%s14050_s17 + $0x7a8] sm:$0xf0] }
  0xc1   : > { %3092 = vmatpush.bf16.msrb.mxu2 %v8734_v0  ;;  %v8538_v0 = vor.u32 %v12326_v59, %v8537_v58  ;;  %v8418_v43 = vor.u32 %v12296_v36, %v8417_v33  ;;  %v9651_v45 = vld [vmem:[%s14050_s17 + $0xa28] sm:$0xf0]  ;;  %v8377_v46 = vld [vmem:[%s14050_s17 + $0x8] sm:$0xf]  ;;  %v12286_v48 = vld [vmem:[%s14050_s17 + $0x2c] sm:$0xf0] }
  0xc2   : > { %3105 = vmatpush.bf16.msrb.mxu3 %v9054_v4  ;;  %v8858_v4 = vor.u32 %v12406_v61, %v8857_v60  ;;  %v8697_v49 = vld [vmem:[%s14050_s17 + $0x288] sm:$0xf]  ;;  %v9617_v53 = vld [vmem:[%s14050_s17 + $0x9b8] sm:$0xf]  ;;  %v12596_v55 = vld [vmem:[%s14050_s17 + $0x9dc] sm:$0xf0]  ;;  %v8378_v59 = vor.u32 %v12286_v48, %v8377_v46 }
  0xc3   : > { %3067 = vmatpush.bf16.msrb.mxu0 %v9650_v11  ;;  %v9774_v11 = vor.u32 %v12630_v3, %v9771_v5  ;;  %v12676_v57 = vld [vmem:[%s14050_s17 + $0xc5c] sm:$0xf0]  ;;  %v12351_v60 = vld [vmem:[%s14050_s17 + $0x23c] sm:$0xf]  ;;  %v8659_v61 = vld [vmem:[%s14050_s17 + $0x260] sm:$0xf0] }
  0xc4   : > { %3080 = vmatpush.bf16.msrb.mxu1 %v8374_v18  ;;  %v8818_v18 = vor.u32 %v12396_v9, %v8817_v8  ;;  %v9257_v2 = vld [vmem:[%s14050_s17 + $0x6e8] sm:$0xf]  ;;  %v12506_v3 = vld [vmem:[%s14050_s17 + $0x70c] sm:$0xf0]  ;;  %v8662_v5 = vor.u32 %v12351_v60, %v8659_v61  ;;  %v12341_v9 = vld [vmem:[%s14050_s17 + $0x1ec] sm:$0xf] }
  0xc5   : > { %3093 = vmatpush.bf16.msrb.mxu2 %v8694_v19  ;;  %v9731_v19 = vld [vmem:[%s14050_s17 + $0xac8] sm:$0xf0]  ;;  %v12586_v6 = vld [vmem:[%s14050_s17 + $0x98c] sm:$0xf0]  ;;  %v9897_v7 = vld [vmem:[%s14050_s17 + $0xbe8] sm:$0xf] }
  0xc6   : > { %3106 = vmatpush.bf16.msrb.mxu3 %v9014_v22  ;;  %3068 = vmatmul.bf16.vlgmr.msrb.gmra.mxu0 %v14236_v35  ;;  %v8777_v22 = vld [vmem:[%s14050_s17 + $0x328] sm:$0xf]  ;;  %v12666_v8 = vld [vmem:[%s14050_s17 + $0xc0c] sm:$0xf0]  ;;  %v12576_v20 = vld [vmem:[%s14050_s17 + $0x93c] sm:$0xf0] }
  0xc7   : > { %3112 = vmatpush.bf16.msra.mxu0 %v9614_v23  ;;  %3081 = vmatmul.bf16.vlgmr.msrb.gmra.mxu1 %v14178_v16  ;;  %v12386_v23 = vld [vmem:[%s14050_s17 + $0x34c] sm:$0xf0]  ;;  %v9857_v21 = vld [vmem:[%s14050_s17 + $0xb98] sm:$0xf]  ;;  %v9817_v36 = vld [vmem:[%s14050_s17 + $0xb48] sm:$0xf] }
  0xc8   : > { %3125 = vmatpush.bf16.msra.mxu1 %v9934_v24  ;;  %3094 = vmatmul.bf16.vlgmr.msrb.gmra.mxu2 %v14180_v17  ;;  %v9414_v24 = vor.u32 %v12540_v13, %v9411_v14  ;;  %v8778_v30 = vor.u32 %v12386_v23, %v8777_v22  ;;  %v9898_v13 = vor.u32 %v12666_v8, %v9897_v7  ;;  %v9217_v14 = vld [vmem:[%s14050_s17 + $0x698] sm:$0xf]  ;;  %v12656_v22 = vld [vmem:[%s14050_s17 + $0xbbc] sm:$0xf0]  ;;  %v12331_v23 = vld [vmem:[%s14050_s17 + $0x19c] sm:$0xf] }
  0xc9   : > { %3138 = vmatpush.bf16.msra.mxu2 %v8658_v25  ;;  %3107 = vmatmul.bf16.vlgmr.msrb.gmra.mxu3 %v14189_v31  ;;  %v9734_v25 = vor.u32 %v12620_v15, %v9731_v19  ;;  %v12496_v15 = vld [vmem:[%s14050_s17 + $0x6bc] sm:$0xf0]  ;;  %v12566_v33 = vld [vmem:[%s14050_s17 + $0x8ec] sm:$0xf0]  ;;  %v9777_v48 = vld [vmem:[%s14050_s17 + $0xaf8] sm:$0xf] }
  0xca   : > { %3151 = vmatpush.bf16.msra.mxu3 %v8978_v29  ;;  %v12610_v29 = vld [vmem:[%s14050_s17 + $0xa54] sm:$0xf]  ;;  %v9737_v60 = vld [vmem:[%s14050_s17 + $0xaa8] sm:$0xf]  ;;  %v12626_v61 = vld [vmem:[%s14050_s17 + $0xacc] sm:$0xf0] }
  0xcb   : > { %3113 = vmatpush.bf16.msra.mxu0 %v9574_v38  ;;  %v12376_v38 = vld [vmem:[%s14050_s17 + $0x2fc] sm:$0xf0]  ;;  %v9694_v42 = vor.u32 %v12610_v29, %v9691_v32  ;;  %v12486_v29 = vld [vmem:[%s14050_s17 + $0x66c] sm:$0xf0]  ;;  %v9697_v8 = vld [vmem:[%s14050_s17 + $0xa58] sm:$0xf] }
  0xcc   : > { %3126 = vmatpush.bf16.msra.mxu1 %v9894_v39  ;;  %v9374_v39 = vor.u32 %v12530_v27, %v9371_v28  ;;  %v8738_v47 = vor.u32 %v12376_v38, %v8737_v37  ;;  %v9858_v27 = vor.u32 %v12656_v22, %v9857_v21  ;;  %v9177_v28 = vld [vmem:[%s14050_s17 + $0x648] sm:$0xf]  ;;  %v12646_v37 = vld [vmem:[%s14050_s17 + $0xb6c] sm:$0xf0]  ;;  %v12321_v38 = vld [vmem:[%s14050_s17 + $0x14c] sm:$0xf] }
  0xcd   : > { %3139 = vmatpush.bf16.msra.mxu2 %v8618_v40  ;;  %v12520_v40 = vld [vmem:[%s14050_s17 + $0x784] sm:$0xf]  ;;  %v12536_v7 = vld [vmem:[%s14050_s17 + $0x7fc] sm:$0xf0]  ;;  %v9657_v21 = vld [vmem:[%s14050_s17 + $0xa08] sm:$0xf] }
  0xce   : > { %3152 = vmatpush.bf16.msra.mxu3 %v8938_v44  ;;  %v12600_v44 = vld [vmem:[%s14050_s17 + $0xa04] sm:$0xf]  ;;  %v9334_v54 = vor.u32 %v12520_v40, %v9331_v41  ;;  %v9178_v40 = vor.u32 %v12486_v29, %v9177_v28  ;;  %v12511_v28 = vld [vmem:[%s14050_s17 + $0x73c] sm:$0xf]  ;;  %s12272_s29 = sld [smem:[#allocation19 + $0x1]] (!%p11247_p1) }
  0xcf   : > { %3114 = vmatpush.bf16.msra.mxu0 %v9534_v50  ;;  %v12366_v50 = vld [vmem:[%s14050_s17 + $0x2ac] sm:$0xf0]  ;;  %v9654_v58 = vor.u32 %v12600_v44, %v9651_v45  ;;  %v12476_v44 = vld [vmem:[%s14050_s17 + $0x61c] sm:$0xf0]  ;;  %v9457_v45 = vld [vmem:[%s14050_s17 + $0x878] sm:$0xf] }
  0xd0   : > { %3127 = vmatpush.bf16.msra.mxu1 %v9854_v51  ;;  %v9297_v51 = vld [vmem:[%s14050_s17 + $0x738] sm:$0xf] }
  0xd1   : > { %3140 = vmatpush.bf16.msra.mxu2 %v8578_v52  ;;  %v12516_v52 = vld [vmem:[%s14050_s17 + $0x75c] sm:$0xf0] }
  0xd2   : > { %3153 = vmatpush.bf16.msra.mxu3 %v8898_v56  ;;  %v9937_v56 = vld [vmem:[%s14050_s17 + $0xc38] sm:$0xf] }
  0xd3   : > { %3115 = vmatpush.bf16.msra.mxu0 %v9494_v62  ;;  %v8698_v62 = vor.u32 %v12366_v50, %v8697_v49  ;;  %v9938_v1 = vor.u32 %v12676_v57, %v9937_v56  ;;  %v12636_v49 = vld [vmem:[%s14050_s17 + $0xb1c] sm:$0xf0]  ;;  %v12311_v50 = vld [vmem:[%s14050_s17 + $0xfc] sm:$0xf]  ;;  %v12466_v56 = vld [vmem:[%s14050_s17 + $0x5cc] sm:$0xf0] }
  0xd4   : > { %3128 = vmatpush.bf16.msra.mxu1 %v9814_v63  ;;  %v9298_v63 = vor.u32 %v12516_v52, %v9297_v51  ;;  %v8499_v51 = vld [vmem:[%s14050_s17 + $0x120] sm:$0xf0]  ;;  %v9417_v57 = vld [vmem:[%s14050_s17 + $0x828] sm:$0xf] }
  0xd5   : > { %3141 = vmatpush.bf16.msra.mxu2 %v8538_v0  ;;  %v9618_v0 = vor.u32 %v12596_v55, %v9617_v53  ;;  %v9097_v55 = vld [vmem:[%s14050_s17 + $0x5a8] sm:$0xf] }
  0xd6   : > { %3154 = vmatpush.bf16.msra.mxu3 %v8858_v4  ;;  %v9577_v4 = vld [vmem:[%s14050_s17 + $0x968] sm:$0xf] }
  0xd7   : > { %3116 = vmatpush.bf16.msra.mxu0 %v9454_v10  ;;  %v8619_v10 = vld [vmem:[%s14050_s17 + $0x210] sm:$0xf0] }
  0xd8   : > { %3129 = vmatpush.bf16.msra.mxu1 %v9774_v11  ;;  %v9258_v11 = vor.u32 %v12506_v3, %v9257_v2  ;;  %v8622_v19 = vor.u32 %v12341_v9, %v8619_v10  ;;  %v9738_v2 = vor.u32 %v12626_v61, %v9737_v60  ;;  %v9057_v3 = vld [vmem:[%s14050_s17 + $0x558] sm:$0xf]  ;;  %v12616_v9 = vld [vmem:[%s14050_s17 + $0xa7c] sm:$0xf0]  ;;  %v12291_v10 = vld [vmem:[%s14050_s17 + $0x5c] sm:$0xf] }
  0xd9   : > { %3142 = vmatpush.bf16.msra.mxu2 %v8498_v12  ;;  %v9578_v12 = vor.u32 %v12586_v6, %v9577_v4  ;;  %v12456_v4 = vld [vmem:[%s14050_s17 + $0x57c] sm:$0xf0]  ;;  %v9219_v60 = vld [vmem:[%s14050_s17 + $0x6c0] sm:$0xf0]  ;;  %v12571_v61 = vld [vmem:[%s14050_s17 + $0x91c] sm:$0xf] }
  0xda   : > { %3155 = vmatpush.bf16.msra.mxu3 %v8818_v18  ;;  %v9537_v18 = vld [vmem:[%s14050_s17 + $0x918] sm:$0xf] }
  0xdb   : > { %3117 = vmatpush.bf16.msra.mxu0 %v9414_v24  ;;  %v8579_v24 = vld [vmem:[%s14050_s17 + $0x1c0] sm:$0xf0] }
  0xdc   : > { %3130 = vmatpush.bf16.msra.mxu1 %v9734_v25  ;;  %v9218_v25 = vor.u32 %v12496_v15, %v9217_v14  ;;  %v8582_v32 = vor.u32 %v12331_v23, %v8579_v24  ;;  %v12446_v14 = vld [vmem:[%s14050_s17 + $0x52c] sm:$0xf0]  ;;  %v12281_v24 = vld [vmem:[%s14050_s17 + $0xc] sm:$0xf] }
  0xdd   : > { %3143 = vmatpush.bf16.msra.mxu2 %v8458_v26  ;;  %v9538_v26 = vor.u32 %v12576_v20, %v9537_v18  ;;  %v9698_v18 = vor.u32 %v12616_v9, %v9697_v8  ;;  %v12526_v20 = vld [vmem:[%s14050_s17 + $0x7ac] sm:$0xf0]  ;;  %v9179_v8 = vld [vmem:[%s14050_s17 + $0x670] sm:$0xf0]  ;;  %v12561_v9 = vld [vmem:[%s14050_s17 + $0x8cc] sm:$0xf] }
  0xde   : > { %3156 = vmatpush.bf16.msra.mxu3 %v8778_v30  ;;  %v9497_v30 = vld [vmem:[%s14050_s17 + $0x8c8] sm:$0xf]  ;;  %v12606_v23 = vld [vmem:[%s14050_s17 + $0xa2c] sm:$0xf0] }
  0xdf   : > { %3118 = vmatpush.bf16.msra.mxu0 %v9374_v39  ;;  %v8539_v39 = vld [vmem:[%s14050_s17 + $0x170] sm:$0xf0]  ;;  %v9498_v41 = vor.u32 %v12566_v33, %v9497_v30  ;;  %v9299_v30 = vld [vmem:[%s14050_s17 + $0x760] sm:$0xf0] }
  0xe0   : > { %3131 = vmatpush.bf16.msra.mxu1 %v9694_v42  ;;  %v9818_v42 = vor.u32 %v12646_v37, %v9817_v36  ;;  %v8542_v46 = vor.u32 %v12321_v38, %v8539_v39  ;;  %v9619_v33 = vld [vmem:[%s14050_s17 + $0x9e0] sm:$0xf0]  ;;  %v9658_v37 = vor.u32 %v12606_v23, %v9657_v21  ;;  %v12671_v38 = vld [vmem:[%s14050_s17 + $0xc3c] sm:$0xf] }
  0xe1   : > { %3144 = vmatpush.bf16.msra.mxu2 %v8418_v43  ;;  %v9137_v43 = vld [vmem:[%s14050_s17 + $0x5f8] sm:$0xf]  ;;  %v9939_v39 = vld [vmem:[%s14050_s17 + $0xc60] sm:$0xf0]  ;;  %v12551_v23 = vld [vmem:[%s14050_s17 + $0x87c] sm:$0xf] }
  0xe2   : > { %3157 = vmatpush.bf16.msra.mxu3 %v8738_v47  ;;  %v12556_v47 = vld [vmem:[%s14050_s17 + $0x89c] sm:$0xf0]  ;;  %v9138_v52 = vor.u32 %v12476_v44, %v9137_v43  ;;  %v12421_v44 = vld [vmem:[%s14050_s17 + $0x46c] sm:$0xf] }
  0xe3   : > { %3119 = vmatpush.bf16.msra.mxu0 %v9334_v54  ;;  %v9458_v53 = vor.u32 %v12556_v47, %v9457_v45  ;;  %v9778_v54 = vor.u32 %v12636_v49, %v9777_v48  ;;  %v8939_v45 = vld [vmem:[%s14050_s17 + $0x490] sm:$0xf0]  ;;  %v9942_v47 = vor.u32 %v12671_v38, %v9939_v39  ;;  %v12581_v49 = vld [vmem:[%s14050_s17 + $0x96c] sm:$0xf] }
  0xe4   : > { %3132 = vmatpush.bf16.msra.mxu1 %v9654_v58  ;;  %v8502_v58 = vor.u32 %v12311_v50, %v8499_v51  ;;  %v9259_v48 = vld [vmem:[%s14050_s17 + $0x710] sm:$0xf0]  ;;  %v12661_v51 = vld [vmem:[%s14050_s17 + $0xbec] sm:$0xf] }
  0xe5   : > { %3145 = vmatpush.bf16.msra.mxu2 %v8378_v59  ;;  %v12546_v59 = vld [vmem:[%s14050_s17 + $0x84c] sm:$0xf0]  ;;  %v9579_v50 = vld [vmem:[%s14050_s17 + $0x990] sm:$0xf0]  ;;  %v12541_v38 = vld [vmem:[%s14050_s17 + $0x82c] sm:$0xf] }
  0xe6   : > { %3158 = vmatpush.bf16.msra.mxu3 %v8698_v62  ;;  %3120 = vmatmul.bf16.vlgmr.msra.gmra.mxu0 %v14194_v34  ;;  %v12301_v62 = vld [vmem:[%s14050_s17 + $0xac] sm:$0xf]  ;;  %v9419_v39 = vld [vmem:[%s14050_s17 + $0x850] sm:$0xf0] }
  0xe7   : > { %3164 = vmatpush.bf16.msrb.mxu0 %v9298_v63  ;;  %3133 = vmatmul.bf16.vlgmr.msra.gmra.mxu1 %v14236_v35  ;;  %v8459_v63 = vld [vmem:[%s14050_s17 + $0xd0] sm:$0xf0] }
  0xe8   : > { %3177 = vmatpush.bf16.msrb.mxu1 %v9618_v0  ;;  %3146 = vmatmul.bf16.vlgmr.msra.gmra.mxu2 %v14178_v16  ;;  %v9098_v0 = vor.u32 %v12466_v56, %v9097_v55  ;;  %v8462_v6 = vor.u32 %v12301_v62, %v8459_v63  ;;  %v9582_v55 = vor.u32 %v12581_v49, %v9579_v50  ;;  %v12411_v56 = vld [vmem:[%s14050_s17 + $0x41c] sm:$0xf]  ;;  %v9539_v62 = vld [vmem:[%s14050_s17 + $0x940] sm:$0xf0] }
  0xe9   : > { %3190 = vmatpush.bf16.msrb.mxu2 %v9938_v1  ;;  %3159 = vmatmul.bf16.vlgmr.msra.gmra.mxu3 %v14180_v17  ;;  %v9418_v1 = vor.u32 %v12546_v59, %v9417_v57  ;;  %v8899_v57 = vld [vmem:[%s14050_s17 + $0x440] sm:$0xf0]  ;;  %v12651_v63 = vld [vmem:[%s14050_s17 + $0xb9c] sm:$0xf] }
  0xea   : > { %3203 = vmatpush.bf16.msrb.mxu3 %v8662_v5  ;;  %v9377_v5 = vld [vmem:[%s14050_s17 + $0x7d8] sm:$0xf]  ;;  %v9059_v49 = vld [vmem:[%s14050_s17 + $0x580] sm:$0xf0]  ;;  %v12531_v50 = vld [vmem:[%s14050_s17 + $0x7dc] sm:$0xf] }
  0xeb   : > { %3165 = vmatpush.bf16.msrb.mxu0 %v9258_v11  ;;  %v8419_v11 = vld [vmem:[%s14050_s17 + $0x80] sm:$0xf0]  ;;  %v9378_v15 = vor.u32 %v12536_v7, %v9377_v5  ;;  %v8859_v5 = vld [vmem:[%s14050_s17 + $0x3f0] sm:$0xf0] }
  0xec   : > { %3178 = vmatpush.bf16.msrb.mxu1 %v9578_v12  ;;  %v9058_v12 = vor.u32 %v12456_v4, %v9057_v3  ;;  %v8422_v22 = vor.u32 %v12291_v10, %v8419_v11  ;;  %v9542_v3 = vor.u32 %v12571_v61, %v9539_v62  ;;  %v12401_v4 = vld [vmem:[%s14050_s17 + $0x3cc] sm:$0xf]  ;;  %v9499_v10 = vld [vmem:[%s14050_s17 + $0x8f0] sm:$0xf0] }
  0xed   : > { %3191 = vmatpush.bf16.msrb.mxu2 %v9898_v13  ;;  %v9017_v13 = vld [vmem:[%s14050_s17 + $0x508] sm:$0xf]  ;;  %v12641_v11 = vld [vmem:[%s14050_s17 + $0xb4c] sm:$0xf] }
  0xee   : > { %3204 = vmatpush.bf16.msrb.mxu3 %v8622_v19  ;;  %v9337_v19 = vld [vmem:[%s14050_s17 + $0x788] sm:$0xf]  ;;  %v9018_v29 = vor.u32 %v12446_v14, %v9017_v13  ;;  %v8862_v13 = vor.u32 %v12401_v4, %v8859_v5  ;;  %v12521_v61 = vld [vmem:[%s14050_s17 + $0x78c] sm:$0xf]  ;;  %v8985_v4 = vld [vmem:[%s14050_s17 + $0x4c0] sm:$0xf] }
  0xef   : > { %3166 = vmatpush.bf16.msrb.mxu0 %v9218_v25  ;;  %v8379_v25 = vld [vmem:[%s14050_s17 + $0x30] sm:$0xf0]  ;;  %v9338_v36 = vor.u32 %v12526_v20, %v9337_v19  ;;  %v8819_v19 = vld [vmem:[%s14050_s17 + $0x3a0] sm:$0xf0]  ;;  %v12471_v20 = vld [vmem:[%s14050_s17 + $0x5fc] sm:$0xf] }
  0xf0   : > { %3179 = vmatpush.bf16.msrb.mxu1 %v9538_v26  ;;  %v12431_v26 = vld [vmem:[%s14050_s17 + $0x4bc] sm:$0xf] }
  0xf1   : > { %3192 = vmatpush.bf16.msrb.mxu2 %v9858_v27  ;;  %v8979_v27 = vld [vmem:[%s14050_s17 + $0x4e0] sm:$0xf0] }
  0xf2   : > { %3205 = vmatpush.bf16.msrb.mxu3 %v8582_v32  ;;  %v12591_v32 = vld [vmem:[%s14050_s17 + $0x9bc] sm:$0xf] }
  0xf3   : > { %3167 = vmatpush.bf16.msrb.mxu0 %v9178_v40  ;;  %v8382_v40 = vor.u32 %v12281_v24, %v8379_v25  ;;  %v9622_v43 = vor.u32 %v12591_v32, %v9619_v33  ;;  %v9459_v24 = vld [vmem:[%s14050_s17 + $0x8a0] sm:$0xf0]  ;;  %v12631_v25 = vld [vmem:[%s14050_s17 + $0xafc] sm:$0xf]  ;;  %v8779_v32 = vld [vmem:[%s14050_s17 + $0x350] sm:$0xf0] }
  0xf4   : > { %3180 = vmatpush.bf16.msrb.mxu1 %v9498_v41  ;;  %v8982_v41 = vor.u32 %v12431_v26, %v8979_v27  ;;  %v9779_v26 = vld [vmem:[%s14050_s17 + $0xb20] sm:$0xf0]  ;;  %v12461_v33 = vld [vmem:[%s14050_s17 + $0x5ac] sm:$0xf] }
  0xf5   : > { %3193 = vmatpush.bf16.msrb.mxu2 %v9818_v42  ;;  %v9302_v42 = vor.u32 %v12511_v28, %v9299_v30  ;;  %v12381_v30 = vld [vmem:[%s14050_s17 + $0x32c] sm:$0xf] }
  0xf6   : > { %3206 = vmatpush.bf16.msrb.mxu3 %v8542_v46  ;;  %v12501_v46 = vld [vmem:[%s14050_s17 + $0x6ec] sm:$0xf] }
  0xf7   : > { %3168 = vmatpush.bf16.msrb.mxu0 %v9138_v52  ;;  %v9899_v52 = vld [vmem:[%s14050_s17 + $0xc10] sm:$0xf0] }
  0xf8   : > { %3181 = vmatpush.bf16.msrb.mxu1 %v9458_v53  ;;  %v8942_v53 = vor.u32 %v12421_v44, %v8939_v45  ;;  %v9902_v59 = vor.u32 %v12661_v51, %v9899_v52  ;;  %v9422_v44 = vor.u32 %v12541_v38, %v9419_v39  ;;  %v12371_v45 = vld [vmem:[%s14050_s17 + $0x2dc] sm:$0xf]  ;;  %v9379_v51 = vld [vmem:[%s14050_s17 + $0x800] sm:$0xf0]  ;;  %v12417_v38 = vld [vmem:[%s14050_s17 + $0x444] sm:$0xf0] }
  0xf9   : > { %3194 = vmatpush.bf16.msrb.mxu2 %v9778_v54  ;;  %v9262_v54 = vor.u32 %v12501_v46, %v9259_v48  ;;  %v8739_v46 = vld [vmem:[%s14050_s17 + $0x300] sm:$0xf0]  ;;  %v12611_v52 = vld [vmem:[%s14050_s17 + $0xa5c] sm:$0xf]  ;;  %v9225_v39 = vld [vmem:[%s14050_s17 + $0x6a0] sm:$0xf] }
  0xfa   : > { %3207 = vmatpush.bf16.msrb.mxu3 %v8502_v58  ;;  %v12491_v58 = vld [vmem:[%s14050_s17 + $0x69c] sm:$0xf] }
  0xfb   : > { %3169 = vmatpush.bf16.msrb.mxu0 %v9098_v0  ;;  %v9859_v0 = vld [vmem:[%s14050_s17 + $0xbc0] sm:$0xf0] }
  0xfc   : > { %3182 = vmatpush.bf16.msrb.mxu1 %v9418_v1  ;;  %v8902_v1 = vor.u32 %v12411_v56, %v8899_v57  ;;  %v9862_v7 = vor.u32 %v12651_v63, %v9859_v0  ;;  %v8699_v56 = vld [vmem:[%s14050_s17 + $0x2b0] sm:$0xf0]  ;;  %v12601_v0 = vld [vmem:[%s14050_s17 + $0xa0c] sm:$0xf] }
  0xfd   : > { %3195 = vmatpush.bf16.msrb.mxu2 %v9738_v2  ;;  %v9222_v2 = vor.u32 %v12491_v58, %v9219_v60  ;;  %v9382_v58 = vor.u32 %v12531_v50, %v9379_v51  ;;  %v9019_v60 = vld [vmem:[%s14050_s17 + $0x530] sm:$0xf0]  ;;  %v12407_v50 = vld [vmem:[%s14050_s17 + $0x3f4] sm:$0xf0]  ;;  %v9185_v51 = vld [vmem:[%s14050_s17 + $0x650] sm:$0xf] }
  0xfe   : > { %3208 = vmatpush.bf16.msrb.mxu3 %v8462_v6  ;;  %v12481_v6 = vld [vmem:[%s14050_s17 + $0x64c] sm:$0xf]  ;;  %v9339_v63 = vld [vmem:[%s14050_s17 + $0x7b0] sm:$0xf0] }
  0xff   : > { %3170 = vmatpush.bf16.msrb.mxu0 %v9058_v12  ;;  %v9819_v12 = vld [vmem:[%s14050_s17 + $0xb70] sm:$0xf0]  ;;  %v9182_v14 = vor.u32 %v12481_v6, %v9179_v8  ;;  %v12437_v6 = vld [vmem:[%s14050_s17 + $0x4e4] sm:$0xf0] }
 0x100   : > { %3183 = vmatpush.bf16.msrb.mxu1 %v9378_v15  ;;  %v9502_v15 = vor.u32 %v12561_v9, %v9499_v10  ;;  %v9822_v21 = vor.u32 %v12641_v11, %v9819_v12  ;;  %v12517_v8 = vld [vmem:[%s14050_s17 + $0x764] sm:$0xf0]  ;;  %v9342_v10 = vor.u32 %v12521_v61, %v9339_v63  ;;  %v9625_v11 = vld [vmem:[%s14050_s17 + $0x9c0] sm:$0xf] }
 0x101   : > { %3196 = vmatpush.bf16.msrb.mxu2 %v9698_v18  ;;  %v12391_v18 = vld [vmem:[%s14050_s17 + $0x37c] sm:$0xf]  ;;  %v12597_v12 = vld [vmem:[%s14050_s17 + $0x9e4] sm:$0xf0] }
 0x102   : > { %3209 = vmatpush.bf16.msrb.mxu3 %v8422_v22  ;;  %v9139_v22 = vld [vmem:[%s14050_s17 + $0x620] sm:$0xf0]  ;;  %v8822_v27 = vor.u32 %v12391_v18, %v8819_v19  ;;  %v8625_v19 = vld [vmem:[%s14050_s17 + $0x1f0] sm:$0xf]  ;;  %v12397_v63 = vld [vmem:[%s14050_s17 + $0x3a4] sm:$0xf0] }
 0x103   : > { %3171 = vmatpush.bf16.msrb.mxu0 %v9018_v29  ;;  %v9142_v28 = vor.u32 %v12471_v20, %v9139_v22  ;;  %v9462_v29 = vor.u32 %v12551_v23, %v9459_v24  ;;  %v12347_v20 = vld [vmem:[%s14050_s17 + $0x214] sm:$0xf0]  ;;  %v9626_v22 = vor.u32 %v12597_v12, %v9625_v11  ;;  %v9265_v24 = vld [vmem:[%s14050_s17 + $0x6f0] sm:$0xf] }
 0x104   : > { %3184 = vmatpush.bf16.msrb.mxu1 %v9338_v36  ;;  %v9782_v36 = vor.u32 %v12631_v25, %v9779_v26  ;;  %v12427_v23 = vld [vmem:[%s14050_s17 + $0x494] sm:$0xf0]  ;;  %v9585_v26 = vld [vmem:[%s14050_s17 + $0x970] sm:$0xf] }
 0x105   : > { %3197 = vmatpush.bf16.msrb.mxu2 %v9658_v37  ;;  %v9099_v37 = vld [vmem:[%s14050_s17 + $0x5d0] sm:$0xf0]  ;;  %v12507_v25 = vld [vmem:[%s14050_s17 + $0x714] sm:$0xf0]  ;;  %v14468_v61 = vld [vmem:[%s14056_s23] sm:$0xff] }
 0x106   : > { %3210 = vmatpush.bf16.msrb.mxu3 %v8382_v40  ;;  %3172 = vmatmul.bf16.vlgmr.msrb.gmra.mxu0 %v14189_v31  ;;  %v12621_v40 = vld [vmem:[%s14050_s17 + $0xaac] sm:$0xf]  ;;  %v12387_v12 = vld [vmem:[%s14050_s17 + $0x354] sm:$0xf0] }
 0x107   : > { %3216 = vmatpush.bf16.msra.mxu0 %v8982_v41  ;;  %3185 = vmatmul.bf16.vlgmr.msrb.gmra.mxu1 %v14194_v34  ;;  %v9739_v41 = vld [vmem:[%s14050_s17 + $0xad0] sm:$0xf0] }
 0x108   : > { %3229 = vmatpush.bf16.msra.mxu1 %v9302_v42  ;;  %3198 = vmatmul.bf16.vlgmr.msrb.gmra.mxu2 %v14236_v35  ;;  %v8782_v42 = vor.u32 %v12381_v30, %v8779_v32  ;;  %v9742_v48 = vor.u32 %v12621_v40, %v9739_v41  ;;  %v9266_v30 = vor.u32 %v12507_v25, %v9265_v24  ;;  %v8585_v32 = vld [vmem:[%s14050_s17 + $0x1a0] sm:$0xf]  ;;  %v12497_v40 = vld [vmem:[%s14050_s17 + $0x6c4] sm:$0xf0] }
 0x109   : > { %3242 = vmatpush.bf16.msra.mxu2 %v9622_v43  ;;  %3211 = vmatmul.bf16.vlgmr.msrb.gmra.mxu3 %v14178_v16  ;;  %v9102_v43 = vor.u32 %v12461_v33, %v9099_v37  ;;  %v12337_v33 = vld [vmem:[%s14050_s17 + $0x1c4] sm:$0xf0]  ;;  %v9545_v41 = vld [vmem:[%s14050_s17 + $0x920] sm:$0xf] }
 0x10a   : > { %3255 = vmatpush.bf16.msra.mxu3 %v9942_v47  ;;  %v12451_v47 = vld [vmem:[%s14050_s17 + $0x55c] sm:$0xf]  ;;  %v8425_v25 = vld [vmem:[%s14050_s17 + $0x60] sm:$0xf] }
 0x10b   : > { %3217 = vmatpush.bf16.msra.mxu0 %v8942_v53  ;;  %v9699_v53 = vld [vmem:[%s14050_s17 + $0xa80] sm:$0xf0]  ;;  %v9062_v57 = vor.u32 %v12451_v47, %v9059_v49  ;;  %v12327_v47 = vld [vmem:[%s14050_s17 + $0x174] sm:$0xf0] }
 0x10c   : > { %3230 = vmatpush.bf16.msra.mxu1 %v9262_v54  ;;  %v8742_v54 = vor.u32 %v12371_v45, %v8739_v46  ;;  %v9702_v62 = vor.u32 %v12611_v52, %v9699_v53  ;;  %v9226_v45 = vor.u32 %v12497_v40, %v9225_v39  ;;  %v8545_v46 = vld [vmem:[%s14050_s17 + $0x150] sm:$0xf]  ;;  %v12487_v52 = vld [vmem:[%s14050_s17 + $0x674] sm:$0xf0] }
 0x10d   : > { %3243 = vmatpush.bf16.msra.mxu2 %v9582_v55  ;;  %v12361_v55 = vld [vmem:[%s14050_s17 + $0x28c] sm:$0xf]  ;;  %v9505_v53 = vld [vmem:[%s14050_s17 + $0x8d0] sm:$0xf]  ;;  %v12287_v40 = vld [vmem:[%s14050_s17 + $0x34] sm:$0xf0] }
 0x10e   : > { %3256 = vmatpush.bf16.msra.mxu3 %v9902_v59  ;;  %v12441_v59 = vld [vmem:[%s14050_s17 + $0x50c] sm:$0xf]  ;;  %v8702_v5 = vor.u32 %v12361_v55, %v8699_v56  ;;  %v8546_v55 = vor.u32 %v12327_v47, %v8545_v46  ;;  %v8505_v56 = vld [vmem:[%s14050_s17 + $0x100] sm:$0xf]  ;;  %v8385_v39 = vld [vmem:[%s14050_s17 + $0x10] sm:$0xf] }
 0x10f   : > { %3218 = vmatpush.bf16.msra.mxu0 %v8902_v1  ;;  %v9659_v1 = vld [vmem:[%s14050_s17 + $0xa30] sm:$0xf0]  ;;  %v9022_v9 = vor.u32 %v12441_v59, %v9019_v60  ;;  %v12317_v59 = vld [vmem:[%s14050_s17 + $0x124] sm:$0xf0]  ;;  %v8825_v60 = vld [vmem:[%s14050_s17 + $0x380] sm:$0xf] }
 0x110   : > { %3231 = vmatpush.bf16.msra.mxu1 %v9222_v2  ;;  %v8665_v2 = vld [vmem:[%s14050_s17 + $0x240] sm:$0xf]  ;;  %v12447_v47 = vld [vmem:[%s14050_s17 + $0x534] sm:$0xf0] }
 0x111   : > { %3244 = vmatpush.bf16.msra.mxu2 %v9542_v3  ;;  %v12357_v3 = vld [vmem:[%s14050_s17 + $0x264] sm:$0xf0] }
 0x112   : > { %3257 = vmatpush.bf16.msra.mxu3 %v9862_v7  ;;  %v9305_v7 = vld [vmem:[%s14050_s17 + $0x740] sm:$0xf] }
 0x113   : > { %3219 = vmatpush.bf16.msra.mxu0 %v8862_v13  ;;  %v9662_v13 = vor.u32 %v12601_v0, %v9659_v1  ;;  %v9306_v18 = vor.u32 %v12517_v8, %v9305_v7  ;;  %v9145_v0 = vld [vmem:[%s14050_s17 + $0x600] sm:$0xf]  ;;  %v12477_v1 = vld [vmem:[%s14050_s17 + $0x624] sm:$0xf0]  ;;  %v8465_v8 = vld [vmem:[%s14050_s17 + $0xb0] sm:$0xf] }
 0x114   : > { %3232 = vmatpush.bf16.msra.mxu1 %v9182_v14  ;;  %v8666_v14 = vor.u32 %v12357_v3, %v8665_v2  ;;  %v9465_v2 = vld [vmem:[%s14050_s17 + $0x880] sm:$0xf]  ;;  %v12557_v3 = vld [vmem:[%s14050_s17 + $0x8a4] sm:$0xf0]  ;;  %v9146_v7 = vor.u32 %v12477_v1, %v9145_v0  ;;  %v12512_v0 = vld [vmem:[%s14050_s17 + $0x744] sm:$0xf] }
 0x115   : > { %3245 = vmatpush.bf16.msra.mxu2 %v9502_v15  ;;  %v8986_v15 = vor.u32 %v12437_v6, %v8985_v4  ;;  %v8506_v4 = vor.u32 %v12317_v59, %v8505_v56  ;;  %v8826_v6 = vor.u32 %v12397_v63, %v8825_v60  ;;  %v9466_v11 = vor.u32 %v12557_v3, %v9465_v2  ;;  %v8667_v56 = vld [vmem:[%s14050_s17 + $0x268] sm:$0xf0] }
 0x116   : > { %3258 = vmatpush.bf16.msra.mxu3 %v9822_v21  ;;  %v8945_v21 = vld [vmem:[%s14050_s17 + $0x470] sm:$0xf]  ;;  %v9307_v1 = vld [vmem:[%s14050_s17 + $0x768] sm:$0xf0] }
 0x117   : > { %3220 = vmatpush.bf16.msra.mxu0 %v8822_v27  ;;  %v12587_v27 = vld [vmem:[%s14050_s17 + $0x994] sm:$0xf0] }
 0x118   : > { %3233 = vmatpush.bf16.msra.mxu1 %v9142_v28  ;;  %v8626_v28 = vor.u32 %v12347_v20, %v8625_v19  ;;  %v9586_v37 = vor.u32 %v12587_v27, %v9585_v26  ;;  %v12297_v26 = vld [vmem:[%s14050_s17 + $0x84] sm:$0xf0]  ;;  %v8745_v27 = vld [vmem:[%s14050_s17 + $0x2e0] sm:$0xf] }
 0x119   : > { %3246 = vmatpush.bf16.msra.mxu2 %v9462_v29  ;;  %v8946_v29 = vor.u32 %v12427_v23, %v8945_v21 }
 0x11a   : > { %3259 = vmatpush.bf16.msra.mxu3 %v9782_v36  ;;  %v8905_v36 = vld [vmem:[%s14050_s17 + $0x420] sm:$0xf] }
 0x11b   : > { %3221 = vmatpush.bf16.msra.mxu0 %v8782_v42  ;;  %v12577_v42 = vld [vmem:[%s14050_s17 + $0x944] sm:$0xf0] }
 0x11c   : > { %3234 = vmatpush.bf16.msra.mxu1 %v9102_v43  ;;  %v8586_v43 = vor.u32 %v12337_v33, %v8585_v32  ;;  %v9546_v49 = vor.u32 %v12577_v42, %v9545_v41  ;;  %v12457_v32 = vld [vmem:[%s14050_s17 + $0x584] sm:$0xf0] }
 0x11d   : > { %3247 = vmatpush.bf16.msra.mxu2 %v9422_v44  ;;  %v8906_v44 = vor.u32 %v12417_v38, %v8905_v36  ;;  %v9385_v36 = vld [vmem:[%s14050_s17 + $0x7e0] sm:$0xf]  ;;  %v8426_v38 = vor.u32 %v12297_v26, %v8425_v25 }
 0x11e   : > { %3260 = vmatpush.bf16.msra.mxu3 %v9742_v48  ;;  %v8865_v48 = vld [vmem:[%s14050_s17 + $0x3d0] sm:$0xf] }
 0x11f   : > { %3222 = vmatpush.bf16.msra.mxu0 %v8742_v54  ;;  %v12567_v54 = vld [vmem:[%s14050_s17 + $0x8f4] sm:$0xf0] }
 0x120   : > { %3235 = vmatpush.bf16.msra.mxu1 %v9062_v57  ;;  %v8866_v57 = vor.u32 %v12407_v50, %v8865_v48  ;;  %v9345_v48 = vld [vmem:[%s14050_s17 + $0x790] sm:$0xf]  ;;  %v9945_v50 = vld [vmem:[%s14050_s17 + $0xc40] sm:$0xf] }
 0x121   : > { %3248 = vmatpush.bf16.msra.mxu2 %v9382_v58  ;;  %v9186_v58 = vor.u32 %v12487_v52, %v9185_v51  ;;  %v12677_v51 = vld [vmem:[%s14050_s17 + $0xc64] sm:$0xf0]  ;;  %v12352_v52 = vld [vmem:[%s14050_s17 + $0x244] sm:$0xf] }
 0x122   : > { %3261 = vmatpush.bf16.msra.mxu3 %v9702_v62  ;;  %v9506_v62 = vor.u32 %v12567_v54, %v9505_v53  ;;  %v9946_v3 = vor.u32 %v12677_v51, %v9945_v50 }
 0x123   : > { %3223 = vmatpush.bf16.msra.mxu0 %v8702_v5  ;;  %v970_v5 = vperm.slane %v14468_v61, 0  ;;  %v3017_v19 = vpop.f32.mrf.mxu0 }
 0x124   : > { %3236 = vmatpush.bf16.msra.mxu1 %v9022_v9  ;;  %v12307_v9 = vld [vmem:[%s14050_s17 + $0xd4] sm:$0xf0] }
 0x125   : > { %3249 = vmatpush.bf16.msra.mxu2 %v9342_v10  ;;  %v8785_v10 = vld [vmem:[%s14050_s17 + $0x330] sm:$0xf]  ;;  %v8466_v20 = vor.u32 %v12307_v9, %v8465_v8  ;;  %v3018_v21 = vadd.f32 %v3017_v19, %v970_v5  ;;  %v8670_v5 = vor.u32 %v12352_v52, %v8667_v56  ;;  %v12667_v8 = vld [vmem:[%s14050_s17 + $0xc14] sm:$0xf0]  ;;  %v12342_v9 = vld [vmem:[%s14050_s17 + $0x1f4] sm:$0xf] }
 0x126   : > { %3262 = vmatpush.bf16.msra.mxu3 %v9662_v13  ;;  %3224 = vmatmul.bf16.vlgmr.msra.gmra.mxu0 %v14180_v17  ;;  %v9105_v13 = vld [vmem:[%s14050_s17 + $0x5b0] sm:$0xf]  ;;  %v8786_v23 = vor.u32 %v12387_v12, %v8785_v10  ;;  %v8627_v12 = vld [vmem:[%s14050_s17 + $0x218] sm:$0xf0]  ;;  %v12637_v56 = vld [vmem:[%s14050_s17 + $0xb24] sm:$0xf0] }
 0x127   : > { %3268 = vmatpush.bf16.msrb.mxu0 %v8666_v14  ;;  %3237 = vmatmul.bf16.vlgmr.msra.gmra.mxu1 %v14189_v31  ;;  %v12467_v14 = vld [vmem:[%s14050_s17 + $0x5d4] sm:$0xf0] }
 0x128   : > { %3281 = vmatpush.bf16.msrb.mxu1 %v8986_v15  ;;  %3250 = vmatmul.bf16.vlgmr.msra.gmra.mxu2 %v14194_v34  ;;  %v9425_v15 = vld [vmem:[%s14050_s17 + $0x830] sm:$0xf]  ;;  %v9106_v24 = vor.u32 %v12467_v14, %v9105_v13  ;;  %v12422_v13 = vld [vmem:[%s14050_s17 + $0x474] sm:$0xf]  ;;  %v8947_v14 = vld [vmem:[%s14050_s17 + $0x498] sm:$0xf0] }
 0x129   : > { %3294 = vmatpush.bf16.msrb.mxu2 %v9306_v18  ;;  %3263 = vmatmul.bf16.vlgmr.msra.gmra.mxu3 %v14236_v35  ;;  %v12547_v18 = vld [vmem:[%s14050_s17 + $0x854] sm:$0xf0] }
 0x12a   : > { %3307 = vmatpush.bf16.msrb.mxu3 %v9626_v22  ;;  %v3030_v22 = vpop.f32.mrf.mxu1 }
 0x12b   : > { %3269 = vmatpush.bf16.msrb.mxu0 %v8626_v28  ;;  %v9426_v28 = vor.u32 %v12547_v18, %v9425_v15  ;;  %v3031_v33 = vadd.f32 %v3030_v22, %v3018_v21  ;;  %v3019_v53 = vpop.f32.mrf.mxu0  ;;  %v3043_v54 = vpop.f32.mrf.mxu2  ;;  %v12502_v15 = vld [vmem:[%s14050_s17 + $0x6f4] sm:$0xf]  ;;  %v9267_v18 = vld [vmem:[%s14050_s17 + $0x718] sm:$0xf0]  ;;  %v8950_v21 = vor.u32 %v12422_v13, %v8947_v14  ;;  %v9865_v22 = vld [vmem:[%s14050_s17 + $0xba0] sm:$0xf] }
 0x12c   : > { %3282 = vmatpush.bf16.msrb.mxu1 %v8946_v29  ;;  %v12377_v29 = vld [vmem:[%s14050_s17 + $0x304] sm:$0xf0]  ;;  %v9270_v26 = vor.u32 %v12502_v15, %v9267_v18  ;;  %v12462_v13 = vld [vmem:[%s14050_s17 + $0x5b4] sm:$0xf]  ;;  %v9107_v14 = vld [vmem:[%s14050_s17 + $0x5d8] sm:$0xf0] }
 0x12d   : > { %3295 = vmatpush.bf16.msrb.mxu2 %v9266_v30  ;;  %v9065_v30 = vld [vmem:[%s14050_s17 + $0x560] sm:$0xf]  ;;  %v8746_v41 = vor.u32 %v12377_v29, %v8745_v27  ;;  %v3044_v60 = vadd.f32 %v3043_v54, %v3031_v33  ;;  %v8587_v27 = vld [vmem:[%s14050_s17 + $0x1c8] sm:$0xf0] }
 0x12e   : > { %3308 = vmatpush.bf16.msrb.mxu3 %v9586_v37  ;;  %v12537_v37 = vld [vmem:[%s14050_s17 + $0x804] sm:$0xf0]  ;;  %v9066_v42 = vor.u32 %v12457_v32, %v9065_v30  ;;  %v8907_v29 = vld [vmem:[%s14050_s17 + $0x448] sm:$0xf0]  ;;  %v12492_v30 = vld [vmem:[%s14050_s17 + $0x6a4] sm:$0xf] }
 0x12f   : > { %3270 = vmatpush.bf16.msrb.mxu0 %v8586_v43  ;;  %v8705_v43 = vld [vmem:[%s14050_s17 + $0x290] sm:$0xf]  ;;  %v9386_v46 = vor.u32 %v12537_v37, %v9385_v36  ;;  %v9227_v32 = vld [vmem:[%s14050_s17 + $0x6c8] sm:$0xf0] }
 0x130   : > { %3283 = vmatpush.bf16.msrb.mxu1 %v8906_v44  ;;  %v12367_v44 = vld [vmem:[%s14050_s17 + $0x2b4] sm:$0xf0] }
 0x131   : > { %3296 = vmatpush.bf16.msrb.mxu2 %v9226_v45  ;;  %v9025_v45 = vld [vmem:[%s14050_s17 + $0x510] sm:$0xf] }
 0x132   : > { %3309 = vmatpush.bf16.msrb.mxu3 %v9546_v49  ;;  %v12527_v49 = vld [vmem:[%s14050_s17 + $0x7b4] sm:$0xf0]  ;;  %v3032_v59 = vpop.f32.mrf.mxu1  ;;  %v9026_v63 = vor.u32 %v12447_v47, %v9025_v45  ;;  %v8867_v45 = vld [vmem:[%s14050_s17 + $0x3f8] sm:$0xf0] }
 0x133   : > { %3271 = vmatpush.bf16.msrb.mxu0 %v8546_v55  ;;  %v8386_v55 = vor.u32 %v12287_v40, %v8385_v39  ;;  %v9346_v2 = vor.u32 %v12527_v49, %v9345_v48  ;;  %v3045_v25 = vpop.f32.mrf.mxu2  ;;  %v9825_v39 = vld [vmem:[%s14050_s17 + $0xb50] sm:$0xf]  ;;  %v12647_v40 = vld [vmem:[%s14050_s17 + $0xb74] sm:$0xf0]  ;;  %v9187_v47 = vld [vmem:[%s14050_s17 + $0x678] sm:$0xf0] }
 0x134   : > { %3284 = vmatpush.bf16.msrb.mxu1 %v8866_v57  ;;  %v12432_v57 = vld [vmem:[%s14050_s17 + $0x4c4] sm:$0xf]  ;;  %v971_v49 = vperm.slane %v14468_v61, 1  ;;  %v9826_v50 = vor.u32 %v12647_v40, %v9825_v39  ;;  %v8507_v59 = vld [vmem:[%s14050_s17 + $0x128] sm:$0xf0] }
 0x135   : > { %3297 = vmatpush.bf16.msrb.mxu2 %v9186_v58  ;;  %v8987_v58 = vld [vmem:[%s14050_s17 + $0x4e8] sm:$0xf0]  ;;  %v12617_v25 = vld [vmem:[%s14050_s17 + $0xa84] sm:$0xf0]  ;;  %v12607_v39 = vld [vmem:[%s14050_s17 + $0xa34] sm:$0xf0] }
 0x136   : > { %3310 = vmatpush.bf16.msrb.mxu3 %v9506_v62  ;;  %v8706_v62 = vor.u32 %v12367_v44, %v8705_v43  ;;  %v8547_v43 = vld [vmem:[%s14050_s17 + $0x178] sm:$0xf0]  ;;  %v12402_v44 = vld [vmem:[%s14050_s17 + $0x3d4] sm:$0xf] }
 0x137   : > { %3272 = vmatpush.bf16.msrb.mxu0 %v8506_v4  ;;  %v3056_v4 = vpop.f32.mrf.mxu3  ;;  %v8870_v54 = vor.u32 %v12402_v44, %v8867_v45  ;;  %v12362_v44 = vld [vmem:[%s14050_s17 + $0x294] sm:$0xf] }
 0x138   : > { %3285 = vmatpush.bf16.msrb.mxu1 %v8826_v6  ;;  %v8990_v6 = vor.u32 %v12432_v57, %v8987_v58  ;;  %v3057_v10 = vadd.f32 %v3056_v4, %v3044_v60  ;;  %v12312_v57 = vld [vmem:[%s14050_s17 + $0x104] sm:$0xf] }
 0x139   : > { %3298 = vmatpush.bf16.msrb.mxu2 %v9146_v7  ;;  %v9905_v7 = vld [vmem:[%s14050_s17 + $0xbf0] sm:$0xf]  ;;  %v12392_v60 = vld [vmem:[%s14050_s17 + $0x384] sm:$0xf] }
 0x13a   : > { %3311 = vmatpush.bf16.msrb.mxu3 %v9466_v11  ;;  %v9310_v11 = vor.u32 %v12512_v0, %v9307_v1  ;;  %v9906_v19 = vor.u32 %v12667_v8, %v9905_v7  ;;  %v9147_v0 = vld [vmem:[%s14050_s17 + $0x628] sm:$0xf0]  ;;  %v12302_v7 = vld [vmem:[%s14050_s17 + $0xb4] sm:$0xf] }
 0x13b   : > { %3273 = vmatpush.bf16.msrb.mxu0 %v8466_v20  ;;  %v8630_v20 = vor.u32 %v12342_v9, %v8627_v12  ;;  %v8467_v9 = vld [vmem:[%s14050_s17 + $0xd8] sm:$0xf0] }
 0x13c   : > { %3286 = vmatpush.bf16.msrb.mxu1 %v8786_v23  ;;  %v12657_v23 = vld [vmem:[%s14050_s17 + $0xbc4] sm:$0xf0] }
 0x13d   : > { %3299 = vmatpush.bf16.msrb.mxu2 %v9106_v24  ;;  %v12332_v24 = vld [vmem:[%s14050_s17 + $0x1a4] sm:$0xf]  ;;  %v9866_v33 = vor.u32 %v12657_v23, %v9865_v22  ;;  %v8470_v22 = vor.u32 %v12302_v7, %v8467_v9  ;;  %v8633_v9 = vld [vmem:[%s14050_s17 + $0x1f8] sm:$0xf] }
 0x13e   : > { %3312 = vmatpush.bf16.msrb.mxu3 %v9426_v28  ;;  %v12412_v28 = vld [vmem:[%s14050_s17 + $0x424] sm:$0xf]  ;;  %v8590_v37 = vor.u32 %v12332_v24, %v8587_v27  ;;  %v9705_v24 = vld [vmem:[%s14050_s17 + $0xa60] sm:$0xf] }
 0x13f   : > { %3274 = vmatpush.bf16.msrb.mxu0 %v8426_v38  ;;  %v3058_v36 = vpop.f32.mrf.mxu3  ;;  %v8910_v38 = vor.u32 %v12412_v28, %v8907_v29  ;;  %v9110_v28 = vor.u32 %v12462_v13, %v9107_v14  ;;  %v8427_v29 = vld [vmem:[%s14050_s17 + $0x88] sm:$0xf0] }
 0x140   : > { %3287 = vmatpush.bf16.msrb.mxu1 %v8746_v41  ;;  %v12322_v41 = vld [vmem:[%s14050_s17 + $0x154] sm:$0xf]  ;;  %v9067_v36 = vld [vmem:[%s14050_s17 + $0x588] sm:$0xf0] }
 0x141   : > { %3300 = vmatpush.bf16.msrb.mxu2 %v9066_v42  ;;  %v9230_v42 = vor.u32 %v12492_v30, %v9227_v32  ;;  %v8550_v53 = vor.u32 %v12322_v41, %v8547_v43  ;;  %v12372_v30 = vld [vmem:[%s14050_s17 + $0x2e4] sm:$0xf]  ;;  %v8747_v32 = vld [vmem:[%s14050_s17 + $0x308] sm:$0xf0]  ;;  %v8387_v43 = vld [vmem:[%s14050_s17 + $0x38] sm:$0xf0] }
 0x142   : > { %3313 = vmatpush.bf16.msrb.mxu3 %v9386_v46  ;;  %v12482_v46 = vld [vmem:[%s14050_s17 + $0x654] sm:$0xf]  ;;  %v8750_v41 = vor.u32 %v12372_v30, %v8747_v32 }
 0x143   : > { %3275 = vmatpush.bf16.msrb.mxu0 %v8386_v55  ;;  %v3069_v48 = vpop.f32.mrf.mxu0  ;;  %v9785_v55 = vld [vmem:[%s14050_s17 + $0xb00] sm:$0xf]  ;;  %v9190_v58 = vor.u32 %v12482_v46, %v9187_v47  ;;  %v8707_v46 = vld [vmem:[%s14050_s17 + $0x2b8] sm:$0xf0]  ;;  %v12442_v47 = vld [vmem:[%s14050_s17 + $0x514] sm:$0xf] }
 0x144   : > { %3288 = vmatpush.bf16.msrb.mxu1 %v8706_v62  ;;  %v14537_v51 = vadd.f32 %v3069_v48, %v3057_v10  ;;  %v3082_v52 = vpop.f32.mrf.mxu1  ;;  %v8827_v62 = vld [vmem:[%s14050_s17 + $0x3a8] sm:$0xf0]  ;;  %v12382_v10 = vld [vmem:[%s14050_s17 + $0x334] sm:$0xf]  ;;  %v9027_v48 = vld [vmem:[%s14050_s17 + $0x538] sm:$0xf0] }
 0x145   : > { %3301 = vmatpush.bf16.msrb.mxu2 %v9026_v63  ;;  %v12472_v63 = vld [vmem:[%s14050_s17 + $0x604] sm:$0xf]  ;;  %v3083_v1 = vadd.f32 %v3082_v52, %v971_v49  ;;  %v8830_v4 = vor.u32 %v12392_v60, %v8827_v62  ;;  %v9627_v52 = vld [vmem:[%s14050_s17 + $0x9e8] sm:$0xf0]  ;;  %v8710_v60 = vor.u32 %v12362_v44, %v8707_v46  ;;  %v8993_v62 = vld [vmem:[%s14050_s17 + $0x4c8] sm:$0xf] }
 0x146   : > { %3314 = vmatpush.bf16.msrb.mxu3 %v9346_v2  ;;  %3276 = vmatmul.bf16.vlgmr.msrb.gmra.mxu0 %v14178_v16  ;;  %v9786_v2 = vor.u32 %v12637_v56, %v9785_v55  ;;  %v9150_v8 = vor.u32 %v12472_v63, %v9147_v0  ;;  %v9947_v56 = vld [vmem:[%s14050_s17 + $0xc68] sm:$0xf0]  ;;  %v12438_v63 = vld [vmem:[%s14050_s17 + $0x4ec] sm:$0xf0]  ;;  %v9030_v0 = vor.u32 %v12442_v47, %v9027_v48  ;;  %v12562_v32 = vld [vmem:[%s14050_s17 + $0x8d4] sm:$0xf]  ;;  %13396 = vtanh.f32 %v14537_v51 }
 0x147   : > { %3320 = vmatpush.bf16.msra.mxu0 %v9946_v3  ;;  %3289 = vmatmul.bf16.vlgmr.msrb.gmra.mxu1 %v14180_v17  ;;  %v8510_v3 = vor.u32 %v12312_v57, %v8507_v59  ;;  %v8673_v57 = vld [vmem:[%s14050_s17 + $0x248] sm:$0xf]  ;;  %v8994_v7 = vor.u32 %v12438_v63, %v8993_v62  ;;  %v12542_v63 = vld [vmem:[%s14050_s17 + $0x834] sm:$0xf]  ;;  %v12838_v51 = vld [vmem:[%s14058_s30 + $0x4ec] sm:$0xf0] }
 0x148   : > { %3333 = vmatpush.bf16.msra.mxu1 %v8670_v5  ;;  %3302 = vmatmul.bf16.vlgmr.msrb.gmra.mxu2 %v14189_v31  ;;  %v9745_v5 = vld [vmem:[%s14050_s17 + $0xab0] sm:$0xf] }
 0x149   : > { %3346 = vmatpush.bf16.msra.mxu2 %v8990_v6  ;;  %3315 = vmatmul.bf16.vlgmr.msrb.gmra.mxu3 %v14194_v34  ;;  %v12627_v6 = vld [vmem:[%s14050_s17 + $0xad4] sm:$0xf0] }
 0x14a   : > { %3359 = vmatpush.bf16.msra.mxu3 %v9310_v11  ;;  %v8787_v11 = vld [vmem:[%s14050_s17 + $0x358] sm:$0xf0] }
 0x14b   : > { %3321 = vmatpush.bf16.msra.mxu0 %v9906_v19  ;;  %v3095_v12 = vpop.f32.mrf.mxu2  ;;  %v3071_v15 = vpop.f32.mrf.mxu0  ;;  %v8790_v23 = vor.u32 %v12382_v10, %v8787_v11  ;;  %v12348_v10 = vld [vmem:[%s14050_s17 + $0x21c] sm:$0xf0]  ;;  %v8953_v11 = vld [vmem:[%s14050_s17 + $0x478] sm:$0xf] }
 0x14c   : > { %3334 = vmatpush.bf16.msra.mxu1 %v8630_v20  ;;  %v3096_v18 = vadd.f32 %v3095_v12, %v3083_v1  ;;  %v3108_v19 = vpop.f32.mrf.mxu3  ;;  %v9746_v20 = vor.u32 %v12627_v6, %v9745_v5  ;;  %v9587_v5 = vld [vmem:[%s14050_s17 + $0x998] sm:$0xf0]  ;;  %v12662_v6 = vld [vmem:[%s14050_s17 + $0xbf4] sm:$0xf]  ;;  %v12428_v12 = vld [vmem:[%s14050_s17 + $0x49c] sm:$0xf0]  ;;  %v8634_v15 = vor.u32 %v12348_v10, %v8633_v9 }
 0x14d   : > { %3347 = vmatpush.bf16.msra.mxu2 %v8950_v21  ;;  %v3084_v21 = vpop.f32.mrf.mxu1 }
 0x14e   : > { %3360 = vmatpush.bf16.msra.mxu3 %v9270_v26  ;;  %v12292_v26 = vld [vmem:[%s14050_s17 + $0x64] sm:$0xf]  ;;  %v14558_v27 = vadd.f32 %v3108_v19, %v3096_v18  ;;  %v9547_v19 = vld [vmem:[%s14050_s17 + $0x948] sm:$0xf0]  ;;  %v8954_v21 = vor.u32 %v12428_v12, %v8953_v11 }
 0x14f   : > { %3322 = vmatpush.bf16.msra.mxu0 %v9866_v33  ;;  %v12452_v33 = vld [vmem:[%s14050_s17 + $0x564] sm:$0xf]  ;;  %v8430_v40 = vor.u32 %v12292_v26, %v8427_v29  ;;  %v12418_v26 = vld [vmem:[%s14050_s17 + $0x44c] sm:$0xf0] }
 0x150   : > { %3335 = vmatpush.bf16.msra.mxu1 %v8590_v37  ;;  %v9706_v37 = vor.u32 %v12617_v25, %v9705_v24  ;;  %v9070_v45 = vor.u32 %v12452_v33, %v9067_v36  ;;  %v12572_v18 = vld [vmem:[%s14050_s17 + $0x924] sm:$0xf]  ;;  %v12338_v24 = vld [vmem:[%s14050_s17 + $0x1cc] sm:$0xf0]  ;;  %v8913_v25 = vld [vmem:[%s14050_s17 + $0x428] sm:$0xf] }
 0x151   : > { %3348 = vmatpush.bf16.msra.mxu2 %v8910_v38  ;;  %v9665_v38 = vld [vmem:[%s14050_s17 + $0xa10] sm:$0xf]  ;;  %v9507_v33 = vld [vmem:[%s14050_s17 + $0x8f8] sm:$0xf0]  ;;  %v12642_v36 = vld [vmem:[%s14050_s17 + $0xb54] sm:$0xf] }
 0x152   : > { %3361 = vmatpush.bf16.msra.mxu3 %v9230_v42  ;;  %v12282_v42 = vld [vmem:[%s14050_s17 + $0x14] sm:$0xf]  ;;  %v9666_v55 = vor.u32 %v12607_v39, %v9665_v38  ;;  %v9827_v38 = vld [vmem:[%s14050_s17 + $0xb78] sm:$0xf0]  ;;  %v8553_v39 = vld [vmem:[%s14050_s17 + $0x158] sm:$0xf]  ;;  %v9510_v44 = vor.u32 %v12562_v32, %v9507_v33 }
 0x153   : > { %3323 = vmatpush.bf16.msra.mxu0 %v9826_v50  ;;  %v3097_v49 = vpop.f32.mrf.mxu2  ;;  %v12592_v50 = vld [vmem:[%s14050_s17 + $0x9c4] sm:$0xf]  ;;  %v8390_v59 = vor.u32 %v12282_v42, %v8387_v43  ;;  %v12408_v42 = vld [vmem:[%s14050_s17 + $0x3fc] sm:$0xf0]  ;;  %v9830_v47 = vor.u32 %v12642_v36, %v9827_v38  ;;  %v9667_v32 = vld [vmem:[%s14050_s17 + $0xa38] sm:$0xf0] }
 0x154   : > { %3336 = vmatpush.bf16.msra.mxu1 %v8550_v53  ;;  %v12672_v53 = vld [vmem:[%s14050_s17 + $0xc44] sm:$0xf]  ;;  %v9630_v1 = vor.u32 %v12592_v50, %v9627_v52  ;;  %v9467_v50 = vld [vmem:[%s14050_s17 + $0x8a8] sm:$0xf0]  ;;  %v8393_v33 = vld [vmem:[%s14050_s17 + $0x18] sm:$0xf] }
 0x155   : > { %3349 = vmatpush.bf16.msra.mxu2 %v8870_v54  ;;  %v3110_v54 = vpop.f32.mrf.mxu3  ;;  %v12552_v49 = vld [vmem:[%s14050_s17 + $0x884] sm:$0xf]  ;;  %v12288_v36 = vld [vmem:[%s14050_s17 + $0x3c] sm:$0xf0]  ;;  %v8713_v38 = vld [vmem:[%s14050_s17 + $0x298] sm:$0xf] }
 0x156   : > { %3362 = vmatpush.bf16.msra.mxu3 %v9190_v58  ;;  %v12358_v58 = vld [vmem:[%s14050_s17 + $0x26c] sm:$0xf0]  ;;  %v12632_v52 = vld [vmem:[%s14050_s17 + $0xb04] sm:$0xf]  ;;  %v9787_v54 = vld [vmem:[%s14050_s17 + $0xb28] sm:$0xf0] }
 0x157   : > { %3324 = vmatpush.bf16.msra.mxu0 %v9786_v2  ;;  %v9950_v2 = vor.u32 %v12672_v53, %v9947_v56  ;;  %v12318_v56 = vld [vmem:[%s14050_s17 + $0x12c] sm:$0xf0] }
 0x158   : > { %3337 = vmatpush.bf16.msra.mxu1 %v8510_v3  ;;  %v8674_v3 = vor.u32 %v12358_v58, %v8673_v57  ;;  %v8833_v57 = vld [vmem:[%s14050_s17 + $0x388] sm:$0xf]  ;;  %v12398_v58 = vld [vmem:[%s14050_s17 + $0x3ac] sm:$0xf0] }
 0x159   : > { %3350 = vmatpush.bf16.msra.mxu2 %v8830_v4  ;;  %v12582_v4 = vld [vmem:[%s14050_s17 + $0x974] sm:$0xf] }
 0x15a   : > { %3363 = vmatpush.bf16.msra.mxu3 %v9150_v8  ;;  %v9907_v8 = vld [vmem:[%s14050_s17 + $0xc18] sm:$0xf0]  ;;  %v9590_v13 = vor.u32 %v12582_v4, %v9587_v5  ;;  %v8473_v4 = vld [vmem:[%s14050_s17 + $0xb8] sm:$0xf]  ;;  %v12308_v5 = vld [vmem:[%s14050_s17 + $0xdc] sm:$0xf0] }
 0x15b   : > { %3325 = vmatpush.bf16.msra.mxu0 %v9746_v20  ;;  %v9910_v14 = vor.u32 %v12662_v6, %v9907_v8  ;;  %v12652_v20 = vld [vmem:[%s14050_s17 + $0xba4] sm:$0xf]  ;;  %v8793_v6 = vld [vmem:[%s14050_s17 + $0x338] sm:$0xf]  ;;  %v8474_v12 = vor.u32 %v12308_v5, %v8473_v4  ;;  %v12343_v4 = vld [vmem:[%s14050_s17 + $0x1fc] sm:$0xf] }
 0x15c   : > { %3338 = vmatpush.bf16.msra.mxu1 %v8470_v22  ;;  %v9867_v22 = vld [vmem:[%s14050_s17 + $0xbc8] sm:$0xf0]  ;;  %v8635_v5 = vld [vmem:[%s14050_s17 + $0x220] sm:$0xf0] }
 0x15d   : > { %3351 = vmatpush.bf16.msra.mxu2 %v8790_v23  ;;  %v8593_v23 = vld [vmem:[%s14050_s17 + $0x1a8] sm:$0xf]  ;;  %v9870_v29 = vor.u32 %v12652_v20, %v9867_v22 }
 0x15e   : > { %3364 = vmatpush.bf16.msra.mxu3 %v9110_v28  ;;  %v9550_v28 = vor.u32 %v12572_v18, %v9547_v19  ;;  %v8594_v30 = vor.u32 %v12338_v24, %v8593_v23  ;;  %v9707_v19 = vld [vmem:[%s14050_s17 + $0xa88] sm:$0xf0]  ;;  %v8433_v20 = vld [vmem:[%s14050_s17 + $0x68] sm:$0xf]  ;;  %v12378_v23 = vld [vmem:[%s14050_s17 + $0x30c] sm:$0xf0] }
 0x15f   : > { %3326 = vmatpush.bf16.msra.mxu0 %v9706_v37  ;;  %v8914_v37 = vor.u32 %v12418_v26, %v8913_v25  ;;  %v8753_v22 = vld [vmem:[%s14050_s17 + $0x2e8] sm:$0xf]  ;;  %v12522_v25 = vld [vmem:[%s14050_s17 + $0x794] sm:$0xf]  ;;  %v9347_v26 = vld [vmem:[%s14050_s17 + $0x7b8] sm:$0xf0] }
 0x160   : > { %3339 = vmatpush.bf16.msra.mxu1 %v8430_v40  ;;  %v12328_v40 = vld [vmem:[%s14050_s17 + $0x17c] sm:$0xf0] }
 0x161   : > { %3352 = vmatpush.bf16.msra.mxu2 %v8750_v41  ;;  %v8873_v41 = vld [vmem:[%s14050_s17 + $0x3d8] sm:$0xf]  ;;  %v8554_v48 = vor.u32 %v12328_v40, %v8553_v39  ;;  %v12368_v39 = vld [vmem:[%s14050_s17 + $0x2bc] sm:$0xf0]  ;;  %v9313_v40 = vld [vmem:[%s14050_s17 + $0x748] sm:$0xf] }
 0x162   : > { %3365 = vmatpush.bf16.msra.mxu3 %v9070_v45  ;;  %v8874_v53 = vor.u32 %v12408_v42, %v8873_v41  ;;  %v12518_v41 = vld [vmem:[%s14050_s17 + $0x76c] sm:$0xf0]  ;;  %v9633_v42 = vld [vmem:[%s14050_s17 + $0x9c8] sm:$0xf] }
 0x163   : > { %3327 = vmatpush.bf16.msra.mxu0 %v9666_v55  ;;  %v3121_v43 = vpop.f32.mrf.mxu0  ;;  %v8513_v55 = vld [vmem:[%s14050_s17 + $0x108] sm:$0xf] }
 0x164   : > { %3340 = vmatpush.bf16.msra.mxu1 %v8390_v59  ;;  %v3122_v45 = vadd.f32 %v3121_v43, %v14558_v27  ;;  %v3134_v46 = vpop.f32.mrf.mxu1  ;;  %v9470_v59 = vor.u32 %v12552_v49, %v9467_v50  ;;  %v8514_v62 = vor.u32 %v12318_v56, %v8513_v55  ;;  %v12598_v43 = vld [vmem:[%s14050_s17 + $0x9ec] sm:$0xf0]  ;;  %v8714_v55 = vor.u32 %v12368_v39, %v8713_v38 }
 0x165   : > { %3353 = vmatpush.bf16.msra.mxu2 %v8710_v60  ;;  %v9790_v60 = vor.u32 %v12632_v52, %v9787_v54  ;;  %v8394_v52 = vor.u32 %v12288_v36, %v8393_v33  ;;  %v8675_v54 = vld [vmem:[%s14050_s17 + $0x270] sm:$0xf0]  ;;  %v9314_v56 = vor.u32 %v12518_v41, %v9313_v40  ;;  %v12648_v33 = vld [vmem:[%s14050_s17 + $0xb7c] sm:$0xf0]  ;;  %v12323_v36 = vld [vmem:[%s14050_s17 + $0x15c] sm:$0xf] }
 0x166   : > { %3366 = vmatpush.bf16.msra.mxu3 %v9030_v0  ;;  %3328 = vmatmul.bf16.vlgmr.msra.gmra.mxu0 %v14236_v35  ;;  %v14616_v27 = vadd.f32 %v3134_v46, %v3122_v45  ;;  %v9427_v0 = vld [vmem:[%s14050_s17 + $0x858] sm:$0xf0]  ;;  %v9953_v45 = vld [vmem:[%s14050_s17 + $0xc48] sm:$0xf]  ;;  %v12678_v46 = vld [vmem:[%s14050_s17 + $0xc6c] sm:$0xf0] }
 0x167   : > { %3372 = vmatpush.bf16.msrb.mxu0 %v9630_v1  ;;  %3341 = vmatmul.bf16.vlgmr.msra.gmra.mxu1 %v14178_v16  ;;  %v12622_v1 = vld [vmem:[%s14050_s17 + $0xab4] sm:$0xf]  ;;  %v9430_v9 = vor.u32 %v12542_v63, %v9427_v0  ;;  %v12588_v0 = vld [vmem:[%s14050_s17 + $0x99c] sm:$0xf0] }
 0x168   : > { %3385 = vmatpush.bf16.msrb.mxu1 %v9950_v2  ;;  %3354 = vmatmul.bf16.vlgmr.msra.gmra.mxu2 %v14180_v17  ;;  %v8834_v2 = vor.u32 %v12398_v58, %v8833_v57  ;;  %v9954_v58 = vor.u32 %v12678_v46, %v9953_v45  ;;  %v12478_v45 = vld [vmem:[%s14050_s17 + $0x62c] sm:$0xf0]  ;;  %v9473_v46 = vld [vmem:[%s14050_s17 + $0x888] sm:$0xf]  ;;  %13398 = vtanh.f32 %v14616_v27  ;;  %v12870_v27 = vld [vmem:[%s14058_s30 + $0x5ec] sm:$0xf0] }
 0x169   : > { %3398 = vmatpush.bf16.msrb.mxu2 %v8674_v3  ;;  %3367 = vmatmul.bf16.vlgmr.msra.gmra.mxu3 %v14189_v31  ;;  %v9747_v3 = vld [vmem:[%s14050_s17 + $0xad8] sm:$0xf0] }
 0x16a   : > { %3411 = vmatpush.bf16.msrb.mxu3 %v8994_v7  ;;  %v12388_v7 = vld [vmem:[%s14050_s17 + $0x35c] sm:$0xf0]  ;;  %v9750_v11 = vor.u32 %v12622_v1, %v9747_v3  ;;  %v9913_v1 = vld [vmem:[%s14050_s17 + $0xbf8] sm:$0xf] }
 0x16b   : > { %3373 = vmatpush.bf16.msrb.mxu0 %v9590_v13  ;;  %v3123_v8 = vpop.f32.mrf.mxu0  ;;  %v12532_v13 = vld [vmem:[%s14050_s17 + $0x7e4] sm:$0xf]  ;;  %v8794_v18 = vor.u32 %v12388_v7, %v8793_v6 }
 0x16c   : > { %3386 = vmatpush.bf16.msrb.mxu1 %v9910_v14  ;;  %v3136_v10 = vpop.f32.mrf.mxu1  ;;  %v9387_v14 = vld [vmem:[%s14050_s17 + $0x808] sm:$0xf0]  ;;  %v3160_v49 = vpop.f32.mrf.mxu3 }
 0x16d   : > { %3399 = vmatpush.bf16.msrb.mxu2 %v8634_v15  ;;  %v12612_v15 = vld [vmem:[%s14050_s17 + $0xa64] sm:$0xf]  ;;  %v9390_v24 = vor.u32 %v12532_v13, %v9387_v14  ;;  %v12498_v10 = vld [vmem:[%s14050_s17 + $0x6cc] sm:$0xf0]  ;;  %v9873_v14 = vld [vmem:[%s14050_s17 + $0xba8] sm:$0xf] }
 0x16e   : > { %3412 = vmatpush.bf16.msrb.mxu3 %v8954_v21  ;;  %v12298_v21 = vld [vmem:[%s14050_s17 + $0x8c] sm:$0xf0] }
 0x16f   : > { %3374 = vmatpush.bf16.msrb.mxu0 %v9550_v28  ;;  %v12602_v28 = vld [vmem:[%s14050_s17 + $0xa14] sm:$0xf]  ;;  %v12578_v13 = vld [vmem:[%s14050_s17 + $0x94c] sm:$0xf0] }
 0x170   : > { %3387 = vmatpush.bf16.msrb.mxu1 %v9870_v29  ;;  %v9710_v29 = vor.u32 %v12612_v15, %v9707_v19  ;;  %v9670_v50 = vor.u32 %v12602_v28, %v9667_v32  ;;  %v12658_v15 = vld [vmem:[%s14050_s17 + $0xbcc] sm:$0xf0]  ;;  %v9513_v28 = vld [vmem:[%s14050_s17 + $0x8d8] sm:$0xf] }
 0x171   : > { %3400 = vmatpush.bf16.msrb.mxu2 %v8594_v30  ;;  %v8434_v30 = vor.u32 %v12298_v21, %v8433_v20  ;;  %v12333_v20 = vld [vmem:[%s14050_s17 + $0x1ac] sm:$0xf]  ;;  %v8595_v21 = vld [vmem:[%s14050_s17 + $0x1d0] sm:$0xf0]  ;;  %v9833_v32 = vld [vmem:[%s14050_s17 + $0xb58] sm:$0xf] }
 0x172   : > { %3413 = vmatpush.bf16.msrb.mxu3 %v8914_v37  ;;  %v8754_v37 = vor.u32 %v12378_v23, %v8753_v22 }
 0x173   : > { %3375 = vmatpush.bf16.msrb.mxu0 %v9510_v44  ;;  %v9350_v44 = vor.u32 %v12522_v25, %v9347_v26  ;;  %v9193_v25 = vld [vmem:[%s14050_s17 + $0x658] sm:$0xf]  ;;  %v12488_v26 = vld [vmem:[%s14050_s17 + $0x67c] sm:$0xf0] }
 0x174   : > { %3388 = vmatpush.bf16.msrb.mxu1 %v9830_v47  ;;  %v972_v47 = vperm.slane %v14468_v61, 2  ;;  %v9634_v61 = vor.u32 %v12598_v43, %v9633_v42  ;;  %v3162_v19 = vpop.f32.mrf.mxu3  ;;  %v9194_v39 = vor.u32 %v12488_v26, %v9193_v25  ;;  %v9834_v43 = vor.u32 %v12648_v33, %v9833_v32  ;;  %v9353_v26 = vld [vmem:[%s14050_s17 + $0x798] sm:$0xf]  ;;  %v12608_v32 = vld [vmem:[%s14050_s17 + $0xa3c] sm:$0xf0] }
 0x175   : > { %3401 = vmatpush.bf16.msrb.mxu2 %v8554_v48  ;;  %v3147_v48 = vpop.f32.mrf.mxu2  ;;  %v12293_v19 = vld [vmem:[%s14050_s17 + $0x6c] sm:$0xf]  ;;  %v12283_v33 = vld [vmem:[%s14050_s17 + $0x1c] sm:$0xf] }
 0x176   : > { %3414 = vmatpush.bf16.msrb.mxu3 %v8874_v53  ;;  %v12353_v53 = vld [vmem:[%s14050_s17 + $0x24c] sm:$0xf]  ;;  %v3148_v57 = vadd.f32 %v3147_v48, %v972_v47  ;;  %v12558_v48 = vld [vmem:[%s14050_s17 + $0x8ac] sm:$0xf0] }
 0x177   : > { %3376 = vmatpush.bf16.msrb.mxu0 %v9470_v59  ;;  %v9273_v59 = vld [vmem:[%s14050_s17 + $0x6f8] sm:$0xf]  ;;  %v8678_v63 = vor.u32 %v12353_v53, %v8675_v54  ;;  %v12313_v53 = vld [vmem:[%s14050_s17 + $0x10c] sm:$0xf]  ;;  %v8515_v54 = vld [vmem:[%s14050_s17 + $0x130] sm:$0xf0] }
 0x178   : > { %3389 = vmatpush.bf16.msrb.mxu1 %v9790_v60  ;;  %v12508_v60 = vld [vmem:[%s14050_s17 + $0x71c] sm:$0xf0]  ;;  %v3161_v3 = vadd.f32 %v3160_v49, %v3148_v57  ;;  %v9793_v49 = vld [vmem:[%s14050_s17 + $0xb08] sm:$0xf] }
 0x179   : > { %3402 = vmatpush.bf16.msrb.mxu2 %v8514_v62  ;;  %v9593_v62 = vld [vmem:[%s14050_s17 + $0x978] sm:$0xf]  ;;  %v9274_v6 = vor.u32 %v12508_v60, %v9273_v59  ;;  %v8518_v60 = vor.u32 %v12313_v53, %v8515_v54 }
 0x17a   : > { %3415 = vmatpush.bf16.msrb.mxu3 %v8834_v2  ;;  %v12668_v2 = vld [vmem:[%s14050_s17 + $0xc1c] sm:$0xf0]  ;;  %v9594_v7 = vor.u32 %v12588_v0, %v9593_v62  ;;  %v9433_v59 = vld [vmem:[%s14050_s17 + $0x838] sm:$0xf] }
 0x17b   : > { %3377 = vmatpush.bf16.msrb.mxu0 %v9430_v9  ;;  %v9914_v8 = vor.u32 %v12668_v2, %v9913_v1  ;;  %v9233_v9 = vld [vmem:[%s14050_s17 + $0x6a8] sm:$0xf]  ;;  %v12548_v62 = vld [vmem:[%s14050_s17 + $0x85c] sm:$0xf0]  ;;  %v12303_v2 = vld [vmem:[%s14050_s17 + $0xbc] sm:$0xf] }
 0x17c   : > { %3390 = vmatpush.bf16.msrb.mxu1 %v9750_v11  ;;  %v9553_v11 = vld [vmem:[%s14050_s17 + $0x928] sm:$0xf]  ;;  %v9234_v22 = vor.u32 %v12498_v10, %v9233_v9  ;;  %v12628_v0 = vld [vmem:[%s14050_s17 + $0xadc] sm:$0xf0] }
 0x17d   : > { %3403 = vmatpush.bf16.msrb.mxu2 %v8474_v12  ;;  %v8638_v12 = vor.u32 %v12343_v4, %v8635_v5  ;;  %v9554_v23 = vor.u32 %v12578_v13, %v9553_v11  ;;  %v9073_v10 = vld [vmem:[%s14050_s17 + $0x568] sm:$0xf]  ;;  %v12458_v11 = vld [vmem:[%s14050_s17 + $0x58c] sm:$0xf0] }
 0x17e   : > { %3416 = vmatpush.bf16.msrb.mxu3 %v8794_v18  ;;  %v3149_v18 = vpop.f32.mrf.mxu2 }
 0x17f   : > { %3378 = vmatpush.bf16.msrb.mxu0 %v9390_v24  ;;  %v9874_v24 = vor.u32 %v12658_v15, %v9873_v14  ;;  %v12538_v14 = vld [vmem:[%s14050_s17 + $0x80c] sm:$0xf0]  ;;  %v9713_v15 = vld [vmem:[%s14050_s17 + $0xa68] sm:$0xf] }
 0x180   : > { %3391 = vmatpush.bf16.msrb.mxu1 %v9710_v29  ;;  %v8598_v29 = vor.u32 %v12333_v20, %v8595_v21  ;;  %v12618_v18 = vld [vmem:[%s14050_s17 + $0xa8c] sm:$0xf0]  ;;  %v8435_v20 = vld [vmem:[%s14050_s17 + $0x90] sm:$0xf0]  ;;  %v9074_v21 = vor.u32 %v12458_v11, %v9073_v10  ;;  %v12573_v11 = vld [vmem:[%s14050_s17 + $0x92c] sm:$0xf] }
 0x181   : > { %3404 = vmatpush.bf16.msrb.mxu2 %v8434_v30  ;;  %v12568_v30 = vld [vmem:[%s14050_s17 + $0x8fc] sm:$0xf0]  ;;  %v9714_v25 = vor.u32 %v12618_v18, %v9713_v15  ;;  %v9235_v10 = vld [vmem:[%s14050_s17 + $0x6d0] sm:$0xf0] }
 0x182   : > { %3417 = vmatpush.bf16.msrb.mxu3 %v8754_v37  ;;  %v8555_v37 = vld [vmem:[%s14050_s17 + $0x180] sm:$0xf0]  ;;  %v9514_v42 = vor.u32 %v12568_v30, %v9513_v28  ;;  %v12528_v28 = vld [vmem:[%s14050_s17 + $0x7bc] sm:$0xf0]  ;;  %v8438_v30 = vor.u32 %v12293_v19, %v8435_v20  ;;  %v9875_v15 = vld [vmem:[%s14050_s17 + $0xbd0] sm:$0xf0] }
 0x183   : > { %3379 = vmatpush.bf16.msrb.mxu0 %v9350_v44  ;;  %v3173_v38 = vpop.f32.mrf.mxu0  ;;  %v9153_v44 = vld [vmem:[%s14050_s17 + $0x608] sm:$0xf]  ;;  %v8558_v47 = vor.u32 %v12323_v36, %v8555_v37  ;;  %v8395_v36 = vld [vmem:[%s14050_s17 + $0x40] sm:$0xf0] }
 0x184   : > { %3392 = vmatpush.bf16.msrb.mxu1 %v9670_v50  ;;  %v3174_v40 = vadd.f32 %v3173_v38, %v3161_v3  ;;  %v3186_v41 = vpop.f32.mrf.mxu1  ;;  %v12638_v50 = vld [vmem:[%s14050_s17 + $0xb2c] sm:$0xf0]  ;;  %v8475_v3 = vld [vmem:[%s14050_s17 + $0xe0] sm:$0xf0]  ;;  %v12433_v38 = vld [vmem:[%s14050_s17 + $0x4cc] sm:$0xf] }
 0x185   : > { %3405 = vmatpush.bf16.msrb.mxu2 %v8394_v52  ;;  %v9794_v57 = vor.u32 %v12638_v50, %v9793_v49  ;;  %v8478_v13 = vor.u32 %v12303_v2, %v8475_v3  ;;  %v9955_v49 = vld [vmem:[%s14050_s17 + $0xc70] sm:$0xf0]  ;;  %v8398_v50 = vor.u32 %v12283_v33, %v8395_v36 }
 0x186   : > { %3418 = vmatpush.bf16.msrb.mxu3 %v8714_v55  ;;  %3380 = vmatmul.bf16.vlgmr.msrb.gmra.mxu0 %v14194_v34  ;;  %v3187_v52 = vadd.f32 %v3186_v41, %v3174_v40  ;;  %v9154_v55 = vor.u32 %v12478_v45, %v9153_v44  ;;  %v12513_v40 = vld [vmem:[%s14050_s17 + $0x74c] sm:$0xf]  ;;  %v9635_v44 = vld [vmem:[%s14050_s17 + $0x9f0] sm:$0xf0] }
 0x187   : > { %3424 = vmatpush.bf16.msra.mxu0 %v9314_v56  ;;  %3393 = vmatmul.bf16.vlgmr.msrb.gmra.mxu1 %v14236_v35  ;;  %v9474_v56 = vor.u32 %v12558_v48, %v9473_v46  ;;  %v9354_v46 = vor.u32 %v12528_v28, %v9353_v26  ;;  %v12673_v48 = vld [vmem:[%s14050_s17 + $0xc4c] sm:$0xf]  ;;  %v9195_v26 = vld [vmem:[%s14050_s17 + $0x680] sm:$0xf0]  ;;  %v12563_v28 = vld [vmem:[%s14050_s17 + $0x8dc] sm:$0xf] }
 0x188   : > { %3437 = vmatpush.bf16.msra.mxu1 %v9634_v61  ;;  %3406 = vmatmul.bf16.vlgmr.msrb.gmra.mxu2 %v14178_v16  ;;  %v9113_v61 = vld [vmem:[%s14050_s17 + $0x5b8] sm:$0xf] }
 0x189   : > { %3450 = vmatpush.bf16.msra.mxu2 %v9954_v58  ;;  %3419 = vmatmul.bf16.vlgmr.msrb.gmra.mxu3 %v14180_v17  ;;  %v12468_v58 = vld [vmem:[%s14050_s17 + $0x5dc] sm:$0xf0] }
 0x18a   : > { %3463 = vmatpush.bf16.msra.mxu3 %v8678_v63  ;;  %v9753_v63 = vld [vmem:[%s14050_s17 + $0xab8] sm:$0xf] }
 0x18b   : > { %3425 = vmatpush.bf16.msra.mxu0 %v9274_v6  ;;  %v3199_v1 = vpop.f32.mrf.mxu2  ;;  %v3175_v4 = vpop.f32.mrf.mxu0  ;;  %v9114_v6 = vor.u32 %v12468_v58, %v9113_v61  ;;  %v9754_v9 = vor.u32 %v12628_v0, %v9753_v63  ;;  %v9958_v61 = vor.u32 %v12673_v48, %v9955_v49  ;;  %v9275_v58 = vld [vmem:[%s14050_s17 + $0x720] sm:$0xf0]  ;;  %v12633_v49 = vld [vmem:[%s14050_s17 + $0xb0c] sm:$0xf] }
 0x18c   : > { %3438 = vmatpush.bf16.msra.mxu1 %v9594_v7  ;;  %v14697_v5 = vadd.f32 %v3199_v1, %v3187_v52  ;;  %v3188_v7 = vpop.f32.mrf.mxu1  ;;  %v3212_v45 = vpop.f32.mrf.mxu3  ;;  %v9915_v63 = vld [vmem:[%s14050_s17 + $0xc20] sm:$0xf0] }
 0x18d   : > { %3451 = vmatpush.bf16.msra.mxu2 %v9914_v8  ;;  %v9434_v8 = vor.u32 %v12548_v62, %v9433_v59  ;;  %v12583_v59 = vld [vmem:[%s14050_s17 + $0x97c] sm:$0xf]  ;;  %v14732_v1 = vld [vmem:[%s14056_s23] sm:$0xff]  ;;  %v8915_v7 = vld [vmem:[%s14050_s17 + $0x450] sm:$0xf0] }
 0x18e   : > { %3464 = vmatpush.bf16.msra.mxu3 %v8638_v12  ;;  %v9393_v12 = vld [vmem:[%s14050_s17 + $0x7e8] sm:$0xf]  ;;  %v12663_v62 = vld [vmem:[%s14050_s17 + $0xbfc] sm:$0xf]  ;;  %v973_v2 = vperm.slane %v14732_v1, 3  ;;  %13400 = vtanh.f32 %v14697_v5 }
 0x18f   : > { %3426 = vmatpush.bf16.msra.mxu0 %v9234_v22  ;;  %v9033_v22 = vld [vmem:[%s14050_s17 + $0x518] sm:$0xf]  ;;  %v12746_v5 = vld [vmem:[%s14058_s30 + $0x20c] sm:$0xf0] }
 0x190   : > { %3439 = vmatpush.bf16.msra.mxu1 %v9554_v23  ;;  %v12448_v23 = vld [vmem:[%s14050_s17 + $0x53c] sm:$0xf0]  ;;  %v3213_v19 = vadd.f32 %v3212_v45, %v973_v2  ;;  %v9155_v45 = vld [vmem:[%s14050_s17 + $0x630] sm:$0xf0] }
 0x191   : > { %3452 = vmatpush.bf16.msra.mxu2 %v9874_v24  ;;  %v9394_v24 = vor.u32 %v12538_v14, %v9393_v12  ;;  %v9034_v41 = vor.u32 %v12448_v23, %v9033_v22  ;;  %v9555_v12 = vld [vmem:[%s14050_s17 + $0x950] sm:$0xf0]  ;;  %v12653_v14 = vld [vmem:[%s14050_s17 + $0xbac] sm:$0xf]  ;;  %v12403_v22 = vld [vmem:[%s14050_s17 + $0x3dc] sm:$0xf] }
 0x192   : > { %3465 = vmatpush.bf16.msra.mxu3 %v8598_v29  ;;  %v9673_v29 = vld [vmem:[%s14050_s17 + $0xa18] sm:$0xf]  ;;  %v8875_v23 = vld [vmem:[%s14050_s17 + $0x400] sm:$0xf0] }
 0x193   : > { %3427 = vmatpush.bf16.msra.mxu0 %v9194_v39  ;;  %v3201_v37 = vpop.f32.mrf.mxu2  ;;  %v8995_v39 = vld [vmem:[%s14050_s17 + $0x4f0] sm:$0xf0]  ;;  %v8878_v36 = vor.u32 %v12403_v22, %v8875_v23  ;;  %v12363_v23 = vld [vmem:[%s14050_s17 + $0x29c] sm:$0xf] }
 0x194   : > { %3440 = vmatpush.bf16.msra.mxu1 %v9514_v42  ;;  %v9315_v42 = vld [vmem:[%s14050_s17 + $0x770] sm:$0xf0]  ;;  %v8998_v52 = vor.u32 %v12433_v38, %v8995_v39 }
 0x195   : > { %3453 = vmatpush.bf16.msra.mxu2 %v9834_v43  ;;  %v12593_v43 = vld [vmem:[%s14050_s17 + $0x9cc] sm:$0xf]  ;;  %v9318_v53 = vor.u32 %v12513_v40, %v9315_v42  ;;  %v8835_v42 = vld [vmem:[%s14050_s17 + $0x3b0] sm:$0xf0] }
 0x196   : > { %3466 = vmatpush.bf16.msra.mxu3 %v8558_v47  ;;  %v9674_v47 = vor.u32 %v12608_v32, %v9673_v29  ;;  %v9638_v54 = vor.u32 %v12593_v43, %v9635_v44  ;;  %v9515_v29 = vld [vmem:[%s14050_s17 + $0x900] sm:$0xf0]  ;;  %v12473_v43 = vld [vmem:[%s14050_s17 + $0x60c] sm:$0xf] }
 0x197   : > { %3428 = vmatpush.bf16.msra.mxu0 %v9154_v55  ;;  %v12423_v55 = vld [vmem:[%s14050_s17 + $0x47c] sm:$0xf]  ;;  %v9835_v32 = vld [vmem:[%s14050_s17 + $0xb80] sm:$0xf0]  ;;  %v9518_v40 = vor.u32 %v12563_v28, %v9515_v29 }
 0x198   : > { %3441 = vmatpush.bf16.msra.mxu1 %v9474_v56  ;;  %v8955_v56 = vld [vmem:[%s14050_s17 + $0x4a0] sm:$0xf0]  ;;  %v12443_v28 = vld [vmem:[%s14050_s17 + $0x51c] sm:$0xf] }
 0x199   : > { %3454 = vmatpush.bf16.msra.mxu2 %v9794_v57  ;;  %v12503_v57 = vld [vmem:[%s14050_s17 + $0x6fc] sm:$0xf]  ;;  %v8958_v0 = vor.u32 %v12423_v55, %v8955_v56  ;;  %v8795_v56 = vld [vmem:[%s14050_s17 + $0x360] sm:$0xf0] }
 0x19a   : > { %3467 = vmatpush.bf16.msra.mxu3 %v8518_v60  ;;  %v9595_v60 = vld [vmem:[%s14050_s17 + $0x9a0] sm:$0xf0]  ;;  %v9278_v3 = vor.u32 %v12503_v57, %v9275_v58  ;;  %v12383_v55 = vld [vmem:[%s14050_s17 + $0x33c] sm:$0xf] }
 0x19b   : > { %3429 = vmatpush.bf16.msra.mxu0 %v9114_v6  ;;  %v9598_v4 = vor.u32 %v12583_v59, %v9595_v60  ;;  %v12413_v6 = vld [vmem:[%s14050_s17 + $0x42c] sm:$0xf]  ;;  %v12463_v57 = vld [vmem:[%s14050_s17 + $0x5bc] sm:$0xf]  ;;  %v9115_v58 = vld [vmem:[%s14050_s17 + $0x5e0] sm:$0xf0] }
 0x19c   : > { %3442 = vmatpush.bf16.msra.mxu1 %v9434_v8  ;;  %v12493_v8 = vld [vmem:[%s14050_s17 + $0x6ac] sm:$0xf]  ;;  %v8918_v18 = vor.u32 %v12413_v6, %v8915_v7  ;;  %v12543_v59 = vld [vmem:[%s14050_s17 + $0x83c] sm:$0xf]  ;;  %v9435_v60 = vld [vmem:[%s14050_s17 + $0x860] sm:$0xf0]  ;;  %v8798_v6 = vor.u32 %v12383_v55, %v8795_v56 }
 0x19d   : > { %3455 = vmatpush.bf16.msra.mxu2 %v9754_v9  ;;  %v9918_v9 = vor.u32 %v12663_v62, %v9915_v63  ;;  %v9238_v20 = vor.u32 %v12493_v8, %v9235_v10  ;;  %v12623_v63 = vld [vmem:[%s14050_s17 + $0xabc] sm:$0xf]  ;;  %v9118_v8 = vor.u32 %v12463_v57, %v9115_v58  ;;  %v12373_v10 = vld [vmem:[%s14050_s17 + $0x2ec] sm:$0xf]  ;;  %v9035_v29 = vld [vmem:[%s14050_s17 + $0x540] sm:$0xf0] }
 0x19e   : > { %3468 = vmatpush.bf16.msra.mxu3 %v8478_v13  ;;  %v3214_v13 = vpop.f32.mrf.mxu3  ;;  %v8641_v56 = vld [vmem:[%s14050_s17 + $0x200] sm:$0xf]  ;;  %v12349_v57 = vld [vmem:[%s14050_s17 + $0x224] sm:$0xf0] }
 0x19f   : > { %3430 = vmatpush.bf16.msra.mxu0 %v9074_v21  ;;  %v9558_v21 = vor.u32 %v12573_v11, %v9555_v12  ;;  %v8755_v11 = vld [vmem:[%s14050_s17 + $0x310] sm:$0xf0]  ;;  %v12453_v12 = vld [vmem:[%s14050_s17 + $0x56c] sm:$0xf] }
 0x1a0   : > { %3443 = vmatpush.bf16.msra.mxu1 %v9394_v24  ;;  %v12483_v24 = vld [vmem:[%s14050_s17 + $0x65c] sm:$0xf]  ;;  %v8758_v22 = vor.u32 %v12373_v10, %v8755_v11  ;;  %v12419_v10 = vld [vmem:[%s14050_s17 + $0x454] sm:$0xf0]  ;;  %v9241_v11 = vld [vmem:[%s14050_s17 + $0x6b0] sm:$0xf] }
 0x1a1   : > { %3456 = vmatpush.bf16.msra.mxu2 %v9714_v25  ;;  %v9878_v25 = vor.u32 %v12653_v14, %v9875_v15  ;;  %v9198_v39 = vor.u32 %v12483_v24, %v9195_v26  ;;  %v9075_v15 = vld [vmem:[%s14050_s17 + $0x590] sm:$0xf0]  ;;  %v8715_v24 = vld [vmem:[%s14050_s17 + $0x2c0] sm:$0xf0] }
 0x1a2   : > { %3469 = vmatpush.bf16.msra.mxu3 %v8438_v30  ;;  %v12643_v30 = vld [vmem:[%s14050_s17 + $0xb5c] sm:$0xf] }
 0x1a3   : > { %3431 = vmatpush.bf16.msra.mxu0 %v9034_v41  ;;  %v3225_v33 = vpop.f32.mrf.mxu0  ;;  %v12393_v41 = vld [vmem:[%s14050_s17 + $0x38c] sm:$0xf]  ;;  %v9838_v44 = vor.u32 %v12643_v30, %v9835_v32  ;;  %v12523_v30 = vld [vmem:[%s14050_s17 + $0x79c] sm:$0xf] }
 0x1a4   : > { %3444 = vmatpush.bf16.msra.mxu1 %v9354_v46  ;;  %v3226_v37 = vadd.f32 %v3225_v33, %v3213_v19  ;;  %v3238_v38 = vpop.f32.mrf.mxu1  ;;  %v12553_v46 = vld [vmem:[%s14050_s17 + $0x88c] sm:$0xf]  ;;  %v9395_v19 = vld [vmem:[%s14050_s17 + $0x810] sm:$0xf0]  ;;  %v9355_v33 = vld [vmem:[%s14050_s17 + $0x7c0] sm:$0xf0] }
 0x1a5   : > { %3457 = vmatpush.bf16.msra.mxu2 %v9674_v47  ;;  %v9475_v47 = vld [vmem:[%s14050_s17 + $0x8b0] sm:$0xf0] }
 0x1a6   : > { %3470 = vmatpush.bf16.msra.mxu3 %v8398_v50  ;;  %3432 = vmatmul.bf16.vlgmr.msra.gmra.mxu0 %v14189_v31  ;;  %v3239_v48 = vadd.f32 %v3238_v38, %v3226_v37  ;;  %v9795_v50 = vld [vmem:[%s14050_s17 + $0xb30] sm:$0xf0]  ;;  %v9675_v37 = vld [vmem:[%s14050_s17 + $0xa40] sm:$0xf0] }
 0x1a7   : > { %3476 = vmatpush.bf16.msrb.mxu0 %v8998_v52  ;;  %3445 = vmatmul.bf16.vlgmr.msra.gmra.mxu1 %v14194_v34  ;;  %v8838_v52 = vor.u32 %v12393_v41, %v8835_v42  ;;  %v9001_v41 = vld [vmem:[%s14050_s17 + $0x4d0] sm:$0xf] }
 0x1a8   : > { %3489 = vmatpush.bf16.msrb.mxu1 %v9318_v53  ;;  %3458 = vmatmul.bf16.vlgmr.msra.gmra.mxu2 %v14236_v35  ;;  %v9158_v53 = vor.u32 %v12473_v43, %v9155_v45  ;;  %v8718_v43 = vor.u32 %v12363_v23, %v8715_v24  ;;  %v9321_v45 = vld [vmem:[%s14050_s17 + $0x750] sm:$0xf]  ;;  %v12329_v23 = vld [vmem:[%s14050_s17 + $0x184] sm:$0xf0]  ;;  %v8881_v24 = vld [vmem:[%s14050_s17 + $0x3e0] sm:$0xf] }
 0x1a9   : > { %3502 = vmatpush.bf16.msrb.mxu2 %v9638_v54  ;;  %3471 = vmatmul.bf16.vlgmr.msra.gmra.mxu3 %v14178_v16  ;;  %v9478_v54 = vor.u32 %v12553_v46, %v9475_v47  ;;  %v12519_v46 = vld [vmem:[%s14050_s17 + $0x774] sm:$0xf0]  ;;  %v9038_v47 = vor.u32 %v12443_v28, %v9035_v29  ;;  %v9201_v28 = vld [vmem:[%s14050_s17 + $0x660] sm:$0xf]  ;;  %v12489_v29 = vld [vmem:[%s14050_s17 + $0x684] sm:$0xf0] }
 0x1aa   : > { %3515 = vmatpush.bf16.msrb.mxu3 %v9958_v61  ;;  %v9798_v61 = vor.u32 %v12633_v49, %v9795_v50  ;;  %v9641_v49 = vld [vmem:[%s14050_s17 + $0x9d0] sm:$0xf]  ;;  %v12599_v50 = vld [vmem:[%s14050_s17 + $0x9f4] sm:$0xf0]  ;;  %v9322_v55 = vor.u32 %v12519_v46, %v9321_v45 }
 0x1ab   : > { %3477 = vmatpush.bf16.msrb.mxu0 %v8958_v0  ;;  %v3251_v62 = vpop.f32.mrf.mxu2  ;;  %v9755_v0 = vld [vmem:[%s14050_s17 + $0xae0] sm:$0xf0]  ;;  %v3227_v2 = vpop.f32.mrf.mxu0  ;;  %v9642_v58 = vor.u32 %v12599_v50, %v9641_v49  ;;  %v9161_v45 = vld [vmem:[%s14050_s17 + $0x610] sm:$0xf]  ;;  %v12479_v46 = vld [vmem:[%s14050_s17 + $0x634] sm:$0xf0] }
 0x1ac   : > { %3490 = vmatpush.bf16.msrb.mxu1 %v9278_v3  ;;  %v3252_v3 = vadd.f32 %v3251_v62, %v3239_v48  ;;  %v3240_v7 = vpop.f32.mrf.mxu1  ;;  %v9758_v14 = vor.u32 %v12623_v63, %v9755_v0  ;;  %v9358_v48 = vor.u32 %v12523_v30, %v9355_v33  ;;  %v12509_v62 = vld [vmem:[%s14050_s17 + $0x724] sm:$0xf0]  ;;  %v9601_v63 = vld [vmem:[%s14050_s17 + $0x980] sm:$0xf]  ;;  %v8642_v2 = vor.u32 %v12349_v57, %v8641_v56  ;;  %v12559_v49 = vld [vmem:[%s14050_s17 + $0x8b4] sm:$0xf0] }
 0x1ad   : > { %3503 = vmatpush.bf16.msrb.mxu2 %v9598_v4  ;;  %v3264_v4 = vpop.f32.mrf.mxu3  ;;  %v12589_v0 = vld [vmem:[%s14050_s17 + $0x9a4] sm:$0xf0]  ;;  %v12339_v7 = vld [vmem:[%s14050_s17 + $0x1d4] sm:$0xf0]  ;;  %v9521_v30 = vld [vmem:[%s14050_s17 + $0x8e0] sm:$0xf] }
 0x1ae   : > { %3516 = vmatpush.bf16.msrb.mxu3 %v9918_v9  ;;  %v9438_v9 = vor.u32 %v12543_v59, %v9435_v60  ;;  %v14774_v13 = vadd.f32 %v3264_v4, %v3252_v3  ;;  %v12429_v59 = vld [vmem:[%s14050_s17 + $0x4a4] sm:$0xf0]  ;;  %v9281_v60 = vld [vmem:[%s14050_s17 + $0x700] sm:$0xf] }
 0x1af   : > { %3478 = vmatpush.bf16.msrb.mxu0 %v8918_v18  ;;  %v12533_v18 = vld [vmem:[%s14050_s17 + $0x7ec] sm:$0xf]  ;;  %v9282_v4 = vor.u32 %v12509_v62, %v9281_v60  ;;  %v8801_v56 = vld [vmem:[%s14050_s17 + $0x340] sm:$0xf] }
 0x1b0   : > { %3491 = vmatpush.bf16.msrb.mxu1 %v9238_v20  ;;  %v12613_v20 = vld [vmem:[%s14050_s17 + $0xa6c] sm:$0xf]  ;;  %v9398_v26 = vor.u32 %v12533_v18, %v9395_v19  ;;  %v974_v19 = vperm.slane %v14732_v1, 4  ;;  %v9441_v62 = vld [vmem:[%s14050_s17 + $0x840] sm:$0xf]  ;;  %13402 = vtanh.f32 %v14774_v13 }
 0x1b1   : > { %3504 = vmatpush.bf16.msrb.mxu2 %v9558_v21  ;;  %v9715_v21 = vld [vmem:[%s14050_s17 + $0xa90] sm:$0xf0]  ;;  %v12778_v13 = vld [vmem:[%s14058_s30 + $0x30c] sm:$0xf0] }
 0x1b2   : > { %3517 = vmatpush.bf16.msrb.mxu3 %v9878_v25  ;;  %v9078_v25 = vor.u32 %v12453_v12, %v9075_v15  ;;  %v9718_v32 = vor.u32 %v12613_v20, %v9715_v21  ;;  %v12499_v12 = vld [vmem:[%s14050_s17 + $0x6d4] sm:$0xf0] }
 0x1b3   : > { %3479 = vmatpush.bf16.msrb.mxu0 %v8878_v36  ;;  %v12603_v36 = vld [vmem:[%s14050_s17 + $0xa1c] sm:$0xf]  ;;  %v3253_v38 = vpop.f32.mrf.mxu2  ;;  %v12579_v15 = vld [vmem:[%s14050_s17 + $0x954] sm:$0xf0]  ;;  %v9242_v21 = vor.u32 %v12499_v12, %v9241_v11  ;;  %v8761_v11 = vld [vmem:[%s14050_s17 + $0x2f0] sm:$0xf] }
 0x1b4   : > { %3492 = vmatpush.bf16.msrb.mxu1 %v9198_v39  ;;  %v8681_v39 = vld [vmem:[%s14050_s17 + $0x250] sm:$0xf] }
 0x1b5   : > { %3505 = vmatpush.bf16.msrb.mxu2 %v9518_v40  ;;  %v12359_v40 = vld [vmem:[%s14050_s17 + $0x274] sm:$0xf0]  ;;  %v3266_v42 = vpop.f32.mrf.mxu3 }
 0x1b6   : > { %3518 = vmatpush.bf16.msrb.mxu3 %v9838_v44  ;;  %v12439_v44 = vld [vmem:[%s14050_s17 + $0x4f4] sm:$0xf0]  ;;  %v8841_v42 = vld [vmem:[%s14050_s17 + $0x390] sm:$0xf] }
 0x1b7   : > { %3480 = vmatpush.bf16.msrb.mxu0 %v8838_v52  ;;  %v9678_v52 = vor.u32 %v12603_v36, %v9675_v37 }
 0x1b8   : > { %3493 = vmatpush.bf16.msrb.mxu1 %v9158_v53  ;;  %v8682_v53 = vor.u32 %v12359_v40, %v8681_v39  ;;  %v9202_v39 = vor.u32 %v12489_v29, %v9201_v28  ;;  %v8521_v40 = vld [vmem:[%s14050_s17 + $0x110] sm:$0xf]  ;;  %v8721_v28 = vld [vmem:[%s14050_s17 + $0x2a0] sm:$0xf]  ;;  %v12369_v29 = vld [vmem:[%s14050_s17 + $0x2c4] sm:$0xf0] }
 0x1b9   : > { %3506 = vmatpush.bf16.msrb.mxu2 %v9478_v54  ;;  %v9002_v54 = vor.u32 %v12439_v44, %v9001_v41  ;;  %v12319_v41 = vld [vmem:[%s14050_s17 + $0x134] sm:$0xf0] }
 0x1ba   : > { %3519 = vmatpush.bf16.msrb.mxu3 %v9798_v61  ;;  %v8961_v61 = vld [vmem:[%s14050_s17 + $0x480] sm:$0xf]  ;;  %v12399_v44 = vld [vmem:[%s14050_s17 + $0x3b4] sm:$0xf0]  ;;  %v8522_v50 = vor.u32 %v12319_v41, %v8521_v40  ;;  %v12354_v40 = vld [vmem:[%s14050_s17 + $0x254] sm:$0xf] }
 0x1bb   : > { %3481 = vmatpush.bf16.msrb.mxu0 %v8798_v6  ;;  %v8962_v3 = vor.u32 %v12429_v59, %v8961_v61  ;;  %v8601_v6 = vld [vmem:[%s14050_s17 + $0x1b0] sm:$0xf]  ;;  %v12389_v61 = vld [vmem:[%s14050_s17 + $0x364] sm:$0xf0] }
 0x1bc   : > { %3494 = vmatpush.bf16.msrb.mxu1 %v9118_v8  ;;  %v8921_v8 = vld [vmem:[%s14050_s17 + $0x430] sm:$0xf]  ;;  %v8602_v18 = vor.u32 %v12339_v7, %v8601_v6  ;;  %v12469_v59 = vld [vmem:[%s14050_s17 + $0x5e4] sm:$0xf0]  ;;  %v8802_v7 = vor.u32 %v12389_v61, %v8801_v56 }
 0x1bd   : > { %3507 = vmatpush.bf16.msrb.mxu2 %v9438_v9  ;;  %v9602_v9 = vor.u32 %v12589_v0, %v9601_v63  ;;  %v8922_v20 = vor.u32 %v12419_v10, %v8921_v8  ;;  %v12549_v63 = vld [vmem:[%s14050_s17 + $0x864] sm:$0xf0]  ;;  %v12299_v10 = vld [vmem:[%s14050_s17 + $0x94] sm:$0xf0] }
 0x1be   : > { %3520 = vmatpush.bf16.msrb.mxu3 %v9758_v14  ;;  %v9561_v14 = vld [vmem:[%s14050_s17 + $0x930] sm:$0xf]  ;;  %v12669_v56 = vld [vmem:[%s14050_s17 + $0xc24] sm:$0xf0] }
 0x1bf   : > { %3482 = vmatpush.bf16.msrb.mxu0 %v8758_v22  ;;  %v8561_v22 = vld [vmem:[%s14050_s17 + $0x160] sm:$0xf] }
 0x1c0   : > { %3495 = vmatpush.bf16.msrb.mxu1 %v9078_v25  ;;  %v9562_v25 = vor.u32 %v12579_v15, %v9561_v14  ;;  %v8562_v33 = vor.u32 %v12329_v23, %v8561_v22  ;;  %v9442_v14 = vor.u32 %v12549_v63, %v9441_v62  ;;  %v12379_v15 = vld [vmem:[%s14050_s17 + $0x314] sm:$0xf0]  ;;  %v8401_v23 = vld [vmem:[%s14050_s17 + $0x20] sm:$0xf]  ;;  %v12504_v62 = vld [vmem:[%s14050_s17 + $0x704] sm:$0xf] }
 0x1c1   : > { %3508 = vmatpush.bf16.msrb.mxu2 %v9398_v26  ;;  %v12409_v26 = vld [vmem:[%s14050_s17 + $0x404] sm:$0xf0]  ;;  %v9283_v63 = vld [vmem:[%s14050_s17 + $0x728] sm:$0xf0] }
 0x1c2   : > { %3521 = vmatpush.bf16.msrb.mxu3 %v9718_v32  ;;  %v12569_v32 = vld [vmem:[%s14050_s17 + $0x904] sm:$0xf0]  ;;  %v8882_v38 = vor.u32 %v12409_v26, %v8881_v24 }
 0x1c3   : > { %3483 = vmatpush.bf16.msrb.mxu0 %v8718_v43  ;;  %v3277_v1 = vpop.f32.mrf.mxu0  ;;  %v9522_v43 = vor.u32 %v12569_v32, %v9521_v30  ;;  %v12289_v24 = vld [vmem:[%s14050_s17 + $0x44] sm:$0xf0]  ;;  %v9041_v30 = vld [vmem:[%s14050_s17 + $0x520] sm:$0xf] }
 0x1c4   : > { %3496 = vmatpush.bf16.msrb.mxu1 %v9038_v47  ;;  %v3278_v36 = vadd.f32 %v3277_v1, %v974_v19  ;;  %v3290_v37 = vpop.f32.mrf.mxu1  ;;  %v12459_v19 = vld [vmem:[%s14050_s17 + $0x594] sm:$0xf0]  ;;  %v12449_v1 = vld [vmem:[%s14050_s17 + $0x544] sm:$0xf0] }
 0x1c5   : > { %3509 = vmatpush.bf16.msrb.mxu2 %v9358_v48  ;;  %v9481_v48 = vld [vmem:[%s14050_s17 + $0x890] sm:$0xf] }
 0x1c6   : > { %3522 = vmatpush.bf16.msrb.mxu3 %v9678_v52  ;;  %3484 = vmatmul.bf16.vlgmr.msrb.gmra.mxu0 %v14180_v17  ;;  %v3291_v47 = vadd.f32 %v3290_v37, %v3278_v36  ;;  %v8842_v52 = vor.u32 %v12399_v44, %v8841_v42  ;;  %v9482_v57 = vor.u32 %v12559_v49, %v9481_v48  ;;  %v12529_v36 = vld [vmem:[%s14050_s17 + $0x7c4] sm:$0xf0]  ;;  %v12434_v44 = vld [vmem:[%s14050_s17 + $0x4d4] sm:$0xf]  ;;  %v9323_v49 = vld [vmem:[%s14050_s17 + $0x778] sm:$0xf0] }
 0x1c7   : > { %3528 = vmatpush.bf16.msra.mxu0 %v8682_v53  ;;  %3497 = vmatmul.bf16.vlgmr.msrb.gmra.mxu1 %v14189_v31  ;;  %v9162_v53 = vor.u32 %v12479_v46, %v9161_v45  ;;  %v8402_v42 = vor.u32 %v12289_v24, %v8401_v23  ;;  %v9003_v45 = vld [vmem:[%s14050_s17 + $0x4f8] sm:$0xf0]  ;;  %v8722_v46 = vor.u32 %v12369_v29, %v8721_v28  ;;  %v12514_v48 = vld [vmem:[%s14050_s17 + $0x754] sm:$0xf]  ;;  %v12324_v23 = vld [vmem:[%s14050_s17 + $0x164] sm:$0xf] }
 0x1c8   : > { %3541 = vmatpush.bf16.msra.mxu1 %v9002_v54  ;;  %3510 = vmatmul.bf16.vlgmr.msrb.gmra.mxu2 %v14194_v34  ;;  %v8481_v54 = vld [vmem:[%s14050_s17 + $0xc0] sm:$0xf]  ;;  %v9326_v61 = vor.u32 %v12514_v48, %v9323_v49  ;;  %v8883_v28 = vld [vmem:[%s14050_s17 + $0x408] sm:$0xf0]  ;;  %v12484_v29 = vld [vmem:[%s14050_s17 + $0x664] sm:$0xf] }
 0x1c9   : > { %3554 = vmatpush.bf16.msra.mxu2 %v9322_v55  ;;  %3523 = vmatmul.bf16.vlgmr.msrb.gmra.mxu3 %v14236_v35  ;;  %v12309_v55 = vld [vmem:[%s14050_s17 + $0xe4] sm:$0xf0] }
 0x1ca   : > { %3567 = vmatpush.bf16.msra.mxu3 %v9642_v58  ;;  %v9121_v58 = vld [vmem:[%s14050_s17 + $0x5c0] sm:$0xf] }
 0x1cb   : > { %3529 = vmatpush.bf16.msra.mxu0 %v8642_v2  ;;  %v3303_v60 = vpop.f32.mrf.mxu2  ;;  %v3279_v0 = vpop.f32.mrf.mxu0  ;;  %v9122_v8 = vor.u32 %v12469_v59, %v9121_v58  ;;  %v8643_v58 = vld [vmem:[%s14050_s17 + $0x228] sm:$0xf0]  ;;  %v12424_v59 = vld [vmem:[%s14050_s17 + $0x484] sm:$0xf] }
 0x1cc   : > { %3542 = vmatpush.bf16.msra.mxu1 %v8962_v3  ;;  %v3304_v2 = vadd.f32 %v3303_v60, %v3291_v47  ;;  %v3316_v3 = vpop.f32.mrf.mxu3  ;;  %v3292_v6 = vpop.f32.mrf.mxu1  ;;  %v9042_v47 = vor.u32 %v12449_v1, %v9041_v30  ;;  %v8963_v60 = vld [vmem:[%s14050_s17 + $0x4a8] sm:$0xf0] }
 0x1cd   : > { %3555 = vmatpush.bf16.msra.mxu2 %v9282_v4  ;;  %v8482_v4 = vor.u32 %v12309_v55, %v8481_v54  ;;  %v9006_v54 = vor.u32 %v12434_v44, %v9003_v45  ;;  %v9921_v55 = vld [vmem:[%s14050_s17 + $0xc00] sm:$0xf]  ;;  %v12659_v6 = vld [vmem:[%s14050_s17 + $0xbd4] sm:$0xf0]  ;;  %v9203_v30 = vld [vmem:[%s14050_s17 + $0x688] sm:$0xf0] }
 0x1ce   : > { %3568 = vmatpush.bf16.msra.mxu3 %v9602_v9  ;;  %v8441_v9 = vld [vmem:[%s14050_s17 + $0x70] sm:$0xf]  ;;  %v14845_v12 = vadd.f32 %v3316_v3, %v3304_v2  ;;  %v9922_v0 = vor.u32 %v12669_v56, %v9921_v55  ;;  %v8966_v3 = vor.u32 %v12424_v59, %v8963_v60  ;;  %v12394_v44 = vld [vmem:[%s14050_s17 + $0x394] sm:$0xf]  ;;  %v8483_v55 = vld [vmem:[%s14050_s17 + $0xe8] sm:$0xf0] }
 0x1cf   : > { %3530 = vmatpush.bf16.msra.mxu0 %v8602_v18  ;;  %v9081_v18 = vld [vmem:[%s14050_s17 + $0x570] sm:$0xf]  ;;  %v8442_v22 = vor.u32 %v12299_v10, %v8441_v9  ;;  %v8603_v9 = vld [vmem:[%s14050_s17 + $0x1d8] sm:$0xf0]  ;;  %v12414_v10 = vld [vmem:[%s14050_s17 + $0x434] sm:$0xf] }
 0x1d0   : > { %3543 = vmatpush.bf16.msra.mxu1 %v8922_v20  ;;  %v9401_v20 = vld [vmem:[%s14050_s17 + $0x7f0] sm:$0xf]  ;;  %v9082_v26 = vor.u32 %v12459_v19, %v9081_v18  ;;  %v12474_v45 = vld [vmem:[%s14050_s17 + $0x614] sm:$0xf]  ;;  %v12384_v56 = vld [vmem:[%s14050_s17 + $0x344] sm:$0xf] }
 0x1d1   : > { %3556 = vmatpush.bf16.msra.mxu2 %v9242_v21  ;;  %v12539_v21 = vld [vmem:[%s14050_s17 + $0x814] sm:$0xf0]  ;;  %v9123_v59 = vld [vmem:[%s14050_s17 + $0x5e8] sm:$0xf0] }
 0x1d2   : > { %3569 = vmatpush.bf16.msra.mxu3 %v9562_v25  ;;  %v8762_v25 = vor.u32 %v12379_v15, %v8761_v11  ;;  %v9402_v32 = vor.u32 %v12539_v21, %v9401_v20  ;;  %v8923_v11 = vld [vmem:[%s14050_s17 + $0x458] sm:$0xf0]  ;;  %v9841_v21 = vld [vmem:[%s14050_s17 + $0xb60] sm:$0xf] }
 0x1d3   : > { %3531 = vmatpush.bf16.msra.mxu0 %v8562_v33  ;;  %v9361_v33 = vld [vmem:[%s14050_s17 + $0x7a0] sm:$0xf]  ;;  %v3305_v37 = vpop.f32.mrf.mxu2  ;;  %v9243_v15 = vld [vmem:[%s14050_s17 + $0x6d8] sm:$0xf0]  ;;  %v8926_v20 = vor.u32 %v12414_v10, %v8923_v11  ;;  %v12374_v10 = vld [vmem:[%s14050_s17 + $0x2f4] sm:$0xf] }
 0x1d4   : > { %3544 = vmatpush.bf16.msra.mxu1 %v8882_v38  ;;  %v9961_v38 = vld [vmem:[%s14050_s17 + $0xc50] sm:$0xf]  ;;  %v3318_v41 = vpop.f32.mrf.mxu3  ;;  %v8763_v11 = vld [vmem:[%s14050_s17 + $0x318] sm:$0xf0] }
 0x1d5   : > { %3557 = vmatpush.bf16.msra.mxu2 %v9202_v39  ;;  %v12679_v39 = vld [vmem:[%s14050_s17 + $0xc74] sm:$0xf0]  ;;  %v12314_v41 = vld [vmem:[%s14050_s17 + $0x114] sm:$0xf] }
 0x1d6   : > { %3570 = vmatpush.bf16.msra.mxu3 %v9522_v43  ;;  %v8683_v43 = vld [vmem:[%s14050_s17 + $0x278] sm:$0xf0] }
 0x1d7   : > { %3532 = vmatpush.bf16.msra.mxu0 %v8522_v50  ;;  %v9362_v50 = vor.u32 %v12529_v36, %v9361_v33 }
 0x1d8   : > { %3545 = vmatpush.bf16.msra.mxu1 %v8842_v52  ;;  %v9962_v52 = vor.u32 %v12679_v39, %v9961_v38  ;;  %v9801_v39 = vld [vmem:[%s14050_s17 + $0xb10] sm:$0xf] }
 0x1d9   : > { %3558 = vmatpush.bf16.msra.mxu2 %v9162_v53  ;;  %v8686_v53 = vor.u32 %v12354_v40, %v8683_v43  ;;  %v12639_v40 = vld [vmem:[%s14050_s17 + $0xb34] sm:$0xf0]  ;;  %v8523_v43 = vld [vmem:[%s14050_s17 + $0x138] sm:$0xf0] }
 0x1da   : > { %3571 = vmatpush.bf16.msra.mxu3 %v9482_v57  ;;  %v12344_v57 = vld [vmem:[%s14050_s17 + $0x204] sm:$0xf]  ;;  %v8526_v48 = vor.u32 %v12314_v41, %v8523_v43  ;;  %v9963_v41 = vld [vmem:[%s14050_s17 + $0xc78] sm:$0xf0] }
 0x1db   : > { %3533 = vmatpush.bf16.msra.mxu0 %v8482_v4  ;;  %v8646_v2 = vor.u32 %v12344_v57, %v8643_v58  ;;  %v9881_v4 = vld [vmem:[%s14050_s17 + $0xbb0] sm:$0xf]  ;;  %v8803_v57 = vld [vmem:[%s14050_s17 + $0x368] sm:$0xf0]  ;;  %v12464_v58 = vld [vmem:[%s14050_s17 + $0x5c4] sm:$0xf] }
 0x1dc   : > { %3546 = vmatpush.bf16.msra.mxu1 %v8802_v7  ;;  %v12334_v7 = vld [vmem:[%s14050_s17 + $0x1b4] sm:$0xf]  ;;  %v9882_v18 = vor.u32 %v12659_v6, %v9881_v4  ;;  %v9721_v4 = vld [vmem:[%s14050_s17 + $0xa70] sm:$0xf]  ;;  %v12619_v6 = vld [vmem:[%s14050_s17 + $0xa94] sm:$0xf0] }
 0x1dd   : > { %3559 = vmatpush.bf16.msra.mxu2 %v9122_v8  ;;  %v9286_v8 = vor.u32 %v12504_v62, %v9283_v63  ;;  %v8606_v19 = vor.u32 %v12334_v7, %v8603_v9  ;;  %v12294_v7 = vld [vmem:[%s14050_s17 + $0x74] sm:$0xf]  ;;  %v8443_v9 = vld [vmem:[%s14050_s17 + $0x98] sm:$0xf0]  ;;  %v12710_v43 = vld [vmem:[%s14058_s30 + $0xec] sm:$0xf0] }
 0x1de   : > { %3572 = vmatpush.bf16.msra.mxu3 %v9442_v14  ;;  %v12494_v14 = vld [vmem:[%s14050_s17 + $0x6b4] sm:$0xf] }
 0x1df   : > { %3534 = vmatpush.bf16.msra.mxu0 %v8442_v22  ;;  %v12649_v22 = vld [vmem:[%s14050_s17 + $0xb84] sm:$0xf0]  ;;  %v9246_v24 = vor.u32 %v12494_v14, %v9243_v15  ;;  %v12454_v14 = vld [vmem:[%s14050_s17 + $0x574] sm:$0xf]  ;;  %v9083_v15 = vld [vmem:[%s14050_s17 + $0x598] sm:$0xf0] }
 0x1e0   : > { %3547 = vmatpush.bf16.msra.mxu1 %v8762_v25  ;;  %v8563_v25 = vld [vmem:[%s14050_s17 + $0x188] sm:$0xf0]  ;;  %v9842_v1 = vor.u32 %v12649_v22, %v9841_v21  ;;  %v8446_v21 = vor.u32 %v12294_v7, %v8443_v9  ;;  %v8766_v22 = vor.u32 %v12374_v10, %v8763_v11  ;;  %v10049_v9 = vld [vmem:[%s14058_s30 + $0xa0] sm:$0xf]  ;;  %v12702_v10 = vld [vmem:[%s14058_s30 + $0xac] sm:$0xf0] }
 0x1e1   : > { %3560 = vmatpush.bf16.msra.mxu2 %v9082_v26  ;;  %v12404_v26 = vld [vmem:[%s14050_s17 + $0x3e4] sm:$0xf]  ;;  %v8566_v37 = vor.u32 %v12324_v23, %v8563_v25  ;;  %v10177_v11 = vld [vmem:[%s14058_s30 + $0x1a0] sm:$0xf] }
 0x1e2   : > { %3573 = vmatpush.bf16.msra.mxu3 %v9402_v32  ;;  %v8886_v38 = vor.u32 %v12404_v26, %v8883_v28  ;;  %v12284_v23 = vld [vmem:[%s14050_s17 + $0x24] sm:$0xf]  ;;  %v9086_v26 = vor.u32 %v12454_v14, %v9083_v15  ;;  %v8723_v28 = vld [vmem:[%s14050_s17 + $0x2c8] sm:$0xf0] }
 0x1e3   : > { %3535 = vmatpush.bf16.msra.mxu0 %v8402_v42  ;;  %v3329_v32 = vpop.f32.mrf.mxu0  ;;  %v9206_v42 = vor.u32 %v12484_v29, %v9203_v30  ;;  %v12364_v25 = vld [vmem:[%s14050_s17 + $0x2a4] sm:$0xf]  ;;  %v9043_v30 = vld [vmem:[%s14050_s17 + $0x548] sm:$0xf0] }
 0x1e4   : > { %3548 = vmatpush.bf16.msra.mxu1 %v8722_v46  ;;  %v14897_v33 = vadd.f32 %v3329_v32, %v14845_v12  ;;  %v14899_v36 = vpop.f32.mrf.mxu1  ;;  %v8843_v12 = vld [vmem:[%s14050_s17 + $0x3b8] sm:$0xf0]  ;;  %v12444_v29 = vld [vmem:[%s14050_s17 + $0x524] sm:$0xf] }
 0x1e5   : > { %3561 = vmatpush.bf16.msra.mxu2 %v9042_v47  ;;  %v9163_v46 = vld [vmem:[%s14050_s17 + $0x638] sm:$0xf0]  ;;  %v9802_v47 = vor.u32 %v12639_v40, %v9801_v39  ;;  %v8846_v49 = vor.u32 %v12394_v44, %v8843_v12  ;;  %v8726_v12 = vor.u32 %v12364_v25, %v8723_v28  ;;  %v12734_v14 = vld [vmem:[%s14058_s30 + $0x1ac] sm:$0xf0]  ;;  %v10161_v25 = vld [vmem:[%s14058_s30 + $0x180] sm:$0xf] }
 0x1e6   : > { %3574 = vmatpush.bf16.msra.mxu3 %v9362_v50  ;;  %3536 = vmatmul.bf16.vlgmr.msra.gmra.mxu0 %v14178_v16  ;;  %v9761_v50 = vld [vmem:[%s14050_s17 + $0xac0] sm:$0xf]  ;;  %13404 = vtanh.f32 %v14897_v33 }
 0x1e7   : > { %3580 = vmatpush.bf16.msrb.mxu0 %v9962_v52  ;;  %3549 = vmatmul.bf16.vlgmr.msra.gmra.mxu1 %v14180_v17  ;;  %v12629_v52 = vld [vmem:[%s14050_s17 + $0xae4] sm:$0xf0] }
 0x1e8   : > { %3593 = vmatpush.bf16.msrb.mxu1 %v8686_v53  ;;  %3562 = vmatmul.bf16.vlgmr.msra.gmra.mxu2 %v14189_v31  ;;  %v12304_v53 = vld [vmem:[%s14050_s17 + $0xc4] sm:$0xf]  ;;  %v9762_v63 = vor.u32 %v12629_v52, %v9761_v50 }
 0x1e9   : > { %3606 = vmatpush.bf16.msrb.mxu2 %v9006_v54  ;;  %3575 = vmatmul.bf16.vlgmr.msra.gmra.mxu3 %v14194_v34  ;;  %v9166_v54 = vor.u32 %v12474_v45, %v9163_v46  ;;  %v10209_v45 = vld [vmem:[%s14058_s30 + $0x1e0] sm:$0xf]  ;;  %v12742_v46 = vld [vmem:[%s14058_s30 + $0x1ec] sm:$0xf0] }
 0x1ea   : > { %3619 = vmatpush.bf16.msrb.mxu3 %v9326_v61  ;;  %v12584_v52 = vld [vmem:[%s14050_s17 + $0x984] sm:$0xf] }
 0x1eb   : > { %3581 = vmatpush.bf16.msrb.mxu0 %v9922_v0  ;;  %v14915_v61 = vpop.f32.mrf.mxu2  ;;  %v3331_v60 = vpop.f32.mrf.mxu0 }
 0x1ec   : > { %3594 = vmatpush.bf16.msrb.mxu1 %v8646_v2  ;;  %v14919_v62 = vpop.f32.mrf.mxu3  ;;  %v3344_v0 = vpop.f32.mrf.mxu1  ;;  %v8486_v2 = vor.u32 %v12304_v53, %v8483_v55  ;;  %v9603_v53 = vld [vmem:[%s14050_s17 + $0x9a8] sm:$0xf0]  ;;  %v10210_v55 = vor.u32 %v12742_v46, %v10209_v45  ;;  %v12738_v60 = vld [vmem:[%s14058_s30 + $0x1cc] sm:$0xf0] }
 0x1ed   : > { %3607 = vmatpush.bf16.msrb.mxu2 %v8966_v3  ;;  %v8806_v3 = vor.u32 %v12384_v56, %v8803_v57  ;;  %v9923_v56 = vld [vmem:[%s14050_s17 + $0xc28] sm:$0xf0]  ;;  %v10065_v57 = vld [vmem:[%s14058_s30 + $0xc0] sm:$0xf] }
 0x1ee   : > { %3620 = vmatpush.bf16.msrb.mxu3 %v9286_v8  ;;  %v9126_v8 = vor.u32 %v12464_v58, %v9123_v59  ;;  %v12706_v58 = vld [vmem:[%s14058_s30 + $0xcc] sm:$0xf0]  ;;  %v10193_v59 = vld [vmem:[%s14058_s30 + $0x1c0] sm:$0xf] }
 0x1ef   : > { %3582 = vmatpush.bf16.msrb.mxu0 %v9882_v18  ;;  %v9722_v18 = vor.u32 %v12619_v6, %v9721_v4  ;;  %v9563_v4 = vld [vmem:[%s14050_s17 + $0x958] sm:$0xf0]  ;;  %v12654_v6 = vld [vmem:[%s14050_s17 + $0xbb4] sm:$0xf]  ;;  %v10194_v7 = vor.u32 %v12738_v60, %v10193_v59 }
 0x1f0   : > { %3595 = vmatpush.bf16.msrb.mxu1 %v8606_v19  ;;  %v9681_v19 = vld [vmem:[%s14050_s17 + $0xa20] sm:$0xf] }
 0x1f1   : > { %3608 = vmatpush.bf16.msrb.mxu2 %v8926_v20  ;;  %v12609_v20 = vld [vmem:[%s14050_s17 + $0xa44] sm:$0xf0] }
 0x1f2   : > { %3621 = vmatpush.bf16.msrb.mxu3 %v9246_v24  ;;  %v8403_v24 = vld [vmem:[%s14050_s17 + $0x48] sm:$0xf0]  ;;  %v9682_v40 = vor.u32 %v12609_v20, %v9681_v19  ;;  %v10050_v19 = vor.u32 %v12702_v10, %v10049_v9  ;;  %v12564_v20 = vld [vmem:[%s14050_s17 + $0x8e4] sm:$0xf]  ;;  %v9985_v9 = vld [vmem:[%s14058_s30 + $0x20] sm:$0xf] }
 0x1f3   : > { %3583 = vmatpush.bf16.msrb.mxu0 %v9842_v1  ;;  %v3357_v32 = vpop.f32.mrf.mxu2  ;;  %v12594_v1 = vld [vmem:[%s14050_s17 + $0x9d4] sm:$0xf]  ;;  %v8406_v44 = vor.u32 %v12284_v23, %v8403_v24  ;;  %v9843_v23 = vld [vmem:[%s14050_s17 + $0xb88] sm:$0xf0]  ;;  %v12698_v24 = vld [vmem:[%s14058_s30 + $0x8c] sm:$0xf0] }
 0x1f4   : > { %3596 = vmatpush.bf16.msrb.mxu1 %v8566_v37  ;;  %v9643_v37 = vld [vmem:[%s14050_s17 + $0x9f8] sm:$0xf0]  ;;  %v3370_v39 = vpop.f32.mrf.mxu3  ;;  %v12686_v10 = vld [vmem:[%s14058_s30 + $0x2c] sm:$0xf0] }
 0x1f5   : > { %3609 = vmatpush.bf16.msrb.mxu2 %v8886_v38  ;;  %v12674_v38 = vld [vmem:[%s14050_s17 + $0xc54] sm:$0xf] }
 0x1f6   : > { %3622 = vmatpush.bf16.msrb.mxu3 %v9206_v42  ;;  %v10081_v42 = vld [vmem:[%s14058_s30 + $0xe0] sm:$0xf] }
 0x1f7   : > { %3584 = vmatpush.bf16.msrb.mxu0 %v9802_v47  ;;  %v9046_v47 = vor.u32 %v12444_v29, %v9043_v30  ;;  %v10082_v50 = vor.u32 %v12710_v43, %v10081_v42  ;;  %v12694_v42 = vld [vmem:[%s14058_s30 + $0x6c] sm:$0xf0]  ;;  %v10145_v43 = vld [vmem:[%s14058_s30 + $0x160] sm:$0xf] }
 0x1f8   : > { %3597 = vmatpush.bf16.msrb.mxu1 %v8526_v48  ;;  %v9646_v48 = vor.u32 %v12594_v1, %v9643_v37  ;;  %v12554_v1 = vld [vmem:[%s14050_s17 + $0x894] sm:$0xf]  ;;  %v9483_v37 = vld [vmem:[%s14050_s17 + $0x8b8] sm:$0xf0] }
 0x1f9   : > { %3610 = vmatpush.bf16.msrb.mxu2 %v8846_v49  ;;  %v9966_v49 = vor.u32 %v12674_v38, %v9963_v41  ;;  %v12634_v38 = vld [vmem:[%s14050_s17 + $0xb14] sm:$0xf] }
 0x1fa   : > { %3623 = vmatpush.bf16.msrb.mxu3 %v9166_v54  ;;  %v12664_v54 = vld [vmem:[%s14050_s17 + $0xc04] sm:$0xf]  ;;  %v10017_v41 = vld [vmem:[%s14058_s30 + $0x60] sm:$0xf] }
 0x1fb   : > { %3585 = vmatpush.bf16.msrb.mxu0 %v9762_v63  ;;  %v9606_v63 = vor.u32 %v12584_v52, %v9603_v53  ;;  %v9926_v0 = vor.u32 %v12664_v54, %v9923_v56  ;;  %v10018_v46 = vor.u32 %v12694_v42, %v10017_v41  ;;  %v9763_v52 = vld [vmem:[%s14050_s17 + $0xae8] sm:$0xf0]  ;;  %v10001_v53 = vld [vmem:[%s14058_s30 + $0x40] sm:$0xf]  ;;  %v12690_v54 = vld [vmem:[%s14058_s30 + $0x4c] sm:$0xf0] }
 0x1fc   : > { %3598 = vmatpush.bf16.msrb.mxu1 %v8486_v2  ;;  %v10066_v2 = vor.u32 %v12706_v58, %v10065_v57  ;;  %v10129_v56 = vld [vmem:[%s14058_s30 + $0x140] sm:$0xf]  ;;  %v12722_v57 = vld [vmem:[%s14058_s30 + $0x14c] sm:$0xf0] }
 0x1fd   : > { %3611 = vmatpush.bf16.msrb.mxu2 %v8806_v3  ;;  %v12574_v3 = vld [vmem:[%s14050_s17 + $0x934] sm:$0xf] }
 0x1fe   : > { %3624 = vmatpush.bf16.msrb.mxu3 %v9126_v8  ;;  %v9883_v8 = vld [vmem:[%s14050_s17 + $0xbd8] sm:$0xf0]  ;;  %v9566_v15 = vor.u32 %v12574_v3, %v9563_v4  ;;  %v12534_v3 = vld [vmem:[%s14050_s17 + $0x7f4] sm:$0xf] }
 0x1ff   : > { %3586 = vmatpush.bf16.msrb.mxu0 %v9722_v18  ;;  %v9886_v18 = vor.u32 %v12654_v6, %v9883_v8  ;;  %v9403_v4 = vld [vmem:[%s14050_s17 + $0x818] sm:$0xf0]  ;;  %v12614_v6 = vld [vmem:[%s14050_s17 + $0xa74] sm:$0xf] }
 0x200   : > { %3599 = vmatpush.bf16.msrb.mxu1 %v8446_v21  ;;  %v9523_v21 = vld [vmem:[%s14050_s17 + $0x908] sm:$0xf0]  ;;  %v9723_v8 = vld [vmem:[%s14050_s17 + $0xa98] sm:$0xf0] }
 0x201   : > { %3612 = vmatpush.bf16.msrb.mxu2 %v8766_v22  ;;  %v12644_v22 = vld [vmem:[%s14050_s17 + $0xb64] sm:$0xf]  ;;  %v9526_v28 = vor.u32 %v12564_v20, %v9523_v21  ;;  %v9726_v20 = vor.u32 %v12614_v6, %v9723_v8  ;;  %v9986_v21 = vor.u32 %v12686_v10, %v9985_v9  ;;  %v10433_v9 = vld [vmem:[%s14058_s30 + $0x3a0] sm:$0xf] }
 0x202   : > { %3625 = vmatpush.bf16.msrb.mxu3 %v9086_v26  ;;  %v12730_v26 = vld [vmem:[%s14058_s30 + $0x18c] sm:$0xf0]  ;;  %v9846_v30 = vor.u32 %v12644_v22, %v9843_v23  ;;  %v9969_v23 = vld [vmem:[%s14058_s30] sm:$0xf] }
 0x203   : > { %3587 = vmatpush.bf16.msrb.mxu0 %v9682_v40  ;;  %v10162_v39 = vor.u32 %v12730_v26, %v10161_v25  ;;  %v9803_v40 = vld [vmem:[%s14050_s17 + $0xb38] sm:$0xf0]  ;;  %v12604_v22 = vld [vmem:[%s14050_s17 + $0xa24] sm:$0xf]  ;;  %v10097_v25 = vld [vmem:[%s14058_s30 + $0x100] sm:$0xf] }
 0x204   : > { %3600 = vmatpush.bf16.msrb.mxu1 %v8406_v44  ;;  %v14975_v29 = vpop.f32.mrf.mxu1  ;;  %v12726_v44 = vld [vmem:[%s14058_s30 + $0x16c] sm:$0xf0]  ;;  %v9806_v45 = vor.u32 %v12634_v38, %v9803_v40 }
 0x205   : > { %3613 = vmatpush.bf16.msrb.mxu2 %v8726_v12  ;;  %v9486_v12 = vor.u32 %v12554_v1, %v9483_v37  ;;  %v12714_v26 = vld [vmem:[%s14058_s30 + $0x10c] sm:$0xf0]  ;;  %v10465_v1 = vld [vmem:[%s14058_s30 + $0x3e0] sm:$0xf] }
 0x206   : > { %3626 = vmatpush.bf16.msrb.mxu3 %v9046_v47  ;;  %3588 = vmatmul.bf16.vlgmr.msrb.gmra.mxu0 %v14236_v35  ;;  %v12544_v47 = vld [vmem:[%s14050_s17 + $0x844] sm:$0xf] }
 0x207   : > { %3632 = vmatpush.bf16.msra.mxu0 %v9646_v48  ;;  %3601 = vmatmul.bf16.vlgmr.msrb.gmra.mxu1 %v14178_v16  ;;  %v10178_v16 = vor.u32 %v12734_v14, %v10177_v11  ;;  %v9443_v48 = vld [vmem:[%s14050_s17 + $0x868] sm:$0xf0]  ;;  %v10113_v11 = vld [vmem:[%s14058_s30 + $0x120] sm:$0xf]  ;;  %v12718_v14 = vld [vmem:[%s14058_s30 + $0x12c] sm:$0xf0] }
 0x208   : > { %3645 = vmatpush.bf16.msra.mxu1 %v9966_v49  ;;  %3614 = vmatmul.bf16.vlgmr.msrb.gmra.mxu2 %v14180_v17  ;;  %v10033_v17 = vld [vmem:[%s14058_s30 + $0x80] sm:$0xf]  ;;  %v12624_v49 = vld [vmem:[%s14050_s17 + $0xac4] sm:$0xf]  ;;  %v9446_v59 = vor.u32 %v12544_v47, %v9443_v48 }
 0x209   : > { %5602 = vmatpush.bf16.msra.mxu2 %v10082_v50  ;;  %3627 = vmatmul.bf16.vlgmr.msrb.gmra.mxu3 %v14189_v31  ;;  %v14973_v31 = vpop.f32.mrf.mxu0  ;;  %v10034_v32 = vor.u32 %v12698_v24, %v10033_v17  ;;  %v10146_v50 = vor.u32 %v12726_v44, %v10145_v43  ;;  %v10114_v17 = vor.u32 %v12718_v14, %v10113_v11  ;;  %v12682_v24 = vld [vmem:[%s14058_s30 + $0xc] sm:$0xf0]  ;;  %v10721_v43 = vld [vmem:[%s14058_s30 + $0x5e0] sm:$0xf] }
 0x20a   : > { %5615 = vmatpush.bf16.msra.mxu3 %v10210_v55  ;;  %v12806_v38 = vld [vmem:[%s14058_s30 + $0x3ec] sm:$0xf0]  ;;  %v9970_v42 = vor.u32 %v12682_v24, %v9969_v23 }
 0x20b   : > { %3633 = vmatpush.bf16.msra.mxu0 %v9606_v63  ;;  %v14991_v55 = vpop.f32.mrf.mxu2  ;;  %v15024_v44 = vld [vmem:[%s14056_s23] sm:$0xff]  ;;  %v10466_v47 = vor.u32 %v12806_v38, %v10465_v1 }
 0x20c   : > { %3646 = vmatpush.bf16.msra.mxu1 %v9926_v0  ;;  %v3396_v60 = vpop.f32.mrf.mxu1  ;;  %v14995_v63 = vpop.f32.mrf.mxu3  ;;  %v9766_v0 = vor.u32 %v12624_v49, %v9763_v52  ;;  %v10321_v49 = vld [vmem:[%s14058_s30 + $0x2c0] sm:$0xf]  ;;  %v12766_v8 = vld [vmem:[%s14058_s30 + $0x2ac] sm:$0xf0] }
 0x20d   : > { %5603 = vmatpush.bf16.msra.mxu2 %v10066_v2  ;;  %v10002_v2 = vor.u32 %v12690_v54, %v10001_v53  ;;  %v10449_v52 = vld [vmem:[%s14058_s30 + $0x3c0] sm:$0xf]  ;;  %v13397_v53 = vpop.eup %13396  ;;  %v10722_v54 = vor.u32 %v12870_v27, %v10721_v43  ;;  %v12762_v23 = vld [vmem:[%s14058_s30 + $0x28c] sm:$0xf0] }
 0x20e   : > { %5616 = vmatpush.bf16.msra.mxu3 %v10194_v7  ;;  %v10130_v7 = vor.u32 %v12722_v57, %v10129_v56  ;;  %v12802_v56 = vld [vmem:[%s14058_s30 + $0x3cc] sm:$0xf0]  ;;  %v10577_v57 = vld [vmem:[%s14058_s30 + $0x4c0] sm:$0xf] }
 0x20f   : > { %3634 = vmatpush.bf16.msra.mxu0 %v9566_v15  ;;  %v9406_v15 = vor.u32 %v12534_v3, %v9403_v4  ;;  %v10705_v60 = vld [vmem:[%s14058_s30 + $0x5c0] sm:$0xf]  ;;  %v15035_v3 = vpack.c.bf16 %v13397_v53, %v13397_v53  ;;  %v10450_v4 = vor.u32 %v12802_v56, %v10449_v52  ;;  %v12790_v27 = vld [vmem:[%s14058_s30 + $0x36c] sm:$0xf0] }
 0x210   : > { %3647 = vmatpush.bf16.msra.mxu1 %v9886_v18  ;;  %v12524_v18 = vld [vmem:[%s14050_s17 + $0x7a4] sm:$0xf]  ;;  %v10385_v53 = vld [vmem:[%s14058_s30 + $0x340] sm:$0xf] }
 0x211   : > { %5604 = vmatpush.bf16.msra.mxu2 %v10050_v19  ;;  %v3383_v58 = vpop.f32.mrf.mxu0  ;;  %v9363_v19 = vld [vmem:[%s14050_s17 + $0x7c8] sm:$0xf0]  ;;  %v12754_v52 = vld [vmem:[%s14058_s30 + $0x24c] sm:$0xf0] }
 0x212   : > { %5617 = vmatpush.bf16.msra.mxu3 %v10178_v16  ;;  %v9683_v16 = vld [vmem:[%s14050_s17 + $0xa48] sm:$0xf0]  ;;  %v9366_v37 = vor.u32 %v12524_v18, %v9363_v19  ;;  %v12834_v58 = vld [vmem:[%s14058_s30 + $0x4cc] sm:$0xf0]  ;;  %v10561_v18 = vld [vmem:[%s14058_s30 + $0x4a0] sm:$0xf] }
 0x213   : > { %3635 = vmatpush.bf16.msra.mxu0 %v9526_v28  ;;  %v3409_v28 = vpop.f32.mrf.mxu2  ;;  %v9686_v41 = vor.u32 %v12604_v22, %v9683_v16  ;;  %v10578_v6 = vor.u32 %v12834_v58, %v10577_v57  ;;  %v12830_v19 = vld [vmem:[%s14058_s30 + $0x4ac] sm:$0xf0]  ;;  %v10289_v16 = vld [vmem:[%s14058_s30 + $0x280] sm:$0xf] }
 0x214   : > { %3648 = vmatpush.bf16.msra.mxu1 %v9846_v30  ;;  %v10337_v30 = vld [vmem:[%s14058_s30 + $0x2e0] sm:$0xf]  ;;  %v3422_v40 = vpop.f32.mrf.mxu3  ;;  %v10562_v22 = vor.u32 %v12830_v19, %v10561_v18  ;;  %v12826_v28 = vld [vmem:[%s14058_s30 + $0x48c] sm:$0xf0]  ;;  %v10290_v1 = vor.u32 %v12762_v23, %v10289_v16 }
 0x215   : > { %5605 = vmatpush.bf16.msra.mxu2 %v10034_v32  ;;  %v12774_v32 = vld [vmem:[%s14058_s30 + $0x2ec] sm:$0xf0]  ;;  %v10401_v40 = vld [vmem:[%s14058_s30 + $0x360] sm:$0xf] }
 0x216   : > { %5618 = vmatpush.bf16.msra.mxu3 %v10162_v39  ;;  %v10593_v39 = vld [vmem:[%s14058_s30 + $0x4e0] sm:$0xf]  ;;  %v12786_v58 = vld [vmem:[%s14058_s30 + $0x34c] sm:$0xf0] }
 0x217   : > { %3636 = vmatpush.bf16.msra.mxu0 %v9486_v12  ;;  %v975_v12 = vperm.slane %v15024_v44, 5  ;;  %v10594_v48 = vor.u32 %v12838_v51, %v10593_v39  ;;  %v10273_v39 = vld [vmem:[%s14058_s30 + $0x260] sm:$0xf]  ;;  %v12758_v51 = vld [vmem:[%s14058_s30 + $0x26c] sm:$0xf0] }
 0x218   : > { %3649 = vmatpush.bf16.msra.mxu1 %v9806_v45  ;;  %v10098_v45 = vor.u32 %v12714_v26, %v10097_v25  ;;  %v12794_v25 = vld [vmem:[%s14058_s30 + $0x38c] sm:$0xf0]  ;;  %v10545_v26 = vld [vmem:[%s14058_s30 + $0x480] sm:$0xf] }
 0x219   : > { %5606 = vmatpush.bf16.msra.mxu2 %v10018_v46  ;;  %v10338_v46 = vor.u32 %v12774_v32, %v10337_v30  ;;  %v3343_v11 = vadd.f32 %v14899_v36, %v975_v12  ;;  %v10673_v30 = vld [vmem:[%s14058_s30 + $0x580] sm:$0xf]  ;;  %v12858_v32 = vld [vmem:[%s14058_s30 + $0x58c] sm:$0xf0]  ;;  %v10546_v38 = vor.u32 %v12826_v28, %v10545_v26 }
 0x21a   : > { %5619 = vmatpush.bf16.msra.mxu3 %v10146_v50  ;;  %v12770_v50 = vld [vmem:[%s14058_s30 + $0x2cc] sm:$0xf0]  ;;  %v10674_v43 = vor.u32 %v12858_v32, %v10673_v30  ;;  %v10529_v12 = vld [vmem:[%s14058_s30 + $0x460] sm:$0xf] }
 0x21b   : > { %3637 = vmatpush.bf16.msra.mxu0 %v9446_v59  ;;  %v13399_v59 = vpop.eup %13398  ;;  %v10481_v26 = vld [vmem:[%s14058_s30 + $0x400] sm:$0xf]  ;;  %v12810_v28 = vld [vmem:[%s14058_s30 + $0x40c] sm:$0xf0] }
 0x21c   : > { %3650 = vmatpush.bf16.msra.mxu1 %v9766_v0  ;;  %v12866_v0 = vld [vmem:[%s14058_s30 + $0x5cc] sm:$0xf0]  ;;  %v15040_v10 = vpack.c.bf16 %v13399_v59, %v13399_v59  ;;  %v10513_v59 = vld [vmem:[%s14058_s30 + $0x440] sm:$0xf] }
 0x21d   : > { %5607 = vmatpush.bf16.msra.mxu2 %v10002_v2  ;;  %v10322_v2 = vor.u32 %v12770_v50, %v10321_v49  ;;  %v10706_v14 = vor.u32 %v12866_v0, %v10705_v60  ;;  %v10402_v49 = vor.u32 %v12790_v27, %v10401_v40  ;;  %v12818_v60 = vld [vmem:[%s14058_s30 + $0x44c] sm:$0xf0]  ;;  %v10609_v30 = vld [vmem:[%s14058_s30 + $0x500] sm:$0xf]  ;;  %v13401_v40 = vpop.eup %13400 }
 0x21e   : > { %5620 = vmatpush.bf16.msra.mxu3 %v10130_v7  ;;  %v10305_v7 = vld [vmem:[%s14058_s30 + $0x2a0] sm:$0xf]  ;;  %v12842_v32 = vld [vmem:[%s14058_s30 + $0x50c] sm:$0xf0]  ;;  %v13403_v27 = vpop.eup %13402 }
 0x21f   : > { %3638 = vmatpush.bf16.msra.mxu0 %v9406_v15  ;;  %v12798_v15 = vld [vmem:[%s14058_s30 + $0x3ac] sm:$0xf0] }
 0x220   : > { %3651 = vmatpush.bf16.msra.mxu1 %v9726_v20  ;;  %v10689_v20 = vld [vmem:[%s14058_s30 + $0x5a0] sm:$0xf]  ;;  %v10434_v36 = vor.u32 %v12798_v15, %v10433_v9 }
 0x221   : > { %5608 = vmatpush.bf16.msra.mxu2 %v9986_v21  ;;  %v12862_v21 = vld [vmem:[%s14058_s30 + $0x5ac] sm:$0xf0]  ;;  %v10241_v9 = vld [vmem:[%s14058_s30 + $0x220] sm:$0xf] }
 0x222   : > { %5621 = vmatpush.bf16.msra.mxu3 %v10114_v17  ;;  %v3356_v17 = vadd.f32 %v14915_v61, %v3343_v11  ;;  %v10690_v24 = vor.u32 %v12862_v21, %v10689_v20  ;;  %v12750_v11 = vld [vmem:[%s14058_s30 + $0x22c] sm:$0xf0]  ;;  %v10497_v21 = vld [vmem:[%s14058_s30 + $0x420] sm:$0xf] }
 0x223   : > { %3639 = vmatpush.bf16.msra.mxu0 %v9366_v37  ;;  %v15061_v37 = vpop.f32.mrf.mxu0  ;;  %v12782_v20 = vld [vmem:[%s14058_s30 + $0x32c] sm:$0xf0]  ;;  %v10242_v16 = vor.u32 %v12750_v11, %v10241_v9  ;;  %v977_v11 = vperm.slane %v15024_v44, 7 }
 0x224   : > { %3652 = vmatpush.bf16.msra.mxu1 %v9686_v41  ;;  %v15066_v41 = vpop.f32.mrf.mxu1 }
 0x225   : > { %5609 = vmatpush.bf16.msra.mxu2 %v9970_v42  ;;  %v3369_v42 = vadd.f32 %v14919_v62, %v3356_v17  ;;  %v10257_v62 = vld [vmem:[%s14058_s30 + $0x240] sm:$0xf] }
 0x226   : > { %5622 = vmatpush.bf16.msra.mxu3 %v10098_v45  ;;  %3640 = vmatmul.bf16.vlgmr.msra.gmra.mxu0 %v14194_v34  ;;  %v10306_v34 = vor.u32 %v12766_v8, %v10305_v7  ;;  %v12822_v45 = vld [vmem:[%s14058_s30 + $0x46c] sm:$0xf0]  ;;  %v10514_v8 = vor.u32 %v12818_v60, %v10513_v59  ;;  %v10353_v17 = vld [vmem:[%s14058_s30 + $0x300] sm:$0xf]  ;;  %v15120_v59 = vpack.c.bf16 %v13403_v27, %v13403_v27 }
 0x227   : > { %5628 = vmatpush.bf16.msrb.mxu0 %v10338_v46  ;;  %3653 = vmatmul.bf16.vlgmr.msra.gmra.mxu1 %v14236_v35  ;;  %v10417_v35 = vld [vmem:[%s14058_s30 + $0x380] sm:$0xf]  ;;  %v10530_v50 = vor.u32 %v12822_v45, %v10529_v12  ;;  %v3382_v56 = vadd.f32 %v14973_v31, %v3369_v42  ;;  %v10386_v31 = vor.u32 %v12786_v58, %v10385_v53  ;;  %v976_v12 = vperm.slane %v15024_v44, 6 }
 0x228   : > { %5641 = vmatpush.bf16.msrb.mxu1 %v10466_v47  ;;  %5610 = vmatmul.bf16.vlgmr.msra.gmra.mxu2 %v15035_v3  ;;  %v10418_v61 = vor.u32 %v12794_v25, %v10417_v35  ;;  %v10657_v46 = vld [vmem:[%s14058_s30 + $0x560] sm:$0xf]  ;;  %v12854_v47 = vld [vmem:[%s14058_s30 + $0x56c] sm:$0xf0]  ;;  %v10354_v42 = vor.u32 %v12778_v13, %v10353_v17  ;;  %v10610_v45 = vor.u32 %v12842_v32, %v10609_v30 }
 0x229   : > { %5654 = vmatpush.bf16.msrb.mxu2 %v10594_v48  ;;  %5623 = vmatmul.bf16.vlgmr.msra.gmra.mxu3 %v15040_v10  ;;  %v10274_v48 = vor.u32 %v12758_v51, %v10273_v39  ;;  %v10658_v57 = vor.u32 %v12854_v47, %v10657_v46  ;;  %v3395_v18 = vadd.f32 %v14975_v29, %v3382_v56  ;;  %v10225_v29 = vld [vmem:[%s14058_s30 + $0x200] sm:$0xf]  ;;  %v12934_v51 = vld [vmem:[%s14058_s30 + $0x7ec] sm:$0xf0] }
 0x22a   : > { %5667 = vmatpush.bf16.msrb.mxu3 %v10722_v54  ;;  %v10977_v39 = vld [vmem:[%s14058_s30 + $0x7e0] sm:$0xf]  ;;  %v15118_v58 = vpack.c.bf16 %v13401_v40, %v13401_v40  ;;  %v12886_v30 = vld [vmem:[%s14058_s30 + $0x66c] sm:$0xf0] }
 0x22b   : > { %5629 = vmatpush.bf16.msrb.mxu0 %v10322_v2  ;;  %v15077_v54 = vpop.f32.mrf.mxu2  ;;  %v10641_v2 = vld [vmem:[%s14058_s30 + $0x540] sm:$0xf]  ;;  %v3435_v7 = vpop.f32.mrf.mxu0  ;;  %13406 = vtanh.f32 %v3395_v18  ;;  %v12926_v18 = vld [vmem:[%s14058_s30 + $0x7ac] sm:$0xf0] }
 0x22c   : > { %5642 = vmatpush.bf16.msrb.mxu1 %v10450_v4  ;;  %v15083_v0 = vpop.f32.mrf.mxu3  ;;  %v12850_v4 = vld [vmem:[%s14058_s30 + $0x54c] sm:$0xf0]  ;;  %v3448_v15 = vpop.f32.mrf.mxu1  ;;  %v11105_v47 = vld [vmem:[%s14058_s30 + $0x8e0] sm:$0xf] }
 0x22d   : > { %5655 = vmatpush.bf16.msrb.mxu2 %v10578_v6  ;;  %v10258_v6 = vor.u32 %v12754_v52, %v10257_v62  ;;  %v10642_v19 = vor.u32 %v12850_v4, %v10641_v2  ;;  %v10833_v62 = vld [vmem:[%s14058_s30 + $0x6c0] sm:$0xf]  ;;  %v12898_v52 = vld [vmem:[%s14058_s30 + $0x6cc] sm:$0xf0]  ;;  %v3408_v4 = vadd.f32 %v14991_v55, %v976_v12 }
 0x22e   : > { %5668 = vmatpush.bf16.msrb.mxu3 %v10706_v14  ;;  %v10369_v14 = vld [vmem:[%s14058_s30 + $0x320] sm:$0xf]  ;;  %v12894_v15 = vld [vmem:[%s14058_s30 + $0x6ac] sm:$0xf0] }
 0x22f   : > { %5630 = vmatpush.bf16.msrb.mxu0 %v10306_v34  ;;  %v12814_v34 = vld [vmem:[%s14058_s30 + $0x42c] sm:$0xf0]  ;;  %v10370_v23 = vor.u32 %v12782_v20, %v10369_v14  ;;  %v10961_v56 = vld [vmem:[%s14058_s30 + $0x7c0] sm:$0xf]  ;;  %v3421_v20 = vadd.f32 %v14995_v63, %v3408_v4 }
 0x230   : > { %5643 = vmatpush.bf16.msrb.mxu1 %v10434_v36  ;;  %v10625_v36 = vld [vmem:[%s14058_s30 + $0x520] sm:$0xf]  ;;  %v10498_v35 = vor.u32 %v12814_v34, %v10497_v21  ;;  %v12958_v34 = vld [vmem:[%s14058_s30 + $0x8ac] sm:$0xf0] }
 0x231   : > { %5656 = vmatpush.bf16.msrb.mxu2 %v10562_v22  ;;  %v12846_v22 = vld [vmem:[%s14058_s30 + $0x52c] sm:$0xf0]  ;;  %v11089_v7 = vld [vmem:[%s14058_s30 + $0x8c0] sm:$0xf] }
 0x232   : > { %5669 = vmatpush.bf16.msrb.mxu3 %v10690_v24  ;;  %v10626_v25 = vor.u32 %v12846_v22, %v10625_v36  ;;  %v10817_v14 = vld [vmem:[%s14058_s30 + $0x6a0] sm:$0xf]  ;;  %v3473_v36 = vadd.f32 %v15083_v0, %v977_v11  ;;  %v12950_v40 = vld [vmem:[%s14058_s30 + $0x86c] sm:$0xf0] }
 0x233   : > { %5631 = vmatpush.bf16.msrb.mxu0 %v10290_v1  ;;  %v3461_v24 = vpop.f32.mrf.mxu2  ;;  %v10849_v1 = vld [vmem:[%s14058_s30 + $0x6e0] sm:$0xf]  ;;  %v10818_v44 = vor.u32 %v12894_v15, %v10817_v14  ;;  %v12882_v12 = vld [vmem:[%s14058_s30 + $0x64c] sm:$0xf0] }
 0x234   : > { %5644 = vmatpush.bf16.msrb.mxu1 %v10418_v61  ;;  %v3474_v33 = vpop.f32.mrf.mxu3  ;;  %v12902_v61 = vld [vmem:[%s14058_s30 + $0x6ec] sm:$0xf0]  ;;  %v10945_v55 = vld [vmem:[%s14058_s30 + $0x7a0] sm:$0xf] }
 0x235   : > { %5657 = vmatpush.bf16.msrb.mxu2 %v10546_v38  ;;  %v10226_v38 = vor.u32 %v12746_v5, %v10225_v29  ;;  %v10850_v46 = vor.u32 %v12902_v61, %v10849_v1  ;;  %v11073_v21 = vld [vmem:[%s14058_s30 + $0x8a0] sm:$0xf]  ;;  %v10946_v22 = vor.u32 %v12926_v18, %v10945_v55  ;;  %v12890_v29 = vld [vmem:[%s14058_s30 + $0x68c] sm:$0xf0]  ;;  %v3434_v5 = vadd.f32 %v15061_v37, %v3421_v20 }
 0x236   : > { %5670 = vmatpush.bf16.msrb.mxu3 %v10674_v43  ;;  %v10482_v43 = vor.u32 %v12810_v28, %v10481_v26  ;;  %v11074_v63 = vor.u32 %v12958_v34, %v11073_v21  ;;  %v11057_v24 = vld [vmem:[%s14058_s30 + $0x880] sm:$0xf]  ;;  %v12918_v1 = vld [vmem:[%s14058_s30 + $0x76c] sm:$0xf0] }
 0x237   : > { %5632 = vmatpush.bf16.msrb.mxu0 %v10274_v48  ;;  %v12966_v48 = vld [vmem:[%s14058_s30 + $0x8ec] sm:$0xf0]  ;;  %v10785_v28 = vld [vmem:[%s14058_s30 + $0x660] sm:$0xf] }
 0x238   : > { %5645 = vmatpush.bf16.msrb.mxu1 %v10402_v49  ;;  %v13405_v49 = vpop.eup %13404  ;;  %v11106_v60 = vor.u32 %v12966_v48, %v11105_v47  ;;  %v10913_v32 = vld [vmem:[%s14058_s30 + $0x760] sm:$0xf]  ;;  %v12914_v47 = vld [vmem:[%s14058_s30 + $0x74c] sm:$0xf0] }
 0x239   : > { %5658 = vmatpush.bf16.msrb.mxu2 %v10530_v50  ;;  %v10978_v50 = vor.u32 %v12934_v51, %v10977_v39  ;;  %v13407_v53 = vpop.eup %13406  ;;  %v15122_v2 = vpack.c.bf16 %v13405_v49, %v13405_v49  ;;  %v10786_v39 = vor.u32 %v12886_v30, %v10785_v28  ;;  %v11041_v51 = vld [vmem:[%s14058_s30 + $0x860] sm:$0xf]  ;;  %v12878_v4 = vld [vmem:[%s14058_s30 + $0x62c] sm:$0xf0]  ;;  %v12772_v30 = vld [vmem:[%s14058_s30 + $0x2e4] sm:$0xf] }
 0x23a   : > { %5671 = vmatpush.bf16.msrb.mxu3 %v10658_v57  ;;  %v12930_v57 = vld [vmem:[%s14058_s30 + $0x7cc] sm:$0xf0]  ;;  %v10769_v27 = vld [vmem:[%s14058_s30 + $0x640] sm:$0xf] }
 0x23b   : > { %5633 = vmatpush.bf16.msrb.mxu0 %v10258_v6  ;;  %v10834_v6 = vor.u32 %v12898_v52, %v10833_v62  ;;  %v10962_v9 = vor.u32 %v12930_v57, %v10961_v56  ;;  %v12946_v56 = vld [vmem:[%s14058_s30 + $0x84c] sm:$0xf0]  ;;  %v11009_v14 = vld [vmem:[%s14058_s30 + $0x820] sm:$0xf] }
 0x23c   : > { %5646 = vmatpush.bf16.msrb.mxu1 %v10386_v31  ;;  %v12962_v31 = vld [vmem:[%s14058_s30 + $0x8cc] sm:$0xf0]  ;;  %v11233_v55 = vld [vmem:[%s14058_s30 + $0x9e0] sm:$0xf] }
 0x23d   : > { %5659 = vmatpush.bf16.msrb.mxu2 %v10514_v8  ;;  %v15127_v8 = vpack.c.bf16 %v13407_v53, %v13407_v53  ;;  %v11025_v53 = vld [vmem:[%s14058_s30 + $0x840] sm:$0xf]  ;;  %v12942_v15 = vld [vmem:[%s14058_s30 + $0x82c] sm:$0xf0] }
 0x23e   : > { %5672 = vmatpush.bf16.msrb.mxu3 %v10642_v19  ;;  %v11090_v19 = vor.u32 %v12962_v31, %v11089_v7  ;;  %v10881_v7 = vld [vmem:[%s14058_s30 + $0x720] sm:$0xf]  ;;  %v12910_v31 = vld [vmem:[%s14058_s30 + $0x72c] sm:$0xf0] }
 0x23f   : > { %5634 = vmatpush.bf16.msrb.mxu0 %v10242_v16  ;;  %v10801_v16 = vld [vmem:[%s14058_s30 + $0x680] sm:$0xf]  ;;  %v10882_v18 = vor.u32 %v12910_v31, %v10881_v7  ;;  %v12906_v34 = vld [vmem:[%s14058_s30 + $0x70c] sm:$0xf0]  ;;  %v10307_v7 = vld [vmem:[%s14058_s30 + $0x2b0] sm:$0xf0] }
 0x240   : > { %5647 = vmatpush.bf16.msrb.mxu1 %v10370_v23  ;;  %v10929_v23 = vld [vmem:[%s14058_s30 + $0x780] sm:$0xf]  ;;  %v10802_v17 = vor.u32 %v12890_v29, %v10801_v16 }
 0x241   : > { %5660 = vmatpush.bf16.msrb.mxu2 %v10498_v35  ;;  %v12922_v35 = vld [vmem:[%s14058_s30 + $0x78c] sm:$0xf0]  ;;  %v10865_v20 = vld [vmem:[%s14058_s30 + $0x700] sm:$0xf] }
 0x242   : > { %5673 = vmatpush.bf16.msrb.mxu3 %v10626_v25  ;;  %v12954_v25 = vld [vmem:[%s14058_s30 + $0x88c] sm:$0xf0]  ;;  %v10930_v0 = vor.u32 %v12922_v35, %v10929_v23  ;;  %v12740_v23 = vld [vmem:[%s14058_s30 + $0x1e4] sm:$0xf]  ;;  %v10211_v35 = vld [vmem:[%s14058_s30 + $0x1f0] sm:$0xf0] }
 0x243   : > { %5635 = vmatpush.bf16.msrb.mxu0 %v10226_v38  ;;  %v3485_v13 = vpop.f32.mrf.mxu0  ;;  %v11058_v61 = vor.u32 %v12954_v25, %v11057_v24  ;;  %v3447_v38 = vadd.f32 %v15066_v41, %v3434_v5  ;;  %v11042_v41 = vor.u32 %v12950_v40, %v11041_v51  ;;  %v10993_v5 = vld [vmem:[%s14058_s30 + $0x800] sm:$0xf]  ;;  %v12994_v25 = vld [vmem:[%s14058_s30 + $0x9cc] sm:$0xf0]  ;;  %v10195_v51 = vld [vmem:[%s14058_s30 + $0x1d0] sm:$0xf0] }
 0x244   : > { %5648 = vmatpush.bf16.msrb.mxu1 %v10354_v42  ;;  %v3486_v26 = vadd.f32 %v3485_v13, %v3473_v36  ;;  %v3498_v33 = vpop.f32.mrf.mxu1  ;;  %v10914_v42 = vor.u32 %v12918_v1, %v10913_v32  ;;  %v12708_v36 = vld [vmem:[%s14058_s30 + $0xe4] sm:$0xf]  ;;  %v12938_v13 = vld [vmem:[%s14058_s30 + $0x80c] sm:$0xf0]  ;;  %v11217_v24 = vld [vmem:[%s14058_s30 + $0x9c0] sm:$0xf] }
 0x245   : > { %5661 = vmatpush.bf16.msrb.mxu2 %v10482_v43  ;;  %v3460_v49 = vadd.f32 %v15077_v54, %v3447_v38  ;;  %v10737_v54 = vld [vmem:[%s14058_s30 + $0x600] sm:$0xf]  ;;  %v11218_v32 = vor.u32 %v12994_v25, %v11217_v24  ;;  %v10067_v38 = vld [vmem:[%s14058_s30 + $0xd0] sm:$0xf0]  ;;  %v10994_v40 = vor.u32 %v12938_v13, %v10993_v5  ;;  %v12978_v13 = vld [vmem:[%s14058_s30 + $0x94c] sm:$0xf0] }
 0x246   : > { %5674 = vmatpush.bf16.msrb.mxu3 %v10610_v45  ;;  %5636 = vmatmul.bf16.vlgmr.msrb.gmra.mxu0 %v15118_v58  ;;  %v3499_v37 = vadd.f32 %v3498_v33, %v3486_v26  ;;  %v10866_v26 = vor.u32 %v12906_v34, %v10865_v20  ;;  %v10339_v33 = vld [vmem:[%s14058_s30 + $0x2f0] sm:$0xf0]  ;;  %v12756_v25 = vld [vmem:[%s14058_s30 + $0x264] sm:$0xf] }
 0x247   : > { %5680 = vmatpush.bf16.msra.mxu0 %v10850_v46  ;;  %5649 = vmatmul.bf16.vlgmr.msrb.gmra.mxu1 %v15120_v59  ;;  %v10897_v46 = vld [vmem:[%s14058_s30 + $0x740] sm:$0xf]  ;;  %v10291_v34 = vld [vmem:[%s14058_s30 + $0x290] sm:$0xf0] }
 0x248   : > { %5693 = vmatpush.bf16.msra.mxu1 %v10978_v50  ;;  %5662 = vmatmul.bf16.vlgmr.msrb.gmra.mxu2 %v15122_v2  ;;  %v10770_v50 = vor.u32 %v12882_v12, %v10769_v27  ;;  %v10898_v57 = vor.u32 %v12914_v47, %v10897_v46  ;;  %v11201_v27 = vld [vmem:[%s14058_s30 + $0x9a0] sm:$0xf]  ;;  %v12990_v12 = vld [vmem:[%s14058_s30 + $0x9ac] sm:$0xf0]  ;;  %v12768_v47 = vld [vmem:[%s14058_s30 + $0x2c4] sm:$0xf] }
 0x249   : > { %5675 = vmatmul.bf16.vlgmr.msrb.gmra.mxu3 %v15127_v8  ;;  %5706 = vmatpush.bf16.msra.mxu2 %v11106_v60  ;;  %v10753_v60 = vld [vmem:[%s14058_s30 + $0x620] sm:$0xf] }
 0x24a   : > { %v10754_v11 = vor.u32 %v12878_v4, %v10753_v60 }
 0x24b   : > { %5681 = vmatpush.bf16.msra.mxu0 %v10834_v6  ;;  %v3511_v43 = vpop.f32.mrf.mxu2  ;;  %v3487_v52 = vpop.f32.mrf.mxu0 }
 0x24c   : > { %5694 = vmatpush.bf16.msra.mxu1 %v10962_v9  ;;  %v3512_v45 = vadd.f32 %v3511_v43, %v3499_v37  ;;  %v3524_v48 = vpop.f32.mrf.mxu3  ;;  %v3500_v6 = vpop.f32.mrf.mxu1  ;;  %v11026_v9 = vor.u32 %v12946_v56, %v11025_v53  ;;  %v10214_v37 = vor.u32 %v12740_v23, %v10211_v35  ;;  %v10342_v43 = vor.u32 %v12772_v30, %v10339_v33  ;;  %v12732_v52 = vld [vmem:[%s14058_s30 + $0x1a4] sm:$0xf]  ;;  %v10179_v53 = vld [vmem:[%s14058_s30 + $0x1b0] sm:$0xf0]  ;;  %v11185_v56 = vld [vmem:[%s14058_s30 + $0x980] sm:$0xf] }
 0x24d   : > { %5707 = vmatpush.bf16.msra.mxu2 %v11090_v19  ;;  %v12874_v19 = vld [vmem:[%s14058_s30 + $0x60c] sm:$0xf0]  ;;  %v12764_v6 = vld [vmem:[%s14058_s30 + $0x2a4] sm:$0xf]  ;;  %v10003_v33 = vld [vmem:[%s14058_s30 + $0x50] sm:$0xf0] }
 0x24e   : > { %v3525_v62 = vadd.f32 %v3524_v48, %v3512_v45  ;;  %v10323_v48 = vld [vmem:[%s14058_s30 + $0x2d0] sm:$0xf0]  ;;  %v12724_v35 = vld [vmem:[%s14058_s30 + $0x164] sm:$0xf] }
 0x24f   : > { %5682 = vmatpush.bf16.msra.mxu0 %v10818_v44  ;;  %v12998_v44 = vld [vmem:[%s14058_s30 + $0x9ec] sm:$0xf0]  ;;  %v10326_v60 = vor.u32 %v12768_v47, %v10323_v48  ;;  %v12688_v30 = vld [vmem:[%s14058_s30 + $0x44] sm:$0xf] }
 0x250   : > { %5695 = vmatpush.bf16.msra.mxu1 %v10946_v22  ;;  %13408 = vtanh.f32 %v3525_v62  ;;  %v10083_v22 = vld [vmem:[%s14058_s30 + $0xf0] sm:$0xf0]  ;;  %v11234_v16 = vor.u32 %v12998_v44, %v11233_v55  ;;  %v10310_v55 = vor.u32 %v12764_v6, %v10307_v7 }
 0x251   : > { %5708 = vmatpush.bf16.msra.mxu2 %v11074_v63  ;;  %13410 = vtanh.f32 %v3460_v49  ;;  %v11010_v63 = vor.u32 %v12942_v15, %v11009_v14  ;;  %v10086_v28 = vor.u32 %v12708_v36, %v10083_v22  ;;  %v10051_v62 = vld [vmem:[%s14058_s30 + $0xb0] sm:$0xf0]  ;;  %v12728_v14 = vld [vmem:[%s14058_s30 + $0x184] sm:$0xf] }
 0x252   : > { %5719 = vmatpush.bf16.msra.mxu3 %v11234_v16  ;;  %v10163_v15 = vld [vmem:[%s14058_s30 + $0x190] sm:$0xf0]  ;;  %v12692_v16 = vld [vmem:[%s14058_s30 + $0x64] sm:$0xf] }
 0x253   : > { %5683 = vmatpush.bf16.msra.mxu0 %v10802_v17  ;;  %v3513_v21 = vpop.f32.mrf.mxu2  ;;  %v10738_v17 = vor.u32 %v12874_v19, %v10737_v54  ;;  %v10182_v54 = vor.u32 %v12732_v52, %v10179_v53  ;;  %v12982_v19 = vld [vmem:[%s14058_s30 + $0x96c] sm:$0xf0]  ;;  %v10166_v22 = vor.u32 %v12728_v14, %v10163_v15  ;;  %v12716_v52 = vld [vmem:[%s14058_s30 + $0x124] sm:$0xf]  ;;  %v10115_v53 = vld [vmem:[%s14058_s30 + $0x130] sm:$0xf0] }
 0x254   : > { %5696 = vmatpush.bf16.msra.mxu1 %v10930_v0  ;;  %v3526_v29 = vpop.f32.mrf.mxu3  ;;  %v12760_v21 = vld [vmem:[%s14058_s30 + $0x284] sm:$0xf]  ;;  %v9971_v7 = vld [vmem:[%s14058_s30 + $0x10] sm:$0xf0] }
 0x255   : > { %5709 = vmatpush.bf16.msra.mxu2 %v11058_v61  ;;  %v12704_v61 = vld [vmem:[%s14058_s30 + $0xc4] sm:$0xf]  ;;  %v10019_v29 = vld [vmem:[%s14058_s30 + $0x70] sm:$0xf0]  ;;  %v10294_v5 = vor.u32 %v12760_v21, %v10291_v34 }
 0x256   : > { %v13409_v0 = vpop.eup %13408  ;;  %5720 = vmatpush.bf16.msra.mxu3 %v11218_v32  ;;  %v10070_v46 = vor.u32 %v12704_v61, %v10067_v38  ;;  %v10022_v24 = vor.u32 %v12692_v16, %v10019_v29  ;;  %v12720_v32 = vld [vmem:[%s14058_s30 + $0x144] sm:$0xf] }
 0x257   : > { %5684 = vmatpush.bf16.msra.mxu0 %v10786_v39  ;;  %v13411_v1 = vpop.eup %13410  ;;  %v12736_v39 = vld [vmem:[%s14058_s30 + $0x1c4] sm:$0xf] }
 0x258   : > { %5697 = vmatpush.bf16.msra.mxu1 %v10914_v42  ;;  %v15189_v42 = vpack.c.bf16 %v13409_v0, %v13409_v0  ;;  %v15193_v45 = vpack.c.bf16 %v13411_v1, %v13411_v1  ;;  %v10198_v49 = vor.u32 %v12736_v39, %v10195_v51  ;;  %v10275_v0 = vld [vmem:[%s14058_s30 + $0x270] sm:$0xf0]  ;;  %v11137_v39 = vld [vmem:[%s14058_s30 + $0x920] sm:$0xf]  ;;  %v12974_v51 = vld [vmem:[%s14058_s30 + $0x92c] sm:$0xf0] }
 0x259   : > { %5710 = vmatpush.bf16.msra.mxu2 %v11042_v41  ;;  %v11202_v41 = vor.u32 %v12990_v12, %v11201_v27  ;;  %v10131_v1 = vld [vmem:[%s14058_s30 + $0x150] sm:$0xf0]  ;;  %v10278_v38 = vor.u32 %v12756_v25, %v10275_v0  ;;  %v12752_v12 = vld [vmem:[%s14058_s30 + $0x244] sm:$0xf]  ;;  %v11138_v47 = vor.u32 %v12974_v51, %v11137_v39 }
 0x25a   : > { %v10134_v48 = vor.u32 %v12720_v32, %v10131_v1  ;;  %v12712_v14 = vld [vmem:[%s14058_s30 + $0x104] sm:$0xf]  ;;  %v10707_v1 = vld [vmem:[%s14058_s30 + $0x5d0] sm:$0xf0] }
 0x25b   : > { %5685 = vmatpush.bf16.msra.mxu0 %v10770_v50  ;;  %v12700_v50 = vld [vmem:[%s14058_s30 + $0xa4] sm:$0xf]  ;;  %5721 = vmatpush.bf16.msra.mxu3 %v11202_v41  ;;  %v10435_v51 = vld [vmem:[%s14058_s30 + $0x3b0] sm:$0xf0] }
 0x25c   : > { %5698 = vmatpush.bf16.msra.mxu1 %v10898_v57  ;;  %v12986_v57 = vld [vmem:[%s14058_s30 + $0x98c] sm:$0xf0]  ;;  %v10054_v4 = vor.u32 %v12700_v50, %v10051_v62  ;;  %v12684_v41 = vld [vmem:[%s14058_s30 + $0x24] sm:$0xf] }
 0x25d   : > { %5711 = vmatpush.bf16.msra.mxu2 %v11026_v9  ;;  %v11186_v31 = vor.u32 %v12986_v57, %v11185_v56  ;;  %v12696_v9 = vld [vmem:[%s14058_s30 + $0x84] sm:$0xf] }
 0x25e   : > { %v12680_v56 = vld [vmem:[%s14058_s30 + $0x4] sm:$0xf] }
 0x25f   : > { %5686 = vmatpush.bf16.msra.mxu0 %v10754_v11  ;;  %v10035_v11 = vld [vmem:[%s14058_s30 + $0x90] sm:$0xf0]  ;;  %5722 = vmatpush.bf16.msra.mxu3 %v11186_v31  ;;  %v12748_v31 = vld [vmem:[%s14058_s30 + $0x224] sm:$0xf] }
 0x260   : > { %5699 = vmatpush.bf16.msra.mxu1 %v10882_v18  ;;  %v11169_v18 = vld [vmem:[%s14058_s30 + $0x960] sm:$0xf]  ;;  %v10038_v20 = vor.u32 %v12696_v9, %v10035_v11  ;;  %v10118_v11 = vor.u32 %v12716_v52, %v10115_v53  ;;  %v12804_v15 = vld [vmem:[%s14058_s30 + $0x3e4] sm:$0xf] }
 0x261   : > { %5712 = vmatpush.bf16.msra.mxu2 %v11010_v63  ;;  %v11170_v36 = vor.u32 %v12982_v19, %v11169_v18  ;;  %v10147_v63 = vld [vmem:[%s14058_s30 + $0x170] sm:$0xf0]  ;;  %v12836_v19 = vld [vmem:[%s14058_s30 + $0x4e4] sm:$0xf] }
 0x262   : > { %v10099_v18 = vld [vmem:[%s14058_s30 + $0x110] sm:$0xf0]  ;;  %v12864_v32 = vld [vmem:[%s14058_s30 + $0x5c4] sm:$0xf] }
 0x263   : > { %5687 = vmatpush.bf16.msra.mxu0 %v10738_v17  ;;  %v15213_v44 = vpop.f32.mrf.mxu0  ;;  %v11153_v17 = vld [vmem:[%s14058_s30 + $0x940] sm:$0xf]  ;;  %5723 = vmatpush.bf16.msra.mxu3 %v11170_v36  ;;  %v12868_v36 = vld [vmem:[%s14058_s30 + $0x5e4] sm:$0xf] }
 0x264   : > { %5700 = vmatpush.bf16.msra.mxu1 %v10866_v26  ;;  %v15219_v23 = vpop.f32.mrf.mxu1  ;;  %v11154_v26 = vor.u32 %v12978_v13, %v11153_v17  ;;  %v10227_v17 = vld [vmem:[%s14058_s30 + $0x210] sm:$0xf0]  ;;  %v12800_v13 = vld [vmem:[%s14058_s30 + $0x3c4] sm:$0xf] }
 0x265   : > { %5713 = vmatpush.bf16.msra.mxu2 %v10994_v40  ;;  %v10006_v40 = vor.u32 %v12688_v30, %v10003_v33  ;;  %v12796_v39 = vld [vmem:[%s14058_s30 + $0x3a4] sm:$0xf] }
 0x266   : > { %5688 = vmatmul.bf16.vlgmr.msra.gmra.mxu0 %v15193_v45  ;;  %v12824_v53 = vld [vmem:[%s14058_s30 + $0x484] sm:$0xf] }
 0x267   : > { %5732 = vmatpush.bf16.msrb.mxu0 %v10086_v28  ;;  %5701 = vmatmul.bf16.vlgmr.msra.gmra.mxu1 %v15189_v42  ;;  %v10150_v28 = vor.u32 %v12724_v35, %v10147_v63  ;;  %v12744_v35 = vld [vmem:[%s14058_s30 + $0x204] sm:$0xf]  ;;  %v9974_v63 = vor.u32 %v12680_v56, %v9971_v7  ;;  %v10547_v56 = vld [vmem:[%s14058_s30 + $0x490] sm:$0xf0] }
 0x268   : > { %5745 = vmatpush.bf16.msrb.mxu1 %v10214_v37  ;;  %v15232_v37 = vld [vmem:[%s14056_s23 + $0x8] sm:$0x3]  ;;  %5724 = vmatpush.bf16.msra.mxu3 %v11154_v26  ;;  %v12832_v26 = vld [vmem:[%s14058_s30 + $0x4c4] sm:$0xf] }
 0x269   : > { %5758 = vmatpush.bf16.msrb.mxu2 %v10342_v43  ;;  %v978_v62 = vperm.slane %v15232_v37, 0  ;;  %v10403_v7 = vld [vmem:[%s14058_s30 + $0x370] sm:$0xf0] }
 0x26b   : > { %5733 = vmatpush.bf16.msrb.mxu0 %v10070_v46  ;;  %v15234_v61 = vpop.f32.mrf.mxu2  ;;  %v3539_v43 = vpop.f32.mrf.mxu0  ;;  %v10259_v46 = vld [vmem:[%s14058_s30 + $0x250] sm:$0xf0]  ;;  %v3538_v34 = vadd.f32 %v15213_v44, %v978_v62  ;;  %v10102_v44 = vor.u32 %v12712_v14, %v10099_v18 }
 0x26c   : > { %5746 = vmatpush.bf16.msrb.mxu1 %v10198_v49  ;;  %v15238_v27 = vpop.f32.mrf.mxu3  ;;  %v9987_v49 = vld [vmem:[%s14058_s30 + $0x30] sm:$0xf0]  ;;  %v3552_v50 = vpop.f32.mrf.mxu1  ;;  %v10262_v57 = vor.u32 %v12752_v12, %v10259_v46  ;;  %5725 = vmatpush.bf16.msra.mxu3 %v11138_v47  ;;  %v10710_v43 = vor.u32 %v12864_v32, %v10707_v1  ;;  %v12828_v12 = vld [vmem:[%s14058_s30 + $0x4a4] sm:$0xf]  ;;  %v10438_v47 = vor.u32 %v12796_v39, %v10435_v51 }
 0x26d   : > { %5759 = vmatpush.bf16.msrb.mxu2 %v10326_v60  ;;  %v11121_v60 = vld [vmem:[%s14058_s30 + $0x900] sm:$0xf]  ;;  %v9990_v6 = vor.u32 %v12684_v41, %v9987_v49  ;;  %v3551_v33 = vadd.f32 %v15219_v23, %v3538_v34  ;;  %v10563_v46 = vld [vmem:[%s14058_s30 + $0x4b0] sm:$0xf0]  ;;  %v12860_v23 = vld [vmem:[%s14058_s30 + $0x5a4] sm:$0xf] }
 0x26e   : > { %v10691_v41 = vld [vmem:[%s14058_s30 + $0x5b0] sm:$0xf0]  ;;  %v12792_v49 = vld [vmem:[%s14058_s30 + $0x384] sm:$0xf]  ;;  %v10566_v62 = vor.u32 %v12828_v12, %v10563_v46 }
 0x26f   : > { %5734 = vmatpush.bf16.msrb.mxu0 %v10054_v4  ;;  %v12970_v4 = vld [vmem:[%s14058_s30 + $0x90c] sm:$0xf0]  ;;  %v10419_v50 = vld [vmem:[%s14058_s30 + $0x390] sm:$0xf0]  ;;  %v10694_v52 = vor.u32 %v12860_v23, %v10691_v41  ;;  %v12776_v23 = vld [vmem:[%s14058_s30 + $0x304] sm:$0xf] }
 0x270   : > { %5747 = vmatpush.bf16.msrb.mxu1 %v10182_v54  ;;  %v10243_v54 = vld [vmem:[%s14058_s30 + $0x230] sm:$0xf0]  ;;  %v11122_v9 = vor.u32 %v12970_v4, %v11121_v60  ;;  %v12856_v60 = vld [vmem:[%s14058_s30 + $0x584] sm:$0xf] }
 0x271   : > { %5760 = vmatpush.bf16.msrb.mxu2 %v10310_v55  ;;  %v10467_v55 = vld [vmem:[%s14058_s30 + $0x3f0] sm:$0xf0]  ;;  %v10246_v16 = vor.u32 %v12748_v31, %v10243_v54  ;;  %v10550_v31 = vor.u32 %v12824_v53, %v10547_v56  ;;  %v12808_v41 = vld [vmem:[%s14058_s30 + $0x404] sm:$0xf] }
 0x272   : > { %v10470_v21 = vor.u32 %v12804_v15, %v10467_v55  ;;  %5726 = vmatpush.bf16.msra.mxu3 %v11122_v9  ;;  %v10675_v4 = vld [vmem:[%s14058_s30 + $0x590] sm:$0xf0]  ;;  %v12852_v55 = vld [vmem:[%s14058_s30 + $0x564] sm:$0xf] }
 0x273   : > { %5735 = vmatpush.bf16.msrb.mxu0 %v10038_v20  ;;  %v10595_v20 = vld [vmem:[%s14058_s30 + $0x4f0] sm:$0xf0]  ;;  %v3565_v29 = vpop.f32.mrf.mxu2  ;;  %v10678_v9 = vor.u32 %v12856_v60, %v10675_v4  ;;  %v12964_v56 = vld [vmem:[%s14058_s30 + $0x8e4] sm:$0xf] }
 0x274   : > { %5748 = vmatpush.bf16.msrb.mxu1 %v10166_v22  ;;  %v10723_v22 = vld [vmem:[%s14058_s30 + $0x5f0] sm:$0xf0]  ;;  %v10598_v25 = vor.u32 %v12836_v19, %v10595_v20  ;;  %v12784_v20 = vld [vmem:[%s14058_s30 + $0x344] sm:$0xf] }
 0x275   : > { %5761 = vmatpush.bf16.msrb.mxu2 %v10294_v5  ;;  %v3578_v5 = vpop.f32.mrf.mxu3  ;;  %v10726_v0 = vor.u32 %v12868_v36, %v10723_v22  ;;  %v10531_v14 = vld [vmem:[%s14058_s30 + $0x470] sm:$0xf0]  ;;  %v12816_v22 = vld [vmem:[%s14058_s30 + $0x444] sm:$0xf] }
 0x276   : > { %5771 = vmatpush.bf16.msrb.mxu3 %v10470_v21  ;;  %v10659_v18 = vld [vmem:[%s14058_s30 + $0x570] sm:$0xf0]  ;;  %v12900_v5 = vld [vmem:[%s14058_s30 + $0x6e4] sm:$0xf] }
 0x277   : > { %5736 = vmatpush.bf16.msrb.mxu0 %v10022_v24  ;;  %v10451_v24 = vld [vmem:[%s14058_s30 + $0x3d0] sm:$0xf0]  ;;  %v10662_v36 = vor.u32 %v12852_v55, %v10659_v18  ;;  %v12960_v18 = vld [vmem:[%s14058_s30 + $0x8c4] sm:$0xf] }
 0x278   : > { %5749 = vmatpush.bf16.msrb.mxu1 %v10150_v28  ;;  %v10579_v28 = vld [vmem:[%s14058_s30 + $0x4d0] sm:$0xf0]  ;;  %v10454_v30 = vor.u32 %v12800_v13, %v10451_v24  ;;  %v12780_v13 = vld [vmem:[%s14058_s30 + $0x324] sm:$0xf] }
 0x279   : > { %5762 = vmatpush.bf16.msrb.mxu2 %v10278_v38  ;;  %v10230_v38 = vor.u32 %v12744_v35, %v10227_v17  ;;  %v10387_v21 = vld [vmem:[%s14058_s30 + $0x350] sm:$0xf0]  ;;  %v12848_v35 = vld [vmem:[%s14058_s30 + $0x544] sm:$0xf] }
 0x27a   : > { %5772 = vmatpush.bf16.msrb.mxu3 %v10454_v30  ;;  %v10390_v29 = vor.u32 %v12784_v20, %v10387_v21  ;;  %v10851_v17 = vld [vmem:[%s14058_s30 + $0x6f0] sm:$0xf0]  ;;  %v12992_v21 = vld [vmem:[%s14058_s30 + $0x9c4] sm:$0xf] }
 0x27b   : > { %5737 = vmatpush.bf16.msrb.mxu0 %v10006_v40  ;;  %v10582_v40 = vor.u32 %v12832_v26, %v10579_v28  ;;  %v10371_v24 = vld [vmem:[%s14058_s30 + $0x330] sm:$0xf0]  ;;  %v12812_v28 = vld [vmem:[%s14058_s30 + $0x424] sm:$0xf]  ;;  %v10854_v1 = vor.u32 %v12900_v5, %v10851_v17 }
 0x27c   : > { %5750 = vmatpush.bf16.msrb.mxu1 %v10134_v48  ;;  %v3564_v48 = vadd.f32 %v15234_v61, %v3551_v33  ;;  %v10499_v30 = vld [vmem:[%s14058_s30 + $0x430] sm:$0xf0]  ;;  %v12988_v17 = vld [vmem:[%s14058_s30 + $0x9a4] sm:$0xf] }
 0x27d   : > { %5763 = vmatpush.bf16.msrb.mxu2 %v10262_v57  ;;  %v10422_v57 = vor.u32 %v12792_v49, %v10419_v50  ;;  %v10627_v39 = vld [vmem:[%s14058_s30 + $0x530] sm:$0xf0] }
 0x27e   : > { %5773 = vmatpush.bf16.msrb.mxu3 %v10438_v47  ;;  %v3577_v61 = vadd.f32 %v15238_v27, %v3564_v48  ;;  %v10835_v46 = vld [vmem:[%s14058_s30 + $0x6d0] sm:$0xf0]  ;;  %v10502_v48 = vor.u32 %v12812_v28, %v10499_v30  ;;  %v12952_v30 = vld [vmem:[%s14058_s30 + $0x884] sm:$0xf] }
 0x27f   : > { %5738 = vmatpush.bf16.msrb.mxu0 %v9990_v6  ;;  %v12788_v6 = vld [vmem:[%s14058_s30 + $0x364] sm:$0xf]  ;;  %v10355_v47 = vld [vmem:[%s14058_s30 + $0x310] sm:$0xf0] }
 0x280   : > { %5751 = vmatpush.bf16.msrb.mxu1 %v10118_v11  ;;  %v12820_v11 = vld [vmem:[%s14058_s30 + $0x464] sm:$0xf]  ;;  %v10406_v15 = vor.u32 %v12788_v6, %v10403_v7  ;;  %v10483_v50 = vld [vmem:[%s14058_s30 + $0x410] sm:$0xf0]  ;;  %v10358_v60 = vor.u32 %v12776_v23, %v10355_v47 }
 0x281   : > { %5764 = vmatpush.bf16.msrb.mxu2 %v10246_v16  ;;  %v10534_v34 = vor.u32 %v12820_v11, %v10531_v14  ;;  %v10515_v16 = vld [vmem:[%s14058_s30 + $0x450] sm:$0xf0]  ;;  %v12892_v6 = vld [vmem:[%s14058_s30 + $0x6a4] sm:$0xf] }
 0x282   : > { %5774 = vmatpush.bf16.msrb.mxu3 %v10422_v57  ;;  %v11107_v57 = vld [vmem:[%s14058_s30 + $0x8f0] sm:$0xf0]  ;;  %v12948_v23 = vld [vmem:[%s14058_s30 + $0x864] sm:$0xf] }
 0x283   : > { %5739 = vmatpush.bf16.msrb.mxu0 %v9974_v63  ;;  %v3589_v54 = vpop.f32.mrf.mxu0  ;;  %v10643_v63 = vld [vmem:[%s14058_s30 + $0x550] sm:$0xf0]  ;;  %v11110_v14 = vor.u32 %v12964_v56, %v11107_v57 }
 0x284   : > { %5752 = vmatpush.bf16.msrb.mxu1 %v10102_v44  ;;  %v3590_v27 = vadd.f32 %v3589_v54, %v3577_v61  ;;  %v15293_v19 = vpop.f32.mrf.mxu1  ;;  %v10518_v44 = vor.u32 %v12816_v22, %v10515_v16  ;;  %v12996_v61 = vld [vmem:[%s14058_s30 + $0x9e4] sm:$0xf]  ;;  %v11235_v4 = vld [vmem:[%s14058_s30 + $0x9f0] sm:$0xf0] }
 0x285   : > { %5765 = vmatpush.bf16.msrb.mxu2 %v10230_v38  ;;  %v12844_v38 = vld [vmem:[%s14058_s30 + $0x524] sm:$0xf]  ;;  %v10819_v7 = vld [vmem:[%s14058_s30 + $0x6b0] sm:$0xf0] }
 0x286   : > { %5740 = vmatmul.bf16.vlgmr.msrb.gmra.mxu0 %v15035_v3  ;;  %13412 = vtanh.f32 %v3590_v27  ;;  %5775 = vmatpush.bf16.msrb.mxu3 %v10406_v15  ;;  %v10630_v49 = vor.u32 %v12844_v38, %v10627_v39  ;;  %v11238_v27 = vor.u32 %v12996_v61, %v11235_v4  ;;  %v10822_v55 = vor.u32 %v12892_v6, %v10819_v7  ;;  %v11091_v20 = vld [vmem:[%s14058_s30 + $0x8d0] sm:$0xf0]  ;;  %v12880_v39 = vld [vmem:[%s14058_s30 + $0x644] sm:$0xf] }
 0x287   : > { %5784 = vmatpush.bf16.msra.mxu0 %v10598_v25  ;;  %5753 = vmatmul.bf16.vlgmr.msrb.gmra.mxu1 %v15040_v10  ;;  %v10803_v22 = vld [vmem:[%s14058_s30 + $0x690] sm:$0xf0]  ;;  %v12976_v6 = vld [vmem:[%s14058_s30 + $0x944] sm:$0xf] }
 0x288   : > { %5797 = vmatpush.bf16.msra.mxu1 %v10726_v0  ;;  %v10646_v0 = vor.u32 %v12848_v35, %v10643_v63  ;;  %v12956_v63 = vld [vmem:[%s14058_s30 + $0x8a4] sm:$0xf]  ;;  %v11075_v5 = vld [vmem:[%s14058_s30 + $0x8b0] sm:$0xf0] }
 0x289   : > { %v11187_v38 = vld [vmem:[%s14058_s30 + $0x990] sm:$0xf0] }
 0x28a   : > { %5776 = vmatpush.bf16.msrb.mxu3 %v10390_v29  ;;  %v11043_v47 = vld [vmem:[%s14058_s30 + $0x870] sm:$0xf0] }
 0x28b   : > { %5785 = vmatpush.bf16.msra.mxu0 %v10582_v40  ;;  %v15305_v25 = vpop.f32.mrf.mxu2  ;;  %v3591_v26 = vpop.f32.mrf.mxu0  ;;  %v12896_v40 = vld [vmem:[%s14058_s30 + $0x6c4] sm:$0xf]  ;;  %v11027_v4 = vld [vmem:[%s14058_s30 + $0x850] sm:$0xf0] }
 0x28c   : > { %5798 = vmatpush.bf16.msra.mxu1 %v10710_v43  ;;  %v15309_v33 = vpop.f32.mrf.mxu3  ;;  %v13413_v32 = vpop.eup %13412  ;;  %v10374_v43 = vor.u32 %v12780_v13, %v10371_v24  ;;  %v10838_v53 = vor.u32 %v12896_v40, %v10835_v46  ;;  %v11203_v13 = vld [vmem:[%s14058_s30 + $0x9b0] sm:$0xf0]  ;;  %v12884_v24 = vld [vmem:[%s14058_s30 + $0x664] sm:$0xf] }
 0x28d   : > { %v3604_v51 = vpop.f32.mrf.mxu1  ;;  %v15314_v12 = vpack.c.bf16 %v13413_v32, %v13413_v32  ;;  %v11206_v26 = vor.u32 %v12988_v17, %v11203_v13  ;;  %v11059_v32 = vld [vmem:[%s14058_s30 + $0x890] sm:$0xf0]  ;;  %v10073_v17 = vld [vmem:[%s14058_s30 + $0xc8] sm:$0xf]  ;;  %v12707_v13 = vld [vmem:[%s14058_s30 + $0xd4] sm:$0xf0] }
 0x28e   : > { %5777 = vmatpush.bf16.msrb.mxu3 %v10374_v43  ;;  %v10771_v51 = vld [vmem:[%s14058_s30 + $0x650] sm:$0xf0] }
 0x28f   : > { %5786 = vmatpush.bf16.msra.mxu0 %v10566_v62  ;;  %5714 = vmatmul.bf16.vlgmr.msra.gmra.mxu2 %v15314_v12  ;;  %v12840_v62 = vld [vmem:[%s14058_s30 + $0x504] sm:$0xf]  ;;  %v10774_v46 = vor.u32 %v12880_v39, %v10771_v51  ;;  %v11155_v7 = vld [vmem:[%s14058_s30 + $0x950] sm:$0xf0]  ;;  %v10345_v39 = vld [vmem:[%s14058_s30 + $0x2e8] sm:$0xf]  ;;  %v10074_v51 = vor.u32 %v12707_v13, %v10073_v17 }
 0x290   : > { %5799 = vmatpush.bf16.msra.mxu1 %v10694_v52  ;;  %v10611_v52 = vld [vmem:[%s14058_s30 + $0x510] sm:$0xf0]  ;;  %5810 = vmatpush.bf16.msra.mxu2 %v10854_v1  ;;  %v12984_v1 = vld [vmem:[%s14058_s30 + $0x984] sm:$0xf]  ;;  %v12763_v17 = vld [vmem:[%s14058_s30 + $0x294] sm:$0xf0] }
 0x291   : > { %v10614_v11 = vor.u32 %v12840_v62, %v10611_v52  ;;  %v11190_v43 = vor.u32 %v12984_v1, %v11187_v38  ;;  %v10755_v62 = vld [vmem:[%s14058_s30 + $0x630] sm:$0xf0]  ;;  %v12928_v1 = vld [vmem:[%s14058_s30 + $0x7c4] sm:$0xf]  ;;  %v10425_v13 = vld [vmem:[%s14058_s30 + $0x388] sm:$0xf] }
 0x292   : > { %5778 = vmatpush.bf16.msrb.mxu3 %v10358_v60  ;;  %v12944_v60 = vld [vmem:[%s14058_s30 + $0x844] sm:$0xf]  ;;  %v10963_v38 = vld [vmem:[%s14058_s30 + $0x7d0] sm:$0xf0] }
 0x293   : > { %5787 = vmatpush.bf16.msra.mxu0 %v10550_v31  ;;  %v10486_v31 = vor.u32 %v12808_v41, %v10483_v50  ;;  %v3617_v54 = vpop.f32.mrf.mxu2  ;;  %v12876_v50 = vld [vmem:[%s14058_s30 + $0x624] sm:$0xf] }
 0x294   : > { %5800 = vmatpush.bf16.msra.mxu1 %v10678_v9  ;;  %v979_v9 = vperm.slane %v15232_v37, 1  ;;  %v3630_v15 = vpop.f32.mrf.mxu3  ;;  %5811 = vmatpush.bf16.msra.mxu2 %v10838_v53  ;;  %v11094_v37 = vor.u32 %v12960_v18, %v11091_v20  ;;  %v11046_v53 = vor.u32 %v12948_v23, %v11043_v47  ;;  %v10758_v61 = vor.u32 %v12876_v50, %v10755_v62  ;;  %v10739_v54 = vld [vmem:[%s14058_s30 + $0x610] sm:$0xf0]  ;;  %v12940_v18 = vld [vmem:[%s14058_s30 + $0x824] sm:$0xf] }
 0x295   : > { %v11011_v20 = vld [vmem:[%s14058_s30 + $0x830] sm:$0xf0]  ;;  %v10057_v23 = vld [vmem:[%s14058_s30 + $0xa8] sm:$0xf]  ;;  %v12703_v47 = vld [vmem:[%s14058_s30 + $0xb4] sm:$0xf0] }
 0x296   : > { %v3603_v16 = vadd.f32 %v15293_v19, %v979_v9  ;;  %v11078_v19 = vor.u32 %v12956_v63, %v11075_v5  ;;  %v10089_v9 = vld [vmem:[%s14058_s30 + $0xe8] sm:$0xf]  ;;  %v11014_v5 = vor.u32 %v12940_v18, %v11011_v20  ;;  %v12799_v20 = vld [vmem:[%s14058_s30 + $0x3b4] sm:$0xf0] }
 0x297   : > { %5788 = vmatpush.bf16.msra.mxu0 %v10534_v34  ;;  %v11219_v34 = vld [vmem:[%s14058_s30 + $0x9d0] sm:$0xf0]  ;;  %v10441_v18 = vld [vmem:[%s14058_s30 + $0x3a8] sm:$0xf] }
 0x298   : > { %5801 = vmatpush.bf16.msra.mxu1 %v10662_v36  ;;  %v12888_v36 = vld [vmem:[%s14058_s30 + $0x684] sm:$0xf]  ;;  %5812 = vmatpush.bf16.msra.mxu2 %v10822_v55  ;;  %v11222_v29 = vor.u32 %v12992_v21, %v11219_v34 }
 0x299   : > { %v10806_v35 = vor.u32 %v12888_v36, %v10803_v22  ;;  %v12972_v21 = vld [vmem:[%s14058_s30 + $0x924] sm:$0xf] }
 0x29b   : > { %5789 = vmatpush.bf16.msra.mxu0 %v10518_v44  ;;  %v10787_v44 = vld [vmem:[%s14058_s30 + $0x670] sm:$0xf0] }
 0x29c   : > { %5802 = vmatpush.bf16.msra.mxu1 %v10646_v0  ;;  %v3616_v0 = vadd.f32 %v15305_v25, %v3603_v16  ;;  %5813 = vmatpush.bf16.msra.mxu2 %v10806_v35  ;;  %v10790_v28 = vor.u32 %v12884_v24, %v10787_v44  ;;  %v11062_v25 = vor.u32 %v12952_v30, %v11059_v32  ;;  %v12932_v16 = vld [vmem:[%s14058_s30 + $0x7e4] sm:$0xf]  ;;  %v11123_v30 = vld [vmem:[%s14058_s30 + $0x910] sm:$0xf0] }
 0x29d   : > { %v12936_v24 = vld [vmem:[%s14058_s30 + $0x804] sm:$0xf] }
 0x29e   : > { %v3629_v40 = vadd.f32 %v15309_v33, %v3616_v0 }
 0x29f   : > { %5790 = vmatpush.bf16.msra.mxu0 %v10502_v48  ;;  %5766 = vmatmul.bf16.vlgmr.msrb.gmra.mxu2 %v15118_v58  ;;  %v12980_v48 = vld [vmem:[%s14058_s30 + $0x964] sm:$0xf] }
 0x2a0   : > { %5803 = vmatpush.bf16.msra.mxu1 %v10630_v49  ;;  %5814 = vmatpush.bf16.msra.mxu2 %v10790_v28  ;;  %v11171_v49 = vld [vmem:[%s14058_s30 + $0x970] sm:$0xf0]  ;;  %v12968_v28 = vld [vmem:[%s14058_s30 + $0x904] sm:$0xf] }
 0x2a1   : > { %v11174_v57 = vor.u32 %v12980_v48, %v11171_v49  ;;  %v10966_v49 = vor.u32 %v12928_v1, %v10963_v38  ;;  %v10899_v1 = vld [vmem:[%s14058_s30 + $0x750] sm:$0xf0]  ;;  %v10281_v38 = vld [vmem:[%s14058_s30 + $0x268] sm:$0xf] }
 0x2a3   : > { %5791 = vmatpush.bf16.msra.mxu0 %v10486_v31  ;;  %v3641_v41 = vpop.f32.mrf.mxu0  ;;  %v12872_v31 = vld [vmem:[%s14058_s30 + $0x604] sm:$0xf] }
 0x2a4   : > { %5804 = vmatpush.bf16.msra.mxu1 %v10614_v11  ;;  %v3642_v52 = vadd.f32 %v3641_v41, %v3629_v40  ;;  %v3654_v33 = vpop.f32.mrf.mxu1  ;;  %5815 = vmatpush.bf16.msra.mxu2 %v10774_v46  ;;  %v12711_v11 = vld [vmem:[%s14058_s30 + $0xf4] sm:$0xf0]  ;;  %v10742_v55 = vor.u32 %v12872_v31, %v10739_v54  ;;  %v10473_v40 = vld [vmem:[%s14058_s30 + $0x3e8] sm:$0xf]  ;;  %v11126_v41 = vor.u32 %v12968_v28, %v11123_v30  ;;  %v12912_v30 = vld [vmem:[%s14058_s30 + $0x744] sm:$0xf] }
 0x2a5   : > { %v10090_v22 = vor.u32 %v12711_v11, %v10089_v9  ;;  %v12920_v11 = vld [vmem:[%s14058_s30 + $0x784] sm:$0xf] }
 0x2a6   : > { %5792 = vmatmul.bf16.vlgmr.msra.gmra.mxu0 %v15122_v2  ;;  %v3655_v56 = vadd.f32 %v3654_v33, %v3642_v52  ;;  %v12924_v33 = vld [vmem:[%s14058_s30 + $0x7a4] sm:$0xf] }
 0x2a7   : > { %5836 = vmatpush.bf16.msrb.mxu0 %v11110_v14  ;;  %5805 = vmatmul.bf16.vlgmr.msra.gmra.mxu1 %v15127_v8  ;;  %v11030_v14 = vor.u32 %v12944_v60, %v11027_v4  ;;  %v10457_v60 = vld [vmem:[%s14058_s30 + $0x3c8] sm:$0xf]  ;;  %v12803_v4 = vld [vmem:[%s14058_s30 + $0x3d4] sm:$0xf0] }
 0x2a8   : > { %5849 = vmatpush.bf16.msrb.mxu1 %v11238_v27  ;;  %13414 = vtanh.f32 %v3655_v56  ;;  %5816 = vmatpush.bf16.msra.mxu2 %v10758_v61  ;;  %v11158_v27 = vor.u32 %v12976_v6, %v11155_v7  ;;  %v10329_v56 = vld [vmem:[%s14058_s30 + $0x2c8] sm:$0xf]  ;;  %v12771_v61 = vld [vmem:[%s14058_s30 + $0x2d4] sm:$0xf0]  ;;  %v10458_v9 = vor.u32 %v12803_v4, %v10457_v60 }
 0x2a9   : > { %v10041_v6 = vld [vmem:[%s14058_s30 + $0x88] sm:$0xf]  ;;  %v12699_v7 = vld [vmem:[%s14058_s30 + $0x94] sm:$0xf0]  ;;  %v10330_v54 = vor.u32 %v12771_v61, %v10329_v56 }
 0x2aa   : > { %v12755_v56 = vld [vmem:[%s14058_s30 + $0x254] sm:$0xf0]  ;;  %v9977_v60 = vld [vmem:[%s14058_s30 + $0x8] sm:$0xf] }
 0x2ab   : > { %5837 = vmatpush.bf16.msrb.mxu0 %v11094_v37  ;;  %v5611_v15 = vpop.f32.mrf.mxu2  ;;  %v3643_v36 = vpop.f32.mrf.mxu0  ;;  %v11139_v37 = vld [vmem:[%s14058_s30 + $0x930] sm:$0xf0]  ;;  %v12787_v61 = vld [vmem:[%s14058_s30 + $0x354] sm:$0xf0] }
 0x2ac   : > { %5850 = vmatpush.bf16.msrb.mxu1 %v11222_v29  ;;  %v5624_v34 = vpop.f32.mrf.mxu3  ;;  %v10979_v29 = vld [vmem:[%s14058_s30 + $0x7f0] sm:$0xf0]  ;;  %v3656_v63 = vpop.f32.mrf.mxu1  ;;  %5817 = vmatpush.bf16.msra.mxu2 %v10742_v55  ;;  %v12767_v55 = vld [vmem:[%s14058_s30 + $0x2b4] sm:$0xf0] }
 0x2ad   : > { %v15375_v35 = vadd.f32 %v5624_v34, %v5611_v15  ;;  %v10982_v0 = vor.u32 %v12932_v16, %v10979_v29  ;;  %v10313_v15 = vld [vmem:[%s14058_s30 + $0x2a8] sm:$0xf]  ;;  %v12695_v34 = vld [vmem:[%s14058_s30 + $0x74] sm:$0xf0]  ;;  %v12916_v16 = vld [vmem:[%s14058_s30 + $0x764] sm:$0xf] }
 0x2ae   : > { %v13415_v44 = vpop.eup %13414  ;;  %v10915_v29 = vld [vmem:[%s14058_s30 + $0x770] sm:$0xf0]  ;;  %v10297_v63 = vld [vmem:[%s14058_s30 + $0x288] sm:$0xf]  ;;  %v12683_v4 = vld [vmem:[%s14058_s30 + $0x14] sm:$0xf0] }
 0x2af   : > { %5838 = vmatpush.bf16.msrb.mxu0 %v11078_v19  ;;  %v11142_v19 = vor.u32 %v12972_v21, %v11139_v37  ;;  %v15383_v32 = vpack.c.bf16 %v13415_v44, %v13415_v44  ;;  %5818 = vmatmul.bf16.vlgmr.msra.gmra.mxu2 %v15193_v45  ;;  %v10025_v21 = vld [vmem:[%s14058_s30 + $0x68] sm:$0xf]  ;;  %v10442_v37 = vor.u32 %v12799_v20, %v10441_v18 }
 0x2b0   : > { %5851 = vmatpush.bf16.msrb.mxu1 %v11206_v26  ;;  %v10995_v26 = vld [vmem:[%s14058_s30 + $0x810] sm:$0xf0]  ;;  %5862 = vmatpush.bf16.msrb.mxu2 %v10090_v22  ;;  %v10314_v22 = vor.u32 %v12767_v55, %v10313_v15  ;;  %v10009_v44 = vld [vmem:[%s14058_s30 + $0x48] sm:$0xf] }
 0x2b1   : > { %5727 = vmatmul.bf16.vlgmr.msra.gmra.mxu3 %v15383_v32  ;;  %v10998_v46 = vor.u32 %v12936_v24, %v10995_v26  ;;  %v12795_v24 = vld [vmem:[%s14058_s30 + $0x394] sm:$0xf0]  ;;  %v10298_v26 = vor.u32 %v12763_v17, %v10297_v63  ;;  %v10867_v15 = vld [vmem:[%s14058_s30 + $0x710] sm:$0xf0] }
 0x2b2   : > { %5823 = vmatpush.bf16.msra.mxu3 %v10982_v0  ;;  %v10918_v0 = vor.u32 %v12916_v16, %v10915_v29  ;;  %v10426_v28 = vor.u32 %v12795_v24, %v10425_v13  ;;  %v10217_v29 = vld [vmem:[%s14058_s30 + $0x1e8] sm:$0xf]  ;;  %v12743_v63 = vld [vmem:[%s14058_s30 + $0x1f4] sm:$0xf0] }
 0x2b3   : > { %5839 = vmatpush.bf16.msrb.mxu0 %v11062_v25  ;;  %v12775_v25 = vld [vmem:[%s14058_s30 + $0x2f4] sm:$0xf0]  ;;  %v5613_v48 = vpop.f32.mrf.mxu2  ;;  %v10585_v13 = vld [vmem:[%s14058_s30 + $0x4c8] sm:$0xf] }
 0x2b4   : > { %5852 = vmatpush.bf16.msrb.mxu1 %v11190_v43  ;;  %v12807_v43 = vld [vmem:[%s14058_s30 + $0x3f4] sm:$0xf0]  ;;  %v5626_v50 = vpop.f32.mrf.mxu3  ;;  %v10346_v62 = vor.u32 %v12775_v25, %v10345_v39  ;;  %5863 = vmatpush.bf16.msrb.mxu2 %v10074_v51 }
 0x2b5   : > { %v10474_v52 = vor.u32 %v12807_v43, %v10473_v40  ;;  %v12759_v25 = vld [vmem:[%s14058_s30 + $0x274] sm:$0xf0]  ;;  %v10409_v40 = vld [vmem:[%s14058_s30 + $0x368] sm:$0xf] }
 0x2b6   : > { %5824 = vmatpush.bf16.msra.mxu3 %v10966_v49  ;;  %v12791_v43 = vld [vmem:[%s14058_s30 + $0x374] sm:$0xf0]  ;;  %v10282_v50 = vor.u32 %v12759_v25, %v10281_v38  ;;  %v10201_v38 = vld [vmem:[%s14058_s30 + $0x1c8] sm:$0xf] }
 0x2b7   : > { %5840 = vmatpush.bf16.msrb.mxu0 %v11046_v53  ;;  %v10947_v53 = vld [vmem:[%s14058_s30 + $0x7b0] sm:$0xf0]  ;;  %v12687_v48 = vld [vmem:[%s14058_s30 + $0x34] sm:$0xf0]  ;;  %v10857_v25 = vld [vmem:[%s14058_s30 + $0x6e8] sm:$0xf] }
 0x2b8   : > { %5853 = vmatpush.bf16.msrb.mxu1 %v11174_v57  ;;  %v10058_v57 = vor.u32 %v12703_v47, %v10057_v23  ;;  %v10950_v31 = vor.u32 %v12924_v33, %v10947_v53  ;;  %v9993_v47 = vld [vmem:[%s14058_s30 + $0x28] sm:$0xf]  ;;  %v12835_v24 = vld [vmem:[%s14058_s30 + $0x4d4] sm:$0xf0] }
 0x2b9   : > { %v10265_v33 = vld [vmem:[%s14058_s30 + $0x248] sm:$0xf]  ;;  %v9994_v53 = vor.u32 %v12687_v48, %v9993_v47  ;;  %v12831_v47 = vld [vmem:[%s14058_s30 + $0x4b4] sm:$0xf0] }
 0x2ba   : > { %5864 = vmatpush.bf16.msrb.mxu2 %v10058_v57  ;;  %5825 = vmatpush.bf16.msra.mxu3 %v10950_v31  ;;  %v10393_v57 = vld [vmem:[%s14058_s30 + $0x348] sm:$0xf]  ;;  %v12839_v31 = vld [vmem:[%s14058_s30 + $0x4f4] sm:$0xf0] }
 0x2bb   : > { %5841 = vmatpush.bf16.msrb.mxu0 %v11030_v14  ;;  %v10931_v14 = vld [vmem:[%s14058_s30 + $0x790] sm:$0xf0] }
 0x2bc   : > { %5854 = vmatpush.bf16.msrb.mxu1 %v11158_v27  ;;  %v10042_v27 = vor.u32 %v12699_v7, %v10041_v6  ;;  %v10934_v36 = vor.u32 %v12920_v11, %v10931_v14  ;;  %v10601_v7 = vld [vmem:[%s14058_s30 + $0x4e8] sm:$0xf]  ;;  %v10394_v11 = vor.u32 %v12787_v61, %v10393_v57  ;;  %v12904_v14 = vld [vmem:[%s14058_s30 + $0x704] sm:$0xf]  ;;  %v12899_v61 = vld [vmem:[%s14058_s30 + $0x6d4] sm:$0xf0] }
 0x2bd   : > { %v10602_v16 = vor.u32 %v12839_v31, %v10601_v7  ;;  %v10870_v17 = vor.u32 %v12904_v14, %v10867_v15  ;;  %v10841_v57 = vld [vmem:[%s14058_s30 + $0x6c8] sm:$0xf]  ;;  %v12827_v7 = vld [vmem:[%s14058_s30 + $0x494] sm:$0xf0] }
 0x2be   : > { %5865 = vmatpush.bf16.msrb.mxu2 %v10042_v27  ;;  %5826 = vmatpush.bf16.msra.mxu3 %v10934_v36  ;;  %v10249_v27 = vld [vmem:[%s14058_s30 + $0x228] sm:$0xf] }
 0x2bf   : > { %5842 = vmatpush.bf16.msrb.mxu0 %v11014_v5  ;;  %v10026_v5 = vor.u32 %v12695_v34, %v10025_v21  ;;  %v9978_v21 = vor.u32 %v12683_v4, %v9977_v60  ;;  %v12751_v34 = vld [vmem:[%s14058_s30 + $0x234] sm:$0xf0]  ;;  %v10377_v36 = vld [vmem:[%s14058_s30 + $0x328] sm:$0xf] }
 0x2c0   : > { %5855 = vmatpush.bf16.msrb.mxu1 %v11142_v19  ;;  %v12691_v19 = vld [vmem:[%s14058_s30 + $0x54] sm:$0xf0]  ;;  %v10969_v60 = vld [vmem:[%s14058_s30 + $0x7c8] sm:$0xf] }
 0x2c1   : > { %v10010_v51 = vor.u32 %v12691_v19, %v10009_v44  ;;  %5779 = vmatmul.bf16.vlgmr.msrb.gmra.mxu3 %v15120_v59  ;;  %v10250_v44 = vor.u32 %v12751_v34, %v10249_v27  ;;  %v12931_v4 = vld [vmem:[%s14058_s30 + $0x7d4] sm:$0xf0]  ;;  %v10825_v27 = vld [vmem:[%s14058_s30 + $0x6a8] sm:$0xf] }
 0x2c2   : > { %5866 = vmatpush.bf16.msrb.mxu2 %v10026_v5  ;;  %5827 = vmatpush.bf16.msra.mxu3 %v10918_v0  ;;  %v10233_v0 = vld [vmem:[%s14058_s30 + $0x208] sm:$0xf]  ;;  %v10970_v14 = vor.u32 %v12931_v4, %v10969_v60  ;;  %v12823_v34 = vld [vmem:[%s14058_s30 + $0x474] sm:$0xf0] }
 0x2c3   : > { %5843 = vmatpush.bf16.msrb.mxu0 %v10998_v46  ;;  %v5637_v39 = vpop.f32.mrf.mxu0  ;;  %v10489_v60 = vld [vmem:[%s14058_s30 + $0x408] sm:$0xf]  ;;  %v12811_v4 = vld [vmem:[%s14058_s30 + $0x414] sm:$0xf0] }
 0x2c4   : > { %5856 = vmatpush.bf16.msrb.mxu1 %v11126_v41  ;;  %v5638_v46 = vadd.f32 %v5637_v39, %v15375_v35  ;;  %v5650_v23 = vpop.f32.mrf.mxu1  ;;  %v10902_v41 = vor.u32 %v12912_v30, %v10899_v1  ;;  %v12908_v35 = vld [vmem:[%s14058_s30 + $0x724] sm:$0xf]  ;;  %v10218_v30 = vor.u32 %v12743_v63, %v10217_v29  ;;  %v12779_v1 = vld [vmem:[%s14058_s30 + $0x314] sm:$0xf0] }
 0x2c5   : > { %v12739_v39 = vld [vmem:[%s14058_s30 + $0x1d4] sm:$0xf0] }
 0x2c6   : > { %5844 = vmatmul.bf16.vlgmr.msrb.gmra.mxu0 %v15314_v12  ;;  %v5651_v49 = vadd.f32 %v5650_v23, %v5638_v46  ;;  %5867 = vmatpush.bf16.msrb.mxu2 %v10010_v51  ;;  %v10586_v51 = vor.u32 %v12835_v24, %v10585_v13  ;;  %v12935_v46 = vld [vmem:[%s14058_s30 + $0x7f4] sm:$0xf0]  ;;  %v10569_v23 = vld [vmem:[%s14058_s30 + $0x4a8] sm:$0xf] }
 0x2c7   : > { %5888 = vmatpush.bf16.msra.mxu0 %v10346_v62  ;;  %5857 = vmatmul.bf16.vlgmr.msrb.gmra.mxu1 %v15383_v32  ;;  %v10410_v62 = vor.u32 %v12791_v43, %v10409_v40  ;;  %v12903_v40 = vld [vmem:[%s14058_s30 + $0x6f4] sm:$0xf0]  ;;  %v10985_v43 = vld [vmem:[%s14058_s30 + $0x7e8] sm:$0xf] }
 0x2c8   : > { %5901 = vmatpush.bf16.msra.mxu1 %v10474_v52  ;;  %v10883_v52 = vld [vmem:[%s14058_s30 + $0x730] sm:$0xf0]  ;;  %5828 = vmatpush.bf16.msra.mxu3 %v10902_v41  ;;  %v12891_v13 = vld [vmem:[%s14058_s30 + $0x694] sm:$0xf0]  ;;  %v10937_v24 = vld [vmem:[%s14058_s30 + $0x788] sm:$0xf] }
 0x2c9   : > { %v10886_v6 = vor.u32 %v12908_v35, %v10883_v52  ;;  %v10858_v35 = vor.u32 %v12903_v40, %v10857_v25  ;;  %v10185_v52 = vld [vmem:[%s14058_s30 + $0x1a8] sm:$0xf]  ;;  %v12887_v25 = vld [vmem:[%s14058_s30 + $0x674] sm:$0xf0] }
 0x2ca   : > { %5868 = vmatpush.bf16.msrb.mxu2 %v9994_v53  ;;  %v10986_v53 = vor.u32 %v12935_v46, %v10985_v43  ;;  %v10921_v40 = vld [vmem:[%s14058_s30 + $0x768] sm:$0xf]  ;;  %v12919_v46 = vld [vmem:[%s14058_s30 + $0x774] sm:$0xf0] }
 0x2cb   : > { %5889 = vmatpush.bf16.msra.mxu0 %v10330_v54  ;;  %v5663_v54 = vpop.f32.mrf.mxu2  ;;  %v5639_v20 = vpop.f32.mrf.mxu0 }
 0x2cc   : > { %5902 = vmatpush.bf16.msra.mxu1 %v10458_v9  ;;  %v10266_v9 = vor.u32 %v12755_v56, %v10265_v33  ;;  %v5664_v55 = vadd.f32 %v5663_v54, %v5651_v49  ;;  %v5676_v18 = vpop.f32.mrf.mxu3  ;;  %5829 = vmatpush.bf16.msra.mxu3 %v10886_v6  ;;  %v12735_v33 = vld [vmem:[%s14058_s30 + $0x1b4] sm:$0xf0]  ;;  %v10570_v56 = vor.u32 %v12831_v47, %v10569_v23  ;;  %v10553_v6 = vld [vmem:[%s14058_s30 + $0x488] sm:$0xf] }
 0x2cd   : > { %v10186_v31 = vor.u32 %v12735_v33, %v10185_v52  ;;  %v10842_v54 = vor.u32 %v12899_v61, %v10841_v57  ;;  %v10554_v15 = vor.u32 %v12827_v7, %v10553_v6  ;;  %v12927_v20 = vld [vmem:[%s14058_s30 + $0x7b4] sm:$0xf0]  ;;  %v10505_v23 = vld [vmem:[%s14058_s30 + $0x428] sm:$0xf]  ;;  %v10922_v33 = vor.u32 %v12919_v46, %v10921_v40 }
 0x2ce   : > { %v15449_v5 = vadd.f32 %v5676_v18, %v5664_v55  ;;  %5869 = vmatpush.bf16.msrb.mxu2 %v9978_v21  ;;  %v12895_v55 = vld [vmem:[%s14058_s30 + $0x6b4] sm:$0xf0]  ;;  %v10953_v18 = vld [vmem:[%s14058_s30 + $0x7a8] sm:$0xf] }
 0x2cf   : > { %5890 = vmatpush.bf16.msra.mxu0 %v10314_v22  ;;  %v12783_v22 = vld [vmem:[%s14058_s30 + $0x334] sm:$0xf0]  ;;  %v10537_v21 = vld [vmem:[%s14058_s30 + $0x468] sm:$0xf]  ;;  %v10954_v29 = vor.u32 %v12927_v20, %v10953_v18 }
 0x2d0   : > { %5903 = vmatpush.bf16.msra.mxu1 %v10442_v37  ;;  %v5652_v37 = vpop.f32.mrf.mxu1  ;;  %v10378_v19 = vor.u32 %v12783_v22, %v10377_v36  ;;  %5830 = vmatpush.bf16.msra.mxu3 %v10870_v17  ;;  %v10826_v22 = vor.u32 %v12895_v55, %v10825_v27  ;;  %v10538_v63 = vor.u32 %v12823_v34, %v10537_v21  ;;  %v10809_v17 = vld [vmem:[%s14058_s30 + $0x688] sm:$0xf]  ;;  %v12815_v47 = vld [vmem:[%s14058_s30 + $0x434] sm:$0xf0] }
 0x2d1   : > { %5870 = vmatmul.bf16.vlgmr.msrb.gmra.mxu2 %v15035_v3  ;;  %v10153_v37 = vld [vmem:[%s14058_s30 + $0x168] sm:$0xf]  ;;  %v12915_v61 = vld [vmem:[%s14058_s30 + $0x754] sm:$0xf0] }
 0x2d2   : > { %5914 = vmatpush.bf16.msra.mxu2 %v10602_v16  ;;  %v12727_v16 = vld [vmem:[%s14058_s30 + $0x174] sm:$0xf0]  ;;  %v10905_v57 = vld [vmem:[%s14058_s30 + $0x748] sm:$0xf] }
 0x2d3   : > { %5891 = vmatpush.bf16.msra.mxu0 %v10298_v26  ;;  %v12747_v26 = vld [vmem:[%s14058_s30 + $0x214] sm:$0xf0]  ;;  %v5665_v48 = vpop.f32.mrf.mxu2  ;;  %5831 = vmatmul.bf16.vlgmr.msra.gmra.mxu3 %v15189_v42  ;;  %v11113_v6 = vld [vmem:[%s14058_s30 + $0x8e8] sm:$0xf] }
 0x2d4   : > { %5904 = vmatpush.bf16.msra.mxu1 %v10426_v28  ;;  %v10361_v28 = vld [vmem:[%s14058_s30 + $0x308] sm:$0xf]  ;;  %v10234_v41 = vor.u32 %v12747_v26, %v10233_v0  ;;  %5875 = vmatpush.bf16.msrb.mxu3 %v10218_v30  ;;  %v12819_v0 = vld [vmem:[%s14058_s30 + $0x454] sm:$0xf0]  ;;  %v10154_v26 = vor.u32 %v12727_v16, %v10153_v37 }
 0x2d5   : > { %v10362_v49 = vor.u32 %v12779_v1, %v10361_v28  ;;  %v10810_v28 = vor.u32 %v12891_v13, %v10809_v17  ;;  %v10137_v30 = vld [vmem:[%s14058_s30 + $0x148] sm:$0xf]  ;;  %v12723_v1 = vld [vmem:[%s14058_s30 + $0x154] sm:$0xf0] }
 0x2d6   : > { %5915 = vmatpush.bf16.msra.mxu2 %v10586_v51  ;;  %v10793_v51 = vld [vmem:[%s14058_s30 + $0x668] sm:$0xf]  ;;  %v12967_v7 = vld [vmem:[%s14058_s30 + $0x8f4] sm:$0xf0] }
 0x2d7   : > { %5892 = vmatpush.bf16.msra.mxu0 %v10282_v50  ;;  %v5678_v50 = vpop.f32.mrf.mxu3  ;;  %v10761_v27 = vld [vmem:[%s14058_s30 + $0x628] sm:$0xf]  ;;  %v12879_v55 = vld [vmem:[%s14058_s30 + $0x634] sm:$0xf0]  ;;  %v11114_v20 = vor.u32 %v12967_v7, %v11113_v6  ;;  %v12701_v7 = vld [vmem:[%s14058_s30 + $0xac] sm:$0xf] }
 0x2d8   : > { %5905 = vmatpush.bf16.msra.mxu1 %v10410_v62  ;;  %v10202_v62 = vor.u32 %v12739_v39, %v10201_v38  ;;  %v10794_v50 = vor.u32 %v12887_v25, %v10793_v51  ;;  %v10889_v21 = vld [vmem:[%s14058_s30 + $0x728] sm:$0xf]  ;;  %v12911_v34 = vld [vmem:[%s14058_s30 + $0x734] sm:$0xf0]  ;;  %v10762_v17 = vor.u32 %v12879_v55, %v10761_v27  ;;  %v12741_v51 = vld [vmem:[%s14058_s30 + $0x1ec] sm:$0xf] }
 0x2d9   : > { %v11097_v37 = vld [vmem:[%s14058_s30 + $0x8c8] sm:$0xf]  ;;  %v12963_v16 = vld [vmem:[%s14058_s30 + $0x8d4] sm:$0xf0]  ;;  %v10219_v25 = vld [vmem:[%s14058_s30 + $0x1f8] sm:$0xf0] }
 0x2da   : > { %5876 = vmatpush.bf16.msrb.mxu3 %v10202_v62  ;;  %5916 = vmatpush.bf16.msra.mxu2 %v10570_v56  ;;  %v10121_v62 = vld [vmem:[%s14058_s30 + $0x128] sm:$0xf]  ;;  %v12883_v56 = vld [vmem:[%s14058_s30 + $0x654] sm:$0xf0] }
 0x2db   : > { %5893 = vmatpush.bf16.msra.mxu0 %v10266_v9  ;;  %v10169_v9 = vld [vmem:[%s14058_s30 + $0x188] sm:$0xf]  ;;  %v12959_v46 = vld [vmem:[%s14058_s30 + $0x8b4] sm:$0xf0] }
 0x2dc   : > { %5906 = vmatpush.bf16.msra.mxu1 %v10394_v11  ;;  %v12731_v11 = vld [vmem:[%s14058_s30 + $0x194] sm:$0xf0]  ;;  %v10745_v13 = vld [vmem:[%s14058_s30 + $0x608] sm:$0xf] }
 0x2dd   : > { %v10170_v36 = vor.u32 %v12731_v11, %v10169_v9  ;;  %v10105_v9 = vld [vmem:[%s14058_s30 + $0x108] sm:$0xf]  ;;  %v10906_v11 = vor.u32 %v12915_v61, %v10905_v57  ;;  %v12955_v57 = vld [vmem:[%s14058_s30 + $0x894] sm:$0xf0] }
 0x2de   : > { %5877 = vmatpush.bf16.msrb.mxu3 %v10186_v31  ;;  %5917 = vmatpush.bf16.msra.mxu2 %v10554_v15  ;;  %v12715_v15 = vld [vmem:[%s14058_s30 + $0x114] sm:$0xf0]  ;;  %v10681_v6 = vld [vmem:[%s14058_s30 + $0x588] sm:$0xf] }
 0x2df   : > { %5894 = vmatpush.bf16.msra.mxu0 %v10250_v44  ;;  %v12923_v44 = vld [vmem:[%s14058_s30 + $0x794] sm:$0xf0] }
 0x2e0   : > { %5907 = vmatpush.bf16.msra.mxu1 %v10378_v19  ;;  %v10521_v19 = vld [vmem:[%s14058_s30 + $0x448] sm:$0xf]  ;;  %v10938_v38 = vor.u32 %v12923_v44, %v10937_v24  ;;  %v10890_v24 = vor.u32 %v12911_v34, %v10889_v21  ;;  %v12875_v44 = vld [vmem:[%s14058_s30 + $0x614] sm:$0xf0]  ;;  %v12697_v34 = vld [vmem:[%s14058_s30 + $0x8c] sm:$0xf] }
 0x2e1   : > { %v10522_v39 = vor.u32 %v12819_v0, %v10521_v19  ;;  %v10873_v19 = vld [vmem:[%s14058_s30 + $0x708] sm:$0xf]  ;;  %v12907_v0 = vld [vmem:[%s14058_s30 + $0x714] sm:$0xf0]  ;;  %v10746_v40 = vor.u32 %v12875_v44, %v10745_v13 }
 0x2e2   : > { %5878 = vmatpush.bf16.msrb.mxu3 %v10170_v36  ;;  %5918 = vmatpush.bf16.msra.mxu2 %v10538_v63  ;;  %v10729_v36 = vld [vmem:[%s14058_s30 + $0x5e8] sm:$0xf]  ;;  %v10106_v63 = vor.u32 %v12715_v15, %v10105_v9  ;;  %v12859_v9 = vld [vmem:[%s14058_s30 + $0x594] sm:$0xf0] }
 0x2e3   : > { %5895 = vmatpush.bf16.msra.mxu0 %v10234_v41  ;;  %v5689_v43 = vpop.f32.mrf.mxu0  ;;  %v11049_v15 = vld [vmem:[%s14058_s30 + $0x868] sm:$0xf]  ;;  %v12951_v27 = vld [vmem:[%s14058_s30 + $0x874] sm:$0xf0] }
 0x2e4   : > { %5908 = vmatpush.bf16.msra.mxu1 %v10362_v49  ;;  %v5690_v48 = vadd.f32 %v5689_v43, %v15449_v5  ;;  %v5702_v41 = vpop.f32.mrf.mxu1  ;;  %v10138_v49 = vor.u32 %v12723_v1, %v10137_v30  ;;  %v10777_v5 = vld [vmem:[%s14058_s30 + $0x648] sm:$0xf]  ;;  %v12709_v1 = vld [vmem:[%s14058_s30 + $0xec] sm:$0xf] }
 0x2e5   : > { %v10713_v30 = vld [vmem:[%s14058_s30 + $0x5c8] sm:$0xf] }
 0x2e6   : > { %5896 = vmatmul.bf16.vlgmr.msra.gmra.mxu0 %v15118_v58  ;;  %5879 = vmatpush.bf16.msrb.mxu3 %v10154_v26  ;;  %v15504_v52 = vadd.f32 %v5702_v41, %v5690_v48  ;;  %v11081_v43 = vld [vmem:[%s14058_s30 + $0x8a8] sm:$0xf]  ;;  %v10222_v41 = vor.u32 %v12741_v51, %v10219_v25 }
 0x2e7   : > { %5940 = vmatpush.bf16.msrb.mxu0 %v10858_v35  ;;  %5909 = vmatmul.bf16.vlgmr.msra.gmra.mxu1 %v15120_v59  ;;  %v12719_v35 = vld [vmem:[%s14058_s30 + $0x134] sm:$0xf0]  ;;  %v10665_v21 = vld [vmem:[%s14058_s30 + $0x568] sm:$0xf] }
 0x2e8   : > { %5953 = vmatpush.bf16.msrb.mxu1 %v10986_v53  ;;  %5919 = vmatpush.bf16.msra.mxu2 %v10522_v39  ;;  %v10506_v53 = vor.u32 %v12815_v47, %v10505_v23  ;;  %v10122_v31 = vor.u32 %v12719_v35, %v10121_v62  ;;  %v12867_v39 = vld [vmem:[%s14058_s30 + $0x5d4] sm:$0xf0]  ;;  %v10874_v23 = vor.u32 %v12907_v0, %v10873_v19  ;;  %v10075_v62 = vld [vmem:[%s14058_s30 + $0xd8] sm:$0xf0]  ;;  %v10649_v19 = vld [vmem:[%s14058_s30 + $0x548] sm:$0xf] }
 0x2e9   : > { %v10714_v48 = vor.u32 %v12867_v39, %v10713_v30  ;;  %v11082_v35 = vor.u32 %v12959_v46, %v11081_v43  ;;  %v12693_v0 = vld [vmem:[%s14058_s30 + $0x6c] sm:$0xf]  ;;  %v10155_v39 = vld [vmem:[%s14058_s30 + $0x178] sm:$0xf0]  ;;  %v11017_v25 = vld [vmem:[%s14058_s30 + $0x828] sm:$0xf] }
 0x2ea   : > { %5880 = vmatpush.bf16.msrb.mxu3 %v10138_v49  ;;  %v10697_v49 = vld [vmem:[%s14058_s30 + $0x5a8] sm:$0xf] }
 0x2eb   : > { %5941 = vmatpush.bf16.msrb.mxu0 %v10842_v54  ;;  %v10778_v54 = vor.u32 %v12883_v56, %v10777_v5  ;;  %v5691_v18 = vpop.f32.mrf.mxu0  ;;  %v10203_v5 = vld [vmem:[%s14058_s30 + $0x1d8] sm:$0xf0]  ;;  %v11065_v56 = vld [vmem:[%s14058_s30 + $0x888] sm:$0xf] }
 0x2ec   : > { %5954 = vmatpush.bf16.msrb.mxu1 %v10970_v14  ;;  %5920 = vmatpush.bf16.msra.mxu2 %v10506_v53  ;;  %v10490_v14 = vor.u32 %v12811_v4, %v10489_v60  ;;  %v12737_v53 = vld [vmem:[%s14058_s30 + $0x1cc] sm:$0xf]  ;;  %v10682_v18 = vor.u32 %v12859_v9, %v10681_v6  ;;  %v10617_v6 = vld [vmem:[%s14058_s30 + $0x508] sm:$0xf] }
 0x2ed   : > { %v10206_v4 = vor.u32 %v12737_v53, %v10203_v5  ;;  %v11001_v53 = vld [vmem:[%s14058_s30 + $0x808] sm:$0xf]  ;;  %v12939_v5 = vld [vmem:[%s14058_s30 + $0x814] sm:$0xf0] }
 0x2ee   : > { %5881 = vmatpush.bf16.msrb.mxu3 %v10122_v31  ;;  %v10059_v31 = vld [vmem:[%s14058_s30 + $0xb8] sm:$0xf0]  ;;  %v11002_v9 = vor.u32 %v12939_v5, %v11001_v53 }
 0x2ef   : > { %5942 = vmatpush.bf16.msrb.mxu0 %v10826_v22  ;;  %v12871_v22 = vld [vmem:[%s14058_s30 + $0x5f4] sm:$0xf0]  ;;  %v10062_v55 = vor.u32 %v12701_v7, %v10059_v31  ;;  %v12685_v7 = vld [vmem:[%s14058_s30 + $0x2c] sm:$0xf]  ;;  %v9995_v31 = vld [vmem:[%s14058_s30 + $0x38] sm:$0xf0] }
 0x2f0   : > { %5955 = vmatpush.bf16.msrb.mxu1 %v10954_v29  ;;  %v5704_v29 = vpop.f32.mrf.mxu1  ;;  %5921 = vmatpush.bf16.msra.mxu2 %v10490_v14  ;;  %v10730_v26 = vor.u32 %v12871_v22, %v10729_v36  ;;  %v10187_v14 = vld [vmem:[%s14058_s30 + $0x1b8] sm:$0xf0]  ;;  %v11050_v22 = vor.u32 %v12951_v27, %v11049_v15 }
 0x2f1   : > { %v10043_v36 = vld [vmem:[%s14058_s30 + $0x98] sm:$0xf0] }
 0x2f2   : > { %5882 = vmatpush.bf16.msrb.mxu3 %v10106_v63  ;;  %v10171_v29 = vld [vmem:[%s14058_s30 + $0x198] sm:$0xf0]  ;;  %v11033_v63 = vld [vmem:[%s14058_s30 + $0x848] sm:$0xf]  ;;  %v10046_v13 = vor.u32 %v12697_v34, %v10043_v36  ;;  %v12769_v34 = vld [vmem:[%s14058_s30 + $0x2cc] sm:$0xf] }
 0x2f3   : > { %5943 = vmatpush.bf16.msrb.mxu0 %v10810_v28  ;;  %v11098_v28 = vor.u32 %v12963_v16, %v11097_v37  ;;  %5922 = vmatmul.bf16.vlgmr.msra.gmra.mxu2 %v15122_v2  ;;  %v12855_v37 = vld [vmem:[%s14058_s30 + $0x574] sm:$0xf0]  ;;  %v12729_v16 = vld [vmem:[%s14058_s30 + $0x18c] sm:$0xf]  ;;  %v10123_v15 = vld [vmem:[%s14058_s30 + $0x138] sm:$0xf0] }
 0x2f4   : > { %5956 = vmatpush.bf16.msrb.mxu1 %v10938_v38  ;;  %5966 = vmatpush.bf16.msrb.mxu2 %v11114_v20  ;;  %v10091_v38 = vld [vmem:[%s14058_s30 + $0xf8] sm:$0xf0]  ;;  %v10174_v44 = vor.u32 %v12729_v16, %v10171_v29 }
 0x2f5   : > { %v10094_v47 = vor.u32 %v12709_v1, %v10091_v38  ;;  %5883 = vmatmul.bf16.vlgmr.msrb.gmra.mxu3 %v15040_v10  ;;  %v12851_v1 = vld [vmem:[%s14058_s30 + $0x554] sm:$0xf0]  ;;  %v12725_v38 = vld [vmem:[%s14058_s30 + $0x16c] sm:$0xf]  ;;  %v10331_v36 = vld [vmem:[%s14058_s30 + $0x2d8] sm:$0xf0] }
 0x2f6   : > { %5927 = vmatpush.bf16.msra.mxu3 %v10730_v26  ;;  %v10027_v26 = vld [vmem:[%s14058_s30 + $0x78] sm:$0xf0] }
 0x2f7   : > { %5944 = vmatpush.bf16.msrb.mxu0 %v10794_v50  ;;  %v12705_v50 = vld [vmem:[%s14058_s30 + $0xcc] sm:$0xf]  ;;  %v10030_v46 = vor.u32 %v12693_v0, %v10027_v26  ;;  %v9979_v29 = vld [vmem:[%s14058_s30 + $0x18] sm:$0xf0]  ;;  %v10334_v0 = vor.u32 %v12769_v34, %v10331_v36  ;;  %v12995_v26 = vld [vmem:[%s14058_s30 + $0x9d4] sm:$0xf0] }
 0x2f8   : > { %5957 = vmatpush.bf16.msrb.mxu1 %v10922_v33  ;;  %5967 = vmatpush.bf16.msrb.mxu2 %v11098_v28  ;;  %v12863_v33 = vld [vmem:[%s14058_s30 + $0x5b4] sm:$0xf0]  ;;  %v10078_v61 = vor.u32 %v12705_v50, %v10075_v62  ;;  %v10683_v34 = vld [vmem:[%s14058_s30 + $0x598] sm:$0xf0]  ;;  %v12753_v36 = vld [vmem:[%s14058_s30 + $0x24c] sm:$0xf] }
 0x2f9   : > { %v10698_v60 = vor.u32 %v12863_v33, %v10697_v49  ;;  %v10011_v49 = vld [vmem:[%s14058_s30 + $0x58] sm:$0xf0]  ;;  %v12847_v62 = vld [vmem:[%s14058_s30 + $0x534] sm:$0xf0] }
 0x2fa   : > { %5928 = vmatpush.bf16.msra.mxu3 %v10714_v48  ;;  %v10633_v48 = vld [vmem:[%s14058_s30 + $0x528] sm:$0xf]  ;;  %v10139_v33 = vld [vmem:[%s14058_s30 + $0x158] sm:$0xf0] }
 0x2fb   : > { %5945 = vmatpush.bf16.msrb.mxu0 %v10778_v54  ;;  %v11066_v54 = vor.u32 %v12955_v57, %v11065_v56  ;;  %v12773_v57 = vld [vmem:[%s14058_s30 + $0x2ec] sm:$0xf] }
 0x2fc   : > { %5958 = vmatpush.bf16.msrb.mxu1 %v10906_v11  ;;  %5968 = vmatpush.bf16.msrb.mxu2 %v11082_v35  ;;  %v12733_v11 = vld [vmem:[%s14058_s30 + $0x1ac] sm:$0xf] }
 0x2fd   : > { %v10190_v20 = vor.u32 %v12733_v11, %v10187_v14  ;;  %v12721_v35 = vld [vmem:[%s14058_s30 + $0x14c] sm:$0xf]  ;;  %v12843_v11 = vld [vmem:[%s14058_s30 + $0x514] sm:$0xf0] }
 0x2fe   : > { %5929 = vmatpush.bf16.msra.mxu3 %v10698_v60  ;;  %v10634_v60 = vor.u32 %v12847_v62, %v10633_v48  ;;  %v12717_v14 = vld [vmem:[%s14058_s30 + $0x12c] sm:$0xf]  ;;  %v10587_v48 = vld [vmem:[%s14058_s30 + $0x4d8] sm:$0xf0] }
 0x2ff   : > { %5946 = vmatpush.bf16.msrb.mxu0 %v10762_v17  ;;  %v12947_v17 = vld [vmem:[%s14058_s30 + $0x854] sm:$0xf0]  ;;  %v10126_v16 = vor.u32 %v12717_v14, %v10123_v15  ;;  %v10715_v62 = vld [vmem:[%s14058_s30 + $0x5d8] sm:$0xf0]  ;;  %v11177_v15 = vld [vmem:[%s14058_s30 + $0x968] sm:$0xf] }
 0x300   : > { %5959 = vmatpush.bf16.msrb.mxu1 %v10890_v24  ;;  %5969 = vmatpush.bf16.msrb.mxu2 %v11066_v54  ;;  %v10666_v24 = vor.u32 %v12855_v37, %v10665_v21  ;;  %v11034_v30 = vor.u32 %v12947_v17, %v11033_v63  ;;  %v9998_v21 = vor.u32 %v12685_v7, %v9995_v31  ;;  %v12713_v63 = vld [vmem:[%s14058_s30 + $0x10c] sm:$0xf]  ;;  %v10107_v17 = vld [vmem:[%s14058_s30 + $0x118] sm:$0xf0] }
 0x301   : > { %v10618_v37 = vor.u32 %v12843_v11, %v10617_v6  ;;  %v12987_v6 = vld [vmem:[%s14058_s30 + $0x994] sm:$0xf0]  ;;  %v12861_v7 = vld [vmem:[%s14058_s30 + $0x5ac] sm:$0xf]  ;;  %v10699_v31 = vld [vmem:[%s14058_s30 + $0x5b8] sm:$0xf0] }
 0x302   : > { %5930 = vmatpush.bf16.msra.mxu3 %v10682_v18  ;;  %v11241_v18 = vld [vmem:[%s14058_s30 + $0x9e8] sm:$0xf]  ;;  %v10702_v14 = vor.u32 %v12861_v7, %v10699_v31  ;;  %v12971_v7 = vld [vmem:[%s14058_s30 + $0x914] sm:$0xf0]  ;;  %v12845_v31 = vld [vmem:[%s14058_s30 + $0x52c] sm:$0xf] }
 0x303   : > { %5947 = vmatpush.bf16.msrb.mxu0 %v10746_v40  ;;  %v5741_v28 = vpop.f32.mrf.mxu0  ;;  %v12943_v40 = vld [vmem:[%s14058_s30 + $0x834] sm:$0xf0] }
 0x304   : > { %5960 = vmatpush.bf16.msrb.mxu1 %v10874_v23  ;;  %5970 = vmatpush.bf16.msrb.mxu2 %v11050_v22  ;;  %v5754_v51 = vpop.f32.mrf.mxu1  ;;  %v10650_v23 = vor.u32 %v12851_v1, %v10649_v19  ;;  %v11018_v50 = vor.u32 %v12943_v40, %v11017_v25  ;;  %v12681_v22 = vld [vmem:[%s14058_s30 + $0xc] sm:$0xf]  ;;  %v10603_v19 = vld [vmem:[%s14058_s30 + $0x4f8] sm:$0xf0] }
 0x305   : > { %v15572_v43 = vadd.f32 %v5754_v51, %v5741_v28  ;;  %v12869_v28 = vld [vmem:[%s14058_s30 + $0x5ec] sm:$0xf]  ;;  %v9982_v1 = vor.u32 %v12681_v22, %v9979_v29  ;;  %v10110_v51 = vor.u32 %v12713_v63, %v10107_v17  ;;  %v10267_v22 = vld [vmem:[%s14058_s30 + $0x258] sm:$0xf0]  ;;  %v11161_v63 = vld [vmem:[%s14058_s30 + $0x948] sm:$0xf] }
 0x306   : > { %5948 = vmatmul.bf16.vlgmr.msrb.gmra.mxu0 %v15193_v45  ;;  %5931 = vmatpush.bf16.msra.mxu3 %v10666_v24  ;;  %v11225_v24 = vld [vmem:[%s14058_s30 + $0x9c8] sm:$0xf]  ;;  %v12821_v17 = vld [vmem:[%s14058_s30 + $0x46c] sm:$0xf] }
 0x307   : > { %5992 = vmatpush.bf16.msra.mxu0 %v10094_v47  ;;  %5961 = vmatmul.bf16.vlgmr.msrb.gmra.mxu1 %v15189_v42  ;;  %v10158_v47 = vor.u32 %v12725_v38, %v10155_v39  ;;  %v12765_v38 = vld [vmem:[%s14058_s30 + $0x2ac] sm:$0xf]  ;;  %v10315_v39 = vld [vmem:[%s14058_s30 + $0x2b8] sm:$0xf0]  ;;  %v11226_v40 = vor.u32 %v12995_v26, %v11225_v24 }
 0x308   : > { %6005 = vmatpush.bf16.msra.mxu1 %v10222_v41  ;;  %v12689_v41 = vld [vmem:[%s14058_s30 + $0x4c] sm:$0xf]  ;;  %5971 = vmatpush.bf16.msrb.mxu2 %v11034_v30  ;;  %v10731_v30 = vld [vmem:[%s14058_s30 + $0x5f8] sm:$0xf0] }
 0x309   : > { %v10014_v56 = vor.u32 %v12689_v41, %v10011_v49  ;;  %v10318_v41 = vor.u32 %v12765_v38, %v10315_v39  ;;  %v12991_v49 = vld [vmem:[%s14058_s30 + $0x9b4] sm:$0xf0]  ;;  %v10667_v26 = vld [vmem:[%s14058_s30 + $0x578] sm:$0xf0] }
 0x30a   : > { %5932 = vmatpush.bf16.msra.mxu3 %v10650_v23  ;;  %v11209_v23 = vld [vmem:[%s14058_s30 + $0x9a8] sm:$0xf] }
 0x30b   : > { %5993 = vmatpush.bf16.msra.mxu0 %v10078_v61  ;;  %v10347_v61 = vld [vmem:[%s14058_s30 + $0x2f8] sm:$0xf0]  ;;  %v5743_v54 = vpop.f32.mrf.mxu0  ;;  %v11210_v5 = vor.u32 %v12991_v49, %v11209_v23 }
 0x30c   : > { %6006 = vmatpush.bf16.msra.mxu1 %v10206_v4  ;;  %v10142_v4 = vor.u32 %v12721_v35, %v10139_v33  ;;  %5972 = vmatpush.bf16.msrb.mxu2 %v11018_v50  ;;  %v5756_v27 = vpop.f32.mrf.mxu1  ;;  %v12865_v50 = vld [vmem:[%s14058_s30 + $0x5cc] sm:$0xf]  ;;  %v10299_v33 = vld [vmem:[%s14058_s30 + $0x298] sm:$0xf0] }
 0x30d   : > { %v12761_v35 = vld [vmem:[%s14058_s30 + $0x28c] sm:$0xf]  ;;  %v10651_v49 = vld [vmem:[%s14058_s30 + $0x558] sm:$0xf0] }
 0x30e   : > { %5933 = vmatpush.bf16.msra.mxu3 %v10634_v60  ;;  %v10571_v60 = vld [vmem:[%s14058_s30 + $0x4b8] sm:$0xf0]  ;;  %v12757_v54 = vld [vmem:[%s14058_s30 + $0x26c] sm:$0xf] }
 0x30f   : > { %5994 = vmatpush.bf16.msra.mxu0 %v10062_v55  ;;  %v10350_v55 = vor.u32 %v12773_v57, %v10347_v61  ;;  %v11193_v57 = vld [vmem:[%s14058_s30 + $0x988] sm:$0xf]  ;;  %v12829_v61 = vld [vmem:[%s14058_s30 + $0x4ac] sm:$0xf] }
 0x310   : > { %6007 = vmatpush.bf16.msra.mxu1 %v10190_v20  ;;  %v12999_v20 = vld [vmem:[%s14058_s30 + $0x9f4] sm:$0xf0]  ;;  %5973 = vmatpush.bf16.msrb.mxu2 %v11002_v9  ;;  %v10283_v9 = vld [vmem:[%s14058_s30 + $0x278] sm:$0xf0]  ;;  %v10574_v11 = vor.u32 %v12829_v61, %v10571_v60  ;;  %v12825_v27 = vld [vmem:[%s14058_s30 + $0x48c] sm:$0xf] }
 0x311   : > { %v12813_v61 = vld [vmem:[%s14058_s30 + $0x42c] sm:$0xf]  ;;  %v10507_v60 = vld [vmem:[%s14058_s30 + $0x438] sm:$0xf0] }
 0x312   : > { %5934 = vmatpush.bf16.msra.mxu3 %v10618_v37 }
 0x313   : > { %5995 = vmatpush.bf16.msra.mxu0 %v10046_v13  ;;  %v11242_v13 = vor.u32 %v12999_v20, %v11241_v18  ;;  %5974 = vmatmul.bf16.vlgmr.msrb.gmra.mxu2 %v15314_v12  ;;  %v10286_v18 = vor.u32 %v12757_v54, %v10283_v9  ;;  %v12983_v20 = vld [vmem:[%s14058_s30 + $0x974] sm:$0xf0]  ;;  %v10635_v54 = vld [vmem:[%s14058_s30 + $0x538] sm:$0xf0] }
 0x314   : > { %6008 = vmatpush.bf16.msra.mxu1 %v10174_v44  ;;  %v12837_v44 = vld [vmem:[%s14058_s30 + $0x4ec] sm:$0xf]  ;;  %6018 = vmatpush.bf16.msra.mxu2 %v10350_v55  ;;  %v10555_v55 = vld [vmem:[%s14058_s30 + $0x498] sm:$0xf0] }
 0x315   : > { %v10606_v25 = vor.u32 %v12837_v44, %v10603_v19  ;;  %5935 = vmatmul.bf16.vlgmr.msra.gmra.mxu3 %v15127_v8  ;;  %v10558_v37 = vor.u32 %v12825_v27, %v10555_v55  ;;  %v10270_v44 = vor.u32 %v12753_v36, %v10267_v22  ;;  %v12979_v19 = vld [vmem:[%s14058_s30 + $0x954] sm:$0xf0]  ;;  %v12897_v27 = vld [vmem:[%s14058_s30 + $0x6cc] sm:$0xf]  ;;  %v10843_v55 = vld [vmem:[%s14058_s30 + $0x6d8] sm:$0xf0] }
 0x316   : > { %5979 = vmatpush.bf16.msrb.mxu3 %v11242_v13  ;;  %v10539_v13 = vld [vmem:[%s14058_s30 + $0x478] sm:$0xf0]  ;;  %v11162_v39 = vor.u32 %v12979_v19, %v11161_v63  ;;  %v12841_v36 = vld [vmem:[%s14058_s30 + $0x50c] sm:$0xf] }
 0x317   : > { %5996 = vmatpush.bf16.msra.mxu0 %v10030_v46  ;;  %v10734_v46 = vor.u32 %v12869_v28, %v10731_v30  ;;  %v12749_v30 = vld [vmem:[%s14058_s30 + $0x22c] sm:$0xf]  ;;  %v10542_v38 = vor.u32 %v12821_v17, %v10539_v13  ;;  %v10619_v22 = vld [vmem:[%s14058_s30 + $0x518] sm:$0xf0]  ;;  %v10846_v13 = vor.u32 %v12897_v27, %v10843_v55 }
 0x318   : > { %6009 = vmatpush.bf16.msra.mxu1 %v10158_v47  ;;  %v12833_v47 = vld [vmem:[%s14058_s30 + $0x4cc] sm:$0xf]  ;;  %6019 = vmatpush.bf16.msra.mxu2 %v10334_v0  ;;  %v11115_v17 = vld [vmem:[%s14058_s30 + $0x8f8] sm:$0xf0] }
 0x319   : > { %v10590_v53 = vor.u32 %v12833_v47, %v10587_v48  ;;  %v12853_v0 = vld [vmem:[%s14058_s30 + $0x56c] sm:$0xf]  ;;  %v12975_v48 = vld [vmem:[%s14058_s30 + $0x934] sm:$0xf0]  ;;  %v10411_v27 = vld [vmem:[%s14058_s30 + $0x378] sm:$0xf0] }
 0x31a   : > { %5980 = vmatpush.bf16.msrb.mxu3 %v11226_v40  ;;  %v12817_v40 = vld [vmem:[%s14058_s30 + $0x44c] sm:$0xf]  ;;  %v11195_v55 = vld [vmem:[%s14058_s30 + $0x998] sm:$0xf0] }
 0x31b   : > { %5997 = vmatpush.bf16.msra.mxu0 %v10014_v56  ;;  %v10718_v56 = vor.u32 %v12865_v50, %v10715_v62  ;;  %v12745_v50 = vld [vmem:[%s14058_s30 + $0x20c] sm:$0xf]  ;;  %v10235_v62 = vld [vmem:[%s14058_s30 + $0x218] sm:$0xf0] }
 0x31c   : > { %6010 = vmatpush.bf16.msra.mxu1 %v10142_v4  ;;  %6020 = vmatpush.bf16.msra.mxu2 %v10318_v41  ;;  %v10302_v4 = vor.u32 %v12761_v35, %v10299_v33  ;;  %v12849_v41 = vld [vmem:[%s14058_s30 + $0x54c] sm:$0xf] }
 0x31d   : > { %v12901_v33 = vld [vmem:[%s14058_s30 + $0x6ec] sm:$0xf] }
 0x31e   : > { %5981 = vmatpush.bf16.msrb.mxu3 %v11210_v5  ;;  %v12965_v63 = vld [vmem:[%s14058_s30 + $0x8ec] sm:$0xf] }
 0x31f   : > { %5998 = vmatpush.bf16.msra.mxu0 %v9998_v21  ;;  %v12857_v21 = vld [vmem:[%s14058_s30 + $0x58c] sm:$0xf] }
 0x320   : > { %6011 = vmatpush.bf16.msra.mxu1 %v10126_v16  ;;  %6021 = vmatpush.bf16.msra.mxu2 %v10302_v4  ;;  %v11178_v16 = vor.u32 %v12983_v20, %v11177_v15  ;;  %v10686_v29 = vor.u32 %v12857_v21, %v10683_v34  ;;  %v10510_v15 = vor.u32 %v12813_v61, %v10507_v60  ;;  %v10491_v34 = vld [vmem:[%s14058_s30 + $0x418] sm:$0xf0]  ;;  %v12997_v19 = vld [vmem:[%s14058_s30 + $0x9ec] sm:$0xf] }
 0x321   : > { %v10638_v21 = vor.u32 %v12845_v31, %v10635_v54  ;;  %v10427_v60 = vld [vmem:[%s14058_s30 + $0x398] sm:$0xf0] }
 0x322   : > { %v10795_v31 = vld [vmem:[%s14058_s30 + $0x678] sm:$0xf0] }
 0x323   : > { %5999 = vmatpush.bf16.msra.mxu0 %v9982_v1  ;;  %v15639_v24 = vpop.f32.mrf.mxu0  ;;  %v10251_v1 = vld [vmem:[%s14058_s30 + $0x238] sm:$0xf0] }
 0x324   : > { %6012 = vmatpush.bf16.msra.mxu1 %v10110_v51  ;;  %6022 = vmatpush.bf16.msra.mxu2 %v10286_v18  ;;  %v15644_v28 = vpop.f32.mrf.mxu1  ;;  %v10670_v51 = vor.u32 %v12853_v0, %v10667_v26  ;;  %v10254_v47 = vor.u32 %v12749_v30, %v10251_v1  ;;  %v12809_v18 = vld [vmem:[%s14058_s30 + $0x40c] sm:$0xf]  ;;  %v11243_v0 = vld [vmem:[%s14058_s30 + $0x9f8] sm:$0xf0] }
 0x325   : > { %v10494_v26 = vor.u32 %v12809_v18, %v10491_v34  ;;  %v12893_v30 = vld [vmem:[%s14058_s30 + $0x6ac] sm:$0xf]  ;;  %v10827_v1 = vld [vmem:[%s14058_s30 + $0x6b8] sm:$0xf0] }
 0x326   : > { %6000 = vmatmul.bf16.vlgmr.msra.gmra.mxu0 %v15035_v3  ;;  %v11194_v3 = vor.u32 %v12987_v6, %v11193_v57  ;;  %v11129_v57 = vld [vmem:[%s14058_s30 + $0x908] sm:$0xf]  ;;  %v10238_v6 = vor.u32 %v12745_v50, %v10235_v62  ;;  %v12889_v50 = vld [vmem:[%s14058_s30 + $0x68c] sm:$0xf] }
 0x327   : > { %6044 = vmatpush.bf16.msrb.mxu0 %v10606_v25  ;;  %6013 = vmatmul.bf16.vlgmr.msra.gmra.mxu1 %v15040_v10  ;;  %v15629_v10 = vpop.f32.mrf.mxu2  ;;  %v11145_v25 = vld [vmem:[%s14058_s30 + $0x928] sm:$0xf]  ;;  %v11130_v20 = vor.u32 %v12971_v7, %v11129_v57  ;;  %v11083_v57 = vld [vmem:[%s14058_s30 + $0x8b8] sm:$0xf0]  ;;  %v12885_v7 = vld [vmem:[%s14058_s30 + $0x66c] sm:$0xf] }
 0x328   : > { %6057 = vmatpush.bf16.msrb.mxu1 %v10734_v46  ;;  %5982 = vmatpush.bf16.msrb.mxu3 %v11194_v3  ;;  %v10523_v46 = vld [vmem:[%s14058_s30 + $0x458] sm:$0xf0]  ;;  %v11146_v5 = vor.u32 %v12975_v48, %v11145_v25  ;;  %v12805_v3 = vld [vmem:[%s14058_s30 + $0x3ec] sm:$0xf]  ;;  %v11246_v25 = vor.u32 %v12997_v19, %v11243_v0 }
 0x329   : > { %6023 = vmatpush.bf16.msra.mxu2 %v10270_v44  ;;  %v10526_v35 = vor.u32 %v12817_v40, %v10523_v46  ;;  %v10459_v44 = vld [vmem:[%s14058_s30 + $0x3d8] sm:$0xf0]  ;;  %v12797_v40 = vld [vmem:[%s14058_s30 + $0x3ac] sm:$0xf] }
 0x32a   : > { %v12961_v46 = vld [vmem:[%s14058_s30 + $0x8cc] sm:$0xf]  ;;  %v10443_v48 = vld [vmem:[%s14058_s30 + $0x3b8] sm:$0xf0] }
 0x32b   : > { %6045 = vmatpush.bf16.msrb.mxu0 %v10590_v53  ;;  %v10859_v53 = vld [vmem:[%s14058_s30 + $0x6f8] sm:$0xf0]  ;;  %v5795_v4 = vpop.f32.mrf.mxu0  ;;  %v12881_v18 = vld [vmem:[%s14058_s30 + $0x64c] sm:$0xf] }
 0x32c   : > { %6058 = vmatpush.bf16.msrb.mxu1 %v10718_v56  ;;  %5983 = vmatpush.bf16.msrb.mxu3 %v11178_v16  ;;  %v10654_v56 = vor.u32 %v12849_v41, %v10651_v49  ;;  %v5808_v9 = vpop.f32.mrf.mxu1  ;;  %v12993_v41 = vld [vmem:[%s14058_s30 + $0x9cc] sm:$0xf]  ;;  %v11227_v49 = vld [vmem:[%s14058_s30 + $0x9d8] sm:$0xf0] }
 0x32d   : > { %6024 = vmatpush.bf16.msra.mxu2 %v10254_v47  ;;  %v10830_v47 = vor.u32 %v12893_v30, %v10827_v1  ;;  %v12989_v4 = vld [vmem:[%s14058_s30 + $0x9ac] sm:$0xf]  ;;  %v10395_v19 = vld [vmem:[%s14058_s30 + $0x358] sm:$0xf0] }
 0x32e   : > { %v3668_v34 = vld [vmem:[#allocation2 + $0x10] sm:$0xff] }
 0x32f   : > { %6046 = vmatpush.bf16.msrb.mxu0 %v10574_v11  ;;  %v5717_v23 = vpop.f32.mrf.mxu2  ;;  %v10862_v11 = vor.u32 %v12901_v33, %v10859_v53  ;;  %v10446_v33 = vor.u32 %v12797_v40, %v10443_v48  ;;  %v11230_v53 = vor.u32 %v12993_v41, %v11227_v49  ;;  %v12981_v0 = vld [vmem:[%s14058_s30 + $0x96c] sm:$0xf]  ;;  %v11035_v41 = vld [vmem:[%s14058_s30 + $0x858] sm:$0xf0] }
 0x330   : > { %6059 = vmatpush.bf16.msrb.mxu1 %v10702_v14  ;;  %5984 = vmatpush.bf16.msrb.mxu3 %v11162_v39  ;;  %v10475_v14 = vld [vmem:[%s14058_s30 + $0x3f8] sm:$0xf0]  ;;  %v11118_v39 = vor.u32 %v12965_v63, %v11115_v17  ;;  %v12785_v63 = vld [vmem:[%s14058_s30 + $0x34c] sm:$0xf] }
 0x331   : > { %6025 = vmatpush.bf16.msra.mxu2 %v10238_v6  ;;  %v10478_v16 = vor.u32 %v12805_v3, %v10475_v14  ;;  %v11099_v23 = vld [vmem:[%s14058_s30 + $0x8d8] sm:$0xf0]  ;;  %v12953_v3 = vld [vmem:[%s14058_s30 + $0x88c] sm:$0xf] }
 0x332   : > { %v11102_v62 = vor.u32 %v12961_v46, %v11099_v23  ;;  %v11211_v6 = vld [vmem:[%s14058_s30 + $0x9b8] sm:$0xf0]  ;;  %v12949_v17 = vld [vmem:[%s14058_s30 + $0x86c] sm:$0xf]  ;;  %v10398_v46 = vor.u32 %v12785_v63, %v10395_v19 }
 0x333   : > { %6047 = vmatpush.bf16.msrb.mxu0 %v10558_v37  ;;  %v11214_v9 = vor.u32 %v12989_v4, %v11211_v6  ;;  %v11067_v14 = vld [vmem:[%s14058_s30 + $0x898] sm:$0xf0]  ;;  %v12781_v40 = vld [vmem:[%s14058_s30 + $0x32c] sm:$0xf] }
 0x334   : > { %6060 = vmatpush.bf16.msrb.mxu1 %v10686_v29  ;;  %5985 = vmatpush.bf16.msrb.mxu3 %v11146_v5  ;;  %v12801_v29 = vld [vmem:[%s14058_s30 + $0x3cc] sm:$0xf] }
 0x335   : > { %6070 = vmatpush.bf16.msrb.mxu2 %v10862_v11  ;;  %v12793_v5 = vld [vmem:[%s14058_s30 + $0x38c] sm:$0xf] }
 0x336   : > { %6026 = vmatmul.bf16.vlgmr.msra.gmra.mxu2 %v15118_v58  ;;  %v10811_v58 = vld [vmem:[%s14058_s30 + $0x698] sm:$0xf0]  ;;  %v12789_v11 = vld [vmem:[%s14058_s30 + $0x36c] sm:$0xf] }
 0x337   : > { %6048 = vmatpush.bf16.msrb.mxu0 %v10542_v38  ;;  %v15672_v37 = vpop.f32.mrf.mxu2  ;;  %v10622_v38 = vor.u32 %v12841_v36, %v10619_v22  ;;  %v10814_v61 = vor.u32 %v12889_v50, %v10811_v58  ;;  %v11070_v36 = vor.u32 %v12953_v3, %v11067_v14  ;;  %v5728_v22 = vpop.f32.mrf.mxu3  ;;  %v12945_v48 = vld [vmem:[%s14058_s30 + $0x84c] sm:$0xf]  ;;  %v11163_v58 = vld [vmem:[%s14058_s30 + $0x958] sm:$0xf0] }
 0x338   : > { %6061 = vmatpush.bf16.msrb.mxu1 %v10670_v51  ;;  %5986 = vmatpush.bf16.msrb.mxu3 %v11130_v20  ;;  %v10462_v51 = vor.u32 %v12801_v29, %v10459_v44  ;;  %v10779_v20 = vld [vmem:[%s14058_s30 + $0x658] sm:$0xf0]  ;;  %v12977_v50 = vld [vmem:[%s14058_s30 + $0x94c] sm:$0xf]  ;;  %v5768_v63 = vadd.f32 %v15672_v37, %v15572_v43 }
 0x339   : > { %6071 = vmatpush.bf16.msrb.mxu2 %v10846_v13  ;;  %v11051_v13 = vld [vmem:[%s14058_s30 + $0x878] sm:$0xf0]  ;;  %v12921_v43 = vld [vmem:[%s14058_s30 + $0x78c] sm:$0xf] }
 0x33a   : > { %v10987_v3 = vld [vmem:[%s14058_s30 + $0x7f8] sm:$0xf0] }
 0x33b   : > { %6049 = vmatpush.bf16.msrb.mxu0 %v10526_v35  ;;  %5987 = vmatmul.bf16.vlgmr.msrb.gmra.mxu3 %v15383_v32  ;;  %v10939_v37 = vld [vmem:[%s14058_s30 + $0x798] sm:$0xf0] }
 0x33c   : > { %6062 = vmatpush.bf16.msrb.mxu1 %v10654_v56  ;;  %6031 = vmatpush.bf16.msra.mxu3 %v10478_v16  ;;  %v12957_v56 = vld [vmem:[%s14058_s30 + $0x8ac] sm:$0xf]  ;;  %v10414_v16 = vor.u32 %v12789_v11, %v10411_v27 }
 0x33d   : > { %6072 = vmatpush.bf16.msrb.mxu2 %v10830_v47  ;;  %v11086_v54 = vor.u32 %v12957_v56, %v11083_v57  ;;  %v10379_v47 = vld [vmem:[%s14058_s30 + $0x338] sm:$0xf0]  ;;  %v11166_v56 = vor.u32 %v12977_v50, %v11163_v58  ;;  %v12777_v57 = vld [vmem:[%s14058_s30 + $0x30c] sm:$0xf] }
 0x33e   : > { %v12933_v11 = vld [vmem:[%s14058_s30 + $0x7ec] sm:$0xf] }
 0x33f   : > { %6050 = vmatpush.bf16.msrb.mxu0 %v10510_v15  ;;  %v5769_v35 = vpop.f32.mrf.mxu2  ;;  %v10798_v15 = vor.u32 %v12885_v7, %v10795_v31  ;;  %v10363_v7 = vld [vmem:[%s14058_s30 + $0x318] sm:$0xf0]  ;;  %v12973_v31 = vld [vmem:[%s14058_s30 + $0x92c] sm:$0xf] }
 0x340   : > { %6063 = vmatpush.bf16.msrb.mxu1 %v10638_v21  ;;  %6032 = vmatpush.bf16.msra.mxu3 %v10462_v51  ;;  %v5716_v21 = vadd.f32 %v15629_v10, %v15504_v52  ;;  %v10782_v10 = vor.u32 %v12881_v18, %v10779_v20  ;;  %v10747_v35 = vld [vmem:[%s14058_s30 + $0x618] sm:$0xf0]  ;;  %v10990_v18 = vor.u32 %v12933_v11, %v10987_v3  ;;  %v12969_v20 = vld [vmem:[%s14058_s30 + $0x90c] sm:$0xf] }
 0x341   : > { %6073 = vmatpush.bf16.msrb.mxu2 %v10814_v61  ;;  %v12941_v61 = vld [vmem:[%s14058_s30 + $0x82c] sm:$0xf] }
 0x342   : > { %v5729_v44 = vadd.f32 %v5728_v22, %v5716_v21  ;;  %v11131_v21 = vld [vmem:[%s14058_s30 + $0x918] sm:$0xf0] }
 0x343   : > { %6051 = vmatpush.bf16.msrb.mxu0 %v10494_v26  ;;  %v15715_v52 = vpop.f32.mrf.mxu0  ;;  %v11179_v26 = vld [vmem:[%s14058_s30 + $0x978] sm:$0xf0] }
 0x344   : > { %6064 = vmatpush.bf16.msrb.mxu1 %v10622_v38  ;;  %6033 = vmatpush.bf16.msra.mxu3 %v10446_v33  ;;  %v15720_v30 = vpop.f32.mrf.mxu1  ;;  %v12877_v38 = vld [vmem:[%s14058_s30 + $0x62c] sm:$0xf]  ;;  %v6122_v51 = vadd.f32 %v5729_v44, %v3668_v34  ;;  %v11182_v23 = vor.u32 %v12981_v0, %v11179_v26  ;;  %v11038_v33 = vor.u32 %v12945_v48, %v11035_v41  ;;  %v10955_v44 = vld [vmem:[%s14058_s30 + $0x7b8] sm:$0xf0] }
 0x345   : > { %6074 = vmatpush.bf16.msrb.mxu2 %v10798_v15  ;;  %v10366_v15 = vor.u32 %v12777_v57, %v10363_v7  ;;  %v12929_v34 = vld [vmem:[%s14058_s30 + $0x7cc] sm:$0xf]  ;;  %v10942_v26 = vor.u32 %v12921_v43, %v10939_v37 }
 0x346   : > { %6052 = vmatmul.bf16.vlgmr.msrb.gmra.mxu0 %v15122_v2  ;;  %v10430_v2 = vor.u32 %v12793_v5, %v10427_v60  ;;  %6126 = vst [vmem:[#allocation2 + $0x10] sm:$0xff] %v6122_v51  ;;  %v10382_v5 = vor.u32 %v12781_v40, %v10379_v47  ;;  %v11019_v60 = vld [vmem:[%s14058_s30 + $0x838] sm:$0xf0]  ;;  %v12909_v41 = vld [vmem:[%s14058_s30 + $0x72c] sm:$0xf] }
 0x347   : > { %6096 = vmatpush.bf16.msra.mxu0 %v11118_v39  ;;  %6065 = vmatmul.bf16.vlgmr.msrb.gmra.mxu1 %v15127_v8  ;;  %v12985_v8 = vld [vmem:[%s14058_s30 + $0x98c] sm:$0xf]  ;;  %v15722_v1 = vpop.f32.mrf.mxu2  ;;  %v10763_v39 = vld [vmem:[%s14058_s30 + $0x638] sm:$0xf0]  ;;  %v11022_v14 = vor.u32 %v12941_v61, %v11019_v60 }
 0x348   : > { %6109 = vmatpush.bf16.msra.mxu1 %v11246_v25  ;;  %6034 = vmatpush.bf16.msra.mxu3 %v10430_v2  ;;  %v11198_v29 = vor.u32 %v12985_v8, %v11195_v55  ;;  %v11054_v25 = vor.u32 %v12949_v17, %v11051_v13  ;;  %v10766_v49 = vor.u32 %v12877_v38, %v10763_v39  ;;  %v12937_v8 = vld [vmem:[%s14058_s30 + $0x80c] sm:$0xf]  ;;  %v11003_v55 = vld [vmem:[%s14058_s30 + $0x818] sm:$0xf0] }
 0x349   : > { %6075 = vmatpush.bf16.msrb.mxu2 %v10782_v10  ;;  %v11006_v22 = vor.u32 %v12937_v8, %v11003_v55  ;;  %v12925_v13 = vld [vmem:[%s14058_s30 + $0x7ac] sm:$0xf]  ;;  %v10907_v40 = vld [vmem:[%s14058_s30 + $0x758] sm:$0xf0] }
 0x34a   : > { %v10958_v19 = vor.u32 %v12925_v13, %v10955_v44  ;;  %v12917_v38 = vld [vmem:[%s14058_s30 + $0x76c] sm:$0xf]  ;;  %v3670_v13 = vld [vmem:[#allocation2 + $0x18] sm:$0xff] }
 0x34b   : > { %6097 = vmatpush.bf16.msra.mxu0 %v11102_v62  ;;  %v12873_v62 = vld [vmem:[%s14058_s30 + $0x60c] sm:$0xf]  ;;  %v5847_v4 = vpop.f32.mrf.mxu0 }
 0x34c   : > { %6110 = vmatpush.bf16.msra.mxu1 %v11230_v53  ;;  %6035 = vmatpush.bf16.msra.mxu3 %v10414_v16  ;;  %v5730_v53 = vpop.f32.mrf.mxu3  ;;  %v10750_v6 = vor.u32 %v12873_v62, %v10747_v35  ;;  %v5860_v2 = vpop.f32.mrf.mxu1  ;;  %v12905_v35 = vld [vmem:[%s14058_s30 + $0x70c] sm:$0xf] }
 0x34d   : > { %6076 = vmatpush.bf16.msrb.mxu2 %v10766_v49  ;;  %v10891_v49 = vld [vmem:[%s14058_s30 + $0x738] sm:$0xf0] }
 0x34e   : > { %v10894_v62 = vor.u32 %v12909_v41, %v10891_v49 }
 0x34f   : > { %6098 = vmatpush.bf16.msra.mxu0 %v11086_v54  ;;  %v11147_v54 = vld [vmem:[%s14058_s30 + $0x938] sm:$0xf0] }
 0x350   : > { %6111 = vmatpush.bf16.msra.mxu1 %v11214_v9  ;;  %6036 = vmatpush.bf16.msra.mxu3 %v10398_v46  ;;  %v5821_v9 = vpop.f32.mrf.mxu2  ;;  %v11150_v27 = vor.u32 %v12973_v31, %v11147_v54 }
 0x351   : > { %6077 = vmatpush.bf16.msrb.mxu2 %v10750_v6 }
 0x353   : > { %6099 = vmatpush.bf16.msra.mxu0 %v11070_v36  ;;  %v10971_v36 = vld [vmem:[%s14058_s30 + $0x7d8] sm:$0xf0] }
 0x354   : > { %6112 = vmatpush.bf16.msra.mxu1 %v11198_v29  ;;  %6037 = vmatpush.bf16.msra.mxu3 %v10382_v5  ;;  %v5780_v16 = vpop.f32.mrf.mxu3  ;;  %v11134_v29 = vor.u32 %v12969_v20, %v11131_v21  ;;  %v10974_v17 = vor.u32 %v12929_v34, %v10971_v36 }
 0x355   : > { %6078 = vmatmul.bf16.vlgmr.msrb.gmra.mxu2 %v15193_v45  ;;  %v5781_v10 = vadd.f32 %v5780_v16, %v5768_v63 }
 0x357   : > { %6100 = vmatpush.bf16.msra.mxu0 %v11054_v25  ;;  %v5794_v45 = vadd.f32 %v15639_v24, %v5781_v10  ;;  %v12913_v25 = vld [vmem:[%s14058_s30 + $0x74c] sm:$0xf] }
 0x358   : > { %6113 = vmatpush.bf16.msra.mxu1 %v11182_v23  ;;  %6038 = vmatpush.bf16.msra.mxu3 %v10366_v15  ;;  %v10910_v48 = vor.u32 %v12913_v25, %v10907_v40 }
 0x359   : > { %v5807_v39 = vadd.f32 %v15644_v28, %v5794_v45  ;;  %v3669_v28 = vld [vmem:[#allocation2] sm:$0xff] }
 0x35b   : > { %6101 = vmatpush.bf16.msra.mxu0 %v11038_v33  ;;  %6039 = vmatmul.bf16.vlgmr.msra.gmra.mxu3 %v15120_v59  ;;  %v10923_v59 = vld [vmem:[%s14058_s30 + $0x778] sm:$0xf0]  ;;  %v5820_v24 = vadd.f32 %v15722_v1, %v5807_v39 }
 0x35c   : > { %6114 = vmatpush.bf16.msra.mxu1 %v11166_v56  ;;  %6083 = vmatpush.bf16.msrb.mxu3 %v10990_v18  ;;  %v5782_v0 = vpop.f32.mrf.mxu3  ;;  %v10926_v51 = vor.u32 %v12917_v38, %v10923_v59  ;;  %v10875_v33 = vld [vmem:[%s14058_s30 + $0x718] sm:$0xf0] }
 0x35d   : > { %v10878_v61 = vor.u32 %v12905_v35, %v10875_v33 }
 0x35f   : > { %6102 = vmatpush.bf16.msra.mxu0 %v11022_v14 }
 0x360   : > { %6115 = vmatpush.bf16.msra.mxu1 %v11150_v27  ;;  %6084 = vmatpush.bf16.msrb.mxu3 %v10974_v17 }
 0x363   : > { %6103 = vmatpush.bf16.msra.mxu0 %v11006_v22  ;;  %v5897_v46 = vpop.f32.mrf.mxu0 }
 0x364   : > { %6116 = vmatpush.bf16.msra.mxu1 %v11134_v29  ;;  %6085 = vmatpush.bf16.msrb.mxu3 %v10958_v19  ;;  %v5832_v23 = vpop.f32.mrf.mxu3 }
 0x365   : > { %v5833_v47 = vadd.f32 %v5832_v23, %v5820_v24 }
 0x366   : > { %6104 = vmatmul.bf16.vlgmr.msra.gmra.mxu0 %v15314_v12  ;;  %v5871_v12 = vpop.f32.mrf.mxu2 }
 0x367   : > { %6117 = vmatmul.bf16.vlgmr.msra.gmra.mxu1 %v15383_v32  ;;  %v5910_v32 = vpop.f32.mrf.mxu1  ;;  %v5846_v50 = vadd.f32 %v15715_v52, %v5833_v47 }
 0x368   : > { %6086 = vmatpush.bf16.msrb.mxu3 %v10942_v26 }
 0x369   : > { %v5859_v58 = vadd.f32 %v15720_v30, %v5846_v50  ;;  %v3671_v50 = vld [vmem:[#allocation2 + $0x8] sm:$0xff] }
 0x36b   : > { %v6123_v53 = vadd.f32 %v5859_v58, %v3669_v28  ;;  %v5899_v56 = vpop.f32.mrf.mxu0 }
 0x36c   : > { %6087 = vmatpush.bf16.msrb.mxu3 %v10926_v51  ;;  %v5834_v57 = vpop.f32.mrf.mxu3 }
 0x36d   : > { %6127 = vst [vmem:[#allocation2] sm:$0xff] %v6123_v53 }
 0x36e   : > { %v5873_v5 = vpop.f32.mrf.mxu2 }
 0x36f   : > { %v5912_v1 = vpop.f32.mrf.mxu1 }
 0x370   : > { %6088 = vmatpush.bf16.msrb.mxu3 %v10910_v48 }
 0x374   : > { %6089 = vmatpush.bf16.msrb.mxu3 %v10894_v62 }
 0x376   : > { %v5923_v60 = vpop.f32.mrf.mxu2 }
 0x378   : > { %6090 = vmatpush.bf16.msrb.mxu3 %v10878_v61  ;;  %v5884_v6 = vpop.f32.mrf.mxu3 }
 0x379   : > { %v5885_v30 = vadd.f32 %v5884_v6, %v5871_v12 }
 0x37b   : > { %6091 = vmatmul.bf16.vlgmr.msrb.gmra.mxu3 %v15189_v42  ;;  %v5898_v7 = vadd.f32 %v5897_v46, %v5885_v30 }
 0x37d   : > { %v5911_v31 = vadd.f32 %v5910_v32, %v5898_v7 }
 0x37e   : > { %v5925_v54 = vpop.f32.mrf.mxu2 }
 0x37f   : > { %v5924_v21 = vadd.f32 %v5923_v60, %v5911_v31 }
 0x380   : > { %v5886_v11 = vpop.f32.mrf.mxu3 }
 0x383   : > { %v5949_v52 = vpop.f32.mrf.mxu0 }
 0x384   : > { %v5962_v4 = vpop.f32.mrf.mxu1 }
 0x38b   : > { %v5951_v2 = vpop.f32.mrf.mxu0 }
 0x38c   : > { %v5964_v9 = vpop.f32.mrf.mxu1 }
 0x396   : > { %v5975_v14 = vpop.f32.mrf.mxu2 }
 0x398   : > { %v5936_v8 = vpop.f32.mrf.mxu3 }
 0x399   : > { %v5937_v34 = vadd.f32 %v5936_v8, %v5924_v21 }
 0x39b   : > { %v5950_v36 = vadd.f32 %v5949_v52, %v5937_v34 }
 0x39d   : > { %v5963_v22 = vadd.f32 %v5962_v4, %v5950_v36 }
 0x39e   : > { %v5977_v18 = vpop.f32.mrf.mxu2 }
 0x39f   : > { %v5976_v17 = vadd.f32 %v5975_v14, %v5963_v22 }
 0x3a0   : > { %v5938_v42 = vpop.f32.mrf.mxu3 }
 0x3a3   : > { %v6001_v3 = vpop.f32.mrf.mxu0 }
 0x3a4   : > { %v6014_v15 = vpop.f32.mrf.mxu1 }
 0x3a5   : > { %v6015_v27 = vadd.f32 %v6014_v15, %v6001_v3 }
 0x3ab   : > { %v6003_v55 = vpop.f32.mrf.mxu0 }
 0x3ac   : > { %v6016_v20 = vpop.f32.mrf.mxu1 }
 0x3b9   : > { %v6027_v29 = vpop.f32.mrf.mxu2 }
 0x3ba   : > { %v6028_v46 = vadd.f32 %v6027_v29, %v6015_v27 }
 0x3be   : > { %v5988_v44 = vpop.f32.mrf.mxu3 }
 0x3bf   : > { %v5989_v10 = vadd.f32 %v5988_v44, %v5976_v17 }
 0x3c1   : > { %v6124_v19 = vadd.f32 %v5989_v10, %v3670_v13  ;;  %v6029_v37 = vpop.f32.mrf.mxu2 }
 0x3c3   : > { %v6053_v16 = vpop.f32.mrf.mxu0  ;;  %6128 = vst [vmem:[#allocation2 + $0x18] sm:$0xff] %v6124_v19 }
 0x3c4   : > { %v6066_v63 = vpop.f32.mrf.mxu1 }
 0x3c6   : > { %v5990_v0 = vpop.f32.mrf.mxu3 }
 0x3cb   : > { %v6055_v43 = vpop.f32.mrf.mxu0 }
 0x3cc   : > { %v6068_v45 = vpop.f32.mrf.mxu1 }
 0x3d8   : > { %v6079_v38 = vpop.f32.mrf.mxu2 }
 0x3de   : > { %v6040_v39 = vpop.f32.mrf.mxu3 }
 0x3df   : > { %v6041_v24 = vadd.f32 %v6040_v39, %v6028_v46 }
 0x3e0   : > { %v6081_v25 = vpop.f32.mrf.mxu2 }
 0x3e1   : > { %v6054_v32 = vadd.f32 %v6053_v16, %v6041_v24 }
 0x3e3   : > { %v6105_v26 = vpop.f32.mrf.mxu0  ;;  %v6067_v23 = vadd.f32 %v6066_v63, %v6054_v32 }
 0x3e4   : > { %v6118_v59 = vpop.f32.mrf.mxu1 }
 0x3e5   : > { %v6080_v47 = vadd.f32 %v6079_v38, %v6067_v23 }
 0x3e6   : > { %v6042_v12 = vpop.f32.mrf.mxu3 }
 0x3eb   : > { %v6107_v51 = vpop.f32.mrf.mxu0 }
 0x3ec   : > { %v6120_v40 = vpop.f32.mrf.mxu1 }
 0x3fe   : > { %v6092_v48 = vpop.f32.mrf.mxu3 }
 0x3ff   : > { %v6093_v41 = vadd.f32 %v6092_v48, %v6080_v47 }
 0x401   : > { %v6106_v49 = vadd.f32 %v6105_v26, %v6093_v41 }
 0x403   : > { %v6119_v28 = vadd.f32 %v6118_v59, %v6106_v49  ;;  %6133 = sbr.rel (%p11247_p1) target bundleno = 1518 (0x5ee), region = 108 }
 0x405   : > { %v6125_v58 = vadd.f32 %v6119_v28, %v3671_v50 }
 0x406   : > { %v6094_v62 = vpop.f32.mrf.mxu3 }
 0x407   : > { %6129 = vst [vmem:[#allocation2 + $0x8] sm:$0xff] %v6125_v58 }
 0x408   : > { %v11362_v35 = vld [vmem:[#allocation13 + $0xe0] sm:$0xf]  ;;  %v13030_v33 = vld [vmem:[#allocation13 + $0xec] sm:$0xf0] }
 0x409   : > { %v11490_v53 = vld [vmem:[#allocation13 + $0x1e0] sm:$0xf]  ;;  %v11363_v5 = vor.u32 %v13030_v33, %v11362_v35  ;;  %v13062_v56 = vld [vmem:[#allocation13 + $0x1ec] sm:$0xf0] }
 0x40a   : > { %v11618_v1 = vld [vmem:[#allocation13 + $0x2e0] sm:$0xf]  ;;  %v13094_v57 = vld [vmem:[#allocation13 + $0x2ec] sm:$0xf0]  ;;  %v11491_v61 = vor.u32 %v13062_v56, %v11490_v53 }
 0x40b   : > { %v11619_v60 = vor.u32 %v13094_v57, %v11618_v1  ;;  %v11746_v52 = vld [vmem:[#allocation13 + $0x3e0] sm:$0xf]  ;;  %v13126_v4 = vld [vmem:[#allocation13 + $0x3ec] sm:$0xf0]  ;;  %6934 = vmatpush.bf16.msra.mxu0 %v11363_v5 }
 0x40c   : > { %v11346_v6 = vld [vmem:[#allocation13 + $0xc0] sm:$0xf]  ;;  %v11747_v30 = vor.u32 %v13126_v4, %v11746_v52  ;;  %v13026_v7 = vld [vmem:[#allocation13 + $0xcc] sm:$0xf0]  ;;  %6947 = vmatpush.bf16.msra.mxu1 %v11491_v61 }
 0x40d   : > { %v11474_v31 = vld [vmem:[#allocation13 + $0x1c0] sm:$0xf]  ;;  %v13058_v54 = vld [vmem:[#allocation13 + $0x1cc] sm:$0xf0]  ;;  %6960 = vmatpush.bf16.msra.mxu2 %v11619_v60  ;;  %v11347_v2 = vor.u32 %v13026_v7, %v11346_v6 }
 0x40e   : > { %v11475_v9 = vor.u32 %v13058_v54, %v11474_v31  ;;  %v11602_v11 = vld [vmem:[#allocation13 + $0x2c0] sm:$0xf]  ;;  %v13090_v3 = vld [vmem:[#allocation13 + $0x2cc] sm:$0xf0]  ;;  %6973 = vmatpush.bf16.msra.mxu3 %v11747_v30 }
 0x40f   : > { %v11730_v14 = vld [vmem:[#allocation13 + $0x3c0] sm:$0xf]  ;;  %v11603_v15 = vor.u32 %v13090_v3, %v11602_v11  ;;  %v13122_v27 = vld [vmem:[#allocation13 + $0x3cc] sm:$0xf0]  ;;  %6935 = vmatpush.bf16.msra.mxu0 %v11347_v2 }
 0x410   : > { %v11330_v8 = vld [vmem:[#allocation13 + $0xa0] sm:$0xf]  ;;  %v13022_v55 = vld [vmem:[#allocation13 + $0xac] sm:$0xf0]  ;;  %v11731_v18 = vor.u32 %v13122_v27, %v11730_v14  ;;  %6948 = vmatpush.bf16.msra.mxu1 %v11475_v9 }
 0x411   : > { %v11458_v20 = vld [vmem:[#allocation13 + $0x1a0] sm:$0xf]  ;;  %v13054_v42 = vld [vmem:[#allocation13 + $0x1ac] sm:$0xf0]  ;;  %v11331_v34 = vor.u32 %v13022_v55, %v11330_v8  ;;  %6961 = vmatpush.bf16.msra.mxu2 %v11603_v15 }
 0x412   : > { %v11586_v21 = vld [vmem:[#allocation13 + $0x2a0] sm:$0xf]  ;;  %v13086_v36 = vld [vmem:[#allocation13 + $0x2ac] sm:$0xf0]  ;;  %v11459_v29 = vor.u32 %v13054_v42, %v11458_v20  ;;  %6974 = vmatpush.bf16.msra.mxu3 %v11731_v18  ;;  %v13028_v42 = vld [vmem:[#allocation13 + $0xe4] sm:$0xf] }
 0x413   : > { %v11714_v22 = vld [vmem:[#allocation13 + $0x3a0] sm:$0xf]  ;;  %v13118_v16 = vld [vmem:[#allocation13 + $0x3ac] sm:$0xf0]  ;;  %v11587_v63 = vor.u32 %v13086_v36, %v11586_v21  ;;  %6936 = vmatpush.bf16.msra.mxu0 %v11331_v34  ;;  %v6138_v34 = vld [vmem:[#allocation12] sm:$0xf] }
 0x414   : > { %v11314_v17 = vld [vmem:[#allocation13 + $0x80] sm:$0xf]  ;;  %v13018_v13 = vld [vmem:[#allocation13 + $0x8c] sm:$0xf0]  ;;  %v11715_v10 = vor.u32 %v13118_v16, %v11714_v22  ;;  %6949 = vmatpush.bf16.msra.mxu1 %v11459_v29  ;;  %v11364_v22 = vld [vmem:[#allocation13 + $0xf0] sm:$0xf0] }
 0x415   : > { %v11442_v44 = vld [vmem:[#allocation13 + $0x180] sm:$0xf]  ;;  %v13050_v19 = vld [vmem:[#allocation13 + $0x18c] sm:$0xf0]  ;;  %v11315_v26 = vor.u32 %v13018_v13, %v11314_v17  ;;  %6962 = vmatpush.bf16.msra.mxu2 %v11587_v63  ;;  %v13060_v16 = vld [vmem:[#allocation13 + $0x1e4] sm:$0xf] }
 0x416   : > { %v11570_v43 = vld [vmem:[#allocation13 + $0x280] sm:$0xf]  ;;  %v13082_v37 = vld [vmem:[#allocation13 + $0x28c] sm:$0xf0]  ;;  %v11443_v38 = vor.u32 %v13050_v19, %v11442_v44  ;;  %6975 = vmatpush.bf16.msra.mxu3 %v11715_v10  ;;  %v6142_v29 = vperm.slane %v6138_v34, 2  ;;  %v6134_v13 = vld [vmem:[#allocation2 + $0x10] sm:$0xff] }
 0x417   : > { %v11698_v45 = vld [vmem:[#allocation13 + $0x380] sm:$0xf]  ;;  %v13114_v0 = vld [vmem:[#allocation13 + $0x38c] sm:$0xf0]  ;;  %v11571_v59 = vor.u32 %v13082_v37, %v11570_v43  ;;  %6937 = vmatpush.bf16.msra.mxu0 %v11315_v26  ;;  %v11492_v63 = vld [vmem:[#allocation13 + $0x1f0] sm:$0xf0] }
 0x418   : > { %v11298_v39 = vld [vmem:[#allocation13 + $0x60] sm:$0xf]  ;;  %v13014_v51 = vld [vmem:[#allocation13 + $0x6c] sm:$0xf0]  ;;  %v11699_v40 = vor.u32 %v13114_v0, %v11698_v45  ;;  %6950 = vmatpush.bf16.msra.mxu1 %v11443_v38  ;;  %v13092_v17 = vld [vmem:[#allocation13 + $0x2e4] sm:$0xf] }
 0x419   : > { %v11426_v25 = vld [vmem:[#allocation13 + $0x160] sm:$0xf]  ;;  %v13046_v12 = vld [vmem:[#allocation13 + $0x16c] sm:$0xf0]  ;;  %v11299_v47 = vor.u32 %v13014_v51, %v11298_v39  ;;  %6963 = vmatpush.bf16.msra.mxu2 %v11571_v59  ;;  %v11620_v10 = vld [vmem:[#allocation13 + $0x2f0] sm:$0xf0] }
 0x41a   : > { %v11554_v46 = vld [vmem:[#allocation13 + $0x260] sm:$0xf]  ;;  %v13078_v24 = vld [vmem:[#allocation13 + $0x26c] sm:$0xf0]  ;;  %v11427_v48 = vor.u32 %v13046_v12, %v11426_v25  ;;  %6976 = vmatpush.bf16.msra.mxu3 %v11699_v40  ;;  %v13124_v19 = vld [vmem:[#allocation13 + $0x3e4] sm:$0xf]  ;;  %v11367_v40 = vor.u32 %v13028_v42, %v11364_v22 }
 0x41b   : > { %v11682_v32 = vld [vmem:[#allocation13 + $0x360] sm:$0xf]  ;;  %v13110_v23 = vld [vmem:[#allocation13 + $0x36c] sm:$0xf0]  ;;  %v11555_v41 = vor.u32 %v13078_v24, %v11554_v46  ;;  %6938 = vmatpush.bf16.msra.mxu0 %v11299_v47  ;;  %v6140_v37 = vperm.slane %v6138_v34, 0  ;;  %v6143_v59 = vperm.slane %v6138_v34, 3  ;;  %v11495_v46 = vor.u32 %v13060_v16, %v11492_v63 }
 0x41c   : > { %v11282_v49 = vld [vmem:[#allocation13 + $0x40] sm:$0xf]  ;;  %v13010_v50 = vld [vmem:[#allocation13 + $0x4c] sm:$0xf0]  ;;  %v11683_v58 = vor.u32 %v13110_v23, %v11682_v32  ;;  %6951 = vmatpush.bf16.msra.mxu1 %v11427_v48  ;;  %v11748_v38 = vld [vmem:[#allocation13 + $0x3f0] sm:$0xf0]  ;;  %v11623_v24 = vor.u32 %v13092_v17, %v11620_v10 }
 0x41d   : > { %v11410_v28 = vld [vmem:[#allocation13 + $0x140] sm:$0xf]  ;;  %v13042_v62 = vld [vmem:[#allocation13 + $0x14c] sm:$0xf0]  ;;  %v11283_v56 = vor.u32 %v13010_v50, %v11282_v49  ;;  %6964 = vmatpush.bf16.msra.mxu2 %v11555_v41  ;;  %v6135_v39 = vld [vmem:[#allocation2] sm:$0xff]  ;;  %v6141_v51 = vperm.slane %v6138_v34, 1  ;;  %v15775_v12 = vadd.f32 %v6140_v37, %v6134_v13  ;;  %v11751_v49 = vor.u32 %v13124_v19, %v11748_v38 }
 0x41e   : > { %v11538_v35 = vld [vmem:[#allocation13 + $0x240] sm:$0xf]  ;;  %v13074_v33 = vld [vmem:[#allocation13 + $0x24c] sm:$0xf0]  ;;  %v11411_v57 = vor.u32 %v13042_v62, %v11410_v28  ;;  %6977 = vmatpush.bf16.msra.mxu3 %v11683_v58  ;;  %v13024_v32 = vld [vmem:[#allocation13 + $0xc4] sm:$0xf] }
 0x41f   : > { %v11666_v53 = vld [vmem:[#allocation13 + $0x340] sm:$0xf]  ;;  %v13106_v5 = vld [vmem:[#allocation13 + $0x34c] sm:$0xf0]  ;;  %v11539_v61 = vor.u32 %v13074_v33, %v11538_v35  ;;  %6939 = vmatpush.bf16.msra.mxu0 %v11283_v56  ;;  %v11348_v23 = vld [vmem:[#allocation13 + $0xd0] sm:$0xf0]  ;;  %v15779_v41 = vadd.f32 %v6141_v51, %v6135_v39 }
 0x420   : > { %v11266_v1 = vld [vmem:[#allocation13 + $0x20] sm:$0xf]  ;;  %v13006_v60 = vld [vmem:[#allocation13 + $0x2c] sm:$0xf0]  ;;  %v11667_v6 = vor.u32 %v13106_v5, %v11666_v53  ;;  %6952 = vmatpush.bf16.msra.mxu1 %v11411_v57  ;;  %v13056_v47 = vld [vmem:[#allocation13 + $0x1c4] sm:$0xf]  ;;  %v15787_v53 = vpack.c.bf16 %v15775_v12, %v15775_v12  ;;  %v11351_v56 = vor.u32 %v13024_v32, %v11348_v23 }
 0x421   : > { %v11394_v52 = vld [vmem:[#allocation13 + $0x120] sm:$0xf]  ;;  %v13038_v4 = vld [vmem:[#allocation13 + $0x12c] sm:$0xf0]  ;;  %v11267_v11 = vor.u32 %v13006_v60, %v11266_v1  ;;  %6965 = vmatpush.bf16.msra.mxu2 %v11539_v61  ;;  %v11476_v28 = vld [vmem:[#allocation13 + $0x1d0] sm:$0xf0]  ;;  %v15795_v1 = vpack.c.bf16 %v15779_v41, %v15779_v41 }
 0x422   : > { %v11522_v30 = vld [vmem:[#allocation13 + $0x220] sm:$0xf]  ;;  %v13070_v7 = vld [vmem:[#allocation13 + $0x22c] sm:$0xf0]  ;;  %v11395_v8 = vor.u32 %v13038_v4, %v11394_v52  ;;  %6978 = vmatpush.bf16.msra.mxu3 %v11667_v6  ;;  %v13088_v58 = vld [vmem:[#allocation13 + $0x2c4] sm:$0xf]  ;;  %v11479_v57 = vor.u32 %v13056_v47, %v11476_v28 }
 0x423   : > { %v11650_v31 = vld [vmem:[#allocation13 + $0x320] sm:$0xf]  ;;  %v13102_v54 = vld [vmem:[#allocation13 + $0x32c] sm:$0xf0]  ;;  %v11523_v55 = vor.u32 %v13070_v7, %v11522_v30  ;;  %6940 = vmatpush.bf16.msra.mxu0 %v11267_v11  ;;  %v11604_v62 = vld [vmem:[#allocation13 + $0x2d0] sm:$0xf0] }
 0x424   : > { %v11250_v2 = vld [vmem:[#allocation13] sm:$0xf]  ;;  %v13002_v9 = vld [vmem:[#allocation13 + $0xc] sm:$0xf0]  ;;  %v11651_v36 = vor.u32 %v13102_v54, %v11650_v31  ;;  %6953 = vmatpush.bf16.msra.mxu1 %v11395_v8  ;;  %v13120_v35 = vld [vmem:[#allocation13 + $0x3c4] sm:$0xf]  ;;  %v11607_v61 = vor.u32 %v13088_v58, %v11604_v62 }
 0x425   : > { %v11378_v3 = vld [vmem:[#allocation13 + $0x100] sm:$0xf]  ;;  %v13034_v14 = vld [vmem:[#allocation13 + $0x10c] sm:$0xf0]  ;;  %v11251_v44 = vor.u32 %v13002_v9, %v11250_v2  ;;  %6966 = vmatpush.bf16.msra.mxu2 %v11523_v55  ;;  %v11732_v33 = vld [vmem:[#allocation13 + $0x3d0] sm:$0xf0] }
 0x426   : > { %v11506_v15 = vld [vmem:[#allocation13 + $0x200] sm:$0xf]  ;;  %v13066_v27 = vld [vmem:[#allocation13 + $0x20c] sm:$0xf0]  ;;  %v11379_v0 = vor.u32 %v13034_v14, %v11378_v3  ;;  %6979 = vmatpush.bf16.msra.mxu3 %v11651_v36  ;;  %v13020_v60 = vld [vmem:[#allocation13 + $0xa4] sm:$0xf]  ;;  %v11735_v6 = vor.u32 %v13120_v35, %v11732_v33 }
 0x427   : > { %v11634_v18 = vld [vmem:[#allocation13 + $0x300] sm:$0xf]  ;;  %v13098_v20 = vld [vmem:[#allocation13 + $0x30c] sm:$0xf0]  ;;  %v11507_v26 = vor.u32 %v13066_v27, %v11506_v15  ;;  %6941 = vmatpush.bf16.msra.mxu0 %v11251_v44  ;;  %v11332_v52 = vld [vmem:[#allocation13 + $0xb0] sm:$0xf0] }
 0x428   : > { %v6136_v21 = vld [vmem:[#allocation2 + $0x18] sm:$0xff]  ;;  %v6137_v45 = vld [vmem:[#allocation2 + $0x8] sm:$0xff]  ;;  %v11635_v25 = vor.u32 %v13098_v20, %v11634_v18  ;;  %6954 = vmatpush.bf16.msra.mxu1 %v11379_v0  ;;  %v13052_v4 = vld [vmem:[#allocation13 + $0x1a4] sm:$0xf]  ;;  %v11335_v9 = vor.u32 %v13020_v60, %v11332_v52 }
 0x429   : > { %v15773_v43 = vadd.f32 %v6142_v29, %v6136_v21  ;;  %v15777_v48 = vadd.f32 %v6143_v59, %v6137_v45  ;;  %6967 = vmatpush.bf16.msra.mxu2 %v11507_v26  ;;  %v11460_v30 = vld [vmem:[#allocation13 + $0x1b0] sm:$0xf0]  ;;  %v13084_v7 = vld [vmem:[#allocation13 + $0x2a4] sm:$0xf] }
 0x42a   : > { %6980 = vmatpush.bf16.msra.mxu3 %v11635_v25  ;;  %v11588_v31 = vld [vmem:[#allocation13 + $0x2b0] sm:$0xf0]  ;;  %6942 = vmatmul.bf16.vlgmr.msra.gmra.mxu0 %v15787_v53  ;;  %v13116_v54 = vld [vmem:[#allocation13 + $0x3a4] sm:$0xf]  ;;  %v11463_v11 = vor.u32 %v13052_v4, %v11460_v30 }
 0x42b   : > { %v15783_v50 = vpack.c.bf16 %v15773_v43, %v15773_v43  ;;  %v15791_v5 = vpack.c.bf16 %v15777_v48, %v15777_v48  ;;  %6986 = vmatpush.bf16.msrb.mxu0 %v11367_v40  ;;  %v11716_v2 = vld [vmem:[#allocation13 + $0x3b0] sm:$0xf0]  ;;  %6955 = vmatmul.bf16.vlgmr.msra.gmra.mxu1 %v15795_v1  ;;  %v11591_v3 = vor.u32 %v13084_v7, %v11588_v31  ;;  %v13016_v14 = vld [vmem:[#allocation13 + $0x84] sm:$0xf] }
 0x42c   : > { %6999 = vmatpush.bf16.msrb.mxu1 %v11495_v46  ;;  %v11316_v15 = vld [vmem:[#allocation13 + $0x90] sm:$0xf0]  ;;  %v13048_v27 = vld [vmem:[#allocation13 + $0x184] sm:$0xf]  ;;  %v11719_v8 = vor.u32 %v13116_v54, %v11716_v2 }
 0x42d   : > { %7012 = vmatpush.bf16.msrb.mxu2 %v11623_v24  ;;  %6981 = vmatmul.bf16.vlgmr.msra.gmra.mxu3 %v15791_v5  ;;  %v11444_v55 = vld [vmem:[#allocation13 + $0x190] sm:$0xf0]  ;;  %v13080_v18 = vld [vmem:[#allocation13 + $0x284] sm:$0xf]  ;;  %v11319_v34 = vor.u32 %v13016_v14, %v11316_v15  ;;  %v11370_v15 = vld [vmem:[#allocation13 + $0xe8] sm:$0xf] }
 0x42e   : > { %7025 = vmatpush.bf16.msrb.mxu3 %v11751_v49  ;;  %6968 = vmatmul.bf16.vlgmr.msra.gmra.mxu2 %v15783_v50  ;;  %v11572_v20 = vld [vmem:[#allocation13 + $0x290] sm:$0xf0]  ;;  %v13112_v42 = vld [vmem:[#allocation13 + $0x384] sm:$0xf]  ;;  %v11447_v36 = vor.u32 %v13048_v27, %v11444_v55  ;;  %v13031_v27 = vld [vmem:[#allocation13 + $0xf4] sm:$0xf0] }
 0x42f   : > { %6987 = vmatpush.bf16.msrb.mxu0 %v11351_v56  ;;  %v11700_v21 = vld [vmem:[#allocation13 + $0x390] sm:$0xf0]  ;;  %v11575_v22 = vor.u32 %v13080_v18, %v11572_v20  ;;  %v13012_v16 = vld [vmem:[#allocation13 + $0x64] sm:$0xf]  ;;  %v13063_v18 = vld [vmem:[#allocation13 + $0x1f4] sm:$0xf0] }
 0x430   : > { %7000 = vmatpush.bf16.msrb.mxu1 %v11479_v57  ;;  %v11300_v29 = vld [vmem:[#allocation13 + $0x70] sm:$0xf0]  ;;  %v13044_v63 = vld [vmem:[#allocation13 + $0x164] sm:$0xf]  ;;  %v11703_v17 = vor.u32 %v13112_v42, %v11700_v21  ;;  %v11626_v20 = vld [vmem:[#allocation13 + $0x2e8] sm:$0xf] }
 0x431   : > { %7013 = vmatpush.bf16.msrb.mxu2 %v11607_v61  ;;  %v11428_v13 = vld [vmem:[#allocation13 + $0x170] sm:$0xf0]  ;;  %v13076_v44 = vld [vmem:[#allocation13 + $0x264] sm:$0xf]  ;;  %v11303_v45 = vor.u32 %v13012_v16, %v11300_v29  ;;  %v13095_v42 = vld [vmem:[#allocation13 + $0x2f4] sm:$0xf0]  ;;  %v11371_v29 = vor.u32 %v13031_v27, %v11370_v15 }
 0x432   : > { %7026 = vmatpush.bf16.msrb.mxu3 %v11735_v6  ;;  %v11556_v10 = vld [vmem:[#allocation13 + $0x270] sm:$0xf0]  ;;  %v13108_v19 = vld [vmem:[#allocation13 + $0x364] sm:$0xf]  ;;  %v11431_v0 = vor.u32 %v13044_v63, %v11428_v13  ;;  %v11354_v13 = vld [vmem:[#allocation13 + $0xc8] sm:$0xf] }
 0x433   : > { %6988 = vmatpush.bf16.msrb.mxu0 %v11335_v9  ;;  %v11684_v37 = vld [vmem:[#allocation13 + $0x370] sm:$0xf0]  ;;  %v11559_v26 = vor.u32 %v13076_v44, %v11556_v10  ;;  %v13008_v38 = vld [vmem:[#allocation13 + $0x44] sm:$0xf]  ;;  %v13027_v44 = vld [vmem:[#allocation13 + $0xd4] sm:$0xf0] }
 0x434   : > { %7001 = vmatpush.bf16.msrb.mxu1 %v11463_v11  ;;  %v11284_v59 = vld [vmem:[#allocation13 + $0x50] sm:$0xf0]  ;;  %v13040_v39 = vld [vmem:[#allocation13 + $0x144] sm:$0xf]  ;;  %v11687_v51 = vor.u32 %v13108_v19, %v11684_v37  ;;  %v11482_v10 = vld [vmem:[#allocation13 + $0x1c8] sm:$0xf] }
 0x435   : > { %7014 = vmatpush.bf16.msrb.mxu2 %v11591_v3  ;;  %v11412_v25 = vld [vmem:[#allocation13 + $0x150] sm:$0xf0]  ;;  %v13072_v40 = vld [vmem:[#allocation13 + $0x244] sm:$0xf]  ;;  %v11287_v23 = vor.u32 %v13008_v38, %v11284_v59  ;;  %v13059_v37 = vld [vmem:[#allocation13 + $0x1d4] sm:$0xf0]  ;;  %v11355_v59 = vor.u32 %v13027_v44, %v11354_v13 }
 0x436   : > { %7027 = vmatpush.bf16.msrb.mxu3 %v11719_v8  ;;  %v11540_v46 = vld [vmem:[#allocation13 + $0x250] sm:$0xf0]  ;;  %v13104_v24 = vld [vmem:[#allocation13 + $0x344] sm:$0xf]  ;;  %v11415_v47 = vor.u32 %v13040_v39, %v11412_v25  ;;  %v11498_v8 = vld [vmem:[#allocation13 + $0x1e8] sm:$0xf]  ;;  %v11483_v39 = vor.u32 %v13059_v37, %v11482_v10 }
 0x437   : > { %6989 = vmatpush.bf16.msrb.mxu0 %v11319_v34  ;;  %v11668_v32 = vld [vmem:[#allocation13 + $0x350] sm:$0xf0]  ;;  %v11543_v49 = vor.u32 %v13072_v40, %v11540_v46  ;;  %v13004_v28 = vld [vmem:[#allocation13 + $0x24] sm:$0xf]  ;;  %v11499_v63 = vor.u32 %v13063_v18, %v11498_v8  ;;  %v13123_v38 = vld [vmem:[#allocation13 + $0x3d4] sm:$0xf0] }
 0x438   : > { %7002 = vmatpush.bf16.msrb.mxu1 %v11447_v36  ;;  %v11268_v58 = vld [vmem:[#allocation13 + $0x30] sm:$0xf0]  ;;  %v13036_v62 = vld [vmem:[#allocation13 + $0x124] sm:$0xf]  ;;  %v11671_v35 = vor.u32 %v13104_v24, %v11668_v32  ;;  %v11754_v36 = vld [vmem:[#allocation13 + $0x3e8] sm:$0xf] }
 0x439   : > { %7015 = vmatpush.bf16.msrb.mxu2 %v11575_v22  ;;  %v11396_v33 = vld [vmem:[#allocation13 + $0x130] sm:$0xf0]  ;;  %v13068_v56 = vld [vmem:[#allocation13 + $0x224] sm:$0xf]  ;;  %v11271_v52 = vor.u32 %v13004_v28, %v11268_v58  ;;  %v13127_v22 = vld [vmem:[#allocation13 + $0x3f4] sm:$0xf0] }
 0x43a   : > { %7028 = vmatpush.bf16.msrb.mxu3 %v11703_v17  ;;  %v11524_v57 = vld [vmem:[#allocation13 + $0x230] sm:$0xf0]  ;;  %v13100_v61 = vld [vmem:[#allocation13 + $0x324] sm:$0xf]  ;;  %v11399_v30 = vor.u32 %v13036_v62, %v11396_v33  ;;  %v11627_v17 = vor.u32 %v13095_v42, %v11626_v20  ;;  %v11755_v19 = vor.u32 %v13127_v22, %v11754_v36  ;;  %v11338_v25 = vld [vmem:[#allocation13 + $0xa8] sm:$0xf] }
 0x43b   : > { %6990 = vmatpush.bf16.msrb.mxu0 %v11303_v45  ;;  %v11652_v60 = vld [vmem:[#allocation13 + $0x330] sm:$0xf0]  ;;  %v13000_v4 = vld [vmem:[#allocation13 + $0x4] sm:$0xf]  ;;  %v11527_v7 = vor.u32 %v13068_v56, %v11524_v57  ;;  %v11610_v45 = vld [vmem:[#allocation13 + $0x2c8] sm:$0xf] }
 0x43c   : > { %7003 = vmatpush.bf16.msrb.mxu1 %v11431_v0  ;;  %v11252_v6 = vld [vmem:[#allocation13 + $0x10] sm:$0xf0]  ;;  %v13032_v31 = vld [vmem:[#allocation13 + $0x104] sm:$0xf]  ;;  %v11655_v9 = vor.u32 %v13100_v61, %v11652_v60  ;;  %v13091_v0 = vld [vmem:[#allocation13 + $0x2d4] sm:$0xf0] }
 0x43d   : > { %7016 = vmatpush.bf16.msrb.mxu2 %v11559_v26  ;;  %v11380_v54 = vld [vmem:[#allocation13 + $0x110] sm:$0xf0]  ;;  %v13064_v2 = vld [vmem:[#allocation13 + $0x204] sm:$0xf]  ;;  %v11255_v55 = vor.u32 %v13000_v4, %v11252_v6  ;;  %v11738_v26 = vld [vmem:[#allocation13 + $0x3c8] sm:$0xf] }
 0x43e   : > { %7029 = vmatpush.bf16.msrb.mxu3 %v11687_v51  ;;  %v11508_v11 = vld [vmem:[#allocation13 + $0x210] sm:$0xf0]  ;;  %v13096_v3 = vld [vmem:[#allocation13 + $0x304] sm:$0xf]  ;;  %v11383_v21 = vor.u32 %v13032_v31, %v11380_v54  ;;  %v11611_v51 = vor.u32 %v13091_v0, %v11610_v45  ;;  %v13023_v40 = vld [vmem:[#allocation13 + $0xb4] sm:$0xf0]  ;;  %v11739_v24 = vor.u32 %v13123_v38, %v11738_v26 }
 0x43f   : > { %6991 = vmatpush.bf16.msrb.mxu0 %v11287_v23  ;;  %v11636_v14 = vld [vmem:[#allocation13 + $0x310] sm:$0xf0]  ;;  %v11511_v34 = vor.u32 %v13064_v2, %v11508_v11  ;;  %v11466_v46 = vld [vmem:[#allocation13 + $0x1a8] sm:$0xf]  ;;  %v13055_v32 = vld [vmem:[#allocation13 + $0x1b4] sm:$0xf0]  ;;  %v11339_v58 = vor.u32 %v13023_v40, %v11338_v25 }
 0x440   : > { %7004 = vmatpush.bf16.msrb.mxu1 %v11415_v47  ;;  %v11639_v16 = vor.u32 %v13096_v3, %v11636_v14  ;;  %v11594_v23 = vld [vmem:[#allocation13 + $0x2a8] sm:$0xf]  ;;  %v13087_v47 = vld [vmem:[#allocation13 + $0x2b4] sm:$0xf0]  ;;  %v11467_v62 = vor.u32 %v13055_v32, %v11466_v46 }
 0x441   : > { %7017 = vmatpush.bf16.msrb.mxu2 %v11543_v49  ;;  %v11722_v49 = vld [vmem:[#allocation13 + $0x3a8] sm:$0xf]  ;;  %v13119_v28 = vld [vmem:[#allocation13 + $0x3b4] sm:$0xf0] }
 0x442   : > { %7030 = vmatpush.bf16.msrb.mxu3 %v11671_v35  ;;  %v11595_v35 = vor.u32 %v13087_v47, %v11594_v23  ;;  %v11322_v33 = vld [vmem:[#allocation13 + $0x88] sm:$0xf]  ;;  %v13019_v56 = vld [vmem:[#allocation13 + $0x94] sm:$0xf0]  ;;  %v11723_v61 = vor.u32 %v13119_v28, %v11722_v49 }
 0x443   : > { %6992 = vmatpush.bf16.msrb.mxu0 %v11271_v52  ;;  %v11450_v57 = vld [vmem:[#allocation13 + $0x188] sm:$0xf]  ;;  %v13051_v60 = vld [vmem:[#allocation13 + $0x194] sm:$0xf0] }
 0x444   : > { %7005 = vmatpush.bf16.msrb.mxu1 %v11399_v30  ;;  %v11578_v52 = vld [vmem:[#allocation13 + $0x288] sm:$0xf]  ;;  %v13083_v4 = vld [vmem:[#allocation13 + $0x294] sm:$0xf0]  ;;  %v11451_v31 = vor.u32 %v13051_v60, %v11450_v57  ;;  %v11372_v57 = vld [vmem:[#allocation13 + $0xf8] sm:$0xf0] }
 0x445   : > { %7018 = vmatpush.bf16.msrb.mxu2 %v11527_v7  ;;  %v11706_v6 = vld [vmem:[#allocation13 + $0x388] sm:$0xf]  ;;  %v13115_v30 = vld [vmem:[#allocation13 + $0x394] sm:$0xf0]  ;;  %v11323_v7 = vor.u32 %v13019_v56, %v11322_v33  ;;  %v11579_v54 = vor.u32 %v13083_v4, %v11578_v52  ;;  %v13029_v56 = vld [vmem:[#allocation13 + $0xec] sm:$0xf] }
 0x446   : > { %7031 = vmatpush.bf16.msrb.mxu3 %v11655_v9  ;;  %v11306_v2 = vld [vmem:[#allocation13 + $0x68] sm:$0xf]  ;;  %v13015_v9 = vld [vmem:[#allocation13 + $0x74] sm:$0xf0]  ;;  %v11707_v3 = vor.u32 %v13115_v30, %v11706_v6  ;;  %v11500_v52 = vld [vmem:[#allocation13 + $0x1f8] sm:$0xf0] }
 0x447   : > { %6993 = vmatpush.bf16.msrb.mxu0 %v11255_v55  ;;  %v11434_v11 = vld [vmem:[#allocation13 + $0x168] sm:$0xf]  ;;  %v13047_v14 = vld [vmem:[#allocation13 + $0x174] sm:$0xf0]  ;;  %v11307_v18 = vor.u32 %v13015_v9, %v11306_v2  ;;  %v13093_v4 = vld [vmem:[#allocation13 + $0x2ec] sm:$0xf]  ;;  %v11375_v9 = vor.u32 %v13029_v56, %v11372_v57 }
 0x448   : > { %7006 = vmatpush.bf16.msrb.mxu1 %v11383_v21  ;;  %v11562_v15 = vld [vmem:[#allocation13 + $0x268] sm:$0xf]  ;;  %v13079_v27 = vld [vmem:[#allocation13 + $0x274] sm:$0xf0]  ;;  %v11435_v20 = vor.u32 %v13047_v14, %v11434_v11  ;;  %v11628_v6 = vld [vmem:[#allocation13 + $0x2f8] sm:$0xf0] }
 0x449   : > { %7019 = vmatpush.bf16.msrb.mxu2 %v11511_v34  ;;  %v11690_v8 = vld [vmem:[#allocation13 + $0x368] sm:$0xf]  ;;  %v13111_v55 = vld [vmem:[#allocation13 + $0x374] sm:$0xf0]  ;;  %v11563_v42 = vor.u32 %v13079_v27, %v11562_v15  ;;  %v13025_v14 = vld [vmem:[#allocation13 + $0xcc] sm:$0xf] }
 0x44a   : > { %7032 = vmatpush.bf16.msrb.mxu3 %v11639_v16  ;;  %6994 = vmatmul.bf16.vlgmr.msrb.gmra.mxu0 %v15787_v53  ;;  %v11290_v21 = vld [vmem:[#allocation13 + $0x48] sm:$0xf]  ;;  %v13011_v34 = vld [vmem:[#allocation13 + $0x54] sm:$0xf0]  ;;  %v11691_v22 = vor.u32 %v13111_v55, %v11690_v8  ;;  %v11356_v15 = vld [vmem:[#allocation13 + $0xd8] sm:$0xf0] }
 0x44b   : > { %7038 = vmatpush.bf16.msra.mxu0 %v11371_v29  ;;  %7007 = vmatmul.bf16.vlgmr.msrb.gmra.mxu1 %v15795_v1  ;;  %v11418_v36 = vld [vmem:[#allocation13 + $0x148] sm:$0xf]  ;;  %v13043_v16 = vld [vmem:[#allocation13 + $0x154] sm:$0xf0]  ;;  %v11291_v44 = vor.u32 %v13011_v34, %v11290_v21  ;;  %v13057_v27 = vld [vmem:[#allocation13 + $0x1cc] sm:$0xf]  ;;  %v11359_v34 = vor.u32 %v13025_v14, %v11356_v15 }
 0x44c   : > { %7051 = vmatpush.bf16.msra.mxu1 %v11499_v63  ;;  %7020 = vmatmul.bf16.vlgmr.msrb.gmra.mxu2 %v15783_v50  ;;  %v11546_v29 = vld [vmem:[#allocation13 + $0x248] sm:$0xf]  ;;  %v13075_v63 = vld [vmem:[#allocation13 + $0x254] sm:$0xf0]  ;;  %v11419_v10 = vor.u32 %v13043_v16, %v11418_v36  ;;  %v11484_v55 = vld [vmem:[#allocation13 + $0x1d8] sm:$0xf0] }
 0x44d   : > { %7064 = vmatpush.bf16.msra.mxu2 %v11627_v17  ;;  %7033 = vmatmul.bf16.vlgmr.msrb.gmra.mxu3 %v15791_v5  ;;  %v11674_v17 = vld [vmem:[#allocation13 + $0x348] sm:$0xf]  ;;  %v13107_v13 = vld [vmem:[#allocation13 + $0x354] sm:$0xf0]  ;;  %v11740_v21 = vld [vmem:[#allocation13 + $0x3d8] sm:$0xf0]  ;;  %v11487_v36 = vor.u32 %v13057_v27, %v11484_v55 }
 0x44e   : > { %7077 = vmatpush.bf16.msra.mxu3 %v11755_v19  ;;  %v11547_v19 = vor.u32 %v13075_v63, %v11546_v29  ;;  %v11274_v37 = vld [vmem:[#allocation13 + $0x28] sm:$0xf]  ;;  %v13007_v45 = vld [vmem:[#allocation13 + $0x34] sm:$0xf0]  ;;  %v11675_v26 = vor.u32 %v13107_v13, %v11674_v17  ;;  %v13021_v16 = vld [vmem:[#allocation13 + $0xac] sm:$0xf] }
 0x44f   : > { %7039 = vmatpush.bf16.msra.mxu0 %v11355_v59  ;;  %v11402_v0 = vld [vmem:[#allocation13 + $0x128] sm:$0xf]  ;;  %v13039_v38 = vld [vmem:[#allocation13 + $0x134] sm:$0xf0]  ;;  %v11275_v40 = vor.u32 %v13007_v45, %v11274_v37  ;;  %v11340_v29 = vld [vmem:[#allocation13 + $0xb8] sm:$0xf0] }
 0x450   : > { %7052 = vmatpush.bf16.msra.mxu1 %v11483_v39  ;;  %v11530_v59 = vld [vmem:[#allocation13 + $0x228] sm:$0xf]  ;;  %v13071_v39 = vld [vmem:[#allocation13 + $0x234] sm:$0xf0]  ;;  %v11403_v32 = vor.u32 %v13039_v38, %v11402_v0  ;;  %v13053_v63 = vld [vmem:[#allocation13 + $0x1ac] sm:$0xf]  ;;  %v11343_v45 = vor.u32 %v13021_v16, %v11340_v29 }
 0x451   : > { %7065 = vmatpush.bf16.msra.mxu2 %v11611_v51  ;;  %v11658_v51 = vld [vmem:[#allocation13 + $0x328] sm:$0xf]  ;;  %v13103_v25 = vld [vmem:[#allocation13 + $0x334] sm:$0xf0]  ;;  %v11531_v23 = vor.u32 %v13071_v39, %v11530_v59  ;;  %v11468_v13 = vld [vmem:[#allocation13 + $0x1b8] sm:$0xf0] }
 0x452   : > { %7078 = vmatpush.bf16.msra.mxu3 %v11739_v24  ;;  %v11258_v46 = vld [vmem:[#allocation13 + $0x8] sm:$0xf]  ;;  %v13003_v24 = vld [vmem:[#allocation13 + $0x14] sm:$0xf0]  ;;  %v11724_v37 = vld [vmem:[#allocation13 + $0x3b8] sm:$0xf0]  ;;  %v11471_v0 = vor.u32 %v13053_v63, %v11468_v13 }
 0x453   : > { %7040 = vmatpush.bf16.msra.mxu0 %v11339_v58  ;;  %v11386_v47 = vld [vmem:[#allocation13 + $0x108] sm:$0xf]  ;;  %v13035_v49 = vld [vmem:[#allocation13 + $0x114] sm:$0xf0]  ;;  %v11659_v58 = vor.u32 %v13103_v25, %v11658_v51  ;;  %v11259_v60 = vor.u32 %v13003_v24, %v11258_v46  ;;  %v13017_v38 = vld [vmem:[#allocation13 + $0x8c] sm:$0xf] }
 0x454   : > { %7053 = vmatpush.bf16.msra.mxu1 %v11467_v62  ;;  %v11514_v28 = vld [vmem:[#allocation13 + $0x208] sm:$0xf]  ;;  %v13067_v62 = vld [vmem:[#allocation13 + $0x214] sm:$0xf0]  ;;  %v11387_v30 = vor.u32 %v13035_v49, %v11386_v47  ;;  %v11324_v59 = vld [vmem:[#allocation13 + $0x98] sm:$0xf0] }
 0x455   : > { %7066 = vmatpush.bf16.msra.mxu2 %v11595_v35  ;;  %v11642_v35 = vld [vmem:[#allocation13 + $0x308] sm:$0xf]  ;;  %v13099_v33 = vld [vmem:[#allocation13 + $0x314] sm:$0xf0]  ;;  %v13049_v39 = vld [vmem:[#allocation13 + $0x18c] sm:$0xf] }
 0x456   : > { %7079 = vmatpush.bf16.msra.mxu3 %v11723_v61  ;;  %v13061_v61 = vld [vmem:[#allocation13 + $0x1ec] sm:$0xf]  ;;  %v11643_v2 = vor.u32 %v13099_v33, %v11642_v35  ;;  %v11452_v25 = vld [vmem:[#allocation13 + $0x198] sm:$0xf0] }
 0x457   : > { %7041 = vmatpush.bf16.msra.mxu0 %v11323_v7  ;;  %v11515_v7 = vor.u32 %v13067_v62, %v11514_v28  ;;  %v11503_v11 = vor.u32 %v13061_v61, %v11500_v52  ;;  %v11580_v46 = vld [vmem:[#allocation13 + $0x298] sm:$0xf0]  ;;  %v13113_v24 = vld [vmem:[#allocation13 + $0x38c] sm:$0xf]  ;;  %v11455_v47 = vor.u32 %v13049_v39, %v11452_v25  ;;  %v13158_v39 = vld [vmem:[#allocation16 + $0xec] sm:$0xf0] }
 0x458   : > { %7054 = vmatpush.bf16.msra.mxu1 %v11451_v31  ;;  %v13125_v31 = vld [vmem:[#allocation13 + $0x3ec] sm:$0xf]  ;;  %v11436_v33 = vld [vmem:[#allocation13 + $0x178] sm:$0xf0]  ;;  %v12002_v25 = vld [vmem:[#allocation16 + $0x1e0] sm:$0xf] }
 0x459   : > { %7067 = vmatpush.bf16.msra.mxu2 %v11579_v54  ;;  %v11756_v54 = vld [vmem:[#allocation13 + $0x3f8] sm:$0xf0]  ;;  %v13013_v28 = vld [vmem:[#allocation13 + $0x6c] sm:$0xf] }
 0x45a   : > { %7080 = vmatpush.bf16.msra.mxu3 %v11707_v3  ;;  %v11631_v3 = vor.u32 %v13093_v4, %v11628_v6  ;;  %v11759_v8 = vor.u32 %v13125_v31, %v11756_v54  ;;  %v13045_v62 = vld [vmem:[#allocation13 + $0x16c] sm:$0xf]  ;;  %v11564_v57 = vld [vmem:[#allocation13 + $0x278] sm:$0xf0] }
 0x45b   : > { %7042 = vmatpush.bf16.msra.mxu0 %v11307_v18  ;;  %v13089_v18 = vld [vmem:[#allocation13 + $0x2cc] sm:$0xf]  ;;  %v11439_v4 = vor.u32 %v13045_v62, %v11436_v33  ;;  %v11676_v14 = vld [vmem:[#allocation13 + $0x358] sm:$0xf0]  ;;  %v13186_v62 = vld [vmem:[#allocation16 + $0x1cc] sm:$0xf0] }
 0x45c   : > { %7055 = vmatpush.bf16.msra.mxu1 %v11435_v20  ;;  %v11612_v20 = vld [vmem:[#allocation13 + $0x2d8] sm:$0xf0]  ;;  %v13077_v56 = vld [vmem:[#allocation13 + $0x26c] sm:$0xf]  ;;  %v11842_v33 = vld [vmem:[#allocation16 + $0xa0] sm:$0xf] }
 0x45d   : > { %7068 = vmatpush.bf16.msra.mxu2 %v11563_v42  ;;  %v13121_v42 = vld [vmem:[#allocation13 + $0x3cc] sm:$0xf]  ;;  %v11567_v6 = vor.u32 %v13077_v56, %v11564_v57  ;;  %v11660_v16 = vld [vmem:[#allocation13 + $0x338] sm:$0xf0]  ;;  %v13150_v56 = vld [vmem:[#allocation16 + $0xac] sm:$0xf0] }
 0x45e   : > { %7081 = vmatpush.bf16.msra.mxu3 %v11691_v22  ;;  %v11615_v22 = vor.u32 %v13089_v18, %v11612_v20  ;;  %v11743_v17 = vor.u32 %v13121_v42, %v11740_v21  ;;  %v13109_v61 = vld [vmem:[#allocation13 + $0x36c] sm:$0xf]  ;;  %v11276_v18 = vld [vmem:[#allocation13 + $0x38] sm:$0xf0] }
 0x45f   : > { %7043 = vmatpush.bf16.msra.mxu0 %v11291_v44  ;;  %v13085_v44 = vld [vmem:[#allocation13 + $0x2ac] sm:$0xf]  ;;  %v11404_v21 = vld [vmem:[#allocation13 + $0x138] sm:$0xf0] }
 0x460   : > { %7056 = vmatpush.bf16.msra.mxu1 %v11419_v10  ;;  %v11596_v10 = vld [vmem:[#allocation13 + $0x2b8] sm:$0xf0]  ;;  %v13041_v31 = vld [vmem:[#allocation13 + $0x14c] sm:$0xf] }
 0x461   : > { %7069 = vmatpush.bf16.msra.mxu2 %v11547_v19  ;;  %v13117_v19 = vld [vmem:[#allocation13 + $0x3ac] sm:$0xf] }
 0x462   : > { %7082 = vmatpush.bf16.msra.mxu3 %v11675_v26  ;;  %v11599_v26 = vor.u32 %v13085_v44, %v11596_v10  ;;  %v11727_v51 = vor.u32 %v13117_v19, %v11724_v37  ;;  %v13005_v55 = vld [vmem:[#allocation13 + $0x2c] sm:$0xf]  ;;  %v11260_v44 = vld [vmem:[#allocation13 + $0x18] sm:$0xf0] }
 0x463   : > { %7044 = vmatpush.bf16.msra.mxu0 %v11275_v40  ;;  %v13081_v40 = vld [vmem:[#allocation13 + $0x28c] sm:$0xf]  ;;  %v11279_v29 = vor.u32 %v13005_v55, %v11276_v18  ;;  %v11388_v19 = vld [vmem:[#allocation13 + $0x118] sm:$0xf0]  ;;  %v11778_v55 = vld [vmem:[#allocation16 + $0x20] sm:$0xf] }
 0x464   : > { %7057 = vmatpush.bf16.msra.mxu1 %v11403_v32  ;;  %v11708_v32 = vld [vmem:[#allocation13 + $0x398] sm:$0xf0]  ;;  %v11583_v49 = vor.u32 %v13081_v40, %v11580_v46  ;;  %v13037_v20 = vld [vmem:[#allocation13 + $0x12c] sm:$0xf]  ;;  %v13190_v40 = vld [vmem:[#allocation16 + $0x1ec] sm:$0xf0] }
 0x465   : > { %7070 = vmatpush.bf16.msra.mxu2 %v11531_v23  ;;  %v11327_v23 = vor.u32 %v13017_v38, %v11324_v59  ;;  %v11711_v35 = vor.u32 %v13113_v24, %v11708_v32  ;;  %v13001_v63 = vld [vmem:[#allocation13 + $0xc] sm:$0xf]  ;;  %v11644_v38 = vld [vmem:[#allocation13 + $0x318] sm:$0xf0]  ;;  %v11874_v59 = vld [vmem:[#allocation16 + $0xe0] sm:$0xf] }
 0x466   : > { %7083 = vmatpush.bf16.msra.mxu3 %v11659_v58  ;;  %v11308_v58 = vld [vmem:[#allocation13 + $0x78] sm:$0xf0]  ;;  %v13033_v10 = vld [vmem:[#allocation13 + $0x10c] sm:$0xf]  ;;  %v13134_v18 = vld [vmem:[#allocation16 + $0x2c] sm:$0xf0] }
 0x467   : > { %7045 = vmatpush.bf16.msra.mxu0 %v11259_v60  ;;  %v11692_v60 = vld [vmem:[#allocation13 + $0x378] sm:$0xf0]  ;;  %v11311_v52 = vor.u32 %v13013_v28, %v11308_v58  ;;  %v11391_v46 = vor.u32 %v13033_v10, %v11388_v19  ;;  %v12003_v28 = vor.u32 %v13190_v40, %v12002_v25  ;;  %v11986_v58 = vld [vmem:[#allocation16 + $0x1c0] sm:$0xf]  ;;  %v13162_v10 = vld [vmem:[#allocation16 + $0x10c] sm:$0xf0] }
 0x468   : > { %7058 = vmatpush.bf16.msra.mxu1 %v11387_v30  ;;  %v13009_v30 = vld [vmem:[#allocation13 + $0x4c] sm:$0xf]  ;;  %v11695_v54 = vor.u32 %v13109_v61, %v11692_v60  ;;  %v11987_v57 = vor.u32 %v13186_v62, %v11986_v58  ;;  %v11970_v61 = vld [vmem:[#allocation16 + $0x1a0] sm:$0xf]  ;;  %v13182_v60 = vld [vmem:[#allocation16 + $0x1ac] sm:$0xf0] }
 0x469   : > { %7071 = vmatpush.bf16.msra.mxu2 %v11515_v7  ;;  %v11292_v7 = vld [vmem:[#allocation13 + $0x58] sm:$0xf0]  ;;  %v11860_v25 = vld [vmem:[#allocation16 + $0xd0] sm:$0xf0] }
 0x46a   : > { %7084 = vmatpush.bf16.msra.mxu3 %v11643_v2  ;;  %7046 = vmatmul.bf16.vlgmr.msra.gmra.mxu0 %v15787_v53  ;;  %v11420_v2 = vld [vmem:[#allocation13 + $0x158] sm:$0xf0]  ;;  %v11295_v15 = vor.u32 %v13009_v30, %v11292_v7  ;;  %v11971_v30 = vor.u32 %v13182_v60, %v11970_v61  ;;  %v11954_v7 = vld [vmem:[#allocation16 + $0x180] sm:$0xf]  ;;  %v11844_v58 = vld [vmem:[#allocation16 + $0xb0] sm:$0xf0] }
 0x46b   : > { %7090 = vmatpush.bf16.msrb.mxu0 %v11375_v9  ;;  %7059 = vmatmul.bf16.vlgmr.msra.gmra.mxu1 %v15795_v1  ;;  %v13073_v9 = vld [vmem:[#allocation13 + $0x24c] sm:$0xf]  ;;  %v11423_v27 = vor.u32 %v13041_v31, %v11420_v2  ;;  %v13142_v2 = vld [vmem:[#allocation16 + $0x6c] sm:$0xf0]  ;;  %v12082_v60 = vld [vmem:[#allocation16 + $0x280] sm:$0xf] }
 0x46c   : > { %7103 = vmatpush.bf16.msrb.mxu1 %v11503_v11  ;;  %7072 = vmatmul.bf16.vlgmr.msra.gmra.mxu2 %v15783_v50  ;;  %v11548_v11 = vld [vmem:[#allocation13 + $0x258] sm:$0xf0] }
 0x46d   : > { %7116 = vmatpush.bf16.msrb.mxu2 %v11631_v3  ;;  %7085 = vmatmul.bf16.vlgmr.msra.gmra.mxu3 %v15791_v5  ;;  %v13105_v3 = vld [vmem:[#allocation13 + $0x34c] sm:$0xf] }
 0x46e   : > { %7129 = vmatpush.bf16.msrb.mxu3 %v11759_v8  ;;  %v11551_v8 = vor.u32 %v13073_v9, %v11548_v11  ;;  %v11679_v42 = vor.u32 %v13105_v3, %v11676_v14  ;;  %v11938_v9 = vld [vmem:[#allocation16 + $0x160] sm:$0xf] }
 0x46f   : > { %7091 = vmatpush.bf16.msrb.mxu0 %v11359_v34  ;;  %v13069_v34 = vld [vmem:[#allocation13 + $0x22c] sm:$0xf]  ;;  %v11794_v3 = vld [vmem:[#allocation16 + $0x40] sm:$0xf] }
 0x470   : > { %7104 = vmatpush.bf16.msrb.mxu1 %v11487_v36  ;;  %v11532_v36 = vld [vmem:[#allocation13 + $0x238] sm:$0xf0] }
 0x471   : > { %7117 = vmatpush.bf16.msrb.mxu2 %v11615_v22  ;;  %v13101_v22 = vld [vmem:[#allocation13 + $0x32c] sm:$0xf]  ;;  %v11535_v13 = vor.u32 %v13069_v34, %v11532_v36  ;;  %v11779_v34 = vor.u32 %v13134_v18, %v11778_v55  ;;  %v11762_v36 = vld [vmem:[#allocation16] sm:$0xf]  ;;  %v11940_v55 = vld [vmem:[#allocation16 + $0x170] sm:$0xf0] }
 0x472   : > { %7130 = vmatpush.bf16.msrb.mxu3 %v11743_v17  ;;  %v11407_v17 = vor.u32 %v13037_v20, %v11404_v21  ;;  %v11663_v37 = vor.u32 %v13101_v22, %v11660_v16  ;;  %v13166_v21 = vld [vmem:[#allocation16 + $0x12c] sm:$0xf0]  ;;  %v13156_v16 = vld [vmem:[#allocation16 + $0xe4] sm:$0xf] }
 0x473   : > { %7092 = vmatpush.bf16.msrb.mxu0 %v11343_v45  ;;  %v13065_v45 = vld [vmem:[#allocation13 + $0x20c] sm:$0xf]  ;;  %v13130_v22 = vld [vmem:[#allocation16 + $0xc] sm:$0xf0] }
 0x474   : > { %7105 = vmatpush.bf16.msrb.mxu1 %v11471_v0  ;;  %v11516_v0 = vld [vmem:[#allocation13 + $0x218] sm:$0xf0] }
 0x475   : > { %7118 = vmatpush.bf16.msrb.mxu2 %v11599_v26  ;;  %v13097_v26 = vld [vmem:[#allocation13 + $0x30c] sm:$0xf]  ;;  %v11519_v24 = vor.u32 %v13065_v45, %v11516_v0  ;;  %v12004_v45 = vld [vmem:[#allocation16 + $0x1f0] sm:$0xf0]  ;;  %v11763_v0 = vor.u32 %v13130_v22, %v11762_v36 }
 0x476   : > { %7131 = vmatpush.bf16.msrb.mxu3 %v11727_v51  ;;  %v11263_v51 = vor.u32 %v13001_v63, %v11260_v44  ;;  %v11647_v32 = vor.u32 %v13097_v26, %v11644_v38  ;;  %v12130_v63 = vld [vmem:[#allocation16 + $0x2e0] sm:$0xf]  ;;  %v11796_v36 = vld [vmem:[#allocation16 + $0x50] sm:$0xf0] }
 0x477   : > { %7093 = vmatpush.bf16.msrb.mxu0 %v11327_v23  ;;  %v11875_v23 = vor.u32 %v13158_v39, %v11874_v59  ;;  %v11890_v44 = vld [vmem:[#allocation16 + $0x100] sm:$0xf]  ;;  %v13218_v39 = vld [vmem:[#allocation16 + $0x2cc] sm:$0xf0] }
 0x478   : > { %7106 = vmatpush.bf16.msrb.mxu1 %v11455_v47  ;;  %v11858_v47 = vld [vmem:[#allocation16 + $0xc0] sm:$0xf]  ;;  %v11891_v38 = vor.u32 %v13162_v10, %v11890_v44 }
 0x479   : > { %7119 = vmatpush.bf16.msrb.mxu2 %v11583_v49  ;;  %v13154_v49 = vld [vmem:[#allocation16 + $0xcc] sm:$0xf0]  ;;  %v12114_v59 = vld [vmem:[#allocation16 + $0x2c0] sm:$0xf] }
 0x47a   : > { %7132 = vmatpush.bf16.msrb.mxu3 %v11711_v35  ;;  %v11859_v35 = vor.u32 %v13154_v49, %v11858_v47  ;;  %v12098_v47 = vld [vmem:[#allocation16 + $0x2a0] sm:$0xf]  ;;  %v13214_v49 = vld [vmem:[#allocation16 + $0x2ac] sm:$0xf0] }
 0x47b   : > { %7094 = vmatpush.bf16.msrb.mxu0 %v11311_v52  ;;  %v11843_v52 = vor.u32 %v13150_v56, %v11842_v33  ;;  %v13180_v33 = vld [vmem:[#allocation16 + $0x1a4] sm:$0xf]  ;;  %v11972_v56 = vld [vmem:[#allocation16 + $0x1b0] sm:$0xf0] }
 0x47c   : > { %7107 = vmatpush.bf16.msrb.mxu1 %v11439_v4  ;;  %v11826_v4 = vld [vmem:[#allocation16 + $0x80] sm:$0xf] }
 0x47d   : > { %7120 = vmatpush.bf16.msrb.mxu2 %v11567_v6  ;;  %v13146_v6 = vld [vmem:[#allocation16 + $0x8c] sm:$0xf0] }
 0x47e   : > { %7133 = vmatpush.bf16.msrb.mxu3 %v11695_v54  ;;  %v11827_v31 = vor.u32 %v13146_v6, %v11826_v4  ;;  %v11810_v54 = vld [vmem:[#allocation16 + $0x60] sm:$0xf]  ;;  %v13144_v4 = vld [vmem:[#allocation16 + $0x84] sm:$0xf]  ;;  %v11828_v6 = vld [vmem:[#allocation16 + $0x90] sm:$0xf0] }
 0x47f   : > { %7095 = vmatpush.bf16.msrb.mxu0 %v11295_v15  ;;  %v11811_v11 = vor.u32 %v13142_v2, %v11810_v54  ;;  %v11922_v15 = vld [vmem:[#allocation16 + $0x140] sm:$0xf]  ;;  %v11956_v54 = vld [vmem:[#allocation16 + $0x190] sm:$0xf0]  ;;  %v11831_v2 = vor.u32 %v13144_v4, %v11828_v6 }
 0x480   : > { %7108 = vmatpush.bf16.msrb.mxu1 %v11423_v27  ;;  %v13170_v27 = vld [vmem:[#allocation16 + $0x14c] sm:$0xf0]  ;;  %v11892_v4 = vld [vmem:[#allocation16 + $0x110] sm:$0xf0] }
 0x481   : > { %7121 = vmatpush.bf16.msrb.mxu2 %v11551_v8  ;;  %v11923_v20 = vor.u32 %v13170_v27, %v11922_v15 }
 0x482   : > { %7134 = vmatpush.bf16.msrb.mxu3 %v11679_v42  ;;  %v11906_v42 = vld [vmem:[#allocation16 + $0x120] sm:$0xf] }
 0x483   : > { %7096 = vmatpush.bf16.msrb.mxu0 %v11279_v29  ;;  %v11907_v29 = vor.u32 %v13166_v21, %v11906_v42  ;;  %v12050_v42 = vld [vmem:[#allocation16 + $0x240] sm:$0xf]  ;;  %v13202_v21 = vld [vmem:[#allocation16 + $0x24c] sm:$0xf0] }
 0x484   : > { %7109 = vmatpush.bf16.msrb.mxu1 %v11407_v17  ;;  %v13222_v17 = vld [vmem:[#allocation16 + $0x2ec] sm:$0xf0] }
 0x485   : > { %7122 = vmatpush.bf16.msrb.mxu2 %v11535_v13  ;;  %v11876_v13 = vld [vmem:[#allocation16 + $0xf0] sm:$0xf0]  ;;  %v12131_v19 = vor.u32 %v13222_v17, %v12130_v63  ;;  %v13168_v63 = vld [vmem:[#allocation16 + $0x144] sm:$0xf] }
 0x486   : > { %7135 = vmatpush.bf16.msrb.mxu3 %v11663_v37  ;;  %v13188_v37 = vld [vmem:[#allocation16 + $0x1e4] sm:$0xf]  ;;  %v11879_v26 = vor.u32 %v13156_v16, %v11876_v13  ;;  %v12051_v16 = vor.u32 %v13202_v21, %v12050_v42  ;;  %v11924_v17 = vld [vmem:[#allocation16 + $0x150] sm:$0xf0]  ;;  %v11850_v42 = vld [vmem:[#allocation16 + $0xa8] sm:$0xf] }
 0x487   : > { %7097 = vmatpush.bf16.msrb.mxu0 %v11263_v51  ;;  %v13152_v51 = vld [vmem:[#allocation16 + $0xc4] sm:$0xf]  ;;  %v12007_v40 = vor.u32 %v13188_v37, %v12004_v45  ;;  %v13198_v37 = vld [vmem:[#allocation16 + $0x22c] sm:$0xf0]  ;;  %v13151_v21 = vld [vmem:[#allocation16 + $0xb4] sm:$0xf0] }
 0x488   : > { %7110 = vmatpush.bf16.msrb.mxu1 %v11391_v46  ;;  %v12115_v46 = vor.u32 %v13218_v39, %v12114_v59  ;;  %v11927_v59 = vor.u32 %v13168_v63, %v11924_v17  ;;  %v13242_v63 = vld [vmem:[#allocation16 + $0x38c] sm:$0xf0]  ;;  %v13208_v17 = vld [vmem:[#allocation16 + $0x284] sm:$0xf] }
 0x489   : > { %7123 = vmatpush.bf16.msrb.mxu2 %v11519_v24  ;;  %v13184_v24 = vld [vmem:[#allocation16 + $0x1c4] sm:$0xf] }
 0x48a   : > { %7136 = vmatpush.bf16.msrb.mxu3 %v11647_v32  ;;  %7098 = vmatmul.bf16.vlgmr.msrb.gmra.mxu0 %v15787_v53  ;;  %v13178_v53 = vld [vmem:[#allocation16 + $0x18c] sm:$0xf0]  ;;  %v11988_v32 = vld [vmem:[#allocation16 + $0x1d0] sm:$0xf0] }
 0x48b   : > { %7928 = vmatpush.bf16.msra.mxu0 %v11875_v23  ;;  %7111 = vmatmul.bf16.vlgmr.msrb.gmra.mxu1 %v15795_v1  ;;  %v11955_v1 = vor.u32 %v13178_v53, %v11954_v7  ;;  %v11863_v23 = vor.u32 %v13152_v51, %v11860_v25  ;;  %v11991_v62 = vor.u32 %v13184_v24, %v11988_v32  ;;  %v13164_v25 = vld [vmem:[#allocation16 + $0x124] sm:$0xf]  ;;  %v11764_v32 = vld [vmem:[#allocation16 + $0x10] sm:$0xf0] }
 0x48c   : > { %7941 = vmatpush.bf16.msra.mxu1 %v12003_v28  ;;  %7124 = vmatmul.bf16.vlgmr.msrb.gmra.mxu2 %v15783_v50  ;;  %v13174_v50 = vld [vmem:[#allocation16 + $0x16c] sm:$0xf0]  ;;  %v13148_v28 = vld [vmem:[#allocation16 + $0xa4] sm:$0xf] }
 0x48d   : > { %7137 = vmatmul.bf16.vlgmr.msrb.gmra.mxu3 %v15791_v5  ;;  %v13138_v5 = vld [vmem:[#allocation16 + $0x4c] sm:$0xf0]  ;;  %v11939_v14 = vor.u32 %v13174_v50, %v11938_v9  ;;  %7954 = vmatpush.bf16.msra.mxu2 %v12131_v19  ;;  %v11847_v61 = vor.u32 %v13148_v28, %v11844_v58  ;;  %v12034_v19 = vld [vmem:[#allocation16 + $0x220] sm:$0xf]  ;;  %v13128_v24 = vld [vmem:[#allocation16 + $0x4] sm:$0xf] }
 0x48e   : > { %v11795_v8 = vor.u32 %v13138_v5, %v11794_v3  ;;  %v13206_v9 = vld [vmem:[#allocation16 + $0x26c] sm:$0xf0]  ;;  %v11812_v3 = vld [vmem:[#allocation16 + $0x70] sm:$0xf0]  ;;  %v12035_v39 = vor.u32 %v13198_v37, %v12034_v19  ;;  %v12018_v28 = vld [vmem:[#allocation16 + $0x200] sm:$0xf] }
 0x48f   : > { %7929 = vmatpush.bf16.msra.mxu0 %v11859_v35  ;;  %v12099_v35 = vor.u32 %v13214_v49, %v12098_v47  ;;  %v11882_v47 = vld [vmem:[#allocation16 + $0xe8] sm:$0xf]  ;;  %v13159_v49 = vld [vmem:[#allocation16 + $0xf4] sm:$0xf0]  ;;  %v13194_v58 = vld [vmem:[#allocation16 + $0x20c] sm:$0xf0] }
 0x490   : > { %7942 = vmatpush.bf16.msra.mxu1 %v11987_v57  ;;  %v15813_v57 = vld [vmem:[#allocation15] sm:$0xf]  ;;  %v12084_v19 = vld [vmem:[#allocation16 + $0x290] sm:$0xf0] }
 0x491   : > { %7955 = vmatpush.bf16.msra.mxu2 %v12115_v46  ;;  %v6286_v53 = vperm.slane %v15813_v57, 0  ;;  %v12087_v37 = vor.u32 %v13208_v17, %v12084_v19  ;;  %v12020_v17 = vld [vmem:[#allocation16 + $0x210] sm:$0xf0]  ;;  %v13252_v19 = vld [vmem:[#allocation16 + $0x3e4] sm:$0xf] }
 0x493   : > { %7930 = vmatpush.bf16.msra.mxu0 %v11843_v52  ;;  %v13210_v52 = vld [vmem:[#allocation16 + $0x28c] sm:$0xf0] }
 0x494   : > { %7943 = vmatpush.bf16.msra.mxu1 %v11971_v30  ;;  %v11975_v30 = vor.u32 %v13180_v33, %v11972_v56  ;;  %v12083_v7 = vor.u32 %v13210_v52, %v12082_v60  ;;  %v12019_v33 = vor.u32 %v13194_v58, %v12018_v28  ;;  %v13160_v56 = vld [vmem:[#allocation16 + $0x104] sm:$0xf]  ;;  %v13254_v60 = vld [vmem:[#allocation16 + $0x3ec] sm:$0xf0] }
 0x495   : > { %7956 = vmatpush.bf16.msra.mxu2 %v12099_v35  ;;  %v13234_v28 = vld [vmem:[#allocation16 + $0x34c] sm:$0xf0]  ;;  %v13200_v58 = vld [vmem:[#allocation16 + $0x244] sm:$0xf] }
 0x497   : > { %7931 = vmatpush.bf16.msra.mxu0 %v11827_v31  ;;  %v13176_v31 = vld [vmem:[#allocation16 + $0x184] sm:$0xf] }
 0x498   : > { %7944 = vmatpush.bf16.msra.mxu1 %v11955_v1  ;;  %v12066_v1 = vld [vmem:[#allocation16 + $0x260] sm:$0xf]  ;;  %v11959_v5 = vor.u32 %v13176_v31, %v11956_v54  ;;  %v11767_v54 = vor.u32 %v13128_v24, %v11764_v32 }
 0x499   : > { %7957 = vmatpush.bf16.msra.mxu2 %v12083_v7  ;;  %v12132_v7 = vld [vmem:[#allocation16 + $0x2f0] sm:$0xf0] }
 0x49b   : > { %7932 = vmatpush.bf16.msra.mxu0 %v11811_v11  ;;  %v13140_v11 = vld [vmem:[#allocation16 + $0x64] sm:$0xf] }
 0x49c   : > { %7945 = vmatpush.bf16.msra.mxu1 %v11939_v14  ;;  %v12067_v14 = vor.u32 %v13206_v9, %v12066_v1  ;;  %v11815_v18 = vor.u32 %v13140_v11, %v11812_v3  ;;  %v11895_v1 = vor.u32 %v13160_v56, %v11892_v4  ;;  %v12242_v9 = vld [vmem:[#allocation16 + $0x3c0] sm:$0xf]  ;;  %v13216_v11 = vld [vmem:[#allocation16 + $0x2c4] sm:$0xf]  ;;  %v11866_v3 = vld [vmem:[#allocation16 + $0xc8] sm:$0xf] }
 0x49d   : > { %v13139_v56 = vld [vmem:[#allocation16 + $0x54] sm:$0xf0] }
 0x49e   : > { %7958 = vmatpush.bf16.msra.mxu2 %v12067_v14 }
 0x49f   : > { %7933 = vmatpush.bf16.msra.mxu0 %v11795_v8  ;;  %v13172_v8 = vld [vmem:[#allocation16 + $0x164] sm:$0xf] }
 0x4a0   : > { %7946 = vmatpush.bf16.msra.mxu1 %v11923_v20  ;;  %v11943_v22 = vor.u32 %v13172_v8, %v11940_v55  ;;  %v12226_v55 = vld [vmem:[#allocation16 + $0x3a0] sm:$0xf] }
 0x4a2   : > { %7959 = vmatpush.bf16.msra.mxu2 %v12051_v16  ;;  %v11851_v16 = vor.u32 %v13151_v21, %v11850_v42  ;;  %v13157_v42 = vld [vmem:[#allocation16 + $0xec] sm:$0xf]  ;;  %v11884_v21 = vld [vmem:[#allocation16 + $0xf8] sm:$0xf0] }
 0x4a3   : > { %7934 = vmatpush.bf16.msra.mxu0 %v11779_v34  ;;  %v13136_v34 = vld [vmem:[#allocation16 + $0x44] sm:$0xf] }
 0x4a4   : > { %7947 = vmatpush.bf16.msra.mxu1 %v11907_v29  ;;  %v11799_v10 = vor.u32 %v13136_v34, %v11796_v36  ;;  %v12100_v36 = vld [vmem:[#allocation16 + $0x2b0] sm:$0xf0] }
 0x4a6   : > { %7960 = vmatpush.bf16.msra.mxu2 %v12035_v39  ;;  %v11818_v39 = vld [vmem:[#allocation16 + $0x68] sm:$0xf] }
 0x4a7   : > { %7935 = vmatpush.bf16.msra.mxu0 %v11763_v0  ;;  %v6943_v50 = vpop.f32.mrf.mxu0  ;;  %v13132_v0 = vld [vmem:[#allocation16 + $0x24] sm:$0xf] }
 0x4a8   : > { %7948 = vmatpush.bf16.msra.mxu1 %v11891_v38  ;;  %v6944_v15 = vadd.f32 %v6943_v50, %v6286_v53  ;;  %v6956_v27 = vpop.f32.mrf.mxu1  ;;  %v13250_v50 = vld [vmem:[#allocation16 + $0x3cc] sm:$0xf0] }
 0x4a9   : > { %v12243_v14 = vor.u32 %v13250_v50, %v12242_v9  ;;  %v12036_v50 = vld [vmem:[#allocation16 + $0x230] sm:$0xf0] }
 0x4aa   : > { %v6957_v20 = vadd.f32 %v6956_v27, %v6944_v15  ;;  %7961 = vmatpush.bf16.msra.mxu2 %v12019_v33  ;;  %v12116_v15 = vld [vmem:[#allocation16 + $0x2d0] sm:$0xf0]  ;;  %v11802_v33 = vld [vmem:[#allocation16 + $0x48] sm:$0xf] }
 0x4ab   : > { %7980 = vmatpush.bf16.msrb.mxu0 %v11879_v26  ;;  %v11780_v26 = vld [vmem:[#allocation16 + $0x30] sm:$0xf0]  ;;  %v12119_v27 = vor.u32 %v13216_v11, %v12116_v15 }
 0x4ac   : > { %7993 = vmatpush.bf16.msrb.mxu1 %v12007_v40  ;;  %v11908_v40 = vld [vmem:[#allocation16 + $0x130] sm:$0xf0] }
 0x4ad   : > { %v11911_v35 = vor.u32 %v13164_v25, %v11908_v40  ;;  %v12068_v40 = vld [vmem:[#allocation16 + $0x270] sm:$0xf0] }
 0x4af   : > { %7981 = vmatpush.bf16.msrb.mxu0 %v11863_v23  ;;  %v6945_v38 = vpop.f32.mrf.mxu0  ;;  %v11783_v23 = vor.u32 %v13132_v0, %v11780_v26  ;;  %v12194_v26 = vld [vmem:[#allocation16 + $0x360] sm:$0xf] }
 0x4b0   : > { %7994 = vmatpush.bf16.msrb.mxu1 %v11991_v62  ;;  %v6982_v44 = vpop.f32.mrf.mxu3  ;;  %v6958_v51 = vpop.f32.mrf.mxu1  ;;  %v13238_v38 = vld [vmem:[#allocation16 + $0x36c] sm:$0xf0] }
 0x4b1   : > { %v6969_v29 = vpop.f32.mrf.mxu2  ;;  %v13143_v51 = vld [vmem:[#allocation16 + $0x74] sm:$0xf0]  ;;  %v12195_v25 = vor.u32 %v13238_v38, %v12194_v26 }
 0x4b2   : > { %v6970_v13 = vadd.f32 %v6969_v29, %v6957_v20  ;;  %v13212_v20 = vld [vmem:[#allocation16 + $0x2a4] sm:$0xf]  ;;  %v12210_v29 = vld [vmem:[#allocation16 + $0x380] sm:$0xf] }
 0x4b3   : > { %7982 = vmatpush.bf16.msrb.mxu0 %v11847_v61  ;;  %v12258_v61 = vld [vmem:[#allocation16 + $0x3e0] sm:$0xf] }
 0x4b4   : > { %7995 = vmatpush.bf16.msrb.mxu1 %v11975_v30  ;;  %v6983_v45 = vadd.f32 %v6982_v44, %v6970_v13  ;;  %v12259_v6 = vor.u32 %v13254_v60, %v12258_v61  ;;  %v13220_v30 = vld [vmem:[#allocation16 + $0x2e4] sm:$0xf]  ;;  %v11834_v13 = vld [vmem:[#allocation16 + $0x88] sm:$0xf]  ;;  %v13147_v44 = vld [vmem:[#allocation16 + $0x94] sm:$0xf0] }
 0x4b5   : > { %v12135_v31 = vor.u32 %v13220_v30, %v12132_v7  ;;  %v11835_v0 = vor.u32 %v13147_v44, %v11834_v13  ;;  %v12052_v60 = vld [vmem:[#allocation16 + $0x250] sm:$0xf0]  ;;  %v11803_v7 = vor.u32 %v13139_v56, %v11802_v33  ;;  %v13187_v44 = vld [vmem:[#allocation16 + $0x1d4] sm:$0xf0]  ;;  %v11852_v33 = vld [vmem:[#allocation16 + $0xb8] sm:$0xf0] }
 0x4b6   : > { %v7142_v46 = vmax.f32 %v6983_v45, 0.0  ;;  %7967 = vmatpush.bf16.msra.mxu3 %v12259_v6  ;;  %v6287_v45 = vperm.slane %v15813_v57, 1  ;;  %v11962_v56 = vld [vmem:[#allocation16 + $0x188] sm:$0xf] }
 0x4b7   : > { %7983 = vmatpush.bf16.msrb.mxu0 %v11831_v2  ;;  %v11883_v2 = vor.u32 %v13159_v49, %v11882_v47  ;;  %8006 = vmatpush.bf16.msrb.mxu2 %v12135_v31  ;;  %v11819_v47 = vor.u32 %v13143_v51, %v11818_v39  ;;  %v12178_v49 = vld [vmem:[#allocation16 + $0x340] sm:$0xf]  ;;  %v13230_v31 = vld [vmem:[#allocation16 + $0x32c] sm:$0xf0]  ;;  %v13153_v51 = vld [vmem:[#allocation16 + $0xcc] sm:$0xf] }
 0x4b8   : > { %7996 = vmatpush.bf16.msrb.mxu1 %v11959_v5  ;;  %v15816_v62 = vpack.c.bf16 %v7142_v46, %v7142_v46  ;;  %v6984_v53 = vpop.f32.mrf.mxu3  ;;  %v13155_v5 = vld [vmem:[#allocation16 + $0xd4] sm:$0xf0]  ;;  %v12179_v61 = vor.u32 %v13234_v28, %v12178_v49  ;;  %v12228_v49 = vld [vmem:[#allocation16 + $0x3b0] sm:$0xf0] }
 0x4b9   : > { %v6971_v52 = vpop.f32.mrf.mxu2  ;;  %v11867_v8 = vor.u32 %v13155_v5, %v11866_v3  ;;  %v12162_v53 = vld [vmem:[#allocation16 + $0x320] sm:$0xf]  ;;  %v12010_v3 = vld [vmem:[#allocation16 + $0x1e8] sm:$0xf]  ;;  %v13191_v5 = vld [vmem:[#allocation16 + $0x1f4] sm:$0xf0] }
 0x4ba   : > { %7936 = vmatmul.bf16.vlgmr.msra.gmra.mxu0 %v15816_v62  ;;  %7968 = vmatpush.bf16.msra.mxu3 %v12243_v14  ;;  %v12055_v52 = vor.u32 %v13200_v58, %v12052_v60  ;;  %v12163_v9 = vor.u32 %v13230_v31, %v12162_v53  ;;  %v11836_v53 = vld [vmem:[#allocation16 + $0x98] sm:$0xf0]  ;;  %v11946_v31 = vld [vmem:[#allocation16 + $0x168] sm:$0xf] }
 0x4bb   : > { %7984 = vmatpush.bf16.msrb.mxu0 %v11815_v18  ;;  %v13246_v18 = vld [vmem:[#allocation16 + $0x3ac] sm:$0xf0]  ;;  %8007 = vmatpush.bf16.msrb.mxu2 %v12119_v27  ;;  %v11770_v27 = vld [vmem:[#allocation16 + $0x8] sm:$0xf] }
 0x4bc   : > { %7997 = vmatpush.bf16.msrb.mxu1 %v11943_v22  ;;  %v12227_v34 = vor.u32 %v13246_v18, %v12226_v55  ;;  %v12103_v22 = vor.u32 %v13212_v20, %v12100_v36  ;;  %v13226_v36 = vld [vmem:[#allocation16 + $0x30c] sm:$0xf0] }
 0x4be   : > { %7969 = vmatpush.bf16.msra.mxu3 %v12227_v34  ;;  %v12146_v34 = vld [vmem:[#allocation16 + $0x300] sm:$0xf] }
 0x4bf   : > { %7985 = vmatpush.bf16.msrb.mxu0 %v11799_v10  ;;  %8008 = vmatpush.bf16.msrb.mxu2 %v12103_v22  ;;  %v12211_v10 = vor.u32 %v13242_v63, %v12210_v29  ;;  %v12011_v22 = vor.u32 %v13191_v5, %v12010_v3  ;;  %v12147_v29 = vor.u32 %v13226_v36, %v12146_v34  ;;  %v13192_v63 = vld [vmem:[#allocation16 + $0x204] sm:$0xf]  ;;  %v12196_v5 = vld [vmem:[#allocation16 + $0x370] sm:$0xf0]  ;;  %v13137_v34 = vld [vmem:[#allocation16 + $0x4c] sm:$0xf] }
 0x4c0   : > { %7998 = vmatpush.bf16.msrb.mxu1 %v11927_v59  ;;  %v13204_v59 = vld [vmem:[#allocation16 + $0x264] sm:$0xf] }
 0x4c1   : > { %v12071_v24 = vor.u32 %v13204_v59, %v12068_v40  ;;  %v11887_v59 = vor.u32 %v13157_v42, %v11884_v21  ;;  %v12244_v40 = vld [vmem:[#allocation16 + $0x3d0] sm:$0xf0]  ;;  %v13236_v3 = vld [vmem:[#allocation16 + $0x364] sm:$0xf] }
 0x4c2   : > { %7970 = vmatpush.bf16.msra.mxu3 %v12211_v10  ;;  %v12023_v10 = vor.u32 %v13192_v63, %v12020_v17  ;;  %v13232_v36 = vld [vmem:[#allocation16 + $0x344] sm:$0xf]  ;;  %v13167_v63 = vld [vmem:[#allocation16 + $0x134] sm:$0xf0] }
 0x4c3   : > { %7986 = vmatpush.bf16.msrb.mxu0 %v11783_v23  ;;  %8009 = vmatpush.bf16.msrb.mxu2 %v12087_v37  ;;  %v12260_v37 = vld [vmem:[#allocation16 + $0x3f0] sm:$0xf0] }
 0x4c4   : > { %7999 = vmatpush.bf16.msrb.mxu1 %v11911_v35 }
 0x4c6   : > { %7971 = vmatpush.bf16.msra.mxu3 %v12195_v25  ;;  %v13248_v25 = vld [vmem:[#allocation16 + $0x3c4] sm:$0xf] }
 0x4c7   : > { %7987 = vmatpush.bf16.msrb.mxu0 %v11767_v54  ;;  %v6995_v46 = vpop.f32.mrf.mxu0  ;;  %8010 = vmatpush.bf16.msrb.mxu2 %v12071_v24  ;;  %v13196_v54 = vld [vmem:[#allocation16 + $0x224] sm:$0xf]  ;;  %v11978_v24 = vld [vmem:[#allocation16 + $0x1a8] sm:$0xf] }
 0x4c8   : > { %8000 = vmatpush.bf16.msrb.mxu1 %v11895_v1  ;;  %v6996_v32 = vadd.f32 %v6995_v46, %v6287_v45  ;;  %v7008_v23 = vpop.f32.mrf.mxu1  ;;  %v13135_v1 = vld [vmem:[#allocation16 + $0x34] sm:$0xf0]  ;;  %v12039_v15 = vor.u32 %v13196_v54, %v12036_v50  ;;  %v11868_v46 = vld [vmem:[#allocation16 + $0xd8] sm:$0xf0] }
 0x4c9   : > { %v11871_v28 = vor.u32 %v13153_v51, %v11868_v46  ;;  %v13175_v54 = vld [vmem:[#allocation16 + $0x174] sm:$0xf0]  ;;  %v11898_v51 = vld [vmem:[#allocation16 + $0x108] sm:$0xf]  ;;  %v13189_v46 = vld [vmem:[#allocation16 + $0x1ec] sm:$0xf] }
 0x4ca   : > { %7988 = vmatmul.bf16.vlgmr.msrb.gmra.mxu0 %v15816_v62  ;;  %v7009_v35 = vadd.f32 %v7008_v23, %v6996_v32  ;;  %7972 = vmatpush.bf16.msra.mxu3 %v12179_v61  ;;  %v13183_v32 = vld [vmem:[#allocation16 + $0x1b4] sm:$0xf0]  ;;  %v12247_v23 = vor.u32 %v13248_v25, %v12244_v40  ;;  %v11947_v50 = vor.u32 %v13175_v54, %v11946_v31  ;;  %v12122_v54 = vld [vmem:[#allocation16 + $0x2c8] sm:$0xf] }
 0x4cb   : > { %8032 = vmatpush.bf16.msra.mxu0 %v11883_v2  ;;  %v11786_v2 = vld [vmem:[#allocation16 + $0x28] sm:$0xf]  ;;  %8011 = vmatpush.bf16.msrb.mxu2 %v12055_v52  ;;  %v11979_v58 = vor.u32 %v13183_v32, %v11978_v24  ;;  %v13179_v61 = vld [vmem:[#allocation16 + $0x194] sm:$0xf0]  ;;  %v13240_v52 = vld [vmem:[#allocation16 + $0x384] sm:$0xf] }
 0x4cc   : > { %v11787_v20 = vor.u32 %v13135_v1, %v11786_v2  ;;  %v6288_v1 = vperm.slane %v15813_v57, 2  ;;  %v13163_v25 = vld [vmem:[#allocation16 + $0x114] sm:$0xf0]  ;;  %v12012_v24 = vld [vmem:[#allocation16 + $0x1f8] sm:$0xf0] }
 0x4ce   : > { %7973 = vmatpush.bf16.msra.mxu3 %v12163_v9 }
 0x4cf   : > { %8033 = vmatpush.bf16.msra.mxu0 %v11867_v8  ;;  %v7021_v4 = vpop.f32.mrf.mxu2  ;;  %v6997_v14 = vpop.f32.mrf.mxu0  ;;  %v13131_v8 = vld [vmem:[#allocation16 + $0x14] sm:$0xf0]  ;;  %8012 = vmatpush.bf16.msrb.mxu2 %v12039_v15  ;;  %v11930_v15 = vld [vmem:[#allocation16 + $0x148] sm:$0xf] }
 0x4d0   : > { %v7022_v6 = vadd.f32 %v7021_v4, %v7009_v35  ;;  %v7034_v30 = vpop.f32.mrf.mxu3  ;;  %v7010_v55 = vpop.f32.mrf.mxu1  ;;  %v11771_v26 = vor.u32 %v13131_v8, %v11770_v27  ;;  %v13149_v35 = vld [vmem:[#allocation16 + $0xac] sm:$0xf]  ;;  %v12212_v4 = vld [vmem:[#allocation16 + $0x390] sm:$0xf0]  ;;  %v11820_v14 = vld [vmem:[#allocation16 + $0x78] sm:$0xf0]  ;;  %v12199_v8 = vor.u32 %v13236_v3, %v12196_v5 }
 0x4d1   : > { %v12215_v2 = vor.u32 %v13240_v52, %v12212_v4  ;;  %v13171_v27 = vld [vmem:[#allocation16 + $0x154] sm:$0xf0]  ;;  %v13129_v52 = vld [vmem:[#allocation16 + $0xc] sm:$0xf]  ;;  %v11772_v4 = vld [vmem:[#allocation16 + $0x18] sm:$0xf0] }
 0x4d2   : > { %v7035_v11 = vadd.f32 %v7034_v30, %v7022_v6  ;;  %7974 = vmatpush.bf16.msra.mxu3 %v12147_v29  ;;  %v11855_v6 = vor.u32 %v13149_v35, %v11852_v33  ;;  %v11963_v30 = vor.u32 %v13179_v61, %v11962_v56  ;;  %v11931_v21 = vor.u32 %v13171_v27, %v11930_v15  ;;  %v11914_v29 = vld [vmem:[#allocation16 + $0x128] sm:$0xf]  ;;  %v13224_v33 = vld [vmem:[#allocation16 + $0x304] sm:$0xf]  ;;  %v12148_v56 = vld [vmem:[#allocation16 + $0x310] sm:$0xf0] }
 0x4d3   : > { %8034 = vmatpush.bf16.msra.mxu0 %v11851_v16  ;;  %v11994_v16 = vld [vmem:[#allocation16 + $0x1c8] sm:$0xf]  ;;  %8013 = vmatpush.bf16.msrb.mxu2 %v12023_v10  ;;  %v13181_v5 = vld [vmem:[#allocation16 + $0x1ac] sm:$0xf]  ;;  %v13215_v27 = vld [vmem:[#allocation16 + $0x2b4] sm:$0xf0] }
 0x4d4   : > { %v7143_v18 = vmax.f32 %v7035_v11, 0.0  ;;  %v11995_v39 = vor.u32 %v13187_v44, %v11994_v16  ;;  %v13141_v11 = vld [vmem:[#allocation16 + $0x6c] sm:$0xf]  ;;  %v11804_v16 = vld [vmem:[#allocation16 + $0x58] sm:$0xf0] }
 0x4d5   : > { %v11823_v42 = vor.u32 %v13141_v11, %v11820_v14  ;;  %v11980_v14 = vld [vmem:[#allocation16 + $0x1b8] sm:$0xf0]  ;;  %v12106_v15 = vld [vmem:[#allocation16 + $0x2a8] sm:$0xf] }
 0x4d6   : > { %v15821_v13 = vpack.c.bf16 %v7143_v18, %v7143_v18 }
 0x4d7   : > { %8035 = vmatpush.bf16.msra.mxu0 %v11835_v0  ;;  %v7023_v45 = vpop.f32.mrf.mxu2  ;;  %v12263_v0 = vor.u32 %v13252_v19, %v12260_v37  ;;  %v11807_v19 = vor.u32 %v13137_v34, %v11804_v16  ;;  %v11915_v37 = vor.u32 %v13167_v63, %v11914_v29  ;;  %v11948_v16 = vld [vmem:[#allocation16 + $0x178] sm:$0xf0]  ;;  %v12074_v29 = vld [vmem:[#allocation16 + $0x268] sm:$0xf]  ;;  %v13207_v63 = vld [vmem:[#allocation16 + $0x274] sm:$0xf0] }
 0x4d8   : > { %7949 = vmatmul.bf16.vlgmr.msra.gmra.mxu1 %v15821_v13  ;;  %v7036_v38 = vpop.f32.mrf.mxu3  ;;  %v13133_v45 = vld [vmem:[#allocation16 + $0x2c] sm:$0xf] }
 0x4d9   : > { %8045 = vmatpush.bf16.msra.mxu1 %v12011_v22  ;;  %8019 = vmatpush.bf16.msrb.mxu3 %v12263_v0  ;;  %v12180_v22 = vld [vmem:[#allocation16 + $0x350] sm:$0xf0]  ;;  %v13228_v0 = vld [vmem:[#allocation16 + $0x324] sm:$0xf] }
 0x4da   : > { %v12183_v17 = vor.u32 %v13232_v36, %v12180_v22  ;;  %v13173_v22 = vld [vmem:[#allocation16 + $0x16c] sm:$0xf] }
 0x4db   : > { %8036 = vmatpush.bf16.msra.mxu0 %v11819_v47  ;;  %v13244_v47 = vld [vmem:[#allocation16 + $0x3a4] sm:$0xf] }
 0x4dc   : > { %v12231_v60 = vor.u32 %v13244_v47, %v12228_v49  ;;  %v12138_v47 = vld [vmem:[#allocation16 + $0x2e8] sm:$0xf]  ;;  %v13223_v49 = vld [vmem:[#allocation16 + $0x2f4] sm:$0xf0] }
 0x4dd   : > { %8046 = vmatpush.bf16.msra.mxu1 %v11995_v39  ;;  %8020 = vmatpush.bf16.msrb.mxu3 %v12247_v23  ;;  %v11788_v39 = vld [vmem:[#allocation16 + $0x38] sm:$0xf0] }
 0x4df   : > { %8037 = vmatpush.bf16.msra.mxu0 %v11803_v7  ;;  %v13145_v7 = vld [vmem:[#allocation16 + $0x8c] sm:$0xf] }
 0x4e0   : > { %v11839_v9 = vor.u32 %v13145_v7, %v11836_v53  ;;  %v11996_v7 = vld [vmem:[#allocation16 + $0x1d8] sm:$0xf0]  ;;  %v12151_v53 = vor.u32 %v13224_v33, %v12148_v56  ;;  %v12026_v33 = vld [vmem:[#allocation16 + $0x208] sm:$0xf]  ;;  %v13195_v56 = vld [vmem:[#allocation16 + $0x214] sm:$0xf0] }
 0x4e1   : > { %8047 = vmatpush.bf16.msra.mxu1 %v11979_v58  ;;  %8021 = vmatpush.bf16.msrb.mxu3 %v12231_v60  ;;  %v11899_v58 = vor.u32 %v13163_v25, %v11898_v51  ;;  %v12015_v60 = vor.u32 %v13189_v46, %v12012_v24  ;;  %v13165_v51 = vld [vmem:[#allocation16 + $0x12c] sm:$0xf]  ;;  %v11916_v25 = vld [vmem:[#allocation16 + $0x138] sm:$0xf0]  ;;  %v13199_v46 = vld [vmem:[#allocation16 + $0x234] sm:$0xf0] }
 0x4e2   : > { %v11919_v24 = vor.u32 %v13165_v51, %v11916_v25  ;;  %v13197_v51 = vld [vmem:[#allocation16 + $0x22c] sm:$0xf]  ;;  %v12044_v25 = vld [vmem:[#allocation16 + $0x238] sm:$0xf0] }
 0x4e3   : > { %8038 = vmatpush.bf16.msra.mxu0 %v11787_v20 }
 0x4e5   : > { %8048 = vmatpush.bf16.msra.mxu1 %v11963_v30  ;;  %8022 = vmatpush.bf16.msrb.mxu3 %v12215_v2  ;;  %v13185_v30 = vld [vmem:[#allocation16 + $0x1cc] sm:$0xf]  ;;  %v13219_v2 = vld [vmem:[#allocation16 + $0x2d4] sm:$0xf0] }
 0x4e6   : > { %v12123_v3 = vor.u32 %v13219_v2, %v12122_v54 }
 0x4e7   : > { %8039 = vmatpush.bf16.msra.mxu0 %v11771_v26  ;;  %v7047_v55 = vpop.f32.mrf.mxu0  ;;  %v12164_v26 = vld [vmem:[#allocation16 + $0x330] sm:$0xf0] }
 0x4e8   : > { %8001 = vmatmul.bf16.vlgmr.msrb.gmra.mxu1 %v15821_v13  ;;  %v7048_v18 = vadd.f32 %v7047_v55, %v6288_v1  ;;  %v7060_v20 = vpop.f32.mrf.mxu1  ;;  %v12167_v40 = vor.u32 %v13228_v0, %v12164_v26  ;;  %v11775_v1 = vor.u32 %v13129_v52, %v11772_v4  ;;  %v12107_v55 = vor.u32 %v13215_v27, %v12106_v15  ;;  %v13203_v0 = vld [vmem:[#allocation16 + $0x254] sm:$0xf0]  ;;  %v12140_v52 = vld [vmem:[#allocation16 + $0x2f8] sm:$0xf0] }
 0x4e9   : > { %8049 = vmatpush.bf16.msra.mxu1 %v11947_v50  ;;  %8023 = vmatpush.bf16.msrb.mxu3 %v12199_v8  ;;  %v11999_v50 = vor.u32 %v13185_v30, %v11996_v7  ;;  %v11983_v8 = vor.u32 %v13181_v5, %v11980_v14  ;;  %v12266_v30 = vld [vmem:[#allocation16 + $0x3e8] sm:$0xf]  ;;  %v13255_v7 = vld [vmem:[#allocation16 + $0x3f4] sm:$0xf0] }
 0x4ea   : > { %8040 = vmatmul.bf16.vlgmr.msra.gmra.mxu0 %v15816_v62  ;;  %v7061_v44 = vadd.f32 %v7060_v20, %v7048_v18  ;;  %v13177_v18 = vld [vmem:[#allocation16 + $0x18c] sm:$0xf]  ;;  %v11964_v20 = vld [vmem:[#allocation16 + $0x198] sm:$0xf0]  ;;  %v13251_v5 = vld [vmem:[#allocation16 + $0x3d4] sm:$0xf0] }
 0x4eb   : > { %8084 = vmatpush.bf16.msrb.mxu0 %v11887_v59  ;;  %v11967_v34 = vor.u32 %v13177_v18, %v11964_v20  ;;  %v12108_v18 = vld [vmem:[#allocation16 + $0x2b8] sm:$0xf0]  ;;  %v12234_v20 = vld [vmem:[#allocation16 + $0x3a8] sm:$0xf] }
 0x4ed   : > { %8050 = vmatpush.bf16.msra.mxu1 %v11931_v21  ;;  %8024 = vmatpush.bf16.msrb.mxu3 %v12183_v17  ;;  %v13211_v21 = vld [vmem:[#allocation16 + $0x294] sm:$0xf0]  ;;  %v6289_v17 = vperm.slane %v15813_v57, 3 }
 0x4ef   : > { %8085 = vmatpush.bf16.msrb.mxu0 %v11871_v28  ;;  %v7073_v10 = vpop.f32.mrf.mxu2  ;;  %v7049_v23 = vpop.f32.mrf.mxu0  ;;  %v11791_v28 = vor.u32 %v13133_v45, %v11788_v39 }
 0x4f0   : > { %v7074_v38 = vadd.f32 %v7073_v10, %v7061_v44  ;;  %v7086_v59 = vpop.f32.mrf.mxu3  ;;  %v7062_v35 = vpop.f32.mrf.mxu1  ;;  %v11951_v44 = vor.u32 %v13173_v22, %v11948_v16  ;;  %v12075_v10 = vor.u32 %v13207_v63, %v12074_v29  ;;  %v12092_v22 = vld [vmem:[#allocation16 + $0x298] sm:$0xf0]  ;;  %v12218_v16 = vld [vmem:[#allocation16 + $0x388] sm:$0xf]  ;;  %v13243_v29 = vld [vmem:[#allocation16 + $0x394] sm:$0xf0] }
 0x4f1   : > { %8051 = vmatpush.bf16.msra.mxu1 %v11915_v37  ;;  %8025 = vmatpush.bf16.msrb.mxu3 %v12167_v40  ;;  %v11932_v37 = vld [vmem:[#allocation16 + $0x158] sm:$0xf0]  ;;  %v12042_v40 = vld [vmem:[#allocation16 + $0x228] sm:$0xf] }
 0x4f2   : > { %v7087_v32 = vadd.f32 %v7086_v59, %v7074_v38  ;;  %v12043_v23 = vor.u32 %v13199_v46, %v12042_v40  ;;  %v13231_v40 = vld [vmem:[#allocation16 + $0x334] sm:$0xf0]  ;;  %v12047_v46 = vor.u32 %v13197_v51, %v12044_v25 }
 0x4f3   : > { %8086 = vmatpush.bf16.msrb.mxu0 %v11855_v6  ;;  %v12139_v6 = vor.u32 %v13223_v49, %v12138_v47  ;;  %v13161_v47 = vld [vmem:[#allocation16 + $0x10c] sm:$0xf]  ;;  %v11900_v49 = vld [vmem:[#allocation16 + $0x118] sm:$0xf0] }
 0x4f4   : > { %v7144_v61 = vmax.f32 %v7087_v32, 0.0 }
 0x4f5   : > { %8052 = vmatpush.bf16.msra.mxu1 %v11899_v58  ;;  %8026 = vmatpush.bf16.msrb.mxu3 %v12151_v53  ;;  %v12027_v53 = vor.u32 %v13195_v56, %v12026_v33 }
 0x4f6   : > { %v15827_v31 = vpack.c.bf16 %v7144_v61, %v7144_v61 }
 0x4f7   : > { %8087 = vmatpush.bf16.msrb.mxu0 %v11839_v9  ;;  %v7075_v9 = vpop.f32.mrf.mxu2 }
 0x4f8   : > { %7962 = vmatmul.bf16.vlgmr.msra.gmra.mxu2 %v15827_v31  ;;  %v7088_v11 = vpop.f32.mrf.mxu3  ;;  %8053 = vmatmul.bf16.vlgmr.msra.gmra.mxu1 %v15821_v13  ;;  %v13217_v9 = vld [vmem:[#allocation16 + $0x2cc] sm:$0xf] }
 0x4f9   : > { %8097 = vmatpush.bf16.msrb.mxu1 %v12015_v60  ;;  %8058 = vmatpush.bf16.msra.mxu2 %v12139_v6  ;;  %v13221_v60 = vld [vmem:[#allocation16 + $0x2ec] sm:$0xf]  ;;  %v11903_v6 = vor.u32 %v13161_v47, %v11900_v49  ;;  %v12154_v47 = vld [vmem:[#allocation16 + $0x308] sm:$0xf]  ;;  %v13227_v49 = vld [vmem:[#allocation16 + $0x314] sm:$0xf0] }
 0x4fa   : > { %v12143_v2 = vor.u32 %v13221_v60, %v12140_v52  ;;  %v12155_v33 = vor.u32 %v13227_v49, %v12154_v47  ;;  %v12252_v60 = vld [vmem:[#allocation16 + $0x3d8] sm:$0xf0] }
 0x4fb   : > { %8088 = vmatpush.bf16.msrb.mxu0 %v11823_v42  ;;  %v12090_v42 = vld [vmem:[#allocation16 + $0x288] sm:$0xf] }
 0x4fc   : > { %v12091_v36 = vor.u32 %v13211_v21, %v12090_v42  ;;  %v13247_v42 = vld [vmem:[#allocation16 + $0x3b4] sm:$0xf0] }
 0x4fd   : > { %8098 = vmatpush.bf16.msrb.mxu1 %v11999_v50  ;;  %8059 = vmatpush.bf16.msra.mxu2 %v12123_v3  ;;  %v12124_v50 = vld [vmem:[#allocation16 + $0x2d8] sm:$0xf0]  ;;  %v12250_v3 = vld [vmem:[#allocation16 + $0x3c8] sm:$0xf] }
 0x4fe   : > { %v12127_v27 = vor.u32 %v13217_v9, %v12124_v50  ;;  %v12204_v9 = vld [vmem:[#allocation16 + $0x378] sm:$0xf0] }
 0x4ff   : > { %8089 = vmatpush.bf16.msrb.mxu0 %v11807_v19  ;;  %v13169_v19 = vld [vmem:[#allocation16 + $0x14c] sm:$0xf] }
 0x500   : > { %v11935_v59 = vor.u32 %v13169_v19, %v11932_v37  ;;  %v13239_v19 = vld [vmem:[#allocation16 + $0x374] sm:$0xf0] }
 0x501   : > { %8099 = vmatpush.bf16.msrb.mxu1 %v11983_v8  ;;  %8060 = vmatpush.bf16.msra.mxu2 %v12107_v55  ;;  %v12251_v8 = vor.u32 %v13251_v5, %v12250_v3  ;;  %v13213_v55 = vld [vmem:[#allocation16 + $0x2ac] sm:$0xf] }
 0x502   : > { %v12111_v21 = vor.u32 %v13213_v55, %v12108_v18  ;;  %v13233_v5 = vld [vmem:[#allocation16 + $0x34c] sm:$0xf] }
 0x503   : > { %8090 = vmatpush.bf16.msrb.mxu0 %v11791_v28  ;;  %v13225_v18 = vld [vmem:[#allocation16 + $0x30c] sm:$0xf] }
 0x505   : > { %8100 = vmatpush.bf16.msrb.mxu1 %v11967_v34  ;;  %8061 = vmatpush.bf16.msra.mxu2 %v12091_v36  ;;  %v12235_v34 = vor.u32 %v13247_v42, %v12234_v20  ;;  %v13209_v36 = vld [vmem:[#allocation16 + $0x28c] sm:$0xf]  ;;  %v12156_v20 = vld [vmem:[#allocation16 + $0x318] sm:$0xf0] }
 0x506   : > { %v12095_v63 = vor.u32 %v13209_v36, %v12092_v22  ;;  %v12159_v42 = vor.u32 %v13225_v18, %v12156_v20 }
 0x507   : > { %8091 = vmatpush.bf16.msrb.mxu0 %v11775_v1  ;;  %v7099_v45 = vpop.f32.mrf.mxu0  ;;  %v12267_v1 = vor.u32 %v13255_v7, %v12266_v30 }
 0x508   : > { %v7100_v26 = vadd.f32 %v7099_v45, %v6289_v17  ;;  %v7112_v38 = vpop.f32.mrf.mxu1  ;;  %8014 = vmatmul.bf16.vlgmr.msrb.gmra.mxu2 %v15827_v31  ;;  %v12219_v17 = vor.u32 %v13243_v29, %v12218_v16 }
 0x509   : > { %8101 = vmatpush.bf16.msrb.mxu1 %v11951_v44  ;;  %8062 = vmatpush.bf16.msra.mxu2 %v12075_v10  ;;  %v12076_v44 = vld [vmem:[#allocation16 + $0x278] sm:$0xf0]  ;;  %v12202_v10 = vld [vmem:[#allocation16 + $0x368] sm:$0xf] }
 0x50a   : > { %8092 = vmatmul.bf16.vlgmr.msrb.gmra.mxu0 %v15816_v62  ;;  %v12058_v62 = vld [vmem:[#allocation16 + $0x248] sm:$0xf]  ;;  %v7113_v57 = vadd.f32 %v7112_v38, %v7100_v26  ;;  %v12203_v45 = vor.u32 %v13239_v19, %v12202_v10  ;;  %v13235_v38 = vld [vmem:[#allocation16 + $0x354] sm:$0xf0] }
 0x50b   : > { %v12059_v39 = vor.u32 %v13203_v0, %v12058_v62  ;;  %v13201_v62 = vld [vmem:[#allocation16 + $0x24c] sm:$0xf]  ;;  %v12060_v0 = vld [vmem:[#allocation16 + $0x258] sm:$0xf0]  ;;  %v12186_v26 = vld [vmem:[#allocation16 + $0x348] sm:$0xf] }
 0x50d   : > { %8102 = vmatpush.bf16.msrb.mxu1 %v11935_v59  ;;  %8063 = vmatpush.bf16.msra.mxu2 %v12059_v39  ;;  %v12063_v59 = vor.u32 %v13201_v62, %v12060_v0  ;;  %v12187_v39 = vor.u32 %v13235_v38, %v12186_v26 }
 0x50f   : > { %v7125_v32 = vpop.f32.mrf.mxu2  ;;  %v7101_v35 = vpop.f32.mrf.mxu0 }
 0x510   : > { %v7126_v28 = vadd.f32 %v7125_v32, %v7113_v57  ;;  %v7138_v58 = vpop.f32.mrf.mxu3  ;;  %v7114_v61 = vpop.f32.mrf.mxu1  ;;  %v12170_v57 = vld [vmem:[#allocation16 + $0x328] sm:$0xf]  ;;  %v13193_v32 = vld [vmem:[#allocation16 + $0x20c] sm:$0xf] }
 0x511   : > { %8103 = vmatpush.bf16.msrb.mxu1 %v11919_v24  ;;  %8064 = vmatpush.bf16.msra.mxu2 %v12043_v23  ;;  %v12171_v24 = vor.u32 %v13231_v40, %v12170_v57  ;;  %v12028_v23 = vld [vmem:[#allocation16 + $0x218] sm:$0xf0]  ;;  %v13249_v61 = vld [vmem:[#allocation16 + $0x3cc] sm:$0xf] }
 0x512   : > { %v7139_v4 = vadd.f32 %v7138_v58, %v7126_v28  ;;  %v13253_v28 = vld [vmem:[#allocation16 + $0x3ec] sm:$0xf]  ;;  %v12268_v58 = vld [vmem:[#allocation16 + $0x3f8] sm:$0xf0]  ;;  %v12031_v35 = vor.u32 %v13193_v32, %v12028_v23  ;;  %v12255_v52 = vor.u32 %v13249_v61, %v12252_v60  ;;  %v8155_v32 = vstv %s12272_s29 }
 0x513   : > { %v12271_v56 = vor.u32 %v13253_v28, %v12268_v58 }
 0x514   : > { %v7145_v54 = vmax.f32 %v7139_v4, 0.0  ;;  %v13245_v4 = vld [vmem:[#allocation16 + $0x3ac] sm:$0xf] }
 0x515   : > { %8104 = vmatpush.bf16.msrb.mxu1 %v11903_v6  ;;  %8065 = vmatpush.bf16.msra.mxu2 %v12027_v53  ;;  %v12236_v6 = vld [vmem:[#allocation16 + $0x3b8] sm:$0xf0]  ;;  %v13241_v53 = vld [vmem:[#allocation16 + $0x38c] sm:$0xf] }
 0x516   : > { %v15834_v11 = vpack.c.bf16 %v7145_v54, %v7145_v54  ;;  %v12239_v30 = vor.u32 %v13245_v4, %v12236_v6  ;;  %v12220_v54 = vld [vmem:[#allocation16 + $0x398] sm:$0xf0] }
 0x517   : > { %v7127_v14 = vpop.f32.mrf.mxu2 }
 0x518   : > { %v7140_v15 = vpop.f32.mrf.mxu3  ;;  %7975 = vmatmul.bf16.vlgmr.msra.gmra.mxu3 %v15834_v11  ;;  %8105 = vmatmul.bf16.vlgmr.msrb.gmra.mxu1 %v15821_v13  ;;  %v13205_v13 = vld [vmem:[#allocation16 + $0x26c] sm:$0xf]  ;;  %v12188_v14 = vld [vmem:[#allocation16 + $0x358] sm:$0xf0] }
 0x519   : > { %8110 = vmatpush.bf16.msrb.mxu2 %v12143_v2  ;;  %8071 = vmatpush.bf16.msra.mxu3 %v12267_v1  ;;  %v12079_v37 = vor.u32 %v13205_v13, %v12076_v44  ;;  %v12223_v2 = vor.u32 %v13241_v53, %v12220_v54  ;;  %v13237_v1 = vld [vmem:[#allocation16 + $0x36c] sm:$0xf] }
 0x51a   : > { %8066 = vmatmul.bf16.vlgmr.msra.gmra.mxu2 %v15827_v31  ;;  %v12207_v50 = vor.u32 %v13237_v1, %v12204_v9  ;;  %v13229_v15 = vld [vmem:[#allocation16 + $0x32c] sm:$0xf] }
 0x51d   : > { %8111 = vmatpush.bf16.msrb.mxu2 %v12127_v27  ;;  %8072 = vmatpush.bf16.msra.mxu3 %v12251_v8  ;;  %v12172_v27 = vld [vmem:[#allocation16 + $0x338] sm:$0xf0] }
 0x51e   : > { %v12175_v8 = vor.u32 %v13229_v15, %v12172_v27 }
 0x521   : > { %8112 = vmatpush.bf16.msrb.mxu2 %v12111_v21  ;;  %8073 = vmatpush.bf16.msra.mxu3 %v12235_v34 }
 0x525   : > { %8113 = vmatpush.bf16.msrb.mxu2 %v12095_v63  ;;  %8074 = vmatpush.bf16.msra.mxu3 %v12219_v17 }
 0x528   : > { %8027 = vmatmul.bf16.vlgmr.msrb.gmra.mxu3 %v15834_v11 }
 0x529   : > { %8114 = vmatpush.bf16.msrb.mxu2 %v12079_v37  ;;  %8075 = vmatpush.bf16.msra.mxu3 %v12203_v45  ;;  %v15845_v45 = vld [vmem:[#allocation18] sm:$0xf] }
 0x52a   : > { %v7280_v0 = vperm.slane %v15845_v45, 0  ;;  %v7281_v49 = vperm.slane %v15845_v45, 1  ;;  %v7282_v54 = vperm.slane %v15845_v45, 2 }
 0x52d   : > { %8115 = vmatpush.bf16.msrb.mxu2 %v12063_v59  ;;  %8076 = vmatpush.bf16.msra.mxu3 %v12187_v39 }
 0x531   : > { %8116 = vmatpush.bf16.msrb.mxu2 %v12047_v46  ;;  %8077 = vmatpush.bf16.msra.mxu3 %v12171_v24  ;;  %v8150_v24 = vstv %s8140_s28 }
 0x535   : > { %8117 = vmatpush.bf16.msrb.mxu2 %v12031_v35  ;;  %8078 = vmatpush.bf16.msra.mxu3 %v12155_v33 }
 0x537   : > { %v7937_v7 = vpop.f32.mrf.mxu0 }
 0x538   : > { %8118 = vmatmul.bf16.vlgmr.msrb.gmra.mxu2 %v15827_v31  ;;  %8079 = vmatmul.bf16.vlgmr.msra.gmra.mxu3 %v15834_v11  ;;  %v12191_v31 = vor.u32 %v13233_v5, %v12188_v14  ;;  %v7938_v26 = vadd.f32 %v7937_v7, %v7280_v0 }
 0x539   : > { %8123 = vmatpush.bf16.msrb.mxu3 %v12271_v56 }
 0x53d   : > { %8124 = vmatpush.bf16.msrb.mxu3 %v12255_v52 }
 0x53f   : > { %v7939_v3 = vpop.f32.mrf.mxu0 }
 0x541   : > { %8125 = vmatpush.bf16.msrb.mxu3 %v12239_v30 }
 0x545   : > { %8126 = vmatpush.bf16.msrb.mxu3 %v12223_v2 }
 0x547   : > { %v7989_v55 = vpop.f32.mrf.mxu0 }
 0x548   : > { %v7990_v61 = vadd.f32 %v7989_v55, %v7281_v49 }
 0x549   : > { %8127 = vmatpush.bf16.msrb.mxu3 %v12207_v50 }
 0x54d   : > { %8128 = vmatpush.bf16.msrb.mxu3 %v12191_v31 }
 0x54f   : > { %v7991_v21 = vpop.f32.mrf.mxu0 }
 0x551   : > { %8129 = vmatpush.bf16.msrb.mxu3 %v12175_v8 }
 0x555   : > { %8130 = vmatpush.bf16.msrb.mxu3 %v12159_v42  ;;  %v7950_v34 = vpop.f32.mrf.mxu1 }
 0x556   : > { %v7951_v59 = vadd.f32 %v7950_v34, %v7938_v26 }
 0x558   : > { %8131 = vmatmul.bf16.vlgmr.msrb.gmra.mxu3 %v15834_v11 }
 0x55d   : > { %v7952_v22 = vpop.f32.mrf.mxu1 }
 0x565   : > { %v8002_v29 = vpop.f32.mrf.mxu1 }
 0x566   : > { %v8003_v60 = vadd.f32 %v8002_v29, %v7990_v61 }
 0x567   : > { %v8041_v36 = vpop.f32.mrf.mxu0 }
 0x568   : > { %v8042_v3 = vadd.f32 %v8041_v36, %v7282_v54 }
 0x56d   : > { %v8004_v63 = vpop.f32.mrf.mxu1 }
 0x56f   : > { %v8043_v16 = vpop.f32.mrf.mxu0 }
 0x570   : > { %v7283_v16 = vperm.slane %v15845_v45, 3 }
 0x575   : > { %v8054_v17 = vpop.f32.mrf.mxu1 }
 0x576   : > { %v8055_v5 = vadd.f32 %v8054_v17, %v8042_v3 }
 0x57b   : > { %v7963_v44 = vpop.f32.mrf.mxu2 }
 0x57c   : > { %v7964_v39 = vadd.f32 %v7963_v44, %v7951_v59 }
 0x57d   : > { %v8056_v10 = vpop.f32.mrf.mxu1 }
 0x583   : > { %v7965_v37 = vpop.f32.mrf.mxu2 }
 0x587   : > { %v15843_v13 = vpop.f32.mrf.mxu0 }
 0x588   : > { %v8094_v29 = vadd.f32 %v15843_v13, %v7283_v16 }
 0x58b   : > { %v8015_v62 = vpop.f32.mrf.mxu2 }
 0x58c   : > { %v8016_v52 = vadd.f32 %v8015_v62, %v8003_v60 }
 0x58f   : > { %v8095_v19 = vpop.f32.mrf.mxu0 }
 0x593   : > { %v8017_v11 = vpop.f32.mrf.mxu2 }
 0x595   : > { %v8106_v38 = vpop.f32.mrf.mxu1 }
 0x596   : > { %v8107_v63 = vadd.f32 %v8106_v38, %v8094_v29 }
 0x59b   : > { %v7976_v51 = vpop.f32.mrf.mxu3 }
 0x59c   : > { %v7977_v25 = vadd.f32 %v7976_v51, %v7964_v39 }
 0x59d   : > { %v8067_v57 = vpop.f32.mrf.mxu2  ;;  %v8108_v46 = vpop.f32.mrf.mxu1 }
 0x59e   : > { %v8136_v40 = vmax.f32 %v7977_v25, 0.0  ;;  %v8068_v14 = vadd.f32 %v8067_v57, %v8055_v5 }
 0x5a0   : > { %v8142_v23 = vmax.f32 %v15775_v12, %v8136_v40  ;;  %v8146_v47 = vmin.f32 %v15775_v12, %v8136_v40 }
 0x5a2   : > { %v8151_v28 = vmul.f32 %v8150_v24, %v8142_v23  ;;  %v8156_v58 = vmul.f32 %v8155_v32, %v8146_v47 }
 0x5a3   : > { %v7978_v35 = vpop.f32.mrf.mxu3 }
 0x5a4   : > { %v8160_v33 = vadd.f32 %v8156_v58, %v8151_v28 }
 0x5a5   : > { %v8069_v56 = vpop.f32.mrf.mxu2 }
 0x5a6   : > { %13418 = vtanh.f32 %v8160_v33 }
 0x5ab   : > { %v8028_v4 = vpop.f32.mrf.mxu3 }
 0x5ac   : > { %v13419_v6 = vpop.eup %13418  ;;  %v8029_v30 = vadd.f32 %v8028_v4, %v8016_v52 }
 0x5ad   : > { %8168 = vst [vmem:[#allocation20] sm:$0xff] %v13419_v6 }
 0x5ae   : > { %v8137_v7 = vmax.f32 %v8029_v30, 0.0 }
 0x5b0   : > { %v8143_v53 = vmax.f32 %v15779_v41, %v8137_v7  ;;  %v8147_v12 = vmin.f32 %v15779_v41, %v8137_v7 }
 0x5b2   : > { %v8152_v2 = vmul.f32 %v8150_v24, %v8143_v53  ;;  %v8157_v1 = vmul.f32 %v8155_v32, %v8147_v12 }
 0x5b3   : > { %v8030_v9 = vpop.f32.mrf.mxu3 }
 0x5b4   : > { %v8161_v50 = vadd.f32 %v8157_v1, %v8152_v2 }
 0x5b6   : > { %13420 = vtanh.f32 %v8161_v50 }
 0x5bb   : > { %v8119_v31 = vpop.f32.mrf.mxu2  ;;  %v8080_v15 = vpop.f32.mrf.mxu3 }
 0x5bc   : > { %v13421_v27 = vpop.eup %13420  ;;  %v8081_v8 = vadd.f32 %v8080_v15, %v8068_v14  ;;  %v8120_v17 = vadd.f32 %v8119_v31, %v8107_v63 }
 0x5bd   : > { %8169 = vst [vmem:[#allocation20 + $0x8] sm:$0xff] %v13421_v27 }
 0x5be   : > { %v8138_v55 = vmax.f32 %v8081_v8, 0.0 }
 0x5c0   : > { %v8144_v18 = vmax.f32 %v15773_v43, %v8138_v55  ;;  %v8148_v41 = vmin.f32 %v15773_v43, %v8138_v55 }
 0x5c2   : > { %v8153_v20 = vmul.f32 %v8150_v24, %v8144_v18  ;;  %v8158_v42 = vmul.f32 %v8155_v32, %v8148_v41 }
 0x5c3   : > { %v8121_v21 = vpop.f32.mrf.mxu2  ;;  %v8082_v34 = vpop.f32.mrf.mxu3 }
 0x5c4   : > { %v8162_v22 = vadd.f32 %v8158_v42, %v8153_v20 }
 0x5c6   : > { %13422 = vtanh.f32 %v8162_v22 }
 0x5cc   : > { %v13423_v36 = vpop.eup %13422 }
 0x5cd   : > { %8170 = vst [vmem:[#allocation20 + $0x10] sm:$0xff] %v13423_v36 }
 0x5db   : > { %v8132_v44 = vpop.f32.mrf.mxu3 }
 0x5dc   : > { %v8133_v10 = vadd.f32 %v8132_v44, %v8120_v17 }
 0x5de   : > { %v8139_v19 = vmax.f32 %v8133_v10, 0.0 }
 0x5e0   : > { %v8145_v37 = vmax.f32 %v15777_v48, %v8139_v19  ;;  %v8149_v43 = vmin.f32 %v15777_v48, %v8139_v19 }
 0x5e2   : > { %v8154_v62 = vmul.f32 %v8150_v24, %v8145_v37  ;;  %v8159_v0 = vmul.f32 %v8155_v32, %v8149_v43 }
 0x5e3   : > { %v8134_v26 = vpop.f32.mrf.mxu3 }
 0x5e4   : > { %v8163_v11 = vadd.f32 %v8159_v0, %v8154_v62 }
 0x5e6   : > { %13424 = vtanh.f32 %v8163_v11 }
 0x5ec   : > { %v13425_v59 = vpop.eup %13424 }
 0x5ed   : > { %8171 = vst [vmem:[#allocation20 + $0x18] sm:$0xff] %v13425_v59 }
 0x5ee PF: > { %p13348_p3 = scmp.eq.s32.totalorder %s13896_s20, 1  ;;  %s13816_s19 = smov [#allocation20]  }
 0x5ef   : > { %s8178_s27 = sshll.u32 %s13816_s19, 4  ;;  %s8180_s15 = sshll.u32 %s15887_s10, 4  ;;  %s8179_s27 = int_to_ptr.vmem [resolvable:$true] %s8178_s27  ;;  %s8181_s15 = int_to_ptr.hbm [resolvable:$true] %s8180_s15 }
 0x5f0   : > { %13298 = dma.vmem_to_hbm [thread:$0]  (%p13348_p3), %s8179_s27, 512, %s8181_s15, [#allocation5]  }
 0x5f1   : > { %13784 = dma.done.wait (%p13348_p3), [#allocation5], 512  }
 0x5f2   : > { %13786 = vsyncadd (%p13348_p3), [#allocation5], 4294966784 }
 0x5f3 PF: > { %s15912_s16 = sld [smem:[#allocation30_spill]]  ;;  %s15915_s13 = smov %s13793_s14 }
 0x5f4   : > { %s15913_s11 = sld [smem:[#allocation29_spill]] }
 0x5f5   : > { %s15914_s15 = sld [smem:[#allocation31_spill]] }
 0x5f9   : > { %p28_p4 = scmp.ge.s32.totalorder %s15912_s16, 4  }
 0x5fa   : > { %s15916_s14 = smov %s15913_s11 }
 0x5fb   :  { %30 = sbr.rel (!%p28_p4) target bundleno = 15 (0xf), region = 159 }
 0x600   :  { %8194 = vsyncpa [#allocation4], 1 }
 0x601   :  { %8196 = vsyncpa [#allocation4 + $0x1], 1 }
 0x602   :  { %8197 = vsyncpa [#allocation8], 1 }
 0x603   :  { %8199 = vsyncpa [#allocation8 + $0x1], 1 }
 0x604   :  { %8200 = vsyncpa [#allocation11], 1 }
 0x605   :  { %8202 = vsyncpa [#allocation11 + $0x1], 1 }
 0x606   :  { %8203 = vsyncpa [#allocation14], 1 }
 0x607   :  { %8204 = vsyncpa [#allocation17], 1 }
 0x608   :  { %8205 = vsyncpa [#allocation5], 1 }
 0x609   :  { %8207 = vsyncpa [#allocation5 + $0x1], 1 }
 0x60a   :  { %8208 = vsyncpa [#allocation6], 1 }
 0x60b   :  { %8210 = vsyncpa [#allocation6 + $0x1], 1 }

</bundles_post_ra>
